<compile_context>
chip_gen: v7x
topology: tpu7x:2x2x1
jax: 0.10.0
libtpu: 0.0.40
codegen_flags: <defaults>
</compile_context>

<pallas_src>
import functools

import jax
import jax.numpy as jnp
import numpy as np
from jax.experimental import pallas as pl
from jax.experimental.pallas import tpu as pltpu


def _reorg_kernel(x_ref, d_ref, o_ref, *, chunk, out_w, store_plan, precision):
    # x_ref: (1, R, n_chunks*chunk)  d_ref: (chunk, chunk)  o_ref: (1, s*s, R, out_w)
    x = x_ref[0]                                   # (R, n_chunks*chunk)
    d = d_ref[...]                                 # 0/1 permutation (chunk, chunk)
    n_chunks = x.shape[-1] // chunk
    ys = []
    for g in range(n_chunks):                      # static: s (block-diag path) or 1 (folded)
        xg = x[:, g * chunk:(g + 1) * chunk]
        yg = jnp.dot(xg, d, preferred_element_type=jnp.float32, precision=precision)
        ys.append(yg.astype(o_ref.dtype))
    # s*s lane-dense stores: each slice is a static-offset slab of out_w lanes (>=128
    # after folding, or the full output width), so no masked partial-lane store path.
    for q, (g, off) in enumerate(store_plan):
        o_ref[0, q, :, :] = ys[g][:, off:off + out_w]


def _deinterleave_matrix(s, W, dtype):
    """D[j*s + dj, dj*Wo + j] = 1 — de-interleave of one W-wide lane chunk.

    The full (s*W, s*W) permutation is block-diagonal with s copies of this block,
    so the kernel reuses ONE (W, W) matrix for all di chunks (r == 1 path)."""
    Wo = W // s
    D = np.zeros((W, W), dtype=np.float32)
    for j in range(Wo):
        for dj in range(s):
            D[j * s + dj, dj * Wo + j] = 1.0
    return jnp.asarray(D, dtype=dtype)


def _folded_perm_matrix(s, W, r, dtype):
    """P[t*sW + di*W + j*s + dj, (di*s+dj)*(r*Wo) + t*Wo + j] = 1.

    De-interleave with r input rows folded into the lane axis; output lanes are ordered
    (q, t, j) so each q gets a contiguous, lane-dense slab of r*Wo lanes."""
    Wo = W // s
    sW = s * W
    L = r * sW
    out_w = r * Wo
    P = np.zeros((L, L), dtype=np.float32)
    for t in range(r):
        for di in range(s):
            for dj in range(s):
                q = di * s + dj
                for j in range(Wo):
                    P[t * sW + di * W + j * s + dj, q * out_w + t * Wo + j] = 1.0
    return jnp.asarray(P, dtype=dtype)


def _pick_fold(CHo, Wo, sW, itemsize, lane_target=128, p_cap_bytes=2 << 20):
    """Smallest divisor r of C*Ho with r*Wo >= lane_target (lane-dense output stores),
    capped so the folded (r*sW)^2 permutation matrix stays small in VMEM."""
    if Wo >= lane_target:
        return 1
    best = 1
    for r in range(1, CHo + 1):
        if CHo % r != 0:
            continue
        if (r * sW) * (r * sW) * itemsize > p_cap_bytes:
            break
        best = r
        if r * Wo >= lane_target:
            return r
    return best


def _pick_row_tile(rows, bytes_per_row, pack, batch, budget_bytes=8 << 20, min_steps=4):
    """Largest row tile whose (in + out) blocks fit budget_bytes (in and out blocks are
    equal-sized), preferring tiles that leave >= min_steps total grid steps so both v7x
    TensorCores and the software pipeline have work.  Tiles must divide `rows` and be
    sublane-pack aligned (8 f32 / 16 bf16) or equal the full dim."""
    cands = [t for t in range(rows, 0, -1)
             if rows % t == 0 and (t % pack == 0 or t == rows)]
    in_budget = [t for t in cands if 2 * t * bytes_per_row <= budget_bytes]
    if in_budget:
        enough = [t for t in in_budget if batch * (rows // t) >= min_steps]
        return enough[0] if enough else in_budget[0]
    return cands[-1]


def reorg_pallas(x, stride=2):
    assert x.ndim == 4
    # TODO(synk): integer dtypes need a non-MXU copy-based variant (no int MXU on v7x).
    assert jnp.issubdtype(x.dtype, jnp.floating), "floating-point activations expected"
    B, C, H, W = x.shape
    s = int(stride)
    assert H % s == 0, f"stride {s} does not divide height {H}"
    assert W % s == 0, f"stride {s} does not divide width {W}"
    Ho, Wo = H // s, W // s
    sW = s * W
    CHo = C * Ho
    itemsize = x.dtype.itemsize
    pack = max(8, 32 // itemsize)          # sublane packing: 8 for f32, 16 for bf16

    # Row-fold factor for lane-dense output stores (r == 1 when Wo is already >= 128).
    r = _pick_fold(CHo, Wo, sW, itemsize)
    L = r * sW                              # folded input lane width
    out_w = r * Wo                          # folded per-q output lane width
    rows = CHo // r                         # folded row count

    if r == 1:
        # Block-diagonal permutation: one shared (W, W) block, s dots per grid step.
        chunk = W
        D = _deinterleave_matrix(s, W, x.dtype)
        store_plan = tuple((q // s, (q % s) * Wo) for q in range(s * s))
    else:
        # Folded permutation: one (r*sW, r*sW) dot, s*s lane-dense (>=128 lane) stores.
        chunk = L
        D = _folded_perm_matrix(s, W, r, x.dtype)
        store_plan = tuple((0, q * out_w) for q in range(s * s))

    R = _pick_row_tile(rows, L * itemsize, pack, B)
    grid = (B, rows // R)

    # Exact for f32 (multi-pass MXU); bf16 keeps the fast default single-pass path.
    precision = (jax.lax.Precision.HIGHEST
                 if x.dtype == jnp.float32 else jax.lax.Precision.DEFAULT)

    kernel = functools.partial(_reorg_kernel, chunk=chunk, out_w=out_w,
                               store_plan=store_plan, precision=precision)

    # glue: pure row-major views only (no data movement outside the kernel).
    x2 = x.reshape(B, rows, L)

    n_chunks = L // chunk
    flops = 2 * B * rows * n_chunks * chunk * chunk
    bytes_accessed = 2 * B * C * H * W * itemsize + chunk * chunk * itemsize

    out = pl.pallas_call(
        kernel,
        out_shape=jax.ShapeDtypeStruct((B, s * s, rows, out_w), x.dtype),
        grid=grid,
        in_specs=[
            pl.BlockSpec((1, R, L), lambda b, m: (b, m, 0)),
            pl.BlockSpec((chunk, chunk), lambda b, m: (0, 0)),  # resident permutation
        ],
        out_specs=pl.BlockSpec((1, s * s, R, out_w), lambda b, m: (b, 0, m, 0)),
        compiler_params=pltpu.CompilerParams(
            dimension_semantics=("parallel", "parallel"),
            vmem_limit_bytes=32 * 1024 * 1024,
        ),
        cost_estimate=pl.CostEstimate(
            flops=flops, transcendentals=0, bytes_accessed=bytes_accessed),
    )(x2, D)

    # glue: free view back to PyTorch's (B, s*s*C, Ho, Wo) layout (channel = q*C + c).
    return out.reshape(B, s * s * C, Ho, Wo)


def reorg_reference(x, stride=2):
    B, C, H, W = x.shape
    s = stride
    y = x.reshape(B, C, H // s, s, W // s, s)
    y = jnp.transpose(y, (0, 3, 5, 1, 2, 4))
    return y.reshape(B, s * s * C, H // s, W // s)


if __name__ == "__main__":
    key = jax.random.PRNGKey(0)
    B, C, H, W = 2, 4, 16, 16
    x = jax.random.normal(key, (B, C, H, W), dtype=jnp.float32)

    out = reorg_pallas(x, stride=2)
    out = jax.block_until_ready(out)

    ref = reorg_reference(x, stride=2)
    assert out.shape == (B, 4 * C, H // 2, W // 2), out.shape
    assert out.dtype == x.dtype
    np.testing.assert_allclose(np.asarray(out), np.asarray(ref), rtol=0, atol=0)

    print("KERNEL_OK")
</pallas_src>

<mosaic_0001>
module attributes {stable_mosaic.version = 11 : i64} {
  func.func @_reorg_kernel(%arg0: i32, %arg1: i32, %arg2: memref<1x2x512xf32, #tpu.memory_space<vmem>>, %arg3: memref<512x512xf32, #tpu.memory_space<vmem>>, %arg4: memref<1x4x2x128xf32, #tpu.memory_space<vmem>>) attributes {dimension_semantics = [#tpu.dimension_semantics<parallel>, #tpu.dimension_semantics<parallel>], iteration_bounds = array<i64: 2, 1>, scalar_prefetch = 0 : i64, scratch_operands = 0 : i64, tpu.core_type = #tpu.core_type<tc>, window_params = [{transform_indices = @transform_0, window_bounds = array<i64: 1, 2, 512>}, {pipeline_mode = #tpu.pipeline_mode<synchronous>, transform_indices = @transform_1, window_bounds = array<i64: 512, 512>}, {transform_indices = @transform_2, window_bounds = array<i64: 1, 4, 2, 128>}]} {
    %c0 = arith.constant 0 : index
    %c0_0 = arith.constant 0 : index
    %c0_1 = arith.constant 0 : index
    %0 = vector.load %arg2[%c0, %c0_0, %c0_1] : memref<1x2x512xf32, #tpu.memory_space<vmem>>, vector<1x2x512xf32>
    %1 = vector.shape_cast %0 : vector<1x2x512xf32> to vector<2x512xf32>
    %c0_2 = arith.constant 0 : index
    %c0_3 = arith.constant 0 : index
    %2 = vector.load %arg3[%c0_2, %c0_3] : memref<512x512xf32, #tpu.memory_space<vmem>>, vector<512x512xf32>
    %cst = arith.constant dense<0.000000e+00> : vector<2x512xf32>
    %3 = tpu.matmul %1, %2, %cst {dimension_numbers = #tpu.dot_dimension_numbers<[1], [0], [0], [1], [0, 0, 1, 1], [], []>, precision = #tpu.contract_precision<fp32>} : vector<2x512xf32>, vector<512x512xf32>, vector<2x512xf32> -> vector<2x512xf32>
    %4 = vector.extract_strided_slice %3 {offsets = [0, 0], sizes = [2, 128], strides = [1, 1]} : vector<2x512xf32> to vector<2x128xf32>
    %c0_4 = arith.constant 0 : index
    %c0_5 = arith.constant 0 : index
    %c0_6 = arith.constant 0 : index
    %c0_7 = arith.constant 0 : index
    %5 = vector.load %arg4[%c0_4, %c0_5, %c0_6, %c0_7] : memref<1x4x2x128xf32, #tpu.memory_space<vmem>>, vector<1x1x2x128xf32>
    %6 = vector.shape_cast %5 : vector<1x1x2x128xf32> to vector<2x128xf32>
    %7 = vector.shape_cast %4 : vector<2x128xf32> to vector<1x1x2x128xf32>
    tpu.vector_store %arg4[%c0_4, %c0_5, %c0_6, %c0_7], %7 {strides = array<i32>} : memref<1x4x2x128xf32, #tpu.memory_space<vmem>>, vector<1x1x2x128xf32>,
    %8 = vector.extract_strided_slice %3 {offsets = [0, 128], sizes = [2, 128], strides = [1, 1]} : vector<2x512xf32> to vector<2x128xf32>
    %c0_8 = arith.constant 0 : index
    %c1 = arith.constant 1 : index
    %c0_9 = arith.constant 0 : index
    %c0_10 = arith.constant 0 : index
    %9 = vector.load %arg4[%c0_8, %c1, %c0_9, %c0_10] : memref<1x4x2x128xf32, #tpu.memory_space<vmem>>, vector<1x1x2x128xf32>
    %10 = vector.shape_cast %9 : vector<1x1x2x128xf32> to vector<2x128xf32>
    %11 = vector.shape_cast %8 : vector<2x128xf32> to vector<1x1x2x128xf32>
    tpu.vector_store %arg4[%c0_8, %c1, %c0_9, %c0_10], %11 {strides = array<i32>} : memref<1x4x2x128xf32, #tpu.memory_space<vmem>>, vector<1x1x2x128xf32>,
    %12 = vector.extract_strided_slice %3 {offsets = [0, 256], sizes = [2, 128], strides = [1, 1]} : vector<2x512xf32> to vector<2x128xf32>
    %c0_11 = arith.constant 0 : index
    %c2 = arith.constant 2 : index
    %c0_12 = arith.constant 0 : index
    %c0_13 = arith.constant 0 : index
    %13 = vector.load %arg4[%c0_11, %c2, %c0_12, %c0_13] : memref<1x4x2x128xf32, #tpu.memory_space<vmem>>, vector<1x1x2x128xf32>
    %14 = vector.shape_cast %13 : vector<1x1x2x128xf32> to vector<2x128xf32>
    %15 = vector.shape_cast %12 : vector<2x128xf32> to vector<1x1x2x128xf32>
    tpu.vector_store %arg4[%c0_11, %c2, %c0_12, %c0_13], %15 {strides = array<i32>} : memref<1x4x2x128xf32, #tpu.memory_space<vmem>>, vector<1x1x2x128xf32>,
    %16 = vector.extract_strided_slice %3 {offsets = [0, 384], sizes = [2, 128], strides = [1, 1]} : vector<2x512xf32> to vector<2x128xf32>
    %c0_14 = arith.constant 0 : index
    %c3 = arith.constant 3 : index
    %c0_15 = arith.constant 0 : index
    %c0_16 = arith.constant 0 : index
    %17 = vector.load %arg4[%c0_14, %c3, %c0_15, %c0_16] : memref<1x4x2x128xf32, #tpu.memory_space<vmem>>, vector<1x1x2x128xf32>
    %18 = vector.shape_cast %17 : vector<1x1x2x128xf32> to vector<2x128xf32>
    %19 = vector.shape_cast %16 : vector<2x128xf32> to vector<1x1x2x128xf32>
    tpu.vector_store %arg4[%c0_14, %c3, %c0_15, %c0_16], %19 {strides = array<i32>} : memref<1x4x2x128xf32, #tpu.memory_space<vmem>>, vector<1x1x2x128xf32>,
    return
  }
  func.func @transform_0(%arg0: i32, %arg1: i32) -> (i32, i32, i32) {
    %c0_i32 = arith.constant 0 : i32
    %c0_i32_0 = arith.constant 0 : i32
    return %arg0, %arg1, %c0_i32 : i32, i32, i32
  }
  func.func @transform_1(%arg0: i32, %arg1: i32) -> (i32, i32) {
    %c0_i32 = arith.constant 0 : i32
    %c0_i32_0 = arith.constant 0 : i32
    %c0_i32_1 = arith.constant 0 : i32
    return %c0_i32, %c0_i32_0 : i32, i32
  }
  func.func @transform_2(%arg0: i32, %arg1: i32) -> (i32, i32, i32, i32) {
    %c0_i32 = arith.constant 0 : i32
    %c0_i32_0 = arith.constant 0 : i32
    %c0_i32_1 = arith.constant 0 : i32
    return %arg0, %c0_i32, %arg1, %c0_i32_0 : i32, i32, i32, i32
  }
}

</mosaic_0001>

<bundles_post_ra>
// kernel: tpu_custom_call.1
= control target key start
LH: loop header
LB: loop body
LE: loop exit
PB: predicated region body
PF: predicated region fallthrough
CT: control target
= control target key end

     0   :  { %7 = vsyncpa [#allocation3], 0  ;;  %s11321_s0 = inlined_call_operand.hbm [shape: f32[2,2,512], index: 0, kind: input, shape index: {}]   ;;  %s11322_s1 = inlined_call_operand.hbm [shape: f32[512,512], index: 1, kind: input, shape index: {}]   ;;  %s11323_s2 = inlined_call_operand.hbm [shape: f32[2,4,2,128], index: 2, kind: output, shape index: {}]  }
   0x1   :  { %9 = vsyncpa [#allocation3 + $0x1], 0 }
   0x2   :  { %10 = vsyncpa [#allocation6], 0 }
   0x3   :  { %11 = vsyncpa [#allocation4], 0 }
   0x4   :  { %13 = vsyncpa [#allocation4 + $0x1], 0  ;;  %s7578_s9 = smov 0   ;;  %s7580_s10 = smov 0  }
   0x5   :  { %s7582_s11 = smov 0   ;;  %s7584_s12 = smov 0  }
   0x6   :  { %s7586_s13 = smov 0   ;;  %s7588_s14 = smov 0  }
   0x7 LB: > { %s5726_s15 = sadd.s32 4294967295, %s7553_s14   ;;  %s5727_s16 = sadd.s32 4294967294, %s7553_s14   ;;  %s7553_s14 = sphi %s7588_s14, %s19_s14   ;;  %s7549_s13 = sphi %s7586_s13, %s13937_s13   ;;  %s7545_s12 = sphi %s7584_s12, %s13936_s12   ;;  %s7541_s11 = sphi %s7582_s11, %s13935_s11   ;;  %s7537_s10 = sphi %s7580_s10, %s13934_s10   ;;  %s7533_s9 = sphi %s7578_s9, %s13933_s9  }
   0x8   : > { %p53_p0 = scmp.ne.s32.totalorder %s7537_s10, %s7533_s9  ;;  %p7612_p1 = scmp.eq.s32.totalorder %s5726_s15, 0 }
   0x9   : > { %p7616_p2 = scmp.eq.s32.totalorder %s5726_s15, 1  ;;  %p106_p3 = scmp.eq.s32.totalorder %s5727_s16, 1 }
   0xa   : > { %s12202_s17 = scalar_select %p7612_p1, 1, 0 }
   0xb   : > { %s12203_s18 = scalar_select %p7616_p2, 1, 0 }
   0xc   : > { %p7622_p4 = por %p7612_p1, %p53_p0  ;;  %p5728_p5 = scmp.ge.s32.totalorder %s7553_s14, 1 }
   0xd   : > { %p7627_p6 = por %p106_p3, %p53_p0  ;;  %p113_p7 = scmp.lt.s32.totalorder %s7553_s14, 3 }
   0xe   : > { %s12204_s19 = scalar_select %p7622_p4, 1, 0 }
   0xf   : > { %s12205_s20 = scalar_select %p7627_p6, 1, 0 }
  0x10   : > { %p7632_p8 = pnand %p5728_p5, %p113_p7  ;;  %s7555_s22 = smov [#allocation5]  }
  0x11   : > { %s125_s23 = sshll.u32 %s7555_s22, 4  ;;  %s31_s25 = sadd.s32 1, %s7549_s13  ;;  %s126_s23 = int_to_ptr.vmem [resolvable:$true] %s125_s23 }
  0x12   : > { %s12206_s21 = scalar_select %p7632_p8, 1, 0 }
  0x13   : > { %p7336_p9 = pneg %p7632_p8  ;;  %s7409_s28 = scalar_lea.hbm %s11322_s1, 32768 }
  0x14   : > { %p7410_p12 = scmp.ne.s32.totalorder %s11322_s1, %s7409_s28  ;;  %p7416_p5 = scmp.lt.u32.totalorder %s7409_s28, %s11322_s1 }
  0x15   : > { %p7641_p11 = pnand %p7336_p9, %p7612_p1 }
  0x17   : > { %p7411_p13 = pneg %p7641_p11 }
  0x19   : > { %p7412_p0 = pnand %p7411_p13, %p7410_p12 }
  0x1b   : > { %p7413_p3 = pneg %p7412_p0 }
  0x1d   : > { %p7418_p7 = pnand %p7416_p5, %p7413_p3 }
  0x1f   : > { %7421 = shalt.err (!%p7418_p7)
}
  0x20   : > { %s7422_s5 = scalar_lea.vmem %s126_s23, 32768  ;;  %p7430_p1 = scmp.lt.s32.totalorder %s126_s23, %s126_s23 }
  0x21   : > { %p7423_p9 = scmp.ne.s32.totalorder %s126_s23, %s7422_s5  ;;  %p7431_p4 = scmp.lt.s32.totalorder %s7422_s5, %s7422_s5 }
  0x23   : > { %p7425_p10 = pnand %p7423_p9, %p7411_p13  ;;  %p7432_p8 = por %p7431_p4, %p7430_p1 }
  0x25   : > { %p7426_p6 = pneg %p7425_p10 }
  0x27   : > { %p7433_p2 = pnand %p7432_p8, %p7426_p6 }
  0x29   : > { %7436 = shalt.err (!%p7433_p2)
}
  0x2a   : > { %s7556_s6 = smov 512   ;;  %s7557_s7 = smov 32  }
  0x2b   : > { %7339 = dma.hbm_to_vmem [thread:$0]  (!%p7641_p11), %s11322_s1, 32768, %s126_s23, [#allocation6], %s7556_s6, %s7556_s6, %s7557_s7  }
  0x2c   : > { %p33_p1 = scmp.ge.s32.totalorder %s31_s25, 2  ;;  %s40_s16 = sadd.s32 1, %s7541_s11 }
  0x2d   : > { %p47_p2 = scmp.ne.s32.totalorder %s7541_s11, %s7537_s10  ;;  %p48_p4 = scmp.eq.s32.totalorder %s7553_s14, 0 }
  0x2e   : > { %s13939_s25 = smov (%p33_p1, %s31_s25), 0  ;;  %p12209_p8 = scmp.ne.s32.totalorder %s12203_s18, 0 }
  0x2f   : > { %p7668_p6 = por %p48_p4, %p47_p2  ;;  %s35_s24 = ssub.s32 %s7549_s13, %s13939_s25 }
  0x30   : > { %p7674_p10 = por %p12209_p8, %p47_p2  ;;  %p7349_p12 = scmp.lt.s32.totalorder %s7553_s14, 2 }
  0x31   : > { %p38_p11 = scmp.eq.s32.totalorder %s35_s24, 0  ;;  %s139_s23 = sand.u32 1, %s7541_s11  }
  0x32   : > { %s5731_s27 = sshll.u32 %s139_s23, 3  ;;  %s5746_s29 = sshll.u32 %s7549_s13, 7 }
  0x33   : > { %s7683_s28 = scalar_select %p38_p11, %s7541_s11, %s40_s16  }
  0x34   : > { %s7689_s4 = scalar_lea.hbm %s11321_s0, %s5746_s29  ;;  %s143_s18 = scalar_lea.vmem [#allocation2], %s5731_s27 }
  0x35   : > { %s153_s5 = sshll.u32 %s143_s18, 4  ;;  %p7695_p13 = pnand %p7349_p12, %p7668_p6  ;;  %s7691_s5 = int_to_ptr.vmem [resolvable:$true] %s153_s5 }
  0x36   : > { %s140_s7 = scalar_lea.sflag [#allocation3], %s139_s23  ;;  %s7437_s8 = scalar_lea.hbm %s7689_s4, 128 }
  0x37   : > { %p7438_p0 = scmp.ne.s32.totalorder %s7689_s4, %s7437_s8  ;;  %p7439_p3 = pneg %p7695_p13 }
  0x38   : > { %s7442_s24 = scalar_lea.hbm %s11321_s0, 256  ;;  %p7443_p9 = scmp.lt.u32.totalorder %s7689_s4, %s11321_s0 }
  0x39   : > { %p7440_p5 = pnand %p7439_p3, %p7438_p0  ;;  %p7444_p1 = scmp.lt.u32.totalorder %s7442_s24, %s7437_s8 }
  0x3a   : > { %p7446_p4 = scmp.lt.u32.totalorder %s7437_s8, %s7689_s4 }
  0x3b   : > { %p7441_p7 = pneg %p7440_p5  ;;  %p7445_p2 = por %p7444_p1, %p7443_p9 }
  0x3d   : > { %p7447_p6 = por %p7446_p4, %p7445_p2 }
  0x3f   : > { %p7448_p8 = pnand %p7447_p6, %p7441_p7 }
  0x41   : > { %7451 = shalt.err (!%p7448_p8)
}
  0x42   : > { %s7452_s23 = scalar_lea.vmem %s7691_s5, 128  ;;  %s7558_s29 = smov [#allocation2]  }
  0x43   : > { %p7453_p12 = scmp.ne.s32.totalorder %s7691_s5, %s7452_s23  ;;  %s7457_s30 = sshll.u32 %s7558_s29, 4  ;;  %s7458_s30 = int_to_ptr.vmem [resolvable:$false] %s7457_s30 }
  0x44   : > { %s7459_s3 = scalar_lea.vmem %s7458_s30, 256  ;;  %p7460_p5 = scmp.lt.s32.totalorder %s7691_s5, %s7458_s30 }
  0x45   : > { %p7455_p11 = pnand %p7453_p12, %p7439_p3  ;;  %p7461_p9 = scmp.lt.s32.totalorder %s7459_s3, %s7452_s23 }
  0x47   : > { %p7456_p0 = pneg %p7455_p11  ;;  %p7462_p1 = por %p7461_p9, %p7460_p5 }
  0x49   : > { %p7463_p2 = pnand %p7462_p1, %p7456_p0 }
  0x4b   : > { %7466 = shalt.err (!%p7463_p2)
}
  0x4c   : > { %7343 = dma.hbm_to_vmem [thread:$0]  (!%p7695_p13), %s7689_s4, 128, %s7691_s5, %s140_s7  }
  0x4d   : > { %p12212_p7 = scmp.ne.s32.totalorder %s12206_s21, 0 }
  0x4f   : > { %162 = sbr.rel (%p12212_p7) target bundleno = 1195 (0x4ab), region = 28 }
  0x56   : > { %s7727_s18 = sand.u32 1, %s7537_s10   ;;  %p12213_p3 = scmp.ne.s32.totalorder %s12204_s19, 0 }
  0x57   : > { %s5735_s8 = sshll.u32 %s7727_s18, 3  ;;  %s165_s15 = scalar_lea.sflag [#allocation3], %s7727_s18 }
  0x58   : > { %s7733_s16 = scalar_lea.vmem [#allocation2], %s5735_s8 }
  0x59   : > { %7520 = dma.done.wait (%p12213_p3), %s165_s15, 128  }
  0x5a   : > { %7522 = vsyncadd (%p12213_p3), %s165_s15, 4294967168  ;;  %p12214_p13 = scmp.ne.s32.totalorder %s12202_s17, 0 }
  0x5c   : > { %7524 = dma.done.wait (%p12214_p13), [#allocation6], 32768  }
  0x5d   : > { %7526 = vsyncadd (%p12214_p13), [#allocation6], 4294934528  ;;  %v7559_v0 = vmov 1983009808   ;;  %v455_v2 = vlaneseq  ;;  %v195_v5 = vld [vmem:[#allocation5 + $0x8] sm:$0xff]  ;;  %v197_v7 = vld [vmem:[#allocation5 + $0x18] sm:$0xff] }
  0x5e   : > { %v453_v1 = vunpack.c.l.s4 %v7559_v0  ;;  %v199_v6 = vld [vmem:[#allocation5 + $0x28] sm:$0xff]  ;;  %v472_v8 = vand.u32 4294901760, %v195_v5  ;;  %v201_v10 = vld [vmem:[#allocation5 + $0x38] sm:$0xff]  ;;  %v3040_v11 = vand.u32 4294901760, %v197_v7  ;;  %v194_v12 = vld [vmem:[#allocation5] sm:$0xff]  ;;  %s192_s17 = scalar_lea.vmem [#allocation7], %s5735_s8 }
  0x5f   : > { %v456_v4 = vshrl.u32 %v455_v2, 7  ;;  %v476_v9 = vand.u32 4294901760, %v199_v6  ;;  %v198_v13 = vld [vmem:[#allocation5 + $0x20] sm:$0xff]  ;;  %v3044_v14 = vand.u32 4294901760, %v201_v10  ;;  %v474_v15 = vand.u32 4294901760, %v194_v12  ;;  %v196_v17 = vld [vmem:[#allocation5 + $0x10] sm:$0xff] }
  0x60   : > { %v454_v3 = vunpack.c.0.s8 %v453_v1  ;;  %v478_v16 = vand.u32 4294901760, %v198_v13  ;;  %v200_v18 = vld [vmem:[#allocation5 + $0x30] sm:$0xff]  ;;  %v203_v19 = vld [vmem:[#allocation5 + $0x48] sm:$0xff]  ;;  %v7747_v22 = vsub.f32 %v195_v5, %v472_v8  ;;  %v7751_v24 = vsub.f32 %v197_v7, %v3040_v11  ;;  %v205_v26 = vld [vmem:[#allocation5 + $0x58] sm:$0xff]  ;;  %s5630_s19 = sshll.u32 %s192_s17, 4  ;;  %s5747_s21 = sshll.u32 %s7545_s12, 7  ;;  %s11267_s19 = int_to_ptr.vmem [resolvable:$true] %s5630_s19 }
  0x61   : > { %v7745_v21 = vpack.c.bf16 %v476_v9, %v472_v8  ;;  %v7749_v23 = vsub.f32 %v199_v6, %v476_v9  ;;  %v207_v25 = vld [vmem:[#allocation5 + $0x68] sm:$0xff]  ;;  %v209_v27 = vld [vmem:[#allocation5 + $0x78] sm:$0xff]  ;;  %v7753_v28 = vpack.c.bf16 %v3044_v14, %v3040_v11  ;;  %v7755_v29 = vsub.f32 %v201_v10, %v3044_v14  ;;  %v202_v32 = vld [vmem:[#allocation5 + $0x40] sm:$0xff]  ;;  %s11272_s6 = scalar_lea.hbm %s11323_s2, %s5747_s21  ;;  %s5616_s7 = scalar_lea.sflag [#allocation4], %s7727_s18 }
  0x62   : > { %v7743_v20 = vsub.s32 %v454_v3, %v456_v4  ;;  %12217 = vst [vmem:[#allocation13_spill] sm:$0xff] %v7747_v22  ;;  %12219 = vst [vmem:[#allocation15_spill] sm:$0xff] %v7751_v24  ;;  %v7757_v30 = vpack.c.bf16 %v478_v16, %v474_v15  ;;  %v7759_v31 = vsub.f32 %v194_v12, %v474_v15  ;;  %v3042_v34 = vand.u32 4294901760, %v196_v17  ;;  %v206_v37 = vld [vmem:[#allocation5 + $0x60] sm:$0xff]  ;;  %v204_v42 = vld [vmem:[#allocation5 + $0x50] sm:$0xff]  ;;  %s7467_s12 = scalar_lea.vmem %s11267_s19, 128 }
  0x63   : > { %12216 = vst [vmem:[#allocation12_spill] sm:$0xff] %v7745_v21  ;;  %12218 = vst [vmem:[#allocation14_spill] sm:$0xff] %v7749_v23  ;;  %5749 = vmatprep.subr.bf16.mxu0 %v7745_v21  ;;  %v7762_v33 = vsub.f32 %v198_v13, %v478_v16  ;;  %v3046_v35 = vand.u32 4294901760, %v200_v18  ;;  %v480_v36 = vand.u32 4294901760, %v203_v19  ;;  %6517 = vmatprep.subr.bf16.mxu1 %v7753_v28  ;;  %v484_v38 = vand.u32 4294901760, %v207_v25  ;;  %v208_v43 = vld [vmem:[#allocation5 + $0x70] sm:$0xff]  ;;  %p7468_p4 = scmp.ne.s32.totalorder %s11267_s19, %s7467_s12 }
  0x64   : > { %12215 = vst [vmem:[#allocation11_spill] sm:$0xff] %v7743_v20  ;;  %12220 = vst [vmem:[#allocation16_spill] sm:$0xff] %v7753_v28  ;;  %5751 = vmatpush1.bf16.msra.mxu0 %v7757_v30  ;;  %v3048_v39 = vand.u32 4294901760, %v205_v26  ;;  %v3052_v40 = vand.u32 4294901760, %v209_v27  ;;  %v482_v41 = vand.u32 4294901760, %v202_v32  ;;  %v7768_v45 = vsub.f32 %v196_v17, %v3042_v34  ;;  %v211_v48 = vld [vmem:[#allocation5 + $0x88] sm:$0xff] }
  0x65   : > { %12221 = vst [vmem:[#allocation17_spill] sm:$0xff] %v7755_v29  ;;  %12222 = vst [vmem:[#allocation18_spill] sm:$0xff] %v7757_v30  ;;  %v7766_v44 = vpack.c.bf16 %v3046_v35, %v3042_v34  ;;  %v7770_v46 = vsub.f32 %v200_v18, %v3046_v35  ;;  %v7772_v47 = vsub.f32 %v203_v19, %v480_v36  ;;  %v215_v49 = vld [vmem:[#allocation5 + $0xa8] sm:$0xff]  ;;  %v213_v50 = vld [vmem:[#allocation5 + $0x98] sm:$0xff]  ;;  %v486_v57 = vand.u32 4294901760, %v206_v37  ;;  %p7469_p6 = pnand %p7468_p4, %p7674_p10  ;;  %s7560_s24 = smov [#allocation7]  }
  0x66   : > { %12223 = vst [vmem:[#allocation19_spill] sm:$0xff] %v7759_v31  ;;  %12224 = vst [vmem:[#allocation20_spill] sm:$0xff] %v7762_v33  ;;  %v7774_v51 = vpack.c.bf16 %v484_v38, %v480_v36  ;;  %v7776_v52 = vsub.f32 %v207_v25, %v484_v38  ;;  %v7778_v53 = vpack.c.bf16 %v3052_v40, %v3048_v39  ;;  %v217_v55 = vld [vmem:[#allocation5 + $0xb8] sm:$0xff]  ;;  %v3050_v59 = vand.u32 4294901760, %v204_v42  ;;  %v210_v0 = vld [vmem:[#allocation5 + $0x80] sm:$0xff]  ;;  %s7471_s22 = sshll.u32 %s7560_s24, 4  ;;  %s7472_s22 = int_to_ptr.vmem [resolvable:$false] %s7471_s22 }
  0x67   : > { %12225 = vst [vmem:[#allocation21_spill] sm:$0xff] %v7766_v44  ;;  %12226 = vst [vmem:[#allocation22_spill] sm:$0xff] %v7768_v45  ;;  %v7780_v54 = vsub.f32 %v205_v26, %v3048_v39  ;;  %6519 = vmatpush1.bf16.msra.mxu1 %v7766_v44  ;;  %v7783_v56 = vsub.f32 %v209_v27, %v3052_v40  ;;  %v7785_v58 = vsub.f32 %v202_v32, %v482_v41  ;;  %v214_v1 = vld [vmem:[#allocation5 + $0xa0] sm:$0xff]  ;;  %v212_v6 = vld [vmem:[#allocation5 + $0x90] sm:$0xff]  ;;  %p7470_p8 = pneg %p7469_p6  ;;  %s7473_s27 = scalar_lea.vmem %s7472_s22, 256 }
  0x68   : > { %12227 = vst [vmem:[#allocation23_spill] sm:$0xff] %v7770_v46  ;;  %12228 = vst [vmem:[#allocation24_spill] sm:$0xff] %v7772_v47  ;;  %5753 = vmatprep.subr.bf16.mxu0 %v7774_v51  ;;  %6521 = vmatprep.subr.bf16.mxu1 %v7778_v53  ;;  %v3054_v60 = vand.u32 4294901760, %v208_v43  ;;  %v488_v61 = vand.u32 4294901760, %v211_v48  ;;  %v492_v62 = vand.u32 4294901760, %v215_v49  ;;  %v3056_v63 = vand.u32 4294901760, %v213_v50  ;;  %p7474_p12 = scmp.lt.s32.totalorder %s11267_s19, %s7472_s22  ;;  %p7475_p11 = scmp.lt.s32.totalorder %s7473_s27, %s7467_s12 }
  0x69   : > { %12229 = vst [vmem:[#allocation25_spill] sm:$0xff] %v7774_v51  ;;  %12230 = vst [vmem:[#allocation26_spill] sm:$0xff] %v7776_v52  ;;  %v7789_v2 = vpack.c.bf16 %v486_v57, %v482_v41  ;;  %v7791_v3 = vsub.f32 %v206_v37, %v486_v57  ;;  %v7793_v4 = vsub.f32 %v204_v42, %v3050_v59  ;;  %v3060_v5 = vand.u32 4294901760, %v217_v55  ;;  %v216_v7 = vld [vmem:[#allocation5 + $0xb0] sm:$0xff]  ;;  %v219_v8 = vld [vmem:[#allocation5 + $0xc8] sm:$0xff] }
  0x6a   : > { %12231 = vst [vmem:[#allocation27_spill] sm:$0xff] %v7778_v53  ;;  %12232 = vst [vmem:[#allocation28_spill] sm:$0xff] %v7780_v54  ;;  %v7795_v9 = vpack.c.bf16 %v3054_v60, %v3050_v59  ;;  %v7797_v10 = vsub.f32 %v208_v43, %v3054_v60  ;;  %v7799_v11 = vpack.c.bf16 %v492_v62, %v488_v61  ;;  %v223_v13 = vld [vmem:[#allocation5 + $0xe8] sm:$0xff]  ;;  %v221_v14 = vld [vmem:[#allocation5 + $0xd8] sm:$0xff]  ;;  %v490_v25 = vand.u32 4294901760, %v210_v0  ;;  %p7476_p0 = por %p7475_p11, %p7474_p12 }
  0x6b   : > { %12233 = vst [vmem:[#allocation29_spill] sm:$0xff] %v7783_v56  ;;  %12234 = vst [vmem:[#allocation30_spill] sm:$0xff] %v7785_v58  ;;  %v7801_v12 = vsub.f32 %v211_v48, %v488_v61  ;;  %v225_v15 = vld [vmem:[#allocation5 + $0xf8] sm:$0xff]  ;;  %5755 = vmatpush1.bf16.msra.mxu0 %v7789_v2  ;;  %v7804_v16 = vsub.f32 %v215_v49, %v492_v62  ;;  %v7806_v17 = vpack.c.bf16 %v3060_v5, %v3056_v63  ;;  %v218_v38 = vld [vmem:[#allocation5 + $0xc0] sm:$0xff] }
  0x6c   : > { %12235 = vst [vmem:[#allocation31_spill] sm:$0xff] %v7789_v2  ;;  %12236 = vst [vmem:[#allocation32_spill] sm:$0xff] %v7791_v3  ;;  %v7808_v18 = vsub.f32 %v213_v50, %v3056_v63  ;;  %v7810_v19 = vsub.f32 %v217_v55, %v3060_v5  ;;  %6523 = vmatpush1.bf16.msra.mxu1 %v7795_v9  ;;  %5757 = vmatprep.subr.bf16.mxu0 %v7799_v11  ;;  %v494_v26 = vand.u32 4294901760, %v214_v1  ;;  %v222_v43 = vld [vmem:[#allocation5 + $0xe0] sm:$0xff]  ;;  %v220_v48 = vld [vmem:[#allocation5 + $0xd0] sm:$0xff]  ;;  %p7477_p5 = pnand %p7476_p0, %p7470_p8 }
  0x6d   : > { %12237 = vst [vmem:[#allocation33_spill] sm:$0xff] %v7793_v4  ;;  %12238 = vst [vmem:[#allocation34_spill] sm:$0xff] %v7795_v9  ;;  %v3058_v27 = vand.u32 4294901760, %v212_v6  ;;  %v3062_v32 = vand.u32 4294901760, %v216_v7  ;;  %6525 = vmatprep.subr.bf16.mxu1 %v7806_v17  ;;  %v496_v34 = vand.u32 4294901760, %v219_v8  ;;  %v500_v35 = vand.u32 4294901760, %v223_v13 }
  0x6e   : > { %12239 = vst [vmem:[#allocation35_spill] sm:$0xff] %v7797_v10  ;;  %12240 = vst [vmem:[#allocation36_spill] sm:$0xff] %v7799_v11  ;;  %v3064_v36 = vand.u32 4294901760, %v221_v14  ;;  %v3068_v37 = vand.u32 4294901760, %v225_v15  ;;  %v7815_v39 = vpack.c.bf16 %v494_v26, %v490_v25  ;;  %v7817_v40 = vsub.f32 %v210_v0, %v490_v25  ;;  %v224_v49 = vld [vmem:[#allocation5 + $0xf0] sm:$0xff]  ;;  %v227_v60 = vld [vmem:[#allocation5 + $0x108] sm:$0xff] }
  0x6f   : > { %12241 = vst [vmem:[#allocation37_spill] sm:$0xff] %v7801_v12  ;;  %12242 = vst [vmem:[#allocation38_spill] sm:$0xff] %v7804_v16  ;;  %v7819_v41 = vsub.f32 %v214_v1, %v494_v26  ;;  %v7821_v42 = vpack.c.bf16 %v3062_v32, %v3058_v27  ;;  %v7823_v50 = vsub.f32 %v212_v6, %v3058_v27  ;;  %v231_v61 = vld [vmem:[#allocation5 + $0x128] sm:$0xff]  ;;  %v229_v62 = vld [vmem:[#allocation5 + $0x118] sm:$0xff]  ;;  %v498_v5 = vand.u32 4294901760, %v218_v38 }
  0x70   : > { %12243 = vst [vmem:[#allocation39_spill] sm:$0xff] %v7806_v17  ;;  %12244 = vst [vmem:[#allocation40_spill] sm:$0xff] %v7808_v18  ;;  %v7825_v55 = vsub.f32 %v216_v7, %v3062_v32  ;;  %v7827_v57 = vpack.c.bf16 %v500_v35, %v496_v34  ;;  %v7829_v59 = vsub.f32 %v219_v8, %v496_v34  ;;  %5759 = vmatpush1.bf16.msra.mxu0 %v7815_v39  ;;  %v233_v26 = vld [vmem:[#allocation5 + $0x138] sm:$0xff]  ;;  %v230_v20 = vld [vmem:[#allocation5 + $0x120] sm:$0xff] }
  0x71   : > { %12245 = vst [vmem:[#allocation41_spill] sm:$0xff] %v7810_v19  ;;  %12246 = vst [vmem:[#allocation42_spill] sm:$0xff] %v7815_v39  ;;  %6527 = vmatpush1.bf16.msra.mxu1 %v7821_v42  ;;  %v7833_v63 = vsub.f32 %v223_v13, %v500_v35  ;;  %v7835_v0 = vpack.c.bf16 %v3068_v37, %v3064_v36  ;;  %v7837_v1 = vsub.f32 %v221_v14, %v3064_v36  ;;  %v226_v35 = vld [vmem:[#allocation5 + $0x100] sm:$0xff]  ;;  %v228_v14 = vld [vmem:[#allocation5 + $0x110] sm:$0xff] }
  0x72   : > { %12247 = vst [vmem:[#allocation43_spill] sm:$0xff] %v7817_v40  ;;  %12248 = vst [vmem:[#allocation44_spill] sm:$0xff] %v7819_v41  ;;  %5761 = vmatprep.subr.bf16.mxu0 %v7827_v57  ;;  %v7840_v6 = vsub.f32 %v225_v15, %v3068_v37  ;;  %v502_v7 = vand.u32 4294901760, %v222_v43  ;;  %v3066_v8 = vand.u32 4294901760, %v220_v48  ;;  %v3070_v25 = vand.u32 4294901760, %v224_v49  ;;  %v235_v39 = vld [vmem:[#allocation5 + $0x148] sm:$0xff] }
  0x73   : > { %12249 = vst [vmem:[#allocation45_spill] sm:$0xff] %v7821_v42  ;;  %12250 = vst [vmem:[#allocation46_spill] sm:$0xff] %v7823_v50  ;;  %6529 = vmatprep.subr.bf16.mxu1 %v7835_v0  ;;  %v7843_v27 = vsub.f32 %v218_v38, %v498_v5  ;;  %v504_v32 = vand.u32 4294901760, %v227_v60  ;;  %v508_v13 = vand.u32 4294901760, %v231_v61  ;;  %v3072_v34 = vand.u32 4294901760, %v229_v62  ;;  %v239_v17 = vld [vmem:[#allocation5 + $0x168] sm:$0xff] }
  0x74   : > { %12251 = vst [vmem:[#allocation47_spill] sm:$0xff] %v7825_v55  ;;  %12252 = vst [vmem:[#allocation48_spill] sm:$0xff] %v7827_v57  ;;  %v7845_v36 = vpack.c.bf16 %v502_v7, %v498_v5  ;;  %v7847_v42 = vsub.f32 %v222_v43, %v502_v7  ;;  %v7849_v15 = vpack.c.bf16 %v3070_v25, %v3066_v8  ;;  %v232_v57 = vld [vmem:[#allocation5 + $0x130] sm:$0xff]  ;;  %v3076_v43 = vand.u32 4294901760, %v233_v26  ;;  %v237_v53 = vld [vmem:[#allocation5 + $0x158] sm:$0xff] }
  0x75   : > { %12253 = vst [vmem:[#allocation49_spill] sm:$0xff] %v7829_v59  ;;  %12254 = vst [vmem:[#allocation50_spill] sm:$0xff] %v7833_v63  ;;  %v7851_v37 = vsub.f32 %v220_v48, %v3066_v8  ;;  %v7855_v38 = vpack.c.bf16 %v508_v13, %v504_v32  ;;  %v7857_v11 = vsub.f32 %v227_v60, %v504_v32  ;;  %v506_v48 = vand.u32 4294901760, %v226_v35  ;;  %v241_v60 = vld [vmem:[#allocation5 + $0x178] sm:$0xff]  ;;  %v236_v51 = vld [vmem:[#allocation5 + $0x150] sm:$0xff] }
  0x76   : > { %12255 = vst [vmem:[#allocation51_spill] sm:$0xff] %v7835_v0  ;;  %12256 = vst [vmem:[#allocation52_spill] sm:$0xff] %v7837_v1  ;;  %v7853_v0 = vsub.f32 %v224_v49, %v3070_v25  ;;  %v7859_v9 = vsub.f32 %v231_v61, %v508_v13  ;;  %5763 = vmatpush1.bf16.msra.mxu0 %v7845_v36  ;;  %6531 = vmatpush1.bf16.msra.mxu1 %v7849_v15  ;;  %v510_v7 = vand.u32 4294901760, %v230_v20  ;;  %v240_v21 = vld [vmem:[#allocation5 + $0x170] sm:$0xff] }
  0x77   : > { %12257 = vst [vmem:[#allocation53_spill] sm:$0xff] %v7840_v6  ;;  %12258 = vst [vmem:[#allocation54_spill] sm:$0xff] %v7843_v27  ;;  %v7863_v5 = vsub.f32 %v229_v62, %v3072_v34  ;;  %5765 = vmatprep.subr.bf16.mxu0 %v7855_v38  ;;  %v3074_v8 = vand.u32 4294901760, %v228_v14  ;;  %v3078_v49 = vand.u32 4294901760, %v232_v57  ;;  %v512_v25 = vand.u32 4294901760, %v235_v39  ;;  %v234_v62 = vld [vmem:[#allocation5 + $0x140] sm:$0xff] }
  0x78   : > { %12259 = vst [vmem:[#allocation55_spill] sm:$0xff] %v7845_v36  ;;  %12260 = vst [vmem:[#allocation56_spill] sm:$0xff] %v7847_v42  ;;  %v516_v2 = vand.u32 4294901760, %v239_v17  ;;  %v7866_v32 = vpack.c.bf16 %v3076_v43, %v3072_v34  ;;  %v7868_v61 = vsub.f32 %v233_v26, %v3076_v43  ;;  %v7870_v13 = vpack.c.bf16 %v510_v7, %v506_v48  ;;  %v238_v36 = vld [vmem:[#allocation5 + $0x160] sm:$0xff]  ;;  %v243_v34 = vld [vmem:[#allocation5 + $0x188] sm:$0xff] }
  0x79   : > { %12261 = vst [vmem:[#allocation57_spill] sm:$0xff] %v7849_v15  ;;  %12262 = vst [vmem:[#allocation58_spill] sm:$0xff] %v7851_v37  ;;  %v7872_v15 = vsub.f32 %v226_v35, %v506_v48  ;;  %v7874_v44 = vsub.f32 %v230_v20, %v510_v7  ;;  %v7878_v30 = vsub.f32 %v228_v14, %v3074_v8  ;;  %v3080_v20 = vand.u32 4294901760, %v237_v53 }
  0x7a   : > { %12263 = vst [vmem:[#allocation59_spill] sm:$0xff] %v7853_v0  ;;  %12264 = vst [vmem:[#allocation60_spill] sm:$0xff] %v7855_v38  ;;  %v7876_v38 = vpack.c.bf16 %v3078_v49, %v3074_v8  ;;  %v7880_v28 = vsub.f32 %v232_v57, %v3078_v49  ;;  %6533 = vmatprep.subr.bf16.mxu1 %v7866_v32  ;;  %5767 = vmatpush1.bf16.msra.mxu0 %v7870_v13  ;;  %v3084_v14 = vand.u32 4294901760, %v241_v60 }
  0x7b   : > { %12265 = vst [vmem:[#allocation61_spill] sm:$0xff] %v7857_v11  ;;  %12266 = vst [vmem:[#allocation62_spill] sm:$0xff] %v7859_v9  ;;  %v7884_v26 = vpack.c.bf16 %v516_v2, %v512_v25  ;;  %v7886_v35 = vsub.f32 %v235_v39, %v512_v25  ;;  %v7888_v43 = vsub.f32 %v239_v17, %v516_v2  ;;  %v514_v48 = vand.u32 4294901760, %v234_v62 }
  0x7c   : > { %12267 = vst [vmem:[#allocation63_spill] sm:$0xff] %v7863_v5  ;;  %12268 = vst [vmem:[#allocation64_spill] sm:$0xff] %v7866_v32  ;;  %v247_v5 = vld [vmem:[#allocation5 + $0x1a8] sm:$0xff]  ;;  %6535 = vmatpush1.bf16.msra.mxu1 %v7876_v38  ;;  %v518_v57 = vand.u32 4294901760, %v238_v36  ;;  %v3082_v7 = vand.u32 4294901760, %v236_v51  ;;  %v7892_v8 = vsub.f32 %v237_v53, %v3080_v20  ;;  %v3086_v49 = vand.u32 4294901760, %v240_v21 }
  0x7d   : > { %12269 = vst [vmem:[#allocation65_spill] sm:$0xff] %v7868_v61  ;;  %12270 = vst [vmem:[#allocation66_spill] sm:$0xff] %v7870_v13  ;;  %5769 = vmatprep.subr.bf16.mxu0 %v7884_v26  ;;  %v520_v32 = vand.u32 4294901760, %v243_v34  ;;  %v524_v13 = vand.u32 4294901760, %v247_v5  ;;  %v7894_v39 = vpack.c.bf16 %v3084_v14, %v3080_v20  ;;  %v7896_v2 = vsub.f32 %v241_v60, %v3084_v14  ;;  %v251_v20 = vld [vmem:[#allocation5 + $0x1c8] sm:$0xff] }
  0x7e   : > { %12271 = vst [vmem:[#allocation67_spill] sm:$0xff] %v7872_v15  ;;  %12272 = vst [vmem:[#allocation68_spill] sm:$0xff] %v7874_v44  ;;  %v7898_v17 = vpack.c.bf16 %v518_v57, %v514_v48  ;;  %v7900_v25 = vsub.f32 %v234_v62, %v514_v48  ;;  %v7902_v44 = vsub.f32 %v238_v36, %v518_v57  ;;  %v248_v15 = vld [vmem:[#allocation5 + $0x1b0] sm:$0xff]  ;;  %v255_v61 = vld [vmem:[#allocation5 + $0x1e8] sm:$0xff] }
  0x7f   : > { %12273 = vst [vmem:[#allocation69_spill] sm:$0xff] %v7876_v38  ;;  %12274 = vst [vmem:[#allocation70_spill] sm:$0xff] %v7878_v30  ;;  %v249_v30 = vld [vmem:[#allocation5 + $0x1b8] sm:$0xff]  ;;  %v242_v38 = vld [vmem:[#allocation5 + $0x180] sm:$0xff]  ;;  %v7904_v53 = vpack.c.bf16 %v3086_v49, %v3082_v7  ;;  %6537 = vmatprep.subr.bf16.mxu1 %v7894_v39  ;;  %v7912_v60 = vpack.c.bf16 %v524_v13, %v520_v32  ;;  %v7914_v62 = vsub.f32 %v243_v34, %v520_v32 }
  0x80   : > { %12275 = vst [vmem:[#allocation71_spill] sm:$0xff] %v7880_v28  ;;  %12276 = vst [vmem:[#allocation72_spill] sm:$0xff] %v7884_v26  ;;  %v245_v28 = vld [vmem:[#allocation5 + $0x198] sm:$0xff]  ;;  %v7906_v26 = vsub.f32 %v236_v51, %v3082_v7  ;;  %5771 = vmatpush1.bf16.msra.mxu0 %v7898_v17  ;;  %v7916_v14 = vsub.f32 %v247_v5, %v524_v13  ;;  %v3092_v51 = vand.u32 4294901760, %v249_v30  ;;  %v522_v48 = vand.u32 4294901760, %v242_v38 }
  0x81   : > { %12277 = vst [vmem:[#allocation73_spill] sm:$0xff] %v7886_v35  ;;  %12278 = vst [vmem:[#allocation74_spill] sm:$0xff] %v7888_v43  ;;  %v246_v43 = vld [vmem:[#allocation5 + $0x1a0] sm:$0xff]  ;;  %v244_v35 = vld [vmem:[#allocation5 + $0x190] sm:$0xff]  ;;  %v3088_v36 = vand.u32 4294901760, %v245_v28  ;;  %6539 = vmatpush1.bf16.msra.mxu1 %v7904_v53  ;;  %5773 = vmatprep.subr.bf16.mxu0 %v7912_v60 }
  0x82   : > { %12279 = vst [vmem:[#allocation75_spill] sm:$0xff] %v7892_v8  ;;  %12280 = vst [vmem:[#allocation76_spill] sm:$0xff] %v7894_v39  ;;  %v7908_v8 = vsub.f32 %v240_v21, %v3086_v49  ;;  %v526_v21 = vand.u32 4294901760, %v246_v43  ;;  %v3090_v57 = vand.u32 4294901760, %v244_v35  ;;  %v3094_v49 = vand.u32 4294901760, %v248_v15 }
  0x83   : > { %12281 = vst [vmem:[#allocation77_spill] sm:$0xff] %v7896_v2  ;;  %12282 = vst [vmem:[#allocation78_spill] sm:$0xff] %v7898_v17  ;;  %v7920_v7 = vsub.f32 %v245_v28, %v3088_v36  ;;  %v528_v39 = vand.u32 4294901760, %v251_v20  ;;  %v532_v17 = vand.u32 4294901760, %v255_v61  ;;  %v7922_v32 = vpack.c.bf16 %v3092_v51, %v3088_v36  ;;  %v259_v36 = vld [vmem:[#allocation5 + $0x208] sm:$0xff] }
  0x84   : > { %12283 = vst [vmem:[#allocation79_spill] sm:$0xff] %v7900_v25  ;;  %12284 = vst [vmem:[#allocation80_spill] sm:$0xff] %v7902_v44  ;;  %v7924_v5 = vsub.f32 %v249_v30, %v3092_v51  ;;  %v7926_v13 = vpack.c.bf16 %v526_v21, %v522_v48  ;;  %v7928_v34 = vsub.f32 %v242_v38, %v522_v48  ;;  %v256_v25 = vld [vmem:[#allocation5 + $0x1f0] sm:$0xff]  ;;  %v263_v2 = vld [vmem:[#allocation5 + $0x228] sm:$0xff] }
  0x85   : > { %12285 = vst [vmem:[#allocation81_spill] sm:$0xff] %v7904_v53  ;;  %12286 = vst [vmem:[#allocation82_spill] sm:$0xff] %v7906_v26  ;;  %v257_v26 = vld [vmem:[#allocation5 + $0x1f8] sm:$0xff]  ;;  %v250_v53 = vld [vmem:[#allocation5 + $0x1c0] sm:$0xff]  ;;  %v7930_v44 = vsub.f32 %v246_v43, %v526_v21  ;;  %v7932_v28 = vpack.c.bf16 %v3094_v49, %v3090_v57  ;;  %6541 = vmatprep.subr.bf16.mxu1 %v7922_v32  ;;  %v7940_v30 = vpack.c.bf16 %v532_v17, %v528_v39 }
  0x86   : > { %12287 = vst [vmem:[#allocation83_spill] sm:$0xff] %v7908_v8  ;;  %12288 = vst [vmem:[#allocation84_spill] sm:$0xff] %v7912_v60  ;;  %v253_v8 = vld [vmem:[#allocation5 + $0x1d8] sm:$0xff]  ;;  %v7934_v60 = vsub.f32 %v244_v35, %v3090_v57  ;;  %5775 = vmatpush1.bf16.msra.mxu0 %v7926_v13  ;;  %v7942_v38 = vsub.f32 %v251_v20, %v528_v39  ;;  %v7944_v51 = vsub.f32 %v255_v61, %v532_v17 }
  0x87   : > { %12289 = vst [vmem:[#allocation85_spill] sm:$0xff] %v7914_v62  ;;  %12290 = vst [vmem:[#allocation86_spill] sm:$0xff] %v7916_v14  ;;  %v254_v14 = vld [vmem:[#allocation5 + $0x1e0] sm:$0xff]  ;;  %v252_v62 = vld [vmem:[#allocation5 + $0x1d0] sm:$0xff]  ;;  %v3096_v43 = vand.u32 4294901760, %v253_v8  ;;  %6543 = vmatpush1.bf16.msra.mxu1 %v7932_v28  ;;  %v3100_v35 = vand.u32 4294901760, %v257_v26  ;;  %5777 = vmatprep.subr.bf16.mxu0 %v7940_v30 }
  0x88   : > { %12291 = vst [vmem:[#allocation87_spill] sm:$0xff] %v7920_v7  ;;  %12292 = vst [vmem:[#allocation88_spill] sm:$0xff] %v7922_v32  ;;  %v7936_v7 = vsub.f32 %v248_v15, %v3094_v49  ;;  %v530_v48 = vand.u32 4294901760, %v250_v53  ;;  %v534_v15 = vand.u32 4294901760, %v254_v14  ;;  %v3098_v21 = vand.u32 4294901760, %v252_v62 }
  0x89   : > { %12293 = vst [vmem:[#allocation89_spill] sm:$0xff] %v7924_v5  ;;  %12294 = vst [vmem:[#allocation90_spill] sm:$0xff] %v7926_v13  ;;  %v7948_v57 = vsub.f32 %v253_v8, %v3096_v43  ;;  %v3102_v49 = vand.u32 4294901760, %v256_v25  ;;  %v536_v32 = vand.u32 4294901760, %v259_v36  ;;  %v540_v13 = vand.u32 4294901760, %v263_v2  ;;  %v271_v5 = vld [vmem:[#allocation5 + $0x268] sm:$0xff] }
  0x8a   : > { %12295 = vst [vmem:[#allocation91_spill] sm:$0xff] %v7928_v34  ;;  %12296 = vst [vmem:[#allocation92_spill] sm:$0xff] %v7930_v44  ;;  %v7950_v39 = vpack.c.bf16 %v3100_v35, %v3096_v43  ;;  %v7952_v61 = vsub.f32 %v257_v26, %v3100_v35  ;;  %v7954_v17 = vpack.c.bf16 %v534_v15, %v530_v48  ;;  %v264_v34 = vld [vmem:[#allocation5 + $0x230] sm:$0xff]  ;;  %v267_v43 = vld [vmem:[#allocation5 + $0x248] sm:$0xff] }
  0x8b   : > { %12297 = vst [vmem:[#allocation93_spill] sm:$0xff] %v7932_v28  ;;  %12298 = vst [vmem:[#allocation94_spill] sm:$0xff] %v7934_v60  ;;  %v265_v60 = vld [vmem:[#allocation5 + $0x238] sm:$0xff]  ;;  %v7956_v20 = vsub.f32 %v250_v53, %v530_v48  ;;  %v258_v28 = vld [vmem:[#allocation5 + $0x200] sm:$0xff]  ;;  %v7958_v44 = vsub.f32 %v254_v14, %v534_v15  ;;  %v7960_v8 = vpack.c.bf16 %v3102_v49, %v3098_v21 }
  0x8c   : > { %12299 = vst [vmem:[#allocation95_spill] sm:$0xff] %v7936_v7  ;;  %12300 = vst [vmem:[#allocation96_spill] sm:$0xff] %v7940_v30  ;;  %v261_v7 = vld [vmem:[#allocation5 + $0x218] sm:$0xff]  ;;  %v7962_v30 = vsub.f32 %v252_v62, %v3098_v21  ;;  %6545 = vmatprep.subr.bf16.mxu1 %v7950_v39  ;;  %5779 = vmatpush1.bf16.msra.mxu0 %v7954_v17  ;;  %v7968_v26 = vpack.c.bf16 %v540_v13, %v536_v32  ;;  %v3108_v62 = vand.u32 4294901760, %v265_v60 }
  0x8d   : > { %12301 = vst [vmem:[#allocation97_spill] sm:$0xff] %v7942_v38  ;;  %12302 = vst [vmem:[#allocation98_spill] sm:$0xff] %v7944_v51  ;;  %v262_v51 = vld [vmem:[#allocation5 + $0x220] sm:$0xff]  ;;  %v260_v38 = vld [vmem:[#allocation5 + $0x210] sm:$0xff]  ;;  %v7970_v53 = vsub.f32 %v259_v36, %v536_v32  ;;  %v7972_v35 = vsub.f32 %v263_v2, %v540_v13  ;;  %v3104_v14 = vand.u32 4294901760, %v261_v7  ;;  %6547 = vmatpush1.bf16.msra.mxu1 %v7960_v8  ;;  %v538_v48 = vand.u32 4294901760, %v258_v28 }
  0x8e   : > { %12303 = vst [vmem:[#allocation99_spill] sm:$0xff] %v7948_v57  ;;  %12304 = vst [vmem:[#allocation100_spill] sm:$0xff] %v7950_v39  ;;  %v7964_v57 = vsub.f32 %v256_v25, %v3102_v49  ;;  %v542_v25 = vand.u32 4294901760, %v262_v51  ;;  %v3106_v15 = vand.u32 4294901760, %v260_v38  ;;  %5781 = vmatprep.subr.bf16.mxu0 %v7968_v26  ;;  %v3110_v49 = vand.u32 4294901760, %v264_v34 }
  0x8f   : > { %12305 = vst [vmem:[#allocation101_spill] sm:$0xff] %v7952_v61  ;;  %12306 = vst [vmem:[#allocation102_spill] sm:$0xff] %v7954_v17  ;;  %v7976_v21 = vsub.f32 %v261_v7, %v3104_v14  ;;  %v544_v39 = vand.u32 4294901760, %v267_v43  ;;  %v548_v17 = vand.u32 4294901760, %v271_v5  ;;  %v7978_v32 = vpack.c.bf16 %v3108_v62, %v3104_v14  ;;  %v275_v14 = vld [vmem:[#allocation5 + $0x288] sm:$0xff] }
  0x90   : > { %12307 = vst [vmem:[#allocation103_spill] sm:$0xff] %v7956_v20  ;;  %12308 = vst [vmem:[#allocation104_spill] sm:$0xff] %v7958_v44  ;;  %v7980_v2 = vsub.f32 %v265_v60, %v3108_v62  ;;  %v7982_v13 = vpack.c.bf16 %v542_v25, %v538_v48  ;;  %v7984_v36 = vsub.f32 %v258_v28, %v538_v48  ;;  %v272_v20 = vld [vmem:[#allocation5 + $0x270] sm:$0xff]  ;;  %v279_v61 = vld [vmem:[#allocation5 + $0x2a8] sm:$0xff] }
  0x91   : > { %12309 = vst [vmem:[#allocation105_spill] sm:$0xff] %v7960_v8  ;;  %12310 = vst [vmem:[#allocation106_spill] sm:$0xff] %v7962_v30  ;;  %v273_v30 = vld [vmem:[#allocation5 + $0x278] sm:$0xff]  ;;  %v266_v8 = vld [vmem:[#allocation5 + $0x240] sm:$0xff]  ;;  %v7986_v44 = vsub.f32 %v262_v51, %v542_v25  ;;  %v7988_v7 = vpack.c.bf16 %v3110_v49, %v3106_v15  ;;  %6549 = vmatprep.subr.bf16.mxu1 %v7978_v32  ;;  %v7996_v60 = vpack.c.bf16 %v548_v17, %v544_v39 }
  0x92   : > { %12311 = vst [vmem:[#allocation107_spill] sm:$0xff] %v7964_v57  ;;  %12312 = vst [vmem:[#allocation108_spill] sm:$0xff] %v7968_v26  ;;  %v269_v57 = vld [vmem:[#allocation5 + $0x258] sm:$0xff]  ;;  %v7990_v26 = vsub.f32 %v260_v38, %v3106_v15  ;;  %5783 = vmatpush1.bf16.msra.mxu0 %v7982_v13  ;;  %v7998_v28 = vsub.f32 %v267_v43, %v544_v39  ;;  %v8000_v62 = vsub.f32 %v271_v5, %v548_v17 }
  0x93   : > { %12313 = vst [vmem:[#allocation109_spill] sm:$0xff] %v7970_v53  ;;  %12314 = vst [vmem:[#allocation110_spill] sm:$0xff] %v7972_v35  ;;  %v270_v35 = vld [vmem:[#allocation5 + $0x260] sm:$0xff]  ;;  %v268_v53 = vld [vmem:[#allocation5 + $0x250] sm:$0xff]  ;;  %v3112_v51 = vand.u32 4294901760, %v269_v57  ;;  %6551 = vmatpush1.bf16.msra.mxu1 %v7988_v7  ;;  %v3116_v38 = vand.u32 4294901760, %v273_v30  ;;  %5785 = vmatprep.subr.bf16.mxu0 %v7996_v60 }
  0x94   : > { %12315 = vst [vmem:[#allocation111_spill] sm:$0xff] %v7976_v21  ;;  %12316 = vst [vmem:[#allocation112_spill] sm:$0xff] %v7978_v32  ;;  %v7992_v21 = vsub.f32 %v264_v34, %v3110_v49  ;;  %v546_v48 = vand.u32 4294901760, %v266_v8  ;;  %v550_v34 = vand.u32 4294901760, %v270_v35  ;;  %v3114_v25 = vand.u32 4294901760, %v268_v53 }
  0x95   : > { %12317 = vst [vmem:[#allocation113_spill] sm:$0xff] %v7980_v2  ;;  %12318 = vst [vmem:[#allocation114_spill] sm:$0xff] %v7982_v13  ;;  %v8004_v15 = vsub.f32 %v269_v57, %v3112_v51  ;;  %v3118_v49 = vand.u32 4294901760, %v272_v20  ;;  %v552_v32 = vand.u32 4294901760, %v275_v14  ;;  %v556_v13 = vand.u32 4294901760, %v279_v61  ;;  %v287_v2 = vld [vmem:[#allocation5 + $0x2e8] sm:$0xff] }
  0x96   : > { %12319 = vst [vmem:[#allocation115_spill] sm:$0xff] %v7984_v36  ;;  %12320 = vst [vmem:[#allocation116_spill] sm:$0xff] %v7986_v44  ;;  %v8006_v39 = vpack.c.bf16 %v3116_v38, %v3112_v51  ;;  %v8008_v5 = vsub.f32 %v273_v30, %v3116_v38  ;;  %v8010_v17 = vpack.c.bf16 %v550_v34, %v546_v48  ;;  %v280_v36 = vld [vmem:[#allocation5 + $0x2b0] sm:$0xff]  ;;  %v283_v51 = vld [vmem:[#allocation5 + $0x2c8] sm:$0xff] }
  0x97   : > { %12321 = vst [vmem:[#allocation117_spill] sm:$0xff] %v7988_v7  ;;  %12322 = vst [vmem:[#allocation118_spill] sm:$0xff] %v7990_v26  ;;  %v281_v26 = vld [vmem:[#allocation5 + $0x2b8] sm:$0xff]  ;;  %v8012_v43 = vsub.f32 %v266_v8, %v546_v48  ;;  %v274_v7 = vld [vmem:[#allocation5 + $0x280] sm:$0xff]  ;;  %v8014_v44 = vsub.f32 %v270_v35, %v550_v34  ;;  %v8016_v57 = vpack.c.bf16 %v3118_v49, %v3114_v25 }
  0x98   : > { %12323 = vst [vmem:[#allocation119_spill] sm:$0xff] %v7992_v21  ;;  %12324 = vst [vmem:[#allocation120_spill] sm:$0xff] %v7996_v60  ;;  %v277_v21 = vld [vmem:[#allocation5 + $0x298] sm:$0xff]  ;;  %v8018_v60 = vsub.f32 %v268_v53, %v3114_v25  ;;  %6553 = vmatprep.subr.bf16.mxu1 %v8006_v39  ;;  %5787 = vmatpush1.bf16.msra.mxu0 %v8010_v17  ;;  %v8024_v30 = vpack.c.bf16 %v556_v13, %v552_v32  ;;  %v3124_v53 = vand.u32 4294901760, %v281_v26 }
  0x99   : > { %12325 = vst [vmem:[#allocation121_spill] sm:$0xff] %v7998_v28  ;;  %12326 = vst [vmem:[#allocation122_spill] sm:$0xff] %v8000_v62  ;;  %v278_v62 = vld [vmem:[#allocation5 + $0x2a0] sm:$0xff]  ;;  %v276_v28 = vld [vmem:[#allocation5 + $0x290] sm:$0xff]  ;;  %v8026_v8 = vsub.f32 %v275_v14, %v552_v32  ;;  %v8028_v38 = vsub.f32 %v279_v61, %v556_v13  ;;  %v3120_v35 = vand.u32 4294901760, %v277_v21  ;;  %6555 = vmatpush1.bf16.msra.mxu1 %v8016_v57  ;;  %v554_v48 = vand.u32 4294901760, %v274_v7 }
  0x9a   : > { %12327 = vst [vmem:[#allocation123_spill] sm:$0xff] %v8004_v15  ;;  %12328 = vst [vmem:[#allocation124_spill] sm:$0xff] %v8006_v39  ;;  %v8020_v15 = vsub.f32 %v272_v20, %v3118_v49  ;;  %v558_v20 = vand.u32 4294901760, %v278_v62  ;;  %v3122_v34 = vand.u32 4294901760, %v276_v28  ;;  %5789 = vmatprep.subr.bf16.mxu0 %v8024_v30  ;;  %v3126_v49 = vand.u32 4294901760, %v280_v36 }
  0x9b   : > { %12329 = vst [vmem:[#allocation125_spill] sm:$0xff] %v8008_v5  ;;  %12330 = vst [vmem:[#allocation126_spill] sm:$0xff] %v8010_v17  ;;  %v8032_v25 = vsub.f32 %v277_v21, %v3120_v35  ;;  %v560_v39 = vand.u32 4294901760, %v283_v51  ;;  %v564_v17 = vand.u32 4294901760, %v287_v2  ;;  %v8034_v32 = vpack.c.bf16 %v3124_v53, %v3120_v35  ;;  %v291_v35 = vld [vmem:[#allocation5 + $0x308] sm:$0xff] }
  0x9c   : > { %12331 = vst [vmem:[#allocation127_spill] sm:$0xff] %v8012_v43  ;;  %12332 = vst [vmem:[#allocation128_spill] sm:$0xff] %v8014_v44  ;;  %v8036_v61 = vsub.f32 %v281_v26, %v3124_v53  ;;  %v8038_v13 = vpack.c.bf16 %v558_v20, %v554_v48  ;;  %v8040_v14 = vsub.f32 %v274_v7, %v554_v48  ;;  %v288_v43 = vld [vmem:[#allocation5 + $0x2f0] sm:$0xff]  ;;  %v295_v5 = vld [vmem:[#allocation5 + $0x328] sm:$0xff] }
  0x9d   : > { %12333 = vst [vmem:[#allocation129_spill] sm:$0xff] %v8016_v57  ;;  %12334 = vst [vmem:[#allocation130_spill] sm:$0xff] %v8018_v60  ;;  %v289_v60 = vld [vmem:[#allocation5 + $0x2f8] sm:$0xff]  ;;  %v282_v57 = vld [vmem:[#allocation5 + $0x2c0] sm:$0xff]  ;;  %v8042_v44 = vsub.f32 %v278_v62, %v558_v20  ;;  %v8044_v21 = vpack.c.bf16 %v3126_v49, %v3122_v34  ;;  %6557 = vmatprep.subr.bf16.mxu1 %v8034_v32  ;;  %v8052_v26 = vpack.c.bf16 %v564_v17, %v560_v39 }
  0x9e   : > { %12335 = vst [vmem:[#allocation131_spill] sm:$0xff] %v8020_v15  ;;  %12336 = vst [vmem:[#allocation132_spill] sm:$0xff] %v8024_v30  ;;  %v285_v15 = vld [vmem:[#allocation5 + $0x2d8] sm:$0xff]  ;;  %v8046_v30 = vsub.f32 %v276_v28, %v3122_v34  ;;  %5791 = vmatpush1.bf16.msra.mxu0 %v8038_v13  ;;  %v8054_v7 = vsub.f32 %v283_v51, %v560_v39  ;;  %v8056_v53 = vsub.f32 %v287_v2, %v564_v17 }
  0x9f   : > { %12337 = vst [vmem:[#allocation133_spill] sm:$0xff] %v8026_v8  ;;  %12338 = vst [vmem:[#allocation134_spill] sm:$0xff] %v8028_v38  ;;  %v286_v38 = vld [vmem:[#allocation5 + $0x2e0] sm:$0xff]  ;;  %v284_v8 = vld [vmem:[#allocation5 + $0x2d0] sm:$0xff]  ;;  %v3128_v62 = vand.u32 4294901760, %v285_v15  ;;  %6559 = vmatpush1.bf16.msra.mxu1 %v8044_v21  ;;  %v3132_v28 = vand.u32 4294901760, %v289_v60  ;;  %5793 = vmatprep.subr.bf16.mxu0 %v8052_v26 }
  0xa0   : > { %12339 = vst [vmem:[#allocation135_spill] sm:$0xff] %v8032_v25  ;;  %12340 = vst [vmem:[#allocation136_spill] sm:$0xff] %v8034_v32  ;;  %v8048_v25 = vsub.f32 %v280_v36, %v3126_v49  ;;  %v562_v48 = vand.u32 4294901760, %v282_v57  ;;  %v566_v36 = vand.u32 4294901760, %v286_v38  ;;  %v3130_v20 = vand.u32 4294901760, %v284_v8 }
  0xa1   : > { %12341 = vst [vmem:[#allocation137_spill] sm:$0xff] %v8036_v61  ;;  %12342 = vst [vmem:[#allocation138_spill] sm:$0xff] %v8038_v13  ;;  %v8060_v34 = vsub.f32 %v285_v15, %v3128_v62  ;;  %v3134_v49 = vand.u32 4294901760, %v288_v43  ;;  %v568_v32 = vand.u32 4294901760, %v291_v35  ;;  %v572_v13 = vand.u32 4294901760, %v295_v5  ;;  %v303_v61 = vld [vmem:[#allocation5 + $0x368] sm:$0xff] }
  0xa2   : > { %12343 = vst [vmem:[#allocation139_spill] sm:$0xff] %v8040_v14  ;;  %12344 = vst [vmem:[#allocation140_spill] sm:$0xff] %v8042_v44  ;;  %v8062_v39 = vpack.c.bf16 %v3132_v28, %v3128_v62  ;;  %v8064_v2 = vsub.f32 %v289_v60, %v3132_v28  ;;  %v8066_v17 = vpack.c.bf16 %v566_v36, %v562_v48  ;;  %v296_v14 = vld [vmem:[#allocation5 + $0x330] sm:$0xff]  ;;  %v299_v62 = vld [vmem:[#allocation5 + $0x348] sm:$0xff] }
  0xa3   : > { %12345 = vst [vmem:[#allocation141_spill] sm:$0xff] %v8044_v21  ;;  %12346 = vst [vmem:[#allocation142_spill] sm:$0xff] %v8046_v30  ;;  %v297_v30 = vld [vmem:[#allocation5 + $0x338] sm:$0xff]  ;;  %v8068_v51 = vsub.f32 %v282_v57, %v562_v48  ;;  %v290_v21 = vld [vmem:[#allocation5 + $0x300] sm:$0xff]  ;;  %v8070_v44 = vsub.f32 %v286_v38, %v566_v36  ;;  %v8072_v15 = vpack.c.bf16 %v3134_v49, %v3130_v20 }
  0xa4   : > { %12347 = vst [vmem:[#allocation143_spill] sm:$0xff] %v8048_v25  ;;  %12348 = vst [vmem:[#allocation144_spill] sm:$0xff] %v8052_v26  ;;  %v293_v25 = vld [vmem:[#allocation5 + $0x318] sm:$0xff]  ;;  %v8074_v26 = vsub.f32 %v284_v8, %v3130_v20  ;;  %6561 = vmatprep.subr.bf16.mxu1 %v8062_v39  ;;  %5795 = vmatpush1.bf16.msra.mxu0 %v8066_v17  ;;  %v8080_v60 = vpack.c.bf16 %v572_v13, %v568_v32  ;;  %v3140_v8 = vand.u32 4294901760, %v297_v30 }
  0xa5   : > { %12349 = vst [vmem:[#allocation145_spill] sm:$0xff] %v8054_v7  ;;  %12350 = vst [vmem:[#allocation146_spill] sm:$0xff] %v8056_v53  ;;  %v294_v53 = vld [vmem:[#allocation5 + $0x320] sm:$0xff]  ;;  %v292_v7 = vld [vmem:[#allocation5 + $0x310] sm:$0xff]  ;;  %v8082_v57 = vsub.f32 %v291_v35, %v568_v32  ;;  %v8084_v28 = vsub.f32 %v295_v5, %v572_v13  ;;  %v3136_v38 = vand.u32 4294901760, %v293_v25  ;;  %6563 = vmatpush1.bf16.msra.mxu1 %v8072_v15  ;;  %v570_v48 = vand.u32 4294901760, %v290_v21 }
  0xa6   : > { %12351 = vst [vmem:[#allocation147_spill] sm:$0xff] %v8060_v34  ;;  %12352 = vst [vmem:[#allocation148_spill] sm:$0xff] %v8062_v39  ;;  %v8076_v34 = vsub.f32 %v288_v43, %v3134_v49  ;;  %v574_v43 = vand.u32 4294901760, %v294_v53  ;;  %v3138_v36 = vand.u32 4294901760, %v292_v7  ;;  %5797 = vmatprep.subr.bf16.mxu0 %v8080_v60  ;;  %v3142_v49 = vand.u32 4294901760, %v296_v14 }
  0xa7   : > { %12353 = vst [vmem:[#allocation149_spill] sm:$0xff] %v8064_v2  ;;  %12354 = vst [vmem:[#allocation150_spill] sm:$0xff] %v8066_v17  ;;  %v8088_v20 = vsub.f32 %v293_v25, %v3136_v38  ;;  %v576_v39 = vand.u32 4294901760, %v299_v62  ;;  %v580_v17 = vand.u32 4294901760, %v303_v61  ;;  %v8090_v32 = vpack.c.bf16 %v3140_v8, %v3136_v38  ;;  %v307_v38 = vld [vmem:[#allocation5 + $0x388] sm:$0xff] }
  0xa8   : > { %12355 = vst [vmem:[#allocation151_spill] sm:$0xff] %v8068_v51  ;;  %12356 = vst [vmem:[#allocation152_spill] sm:$0xff] %v8070_v44  ;;  %v8092_v5 = vsub.f32 %v297_v30, %v3140_v8  ;;  %v8094_v13 = vpack.c.bf16 %v574_v43, %v570_v48  ;;  %v8096_v35 = vsub.f32 %v290_v21, %v570_v48  ;;  %v304_v51 = vld [vmem:[#allocation5 + $0x370] sm:$0xff]  ;;  %v311_v2 = vld [vmem:[#allocation5 + $0x3a8] sm:$0xff] }
  0xa9   : > { %12357 = vst [vmem:[#allocation153_spill] sm:$0xff] %v8072_v15  ;;  %12358 = vst [vmem:[#allocation154_spill] sm:$0xff] %v8074_v26  ;;  %v305_v26 = vld [vmem:[#allocation5 + $0x378] sm:$0xff]  ;;  %v298_v15 = vld [vmem:[#allocation5 + $0x340] sm:$0xff]  ;;  %v8098_v44 = vsub.f32 %v294_v53, %v574_v43  ;;  %v8100_v25 = vpack.c.bf16 %v3142_v49, %v3138_v36  ;;  %6565 = vmatprep.subr.bf16.mxu1 %v8090_v32  ;;  %v8108_v30 = vpack.c.bf16 %v580_v17, %v576_v39 }
  0xaa   : > { %12359 = vst [vmem:[#allocation155_spill] sm:$0xff] %v8076_v34  ;;  %12360 = vst [vmem:[#allocation156_spill] sm:$0xff] %v8080_v60  ;;  %v301_v34 = vld [vmem:[#allocation5 + $0x358] sm:$0xff]  ;;  %v8102_v60 = vsub.f32 %v292_v7, %v3138_v36  ;;  %5799 = vmatpush1.bf16.msra.mxu0 %v8094_v13  ;;  %v8110_v21 = vsub.f32 %v299_v62, %v576_v39  ;;  %v8112_v8 = vsub.f32 %v303_v61, %v580_v17 }
  0xab   : > { %12361 = vst [vmem:[#allocation157_spill] sm:$0xff] %v8082_v57  ;;  %12362 = vst [vmem:[#allocation158_spill] sm:$0xff] %v8084_v28  ;;  %v302_v28 = vld [vmem:[#allocation5 + $0x360] sm:$0xff]  ;;  %v300_v57 = vld [vmem:[#allocation5 + $0x350] sm:$0xff]  ;;  %v3144_v53 = vand.u32 4294901760, %v301_v34  ;;  %6567 = vmatpush1.bf16.msra.mxu1 %v8100_v25  ;;  %v3148_v7 = vand.u32 4294901760, %v305_v26  ;;  %5801 = vmatprep.subr.bf16.mxu0 %v8108_v30 }
  0xac   : > { %12363 = vst [vmem:[#allocation159_spill] sm:$0xff] %v8088_v20  ;;  %12364 = vst [vmem:[#allocation160_spill] sm:$0xff] %v8090_v32  ;;  %v8104_v20 = vsub.f32 %v296_v14, %v3142_v49  ;;  %v578_v48 = vand.u32 4294901760, %v298_v15  ;;  %v582_v14 = vand.u32 4294901760, %v302_v28  ;;  %v3146_v43 = vand.u32 4294901760, %v300_v57 }
  0xad   : > { %12365 = vst [vmem:[#allocation161_spill] sm:$0xff] %v8092_v5  ;;  %12366 = vst [vmem:[#allocation162_spill] sm:$0xff] %v8094_v13  ;;  %v8116_v36 = vsub.f32 %v301_v34, %v3144_v53  ;;  %v3150_v49 = vand.u32 4294901760, %v304_v51  ;;  %v584_v32 = vand.u32 4294901760, %v307_v38  ;;  %v588_v13 = vand.u32 4294901760, %v311_v2  ;;  %v319_v5 = vld [vmem:[#allocation5 + $0x3e8] sm:$0xff] }
  0xae   : > { %12367 = vst [vmem:[#allocation163_spill] sm:$0xff] %v8096_v35  ;;  %12368 = vst [vmem:[#allocation164_spill] sm:$0xff] %v8098_v44  ;;  %v8118_v39 = vpack.c.bf16 %v3148_v7, %v3144_v53  ;;  %v8120_v61 = vsub.f32 %v305_v26, %v3148_v7  ;;  %v8122_v17 = vpack.c.bf16 %v582_v14, %v578_v48  ;;  %v312_v35 = vld [vmem:[#allocation5 + $0x3b0] sm:$0xff]  ;;  %v315_v53 = vld [vmem:[#allocation5 + $0x3c8] sm:$0xff] }
  0xaf   : > { %12369 = vst [vmem:[#allocation165_spill] sm:$0xff] %v8100_v25  ;;  %12370 = vst [vmem:[#allocation166_spill] sm:$0xff] %v8102_v60  ;;  %v313_v60 = vld [vmem:[#allocation5 + $0x3b8] sm:$0xff]  ;;  %v8124_v62 = vsub.f32 %v298_v15, %v578_v48  ;;  %v306_v25 = vld [vmem:[#allocation5 + $0x380] sm:$0xff]  ;;  %v8126_v44 = vsub.f32 %v302_v28, %v582_v14  ;;  %v8128_v34 = vpack.c.bf16 %v3150_v49, %v3146_v43 }
  0xb0   : > { %12371 = vst [vmem:[#allocation167_spill] sm:$0xff] %v8104_v20  ;;  %12372 = vst [vmem:[#allocation168_spill] sm:$0xff] %v8108_v30  ;;  %v309_v20 = vld [vmem:[#allocation5 + $0x398] sm:$0xff]  ;;  %v8130_v30 = vsub.f32 %v300_v57, %v3146_v43  ;;  %6569 = vmatprep.subr.bf16.mxu1 %v8118_v39  ;;  %5803 = vmatpush1.bf16.msra.mxu0 %v8122_v17  ;;  %v8136_v26 = vpack.c.bf16 %v588_v13, %v584_v32  ;;  %v3156_v57 = vand.u32 4294901760, %v313_v60 }
  0xb1   : > { %12373 = vst [vmem:[#allocation169_spill] sm:$0xff] %v8110_v21  ;;  %12374 = vst [vmem:[#allocation170_spill] sm:$0xff] %v8112_v8  ;;  %v310_v8 = vld [vmem:[#allocation5 + $0x3a0] sm:$0xff]  ;;  %v308_v21 = vld [vmem:[#allocation5 + $0x390] sm:$0xff]  ;;  %v8138_v15 = vsub.f32 %v307_v38, %v584_v32  ;;  %v8140_v7 = vsub.f32 %v311_v2, %v588_v13  ;;  %v3152_v28 = vand.u32 4294901760, %v309_v20  ;;  %6571 = vmatpush1.bf16.msra.mxu1 %v8128_v34  ;;  %v586_v48 = vand.u32 4294901760, %v306_v25 }
  0xb2   : > { %12375 = vst [vmem:[#allocation171_spill] sm:$0xff] %v8116_v36  ;;  %12376 = vst [vmem:[#allocation172_spill] sm:$0xff] %v8118_v39  ;;  %v8132_v36 = vsub.f32 %v304_v51, %v3150_v49  ;;  %v590_v51 = vand.u32 4294901760, %v310_v8  ;;  %v3154_v14 = vand.u32 4294901760, %v308_v21  ;;  %5805 = vmatprep.subr.bf16.mxu0 %v8136_v26  ;;  %v3158_v49 = vand.u32 4294901760, %v312_v35  ;;  %v321_v32 = vld [vmem:[#allocation5 + $0x3f8] sm:$0xff] }
  0xb3   : > { %12377 = vst [vmem:[#allocation173_spill] sm:$0xff] %v8120_v61  ;;  %12378 = vst [vmem:[#allocation174_spill] sm:$0xff] %v8122_v17  ;;  %v8144_v43 = vsub.f32 %v309_v20, %v3152_v28  ;;  %v592_v39 = vand.u32 4294901760, %v315_v53  ;;  %v596_v17 = vand.u32 4294901760, %v319_v5  ;;  %v8146_v38 = vpack.c.bf16 %v3156_v57, %v3152_v28 }
  0xb4   : > { %12379 = vst [vmem:[#allocation175_spill] sm:$0xff] %v8124_v62  ;;  %12380 = vst [vmem:[#allocation176_spill] sm:$0xff] %v8126_v44  ;;  %v8148_v2 = vsub.f32 %v313_v60, %v3156_v57  ;;  %v8150_v13 = vpack.c.bf16 %v590_v51, %v586_v48  ;;  %v8156_v20 = vpack.c.bf16 %v3158_v49, %v3154_v14  ;;  %v320_v62 = vld [vmem:[#allocation5 + $0x3f0] sm:$0xff] }
  0xb5   : > { %12381 = vst [vmem:[#allocation177_spill] sm:$0xff] %v8128_v34  ;;  %12382 = vst [vmem:[#allocation178_spill] sm:$0xff] %v8130_v30  ;;  %v8152_v34 = vsub.f32 %v306_v25, %v586_v48  ;;  %v316_v30 = vld [vmem:[#allocation5 + $0x3d0] sm:$0xff]  ;;  %v8160_v44 = vsub.f32 %v312_v35, %v3158_v49  ;;  %6573 = vmatprep.subr.bf16.mxu1 %v8146_v38  ;;  %v8165_v60 = vpack.c.bf16 %v596_v17, %v592_v39 }
  0xb6   : > { %12383 = vst [vmem:[#allocation179_spill] sm:$0xff] %v8132_v36  ;;  %12384 = vst [vmem:[#allocation180_spill] sm:$0xff] %v8136_v26  ;;  %v317_v36 = vld [vmem:[#allocation5 + $0x3d8] sm:$0xff]  ;;  %v8154_v26 = vsub.f32 %v310_v8, %v590_v51  ;;  %5807 = vmatpush1.bf16.msra.mxu0 %v8150_v13  ;;  %v8167_v25 = vsub.f32 %v315_v53, %v592_v39  ;;  %v8169_v57 = vsub.f32 %v319_v5, %v596_v17 }
  0xb7   : > { %12385 = vst [vmem:[#allocation181_spill] sm:$0xff] %v8138_v15  ;;  %12386 = vst [vmem:[#allocation182_spill] sm:$0xff] %v8140_v7  ;;  %v314_v7 = vld [vmem:[#allocation5 + $0x3c0] sm:$0xff]  ;;  %v7408_v28 = vld.sshfl [vmem:[%s7733_s16] sm:$0xff pattern:$0x76325410]  ;;  %6575 = vmatpush1.bf16.msra.mxu1 %v8156_v20  ;;  %5809 = vmatprep.subr.bf16.mxu0 %v8165_v60 }
  0xb8   : > { %12387 = vst [vmem:[#allocation183_spill] sm:$0xff] %v8144_v43  ;;  %12388 = vst [vmem:[#allocation184_spill] sm:$0xff] %v8146_v38  ;;  %v318_v15 = vld [vmem:[#allocation5 + $0x3e0] sm:$0xff]  ;;  %v8158_v43 = vsub.f32 %v308_v21, %v3154_v14  ;;  %v3160_v8 = vand.u32 4294901760, %v317_v36  ;;  %v3164_v48 = vand.u32 4294901760, %v321_v32  ;;  %v594_v21 = vand.u32 4294901760, %v314_v7 }
  0xb9   : > { %12389 = vst [vmem:[#allocation185_spill] sm:$0xff] %v8148_v2  ;;  %12390 = vst [vmem:[#allocation186_spill] sm:$0xff] %v8150_v13  ;;  %v598_v51 = vand.u32 4294901760, %v318_v15  ;;  %v3162_v35 = vand.u32 4294901760, %v316_v30  ;;  %v3166_v49 = vand.u32 4294901760, %v320_v62 }
  0xba   : > { %12391 = vst [vmem:[#allocation187_spill] sm:$0xff] %v8152_v34  ;;  %12392 = vst [vmem:[#allocation188_spill] sm:$0xff] %v8154_v26  ;;  %v8173_v14 = vsub.f32 %v317_v36, %v3160_v8  ;;  %v8175_v38 = vpack.c.bf16 %v3164_v48, %v3160_v8  ;;  %v8177_v13 = vsub.f32 %v321_v32, %v3164_v48  ;;  %v8193_v8 = vand.u32 4294901760, %v7408_v28 }
  0xbb   : > { %12393 = vst [vmem:[#allocation189_spill] sm:$0xff] %v8156_v20  ;;  %12394 = vst [vmem:[#allocation190_spill] sm:$0xff] %v8158_v43  ;;  %v8179_v39 = vpack.c.bf16 %v598_v51, %v594_v21  ;;  %v8181_v5 = vsub.f32 %v314_v7, %v594_v21  ;;  %v8183_v17 = vsub.f32 %v318_v15, %v598_v51  ;;  %v11533_v32 = vand.u32 4294901760, %v7747_v22 }
  0xbc   : > { %12395 = vst [vmem:[#allocation191_spill] sm:$0xff] %v8160_v44  ;;  %12396 = vst [vmem:[#allocation192_spill] sm:$0xff] %v8165_v60  ;;  %v8185_v53 = vpack.c.bf16 %v3166_v49, %v3162_v35  ;;  %v8187_v20 = vsub.f32 %v316_v30, %v3162_v35  ;;  %6577 = vmatprep.subr.bf16.mxu1 %v8175_v38  ;;  %v466_v36 = vcombine.high %v7408_v28, %v7408_v28 }
  0xbd   : > { %12397 = vst [vmem:[#allocation193_spill] sm:$0xff] %v8167_v25  ;;  %12398 = vst [vmem:[#allocation194_spill] sm:$0xff] %v8169_v57  ;;  %v8189_v57 = vsub.f32 %v320_v62, %v3166_v49  ;;  %5811 = vmatpush1.bf16.msra.mxu0 %v8179_v39  ;;  %v11536_v7 = vand.u32 4294901760, %v7749_v23  ;;  %v11541_v15 = vand.u32 4294901760, %v7751_v24  ;;  %v620_v51 = vsub.f32 %v7747_v22, %v11533_v32 }
  0xbe   : > { %12399 = vst [vmem:[#allocation195_spill] sm:$0xff] %v8173_v14  ;;  %12400 = vst [vmem:[#allocation196_spill] sm:$0xff] %v8175_v38  ;;  %6579 = vmatpush1.bf16.msra.mxu1 %v8185_v53  ;;  %v8202_v21 = vand.u32 4294901760, %v466_v36  ;;  %v8211_v49 = vsub.f32 %v7408_v28, %v8193_v8  ;;  %v12411_v62 = vand.u32 4294901760, %v7755_v29  ;;  %v12413_v32 = vand.u32 4294901760, %v7762_v33 }
  0xbf   : > { %12401 = vst [vmem:[#allocation197_spill] sm:$0xff] %v8177_v13  ;;  %12402 = vst [vmem:[#allocation198_spill] sm:$0xff] %v8179_v39  ;;  %v632_v35 = vsub.f32 %v7749_v23, %v11536_v7  ;;  %v3188_v30 = vsub.f32 %v7751_v24, %v11541_v15  ;;  %v621_v28 = vand.u32 4294901760, %v620_v51  ;;  %v11553_v51 = vand.u32 4294901760, %v7770_v46 }
  0xc0   : > { %12403 = vst [vmem:[#allocation199_spill] sm:$0xff] %v8181_v5  ;;  %12404 = vst [vmem:[#allocation200_spill] sm:$0xff] %v8183_v17  ;;  %v3200_v48 = vsub.f32 %v7755_v29, %v12411_v62  ;;  %v638_v38 = vsub.f32 %v7762_v33, %v12413_v32  ;;  %v8226_v7 = vsub.f32 %v466_v36, %v8202_v21  ;;  %v11552_v32 = vand.u32 4294901760, %v7768_v45 }
  0xc1   : > { %12405 = vst [vmem:[#allocation201_spill] sm:$0xff] %v8185_v53  ;;  %12406 = vst [vmem:[#allocation202_spill] sm:$0xff] %v8187_v20  ;;  %v12412_v53 = vand.u32 4294901760, %v7759_v31  ;;  %v633_v60 = vand.u32 4294901760, %v632_v35  ;;  %v3189_v15 = vand.u32 4294901760, %v3188_v30  ;;  %v11554_v35 = vand.u32 4294901760, %v7772_v47 }
  0xc2   : > { %12407 = vst [vmem:[#allocation203_spill] sm:$0xff] %v8189_v57  ;;  %12408 = vst [vmem:[#allocation204_spill] sm:$0xff] %v8193_v8  ;;  %v8229_v8 = vand.u32 4294901760, %v8211_v49  ;;  %v3201_v24 = vand.u32 4294901760, %v3200_v48  ;;  %v639_v62 = vand.u32 4294901760, %v638_v38  ;;  %v8232_v29 = vand.u32 4294901760, %v8226_v7 }
  0xc3   : > { %12409 = vst [vmem:[#allocation205_spill] sm:$0xff] %v8202_v21  ;;  %12410 = vst [vmem:[#allocation206_spill] sm:$0xff] %v8211_v49  ;;  %v626_v39 = vsub.f32 %v7759_v31, %v12412_v53  ;;  %v5812_v53 = vpack.c.bf16 %v633_v60, %v621_v28  ;;  %v3194_v60 = vsub.f32 %v7768_v45, %v11552_v32  ;;  %v11561_v48 = vand.u32 4294901760, %v7783_v56 }
  0xc4   : > { %12414 = vst [vmem:[#allocation207_spill] sm:$0xff] %v8226_v7  ;;  %12415 = vst [vmem:[#allocation208_spill] sm:$0xff] %v8229_v8  ;;  %v609_v31 = vsub.f32 %v8211_v49, %v8229_v8  ;;  %v6580_v36 = vpack.c.bf16 %v3201_v24, %v3189_v15  ;;  %v603_v30 = vsub.f32 %v8226_v7, %v8232_v29  ;;  %v11558_v15 = vand.u32 4294901760, %v7780_v54 }
  0xc5   : > { %v627_v23 = vand.u32 4294901760, %v626_v39  ;;  %12416 = vst [vmem:[#allocation209_spill] sm:$0xff] %v8232_v29  ;;  %5813 = vmatprep.subr.bf16.mxu0 %v5812_v53  ;;  %v11555_v39 = vand.u32 4294901760, %v7776_v52  ;;  %v644_v24 = vsub.f32 %v7772_v47, %v11554_v35  ;;  %v3195_v28 = vand.u32 4294901760, %v3194_v60 }
  0xc6   : > { %v610_v38 = vand.u32 4294901760, %v609_v31  ;;  %6581 = vmatprep.subr.bf16.mxu1 %v6580_v36  ;;  %v604_v31 = vand.u32 4294901760, %v603_v30  ;;  %v11581_v53 = vand.u32 4294901760, %v7785_v58  ;;  %v3224_v35 = vsub.f32 %v7783_v56, %v11561_v48 }
  0xc7   : > { %v5814_v33 = vpack.c.bf16 %v639_v62, %v627_v23  ;;  %v3206_v23 = vsub.f32 %v7770_v46, %v11553_v51  ;;  %v656_v62 = vsub.f32 %v7776_v52, %v11555_v39  ;;  %v645_v32 = vand.u32 4294901760, %v644_v24 }
  0xc8   : > { %v3212_v51 = vsub.f32 %v7780_v54, %v11558_v15  ;;  %605 = vmatprep.mubr.f32.mxu0 %v604_v31  ;;  %3173 = vmatprep.mubr.f32.mxu1 %v604_v31  ;;  %v650_v60 = vsub.f32 %v7785_v58, %v11581_v53  ;;  %v11570_v39 = vand.u32 4294901760, %v7791_v3  ;;  %v3225_v15 = vand.u32 4294901760, %v3224_v35 }
  0xc9   : > { %v3207_v36 = vand.u32 4294901760, %v3206_v23  ;;  %v657_v30 = vand.u32 4294901760, %v656_v62  ;;  %v11567_v23 = vand.u32 4294901760, %v7793_v4  ;;  %611 = vmatmul.mubr.f32.vlgmr.msra.gmra.mrb[0].mxu0 %v610_v38  ;;  %3179 = vmatmul.mubr.f32.vlgmr.msra.gmra.mrb[0].mxu1 %v610_v38  ;;  %v11564_v29 = vand.u32 4294901760, %v7797_v10 }
  0xca   : > { %v3213_v8 = vand.u32 4294901760, %v3212_v51  ;;  %5815 = vmatpush1.bf16.msra.mxu0 %v5814_v33  ;;  %v651_v49 = vand.u32 4294901760, %v650_v60  ;;  %v662_v31 = vsub.f32 %v7791_v3, %v11570_v39  ;;  %1002 = vmatprep.mubr.f32.mxu0 %v8202_v21  ;;  %v11565_v33 = vand.u32 4294901760, %v7801_v12 }
  0xcb   : > { %v6582_v24 = vpack.c.bf16 %v3207_v36, %v3195_v28  ;;  %v5816_v48 = vpack.c.bf16 %v657_v30, %v645_v32  ;;  %v3218_v62 = vsub.f32 %v7793_v4, %v11567_v23  ;;  %v3230_v51 = vsub.f32 %v7797_v10, %v11564_v29  ;;  %3570 = vmatprep.mubr.f32.mxu1 %v8202_v21 }
  0xcc   : > { %v6584_v38 = vpack.c.bf16 %v3225_v15, %v3213_v8  ;;  %v11566_v32 = vand.u32 4294901760, %v7804_v16  ;;  %v663_v35 = vand.u32 4294901760, %v662_v31  ;;  %v11568_v36 = vand.u32 4294901760, %v7808_v18 }
  0xcd   : > { %6583 = vmatpush1.bf16.msra.mxu1 %v6582_v24  ;;  %5817 = vmatprep.subr.bf16.mxu0 %v5816_v48  ;;  %v3219_v28 = vand.u32 4294901760, %v3218_v62  ;;  %v11569_v30 = vand.u32 4294901760, %v7810_v19  ;;  %v3231_v60 = vand.u32 4294901760, %v3230_v51  ;;  %v668_v8 = vsub.f32 %v7801_v12, %v11565_v33 }
  0xce   : > { %6585 = vmatprep.subr.bf16.mxu1 %v6584_v38  ;;  %v680_v15 = vsub.f32 %v7804_v16, %v11566_v32  ;;  %v11577_v24 = vand.u32 4294901760, %v7817_v40  ;;  %v5818_v29 = vpack.c.bf16 %v663_v35, %v651_v49  ;;  %v3236_v48 = vsub.f32 %v7808_v18, %v11568_v36 }
  0xcf   : > { %v3248_v31 = vsub.f32 %v7810_v19, %v11569_v30  ;;  %v11575_v62 = vand.u32 4294901760, %v7819_v41  ;;  %v6586_v38 = vpack.c.bf16 %v3231_v60, %v3219_v28  ;;  %v669_v51 = vand.u32 4294901760, %v668_v8 }
  0xd0   : > { %v681_v33 = vand.u32 4294901760, %v680_v15  ;;  %v674_v32 = vsub.f32 %v7817_v40, %v11577_v24  ;;  %5819 = vmatpush1.bf16.msra.mxu0 %v5818_v29  ;;  %v3237_v23 = vand.u32 4294901760, %v3236_v48  ;;  %v11571_v36 = vand.u32 4294901760, %v7823_v50 }
  0xd1   : > { %v3249_v49 = vand.u32 4294901760, %v3248_v31  ;;  %v686_v35 = vsub.f32 %v7819_v41, %v11575_v62  ;;  %6587 = vmatpush1.bf16.msra.mxu1 %v6586_v38  ;;  %v11572_v28 = vand.u32 4294901760, %v7825_v55  ;;  %v11573_v60 = vand.u32 4294901760, %v7829_v59 }
  0xd2   : > { %v5820_v30 = vpack.c.bf16 %v681_v33, %v669_v51  ;;  %v675_v39 = vand.u32 4294901760, %v674_v32  ;;  %v3242_v29 = vsub.f32 %v7823_v50, %v11571_v36  ;;  %v11574_v48 = vand.u32 4294901760, %v7833_v63 }
  0xd3   : > { %v6588_v8 = vpack.c.bf16 %v3249_v49, %v3237_v23  ;;  %v687_v15 = vand.u32 4294901760, %v686_v35  ;;  %v3254_v31 = vsub.f32 %v7825_v55, %v11572_v28  ;;  %v692_v33 = vsub.f32 %v7829_v59, %v11573_v60 }
  0xd4   : > { %5821 = vmatprep.subr.bf16.mxu0 %v5820_v30  ;;  %v11576_v32 = vand.u32 4294901760, %v7837_v1  ;;  %v11580_v23 = vand.u32 4294901760, %v7840_v6  ;;  %v3243_v51 = vand.u32 4294901760, %v3242_v29  ;;  %v704_v49 = vsub.f32 %v7833_v63, %v11574_v48 }
  0xd5   : > { %6589 = vmatprep.subr.bf16.mxu1 %v6588_v8  ;;  %v5822_v38 = vpack.c.bf16 %v687_v15, %v675_v39  ;;  %v11578_v30 = vand.u32 4294901760, %v7843_v27  ;;  %v3255_v35 = vand.u32 4294901760, %v3254_v31  ;;  %v693_v36 = vand.u32 4294901760, %v692_v33 }
  0xd6   : > { %v3260_v28 = vsub.f32 %v7837_v1, %v11576_v32  ;;  %v3272_v60 = vsub.f32 %v7840_v6, %v11580_v23  ;;  %v705_v8 = vand.u32 4294901760, %v704_v49  ;;  %v11579_v15 = vand.u32 4294901760, %v7847_v42 }
  0xd7   : > { %5823 = vmatpush1.bf16.msra.mxu0 %v5822_v38  ;;  %v698_v39 = vsub.f32 %v7843_v27, %v11578_v30  ;;  %v11583_v29 = vand.u32 4294901760, %v7851_v37  ;;  %v6590_v31 = vpack.c.bf16 %v3255_v35, %v3243_v51  ;;  %v11582_v62 = vand.u32 4294901760, %v7853_v0 }
  0xd8   : > { %v3261_v33 = vand.u32 4294901760, %v3260_v28  ;;  %v3273_v48 = vand.u32 4294901760, %v3272_v60  ;;  %v5824_v32 = vpack.c.bf16 %v705_v8, %v693_v36  ;;  %v710_v38 = vsub.f32 %v7847_v42, %v11579_v15  ;;  %v12417_v8 = vld [vmem:[#allocation63_spill] sm:$0xff]  ;;  %v12418_v15 = vld [vmem:[#allocation65_spill] sm:$0xff] }
  0xd9   : > { %v699_v24 = vand.u32 4294901760, %v698_v39  ;;  %v3266_v49 = vsub.f32 %v7851_v37, %v11583_v29  ;;  %6591 = vmatpush1.bf16.msra.mxu1 %v6590_v31  ;;  %v3278_v51 = vsub.f32 %v7853_v0, %v11582_v62  ;;  %v11586_v28 = vand.u32 4294901760, %v7857_v11 }
  0xda   : > { %v6592_v30 = vpack.c.bf16 %v3273_v48, %v3261_v33  ;;  %v11587_v60 = vand.u32 4294901760, %v7859_v9  ;;  %5825 = vmatprep.subr.bf16.mxu0 %v5824_v32  ;;  %v711_v36 = vand.u32 4294901760, %v710_v38  ;;  %v11590_v39 = vand.u32 4294901760, %v12417_v8  ;;  %v12419_v33 = vld [vmem:[#allocation67_spill] sm:$0xff]  ;;  %v12420_v38 = vld [vmem:[#allocation68_spill] sm:$0xff] }
  0xdb   : > { %v3267_v35 = vand.u32 4294901760, %v3266_v49  ;;  %v11592_v23 = vand.u32 4294901760, %v12418_v15  ;;  %v3279_v53 = vand.u32 4294901760, %v3278_v51  ;;  %v716_v48 = vsub.f32 %v7857_v11, %v11586_v28 }
  0xdc   : > { %6593 = vmatprep.subr.bf16.mxu1 %v6592_v30  ;;  %v728_v31 = vsub.f32 %v7859_v9, %v11587_v60  ;;  %v11600_v62 = vand.u32 4294901760, %v12419_v33  ;;  %v5826_v29 = vpack.c.bf16 %v711_v36, %v699_v24  ;;  %v3284_v32 = vsub.f32 %v12417_v8, %v11590_v39  ;;  %v12421_v39 = vld [vmem:[#allocation70_spill] sm:$0xff]  ;;  %v12422_v9 = vld [vmem:[#allocation71_spill] sm:$0xff] }
  0xdd   : > { %v3296_v30 = vsub.f32 %v12418_v15, %v11592_v23  ;;  %v11598_v49 = vand.u32 4294901760, %v12420_v38  ;;  %v6594_v51 = vpack.c.bf16 %v3279_v53, %v3267_v35  ;;  %v717_v21 = vand.u32 4294901760, %v716_v48  ;;  %v12423_v35 = vld [vmem:[#allocation73_spill] sm:$0xff] }
  0xde   : > { %v729_v28 = vand.u32 4294901760, %v728_v31  ;;  %v722_v60 = vsub.f32 %v12419_v33, %v11600_v62  ;;  %5827 = vmatpush1.bf16.msra.mxu0 %v5826_v29  ;;  %v3285_v7 = vand.u32 4294901760, %v3284_v32  ;;  %v11599_v8 = vand.u32 4294901760, %v12421_v39  ;;  %v12424_v32 = vld [vmem:[#allocation74_spill] sm:$0xff] }
  0xdf   : > { %v3297_v24 = vand.u32 4294901760, %v3296_v30  ;;  %v734_v36 = vsub.f32 %v12420_v38, %v11598_v49  ;;  %6595 = vmatpush1.bf16.msra.mxu1 %v6594_v51  ;;  %v11603_v53 = vand.u32 4294901760, %v12422_v9  ;;  %v11604_v48 = vand.u32 4294901760, %v12423_v35  ;;  %v12426_v51 = vld [vmem:[#allocation77_spill] sm:$0xff] }
  0xe0   : > { %v5828_v23 = vpack.c.bf16 %v729_v28, %v717_v21  ;;  %v723_v15 = vand.u32 4294901760, %v722_v60  ;;  %v3290_v29 = vsub.f32 %v12421_v39, %v11599_v8  ;;  %v11605_v30 = vand.u32 4294901760, %v12424_v32  ;;  %v12425_v28 = vld [vmem:[#allocation75_spill] sm:$0xff] }
  0xe1   : > { %v6596_v31 = vpack.c.bf16 %v3297_v24, %v3285_v7  ;;  %v735_v11 = vand.u32 4294901760, %v734_v36  ;;  %v3302_v49 = vsub.f32 %v12422_v9, %v11603_v53  ;;  %v740_v21 = vsub.f32 %v12423_v35, %v11604_v48  ;;  %v12430_v9 = vld [vmem:[#allocation83_spill] sm:$0xff] }
  0xe2   : > { %5829 = vmatprep.subr.bf16.mxu0 %v5828_v23  ;;  %v11610_v60 = vand.u32 4294901760, %v12425_v28  ;;  %v11613_v7 = vand.u32 4294901760, %v12426_v51  ;;  %v3291_v36 = vand.u32 4294901760, %v3290_v29  ;;  %v752_v8 = vsub.f32 %v12424_v32, %v11605_v30  ;;  %v12427_v23 = vld [vmem:[#allocation79_spill] sm:$0xff]  ;;  %v12429_v30 = vld [vmem:[#allocation82_spill] sm:$0xff] }
  0xe3   : > { %6597 = vmatprep.subr.bf16.mxu1 %v6596_v31  ;;  %v5830_v24 = vpack.c.bf16 %v735_v11, %v723_v15  ;;  %v11612_v62 = vand.u32 4294901760, %v12427_v23  ;;  %v3303_v39 = vand.u32 4294901760, %v3302_v49  ;;  %v741_v38 = vand.u32 4294901760, %v740_v21  ;;  %v12428_v15 = vld [vmem:[#allocation80_spill] sm:$0xff] }
  0xe4   : > { %v3308_v53 = vsub.f32 %v12425_v28, %v11610_v60  ;;  %v3320_v48 = vsub.f32 %v12426_v51, %v11613_v7  ;;  %v753_v31 = vand.u32 4294901760, %v752_v8  ;;  %v11615_v29 = vand.u32 4294901760, %v12428_v15 }
  0xe5   : > { %5831 = vmatpush1.bf16.msra.mxu0 %v5830_v24  ;;  %v746_v11 = vsub.f32 %v12427_v23, %v11612_v62  ;;  %v11619_v32 = vand.u32 4294901760, %v12429_v30  ;;  %v6598_v49 = vpack.c.bf16 %v3303_v39, %v3291_v36  ;;  %v11618_v33 = vand.u32 4294901760, %v12430_v9  ;;  %v12432_v36 = vld [vmem:[#allocation86_spill] sm:$0xff] }
  0xe6   : > { %v3309_v21 = vand.u32 4294901760, %v3308_v53  ;;  %v3321_v35 = vand.u32 4294901760, %v3320_v48  ;;  %v5832_v60 = vpack.c.bf16 %v753_v31, %v741_v38  ;;  %v758_v24 = vsub.f32 %v12428_v15, %v11615_v29  ;;  %v12431_v53 = vld [vmem:[#allocation85_spill] sm:$0xff] }
  0xe7   : > { %v747_v28 = vand.u32 4294901760, %v746_v11  ;;  %v3314_v8 = vsub.f32 %v12429_v30, %v11619_v32  ;;  %6599 = vmatpush1.bf16.msra.mxu1 %v6598_v49  ;;  %v3326_v39 = vsub.f32 %v12430_v9, %v11618_v33  ;;  %v11621_v48 = vand.u32 4294901760, %v12431_v53  ;;  %v12433_v11 = vld [vmem:[#allocation87_spill] sm:$0xff]  ;;  %v12434_v29 = vld [vmem:[#allocation89_spill] sm:$0xff] }
  0xe8   : > { %v6600_v62 = vpack.c.bf16 %v3321_v35, %v3309_v21  ;;  %v11622_v7 = vand.u32 4294901760, %v12432_v36  ;;  %5833 = vmatprep.subr.bf16.mxu0 %v5832_v60  ;;  %v759_v38 = vand.u32 4294901760, %v758_v24  ;;  %v11624_v23 = vand.u32 4294901760, %v12433_v11  ;;  %v12435_v21 = vld [vmem:[#allocation91_spill] sm:$0xff]  ;;  %v12436_v24 = vld [vmem:[#allocation92_spill] sm:$0xff] }
  0xe9   : > { %v3315_v31 = vand.u32 4294901760, %v3314_v8  ;;  %v11626_v15 = vand.u32 4294901760, %v12434_v29  ;;  %v3327_v51 = vand.u32 4294901760, %v3326_v39  ;;  %v764_v35 = vsub.f32 %v12431_v53, %v11621_v48  ;;  %v12438_v53 = vld [vmem:[#allocation95_spill] sm:$0xff] }
  0xea   : > { %6601 = vmatprep.subr.bf16.mxu1 %v6600_v62  ;;  %v776_v49 = vsub.f32 %v12432_v36, %v11622_v7  ;;  %v11632_v33 = vand.u32 4294901760, %v12435_v21  ;;  %v5834_v32 = vpack.c.bf16 %v759_v38, %v747_v28  ;;  %v3332_v60 = vsub.f32 %v12433_v11, %v11624_v23  ;;  %v12437_v23 = vld [vmem:[#allocation94_spill] sm:$0xff] }
  0xeb   : > { %v3344_v62 = vsub.f32 %v12434_v29, %v11626_v15  ;;  %v11630_v8 = vand.u32 4294901760, %v12436_v24  ;;  %v6602_v39 = vpack.c.bf16 %v3327_v51, %v3315_v31  ;;  %v765_v9 = vand.u32 4294901760, %v764_v35  ;;  %v12439_v31 = vld [vmem:[#allocation97_spill] sm:$0xff] }
  0xec   : > { %v777_v48 = vand.u32 4294901760, %v776_v49  ;;  %v770_v7 = vsub.f32 %v12435_v21, %v11632_v33  ;;  %5835 = vmatpush1.bf16.msra.mxu0 %v5834_v32  ;;  %v3333_v36 = vand.u32 4294901760, %v3332_v60  ;;  %v11631_v11 = vand.u32 4294901760, %v12437_v23  ;;  %v12440_v60 = vld [vmem:[#allocation98_spill] sm:$0xff] }
  0xed   : > { %v3345_v28 = vand.u32 4294901760, %v3344_v62  ;;  %v782_v38 = vsub.f32 %v12436_v24, %v11630_v8  ;;  %6603 = vmatpush1.bf16.msra.mxu1 %v6602_v39  ;;  %v11635_v51 = vand.u32 4294901760, %v12438_v53  ;;  %v11636_v35 = vand.u32 4294901760, %v12439_v31  ;;  %v12442_v39 = vld [vmem:[#allocation101_spill] sm:$0xff] }
  0xee   : > { %v5836_v15 = vpack.c.bf16 %v777_v48, %v765_v9  ;;  %v771_v29 = vand.u32 4294901760, %v770_v7  ;;  %v3338_v32 = vsub.f32 %v12437_v23, %v11631_v11  ;;  %v11637_v62 = vand.u32 4294901760, %v12440_v60  ;;  %v12441_v7 = vld [vmem:[#allocation99_spill] sm:$0xff] }
  0xef   : > { %v6604_v49 = vpack.c.bf16 %v3345_v28, %v3333_v36  ;;  %v783_v30 = vand.u32 4294901760, %v782_v38  ;;  %v3350_v8 = vsub.f32 %v12438_v53, %v11635_v51  ;;  %v788_v9 = vsub.f32 %v12439_v31, %v11636_v35  ;;  %v12446_v53 = vld [vmem:[#allocation107_spill] sm:$0xff] }
  0xf0   : > { %5837 = vmatprep.subr.bf16.mxu0 %v5836_v15  ;;  %v11642_v48 = vand.u32 4294901760, %v12441_v7  ;;  %v11645_v36 = vand.u32 4294901760, %v12442_v39  ;;  %v3339_v38 = vand.u32 4294901760, %v3338_v32  ;;  %v800_v11 = vsub.f32 %v12440_v60, %v11637_v62  ;;  %v12443_v15 = vld [vmem:[#allocation103_spill] sm:$0xff]  ;;  %v12445_v62 = vld [vmem:[#allocation106_spill] sm:$0xff] }
  0xf1   : > { %6605 = vmatprep.subr.bf16.mxu1 %v6604_v49  ;;  %v5838_v28 = vpack.c.bf16 %v783_v30, %v771_v29  ;;  %v11644_v33 = vand.u32 4294901760, %v12443_v15  ;;  %v3351_v23 = vand.u32 4294901760, %v3350_v8  ;;  %v789_v24 = vand.u32 4294901760, %v788_v9  ;;  %v12444_v29 = vld [vmem:[#allocation104_spill] sm:$0xff] }
  0xf2   : > { %v3356_v51 = vsub.f32 %v12441_v7, %v11642_v48  ;;  %v3368_v35 = vsub.f32 %v12442_v39, %v11645_v36  ;;  %v801_v49 = vand.u32 4294901760, %v800_v11  ;;  %v11647_v32 = vand.u32 4294901760, %v12444_v29 }
  0xf3   : > { %5839 = vmatpush1.bf16.msra.mxu0 %v5838_v28  ;;  %v794_v30 = vsub.f32 %v12443_v15, %v11644_v33  ;;  %v11651_v60 = vand.u32 4294901760, %v12445_v62  ;;  %v6606_v8 = vpack.c.bf16 %v3351_v23, %v3339_v38  ;;  %v11650_v21 = vand.u32 4294901760, %v12446_v53  ;;  %v12448_v38 = vld [vmem:[#allocation110_spill] sm:$0xff] }
  0xf4   : > { %v3357_v9 = vand.u32 4294901760, %v3356_v51  ;;  %v3369_v31 = vand.u32 4294901760, %v3368_v35  ;;  %v5840_v48 = vpack.c.bf16 %v801_v49, %v789_v24  ;;  %v806_v28 = vsub.f32 %v12444_v29, %v11647_v32  ;;  %v12447_v51 = vld [vmem:[#allocation109_spill] sm:$0xff] }
  0xf5   : > { %v795_v7 = vand.u32 4294901760, %v794_v30  ;;  %v3362_v11 = vsub.f32 %v12445_v62, %v11651_v60  ;;  %6607 = vmatpush1.bf16.msra.mxu1 %v6606_v8  ;;  %v3374_v23 = vsub.f32 %v12446_v53, %v11650_v21  ;;  %v11653_v35 = vand.u32 4294901760, %v12447_v51  ;;  %v12449_v30 = vld [vmem:[#allocation111_spill] sm:$0xff]  ;;  %v12450_v32 = vld [vmem:[#allocation113_spill] sm:$0xff] }
  0xf6   : > { %v6608_v33 = vpack.c.bf16 %v3369_v31, %v3357_v9  ;;  %v11654_v36 = vand.u32 4294901760, %v12448_v38  ;;  %5841 = vmatprep.subr.bf16.mxu0 %v5840_v48  ;;  %v807_v24 = vand.u32 4294901760, %v806_v28  ;;  %v11656_v15 = vand.u32 4294901760, %v12449_v30  ;;  %v12451_v9 = vld [vmem:[#allocation115_spill] sm:$0xff]  ;;  %v12452_v28 = vld [vmem:[#allocation116_spill] sm:$0xff] }
  0xf7   : > { %v3363_v49 = vand.u32 4294901760, %v3362_v11  ;;  %v11658_v29 = vand.u32 4294901760, %v12450_v32  ;;  %v3375_v39 = vand.u32 4294901760, %v3374_v23  ;;  %v812_v31 = vsub.f32 %v12447_v51, %v11653_v35  ;;  %v12454_v51 = vld [vmem:[#allocation119_spill] sm:$0xff] }
  0xf8   : > { %6609 = vmatprep.subr.bf16.mxu1 %v6608_v33  ;;  %v824_v8 = vsub.f32 %v12448_v38, %v11654_v36  ;;  %v11664_v21 = vand.u32 4294901760, %v12451_v9  ;;  %v5842_v60 = vpack.c.bf16 %v807_v24, %v795_v7  ;;  %v3380_v48 = vsub.f32 %v12449_v30, %v11656_v15  ;;  %v12453_v15 = vld [vmem:[#allocation118_spill] sm:$0xff] }
  0xf9   : > { %v3392_v33 = vsub.f32 %v12450_v32, %v11658_v29  ;;  %v11662_v11 = vand.u32 4294901760, %v12452_v28  ;;  %v6610_v23 = vpack.c.bf16 %v3375_v39, %v3363_v49  ;;  %v813_v53 = vand.u32 4294901760, %v812_v31  ;;  %v12455_v49 = vld [vmem:[#allocation121_spill] sm:$0xff] }
  0xfa   : > { %v825_v35 = vand.u32 4294901760, %v824_v8  ;;  %v818_v36 = vsub.f32 %v12451_v9, %v11664_v21  ;;  %5843 = vmatpush1.bf16.msra.mxu0 %v5842_v60  ;;  %v3381_v38 = vand.u32 4294901760, %v3380_v48  ;;  %v11663_v30 = vand.u32 4294901760, %v12453_v15  ;;  %v12456_v48 = vld [vmem:[#allocation122_spill] sm:$0xff] }
  0xfb   : > { %v3393_v7 = vand.u32 4294901760, %v3392_v33  ;;  %v830_v24 = vsub.f32 %v12452_v28, %v11662_v11  ;;  %6611 = vmatpush1.bf16.msra.mxu1 %v6610_v23  ;;  %v11667_v39 = vand.u32 4294901760, %v12454_v51  ;;  %v11668_v31 = vand.u32 4294901760, %v12455_v49  ;;  %v12458_v23 = vld [vmem:[#allocation125_spill] sm:$0xff] }
  0xfc   : > { %v5844_v29 = vpack.c.bf16 %v825_v35, %v813_v53  ;;  %v819_v32 = vand.u32 4294901760, %v818_v36  ;;  %v3386_v60 = vsub.f32 %v12453_v15, %v11663_v30  ;;  %v11669_v33 = vand.u32 4294901760, %v12456_v48  ;;  %v12457_v36 = vld [vmem:[#allocation123_spill] sm:$0xff] }
  0xfd   : > { %v6612_v8 = vpack.c.bf16 %v3393_v7, %v3381_v38  ;;  %v831_v62 = vand.u32 4294901760, %v830_v24  ;;  %v3398_v11 = vsub.f32 %v12454_v51, %v11667_v39  ;;  %v836_v53 = vsub.f32 %v12455_v49, %v11668_v31  ;;  %v12462_v51 = vld [vmem:[#allocation131_spill] sm:$0xff] }
  0xfe   : > { %5845 = vmatprep.subr.bf16.mxu0 %v5844_v29  ;;  %v11674_v35 = vand.u32 4294901760, %v12457_v36  ;;  %v11677_v38 = vand.u32 4294901760, %v12458_v23  ;;  %v3387_v24 = vand.u32 4294901760, %v3386_v60  ;;  %v848_v30 = vsub.f32 %v12456_v48, %v11669_v33  ;;  %v12459_v29 = vld [vmem:[#allocation127_spill] sm:$0xff]  ;;  %v12461_v33 = vld [vmem:[#allocation130_spill] sm:$0xff] }
  0xff   : > { %6613 = vmatprep.subr.bf16.mxu1 %v6612_v8  ;;  %v5846_v7 = vpack.c.bf16 %v831_v62, %v819_v32  ;;  %v11676_v21 = vand.u32 4294901760, %v12459_v29  ;;  %v3399_v28 = vand.u32 4294901760, %v3398_v11  ;;  %v837_v9 = vand.u32 4294901760, %v836_v53  ;;  %v12460_v32 = vld [vmem:[#allocation128_spill] sm:$0xff] }
 0x100   : > { %v3404_v39 = vsub.f32 %v12457_v36, %v11674_v35  ;;  %v3416_v31 = vsub.f32 %v12458_v23, %v11677_v38  ;;  %v849_v8 = vand.u32 4294901760, %v848_v30  ;;  %v11679_v60 = vand.u32 4294901760, %v12460_v32 }
 0x101   : > { %5847 = vmatpush1.bf16.msra.mxu0 %v5846_v7  ;;  %v842_v62 = vsub.f32 %v12459_v29, %v11676_v21  ;;  %v11683_v48 = vand.u32 4294901760, %v12461_v33  ;;  %v6614_v11 = vpack.c.bf16 %v3399_v28, %v3387_v24  ;;  %v11682_v15 = vand.u32 4294901760, %v12462_v51  ;;  %v12464_v24 = vld [vmem:[#allocation134_spill] sm:$0xff] }
 0x102   : > { %v3405_v53 = vand.u32 4294901760, %v3404_v39  ;;  %v3417_v49 = vand.u32 4294901760, %v3416_v31  ;;  %v5848_v35 = vpack.c.bf16 %v849_v8, %v837_v9  ;;  %v854_v7 = vsub.f32 %v12460_v32, %v11679_v60  ;;  %v12463_v39 = vld [vmem:[#allocation133_spill] sm:$0xff] }
 0x103   : > { %v843_v36 = vand.u32 4294901760, %v842_v62  ;;  %v3410_v30 = vsub.f32 %v12461_v33, %v11683_v48  ;;  %6615 = vmatpush1.bf16.msra.mxu1 %v6614_v11  ;;  %v3422_v28 = vsub.f32 %v12462_v51, %v11682_v15  ;;  %v11685_v31 = vand.u32 4294901760, %v12463_v39  ;;  %v12465_v62 = vld [vmem:[#allocation135_spill] sm:$0xff]  ;;  %v12466_v60 = vld [vmem:[#allocation137_spill] sm:$0xff] }
 0x104   : > { %v6616_v21 = vpack.c.bf16 %v3417_v49, %v3405_v53  ;;  %v11686_v38 = vand.u32 4294901760, %v12464_v24  ;;  %5849 = vmatprep.subr.bf16.mxu0 %v5848_v35  ;;  %v855_v9 = vand.u32 4294901760, %v854_v7  ;;  %v11688_v29 = vand.u32 4294901760, %v12465_v62  ;;  %v12467_v53 = vld [vmem:[#allocation139_spill] sm:$0xff]  ;;  %v12468_v7 = vld [vmem:[#allocation140_spill] sm:$0xff] }
 0x105   : > { %v3411_v8 = vand.u32 4294901760, %v3410_v30  ;;  %v11690_v32 = vand.u32 4294901760, %v12466_v60  ;;  %v3423_v23 = vand.u32 4294901760, %v3422_v28  ;;  %v860_v49 = vsub.f32 %v12463_v39, %v11685_v31  ;;  %v12470_v39 = vld [vmem:[#allocation143_spill] sm:$0xff] }
 0x106   : > { %6617 = vmatprep.subr.bf16.mxu1 %v6616_v21  ;;  %v872_v11 = vsub.f32 %v12464_v24, %v11686_v38  ;;  %v11696_v15 = vand.u32 4294901760, %v12467_v53  ;;  %v5850_v48 = vpack.c.bf16 %v855_v9, %v843_v36  ;;  %v3428_v35 = vsub.f32 %v12465_v62, %v11688_v29  ;;  %v12469_v29 = vld [vmem:[#allocation142_spill] sm:$0xff] }
 0x107   : > { %v3440_v21 = vsub.f32 %v12466_v60, %v11690_v32  ;;  %v11694_v30 = vand.u32 4294901760, %v12468_v7  ;;  %v6618_v28 = vpack.c.bf16 %v3423_v23, %v3411_v8  ;;  %v861_v51 = vand.u32 4294901760, %v860_v49  ;;  %v12471_v8 = vld [vmem:[#allocation145_spill] sm:$0xff] }
 0x108   : > { %v873_v31 = vand.u32 4294901760, %v872_v11  ;;  %v866_v38 = vsub.f32 %v12467_v53, %v11696_v15  ;;  %5851 = vmatpush1.bf16.msra.mxu0 %v5850_v48  ;;  %v3429_v24 = vand.u32 4294901760, %v3428_v35  ;;  %v11695_v62 = vand.u32 4294901760, %v12469_v29  ;;  %v12472_v35 = vld [vmem:[#allocation146_spill] sm:$0xff] }
 0x109   : > { %v3441_v36 = vand.u32 4294901760, %v3440_v21  ;;  %v878_v9 = vsub.f32 %v12468_v7, %v11694_v30  ;;  %6619 = vmatpush1.bf16.msra.mxu1 %v6618_v28  ;;  %v11699_v23 = vand.u32 4294901760, %v12470_v39  ;;  %v11700_v49 = vand.u32 4294901760, %v12471_v8  ;;  %v12474_v28 = vld [vmem:[#allocation149_spill] sm:$0xff] }
 0x10a   : > { %v5852_v32 = vpack.c.bf16 %v873_v31, %v861_v51  ;;  %v867_v60 = vand.u32 4294901760, %v866_v38  ;;  %v3434_v48 = vsub.f32 %v12469_v29, %v11695_v62  ;;  %v11701_v21 = vand.u32 4294901760, %v12472_v35  ;;  %v12473_v38 = vld [vmem:[#allocation147_spill] sm:$0xff] }
 0x10b   : > { %v6620_v11 = vpack.c.bf16 %v3441_v36, %v3429_v24  ;;  %v879_v33 = vand.u32 4294901760, %v878_v9  ;;  %v3446_v30 = vsub.f32 %v12470_v39, %v11699_v23  ;;  %v884_v51 = vsub.f32 %v12471_v8, %v11700_v49  ;;  %v12478_v39 = vld [vmem:[#allocation155_spill] sm:$0xff] }
 0x10c   : > { %5853 = vmatprep.subr.bf16.mxu0 %v5852_v32  ;;  %v11706_v31 = vand.u32 4294901760, %v12473_v38  ;;  %v11709_v24 = vand.u32 4294901760, %v12474_v28  ;;  %v3435_v9 = vand.u32 4294901760, %v3434_v48  ;;  %v896_v62 = vsub.f32 %v12472_v35, %v11701_v21  ;;  %v12475_v32 = vld [vmem:[#allocation151_spill] sm:$0xff]  ;;  %v12477_v21 = vld [vmem:[#allocation154_spill] sm:$0xff] }
 0x10d   : > { %6621 = vmatprep.subr.bf16.mxu1 %v6620_v11  ;;  %v5854_v36 = vpack.c.bf16 %v879_v33, %v867_v60  ;;  %v11708_v15 = vand.u32 4294901760, %v12475_v32  ;;  %v3447_v29 = vand.u32 4294901760, %v3446_v30  ;;  %v885_v7 = vand.u32 4294901760, %v884_v51  ;;  %v12476_v60 = vld [vmem:[#allocation152_spill] sm:$0xff] }
 0x10e   : > { %v3452_v23 = vsub.f32 %v12473_v38, %v11706_v31  ;;  %v3464_v49 = vsub.f32 %v12474_v28, %v11709_v24  ;;  %v897_v11 = vand.u32 4294901760, %v896_v62  ;;  %v11711_v48 = vand.u32 4294901760, %v12476_v60 }
 0x10f   : > { %5855 = vmatpush1.bf16.msra.mxu0 %v5854_v36  ;;  %v890_v33 = vsub.f32 %v12475_v32, %v11708_v15  ;;  %v11715_v35 = vand.u32 4294901760, %v12477_v21  ;;  %v6622_v30 = vpack.c.bf16 %v3447_v29, %v3435_v9  ;;  %v11714_v53 = vand.u32 4294901760, %v12478_v39  ;;  %v12480_v9 = vld [vmem:[#allocation158_spill] sm:$0xff] }
 0x110   : > { %v3453_v51 = vand.u32 4294901760, %v3452_v23  ;;  %v3465_v8 = vand.u32 4294901760, %v3464_v49  ;;  %v5856_v31 = vpack.c.bf16 %v897_v11, %v885_v7  ;;  %v902_v36 = vsub.f32 %v12476_v60, %v11711_v48  ;;  %v12479_v23 = vld [vmem:[#allocation157_spill] sm:$0xff] }
 0x111   : > { %v891_v38 = vand.u32 4294901760, %v890_v33  ;;  %v3458_v62 = vsub.f32 %v12477_v21, %v11715_v35  ;;  %6623 = vmatpush1.bf16.msra.mxu1 %v6622_v30  ;;  %v3470_v29 = vsub.f32 %v12478_v39, %v11714_v53  ;;  %v11717_v49 = vand.u32 4294901760, %v12479_v23  ;;  %v12481_v33 = vld [vmem:[#allocation159_spill] sm:$0xff]  ;;  %v12482_v48 = vld [vmem:[#allocation161_spill] sm:$0xff] }
 0x112   : > { %v6624_v15 = vpack.c.bf16 %v3465_v8, %v3453_v51  ;;  %v11718_v24 = vand.u32 4294901760, %v12480_v9  ;;  %5857 = vmatprep.subr.bf16.mxu0 %v5856_v31  ;;  %v903_v7 = vand.u32 4294901760, %v902_v36  ;;  %v11720_v32 = vand.u32 4294901760, %v12481_v33  ;;  %v12483_v51 = vld [vmem:[#allocation163_spill] sm:$0xff]  ;;  %v12484_v36 = vld [vmem:[#allocation164_spill] sm:$0xff] }
 0x113   : > { %v3459_v11 = vand.u32 4294901760, %v3458_v62  ;;  %v11722_v60 = vand.u32 4294901760, %v12482_v48  ;;  %v3471_v28 = vand.u32 4294901760, %v3470_v29  ;;  %v908_v8 = vsub.f32 %v12479_v23, %v11717_v49  ;;  %v12486_v23 = vld [vmem:[#allocation167_spill] sm:$0xff] }
 0x114   : > { %6625 = vmatprep.subr.bf16.mxu1 %v6624_v15  ;;  %v920_v30 = vsub.f32 %v12480_v9, %v11718_v24  ;;  %v11728_v53 = vand.u32 4294901760, %v12483_v51  ;;  %v5858_v35 = vpack.c.bf16 %v903_v7, %v891_v38  ;;  %v3476_v31 = vsub.f32 %v12481_v33, %v11720_v32  ;;  %v12485_v32 = vld [vmem:[#allocation166_spill] sm:$0xff] }
 0x115   : > { %v3488_v15 = vsub.f32 %v12482_v48, %v11722_v60  ;;  %v11726_v62 = vand.u32 4294901760, %v12484_v36  ;;  %v6626_v29 = vpack.c.bf16 %v3471_v28, %v3459_v11  ;;  %v909_v39 = vand.u32 4294901760, %v908_v8  ;;  %v12487_v11 = vld [vmem:[#allocation169_spill] sm:$0xff] }
 0x116   : > { %v921_v49 = vand.u32 4294901760, %v920_v30  ;;  %v914_v24 = vsub.f32 %v12483_v51, %v11728_v53  ;;  %5859 = vmatpush1.bf16.msra.mxu0 %v5858_v35  ;;  %v3477_v9 = vand.u32 4294901760, %v3476_v31  ;;  %v11727_v33 = vand.u32 4294901760, %v12485_v32  ;;  %v12488_v31 = vld [vmem:[#allocation170_spill] sm:$0xff] }
 0x117   : > { %v3489_v38 = vand.u32 4294901760, %v3488_v15  ;;  %v926_v7 = vsub.f32 %v12484_v36, %v11726_v62  ;;  %6627 = vmatpush1.bf16.msra.mxu1 %v6626_v29  ;;  %v11730_v28 = vand.u32 4294901760, %v12486_v23  ;;  %v11731_v8 = vand.u32 4294901760, %v12487_v11 }
 0x118   : > { %v5860_v60 = vpack.c.bf16 %v921_v49, %v909_v39  ;;  %v915_v48 = vand.u32 4294901760, %v914_v24  ;;  %v3482_v35 = vsub.f32 %v12485_v32, %v11727_v33  ;;  %v11732_v15 = vand.u32 4294901760, %v12488_v31  ;;  %v12489_v24 = vld [vmem:[#allocation171_spill] sm:$0xff] }
 0x119   : > { %v6628_v30 = vpack.c.bf16 %v3489_v38, %v3477_v9  ;;  %v927_v21 = vand.u32 4294901760, %v926_v7  ;;  %v3494_v62 = vsub.f32 %v12486_v23, %v11730_v28  ;;  %v932_v39 = vsub.f32 %v12487_v11, %v11731_v8  ;;  %v12493_v23 = vld [vmem:[#allocation179_spill] sm:$0xff] }
 0x11a   : > { %5861 = vmatprep.subr.bf16.mxu0 %v5860_v60  ;;  %v11737_v49 = vand.u32 4294901760, %v12489_v24  ;;  %v11740_v9 = vand.u32 4294901760, %v8120_v61  ;;  %v3483_v38 = vand.u32 4294901760, %v3482_v35  ;;  %v944_v7 = vsub.f32 %v12488_v31, %v11732_v15  ;;  %v12490_v60 = vld [vmem:[#allocation175_spill] sm:$0xff]  ;;  %v12492_v15 = vld [vmem:[#allocation178_spill] sm:$0xff] }
 0x11b   : > { %6629 = vmatprep.subr.bf16.mxu1 %v6628_v30  ;;  %v5862_v29 = vpack.c.bf16 %v927_v21, %v915_v48  ;;  %v11739_v33 = vand.u32 4294901760, %v12490_v60  ;;  %v3495_v53 = vand.u32 4294901760, %v3494_v62  ;;  %v933_v32 = vand.u32 4294901760, %v932_v39  ;;  %v12491_v48 = vld [vmem:[#allocation176_spill] sm:$0xff] }
 0x11c   : > { %v3500_v28 = vsub.f32 %v12489_v24, %v11737_v49  ;;  %v3512_v8 = vsub.f32 %v8120_v61, %v11740_v9  ;;  %v945_v30 = vand.u32 4294901760, %v944_v7  ;;  %v11742_v35 = vand.u32 4294901760, %v12491_v48 }
 0x11d   : > { %5863 = vmatpush1.bf16.msra.mxu0 %v5862_v29  ;;  %v938_v21 = vsub.f32 %v12490_v60, %v11739_v33  ;;  %v11747_v31 = vand.u32 4294901760, %v12492_v15  ;;  %v6630_v62 = vpack.c.bf16 %v3495_v53, %v3483_v38  ;;  %v11744_v36 = vand.u32 4294901760, %v12493_v23  ;;  %v12495_v38 = vld [vmem:[#allocation182_spill] sm:$0xff] }
 0x11e   : > { %v3501_v39 = vand.u32 4294901760, %v3500_v28  ;;  %v3513_v11 = vand.u32 4294901760, %v3512_v8  ;;  %v5864_v49 = vpack.c.bf16 %v945_v30, %v933_v32  ;;  %v950_v29 = vsub.f32 %v12491_v48, %v11742_v35  ;;  %v12494_v28 = vld [vmem:[#allocation181_spill] sm:$0xff] }
 0x11f   : > { %v939_v24 = vand.u32 4294901760, %v938_v21  ;;  %v3506_v7 = vsub.f32 %v12492_v15, %v11747_v31  ;;  %6631 = vmatpush1.bf16.msra.mxu1 %v6630_v62  ;;  %v3518_v53 = vsub.f32 %v12493_v23, %v11744_v36  ;;  %v11745_v8 = vand.u32 4294901760, %v12494_v28  ;;  %v12496_v21 = vld [vmem:[#allocation183_spill] sm:$0xff] }
 0x120   : > { %v6632_v33 = vpack.c.bf16 %v3513_v11, %v3501_v39  ;;  %v11746_v9 = vand.u32 4294901760, %v12495_v38  ;;  %5865 = vmatprep.subr.bf16.mxu0 %v5864_v49  ;;  %v951_v32 = vand.u32 4294901760, %v950_v29  ;;  %v11748_v60 = vand.u32 4294901760, %v12496_v21 }
 0x121   : > { %v3507_v30 = vand.u32 4294901760, %v3506_v7  ;;  %v11749_v35 = vand.u32 4294901760, %v8148_v2  ;;  %v3519_v48 = vand.u32 4294901760, %v3518_v53  ;;  %v956_v11 = vsub.f32 %v12494_v28, %v11745_v8 }
 0x122   : > { %6633 = vmatprep.subr.bf16.mxu1 %v6632_v33  ;;  %v968_v62 = vsub.f32 %v12495_v38, %v11746_v9  ;;  %v11757_v39 = vand.u32 4294901760, %v8152_v34  ;;  %v5866_v36 = vpack.c.bf16 %v951_v32, %v939_v24  ;;  %v3524_v49 = vsub.f32 %v12496_v21, %v11748_v60  ;;  %v12549_v21 = vld [vmem:[#allocation63_spill] sm:$0xff] }
 0x123   : > { %v3536_v33 = vsub.f32 %v8148_v2, %v11749_v35  ;;  %v11752_v29 = vand.u32 4294901760, %v8154_v26  ;;  %v6634_v7 = vpack.c.bf16 %v3519_v48, %v3507_v30  ;;  %v957_v53 = vand.u32 4294901760, %v956_v11 }
 0x124   : > { %v969_v8 = vand.u32 4294901760, %v968_v62  ;;  %v962_v9 = vsub.f32 %v8152_v34, %v11757_v39  ;;  %5867 = vmatpush1.bf16.msra.mxu0 %v5866_v36  ;;  %v3525_v31 = vand.u32 4294901760, %v3524_v49  ;;  %v11753_v60 = vand.u32 4294901760, %v8158_v43  ;;  %v12497_v49 = vld [vmem:[#allocation194_spill] sm:$0xff] }
 0x125   : > { %v3537_v24 = vand.u32 4294901760, %v3536_v33  ;;  %v974_v32 = vsub.f32 %v8154_v26, %v11752_v29  ;;  %6635 = vmatpush1.bf16.msra.mxu1 %v6634_v7  ;;  %v11754_v48 = vand.u32 4294901760, %v8160_v44  ;;  %v11755_v30 = vand.u32 4294901760, %v8167_v25 }
 0x126   : > { %v5868_v35 = vpack.c.bf16 %v969_v8, %v957_v53  ;;  %v963_v2 = vand.u32 4294901760, %v962_v9  ;;  %v3530_v36 = vsub.f32 %v8158_v43, %v11753_v60  ;;  %v11756_v33 = vand.u32 4294901760, %v12497_v49  ;;  %v12552_v43 = vld [vmem:[#allocation68_spill] sm:$0xff] }
 0x127   : > { %v6636_v11 = vpack.c.bf16 %v3537_v24, %v3525_v31  ;;  %v975_v62 = vand.u32 4294901760, %v974_v32  ;;  %v3542_v29 = vsub.f32 %v8160_v44, %v11754_v48  ;;  %v980_v9 = vsub.f32 %v8167_v25, %v11755_v30 }
 0x128   : > { %5869 = vmatprep.subr.bf16.mxu0 %v5868_v35  ;;  %v11758_v8 = vand.u32 4294901760, %v8173_v14  ;;  %v11763_v31 = vand.u32 4294901760, %v8177_v13  ;;  %v3531_v53 = vand.u32 4294901760, %v3530_v36  ;;  %v992_v24 = vsub.f32 %v12497_v49, %v11756_v33 }
 0x129   : > { %6637 = vmatprep.subr.bf16.mxu1 %v6636_v11  ;;  %v5870_v7 = vpack.c.bf16 %v975_v62, %v963_v2  ;;  %v11761_v35 = vand.u32 4294901760, %v8181_v5  ;;  %v3543_v32 = vand.u32 4294901760, %v3542_v29  ;;  %v981_v60 = vand.u32 4294901760, %v980_v9 }
 0x12a   : > { %v3548_v48 = vsub.f32 %v8173_v14, %v11758_v8  ;;  %v3560_v30 = vsub.f32 %v8177_v13, %v11763_v31  ;;  %v993_v11 = vand.u32 4294901760, %v992_v24  ;;  %v11762_v62 = vand.u32 4294901760, %v8183_v17  ;;  %v12500_v31 = vld [vmem:[#allocation17_spill] sm:$0xff] }
 0x12b   : > { %5871 = vmatpush1.bf16.msra.mxu0 %v5870_v7  ;;  %v986_v2 = vsub.f32 %v8181_v5, %v11761_v35  ;;  %v11769_v36 = vand.u32 4294901760, %v8187_v20  ;;  %v6638_v29 = vpack.c.bf16 %v3543_v32, %v3531_v53  ;;  %v11768_v39 = vand.u32 4294901760, %v8189_v57  ;;  %v12498_v32 = vld [vmem:[#allocation14_spill] sm:$0xff] }
 0x12c   : > { %v3549_v9 = vand.u32 4294901760, %v3548_v48  ;;  %v3561_v33 = vand.u32 4294901760, %v3560_v30  ;;  %v5872_v8 = vpack.c.bf16 %v993_v11, %v981_v60  ;;  %v998_v7 = vsub.f32 %v8183_v17, %v11762_v62  ;;  %v12499_v62 = vld [vmem:[#allocation15_spill] sm:$0xff] }
 0x12d   : > { %v987_v14 = vand.u32 4294901760, %v986_v2  ;;  %v3554_v24 = vsub.f32 %v8187_v20, %v11769_v36  ;;  %6639 = vmatpush1.bf16.msra.mxu1 %v6638_v29  ;;  %v3566_v53 = vsub.f32 %v8189_v57, %v11768_v39  ;;  %v5876_v11 = vpack.c.bf16 %v12498_v32, %v7747_v22  ;;  %v12501_v29 = vld [vmem:[#allocation19_spill] sm:$0xff]  ;;  %v12504_v39 = vld [vmem:[#allocation61_spill] sm:$0xff]  ;;  %v12505_v36 = vld [vmem:[#allocation62_spill] sm:$0xff] }
 0x12e   : > { %v6640_v35 = vpack.c.bf16 %v3561_v33, %v3549_v9  ;;  %5873 = vmatprep.subr.bf16.mxu0 %v5872_v8  ;;  %v999_v48 = vand.u32 4294901760, %v998_v7  ;;  %v6644_v17 = vpack.c.bf16 %v12500_v31, %v12499_v62  ;;  %v12502_v33 = vld [vmem:[#allocation20_spill] sm:$0xff]  ;;  %v6646_v8 = vpack.c.bf16 %v7770_v46, %v7768_v45  ;;  %v12534_v31 = vld [vmem:[#allocation158_spill] sm:$0xff]  ;;  %v12535_v62 = vld [vmem:[#allocation159_spill] sm:$0xff] }
 0x12f   : > { %v3555_v30 = vand.u32 4294901760, %v3554_v24  ;;  %v3567_v60 = vand.u32 4294901760, %v3566_v53  ;;  %v5878_v9 = vpack.c.bf16 %v12502_v33, %v12501_v29  ;;  %v12503_v7 = vld [vmem:[#allocation204_spill] sm:$0xff]  ;;  %v5882_v24 = vpack.c.bf16 %v7791_v3, %v7785_v58  ;;  %v12523_v3 = vld [vmem:[#allocation142_spill] sm:$0xff]  ;;  %v12533_v29 = vld [vmem:[#allocation157_spill] sm:$0xff] }
 0x130   : > { %6641 = vmatprep.subr.bf16.mxu1 %v6640_v35  ;;  %v5874_v2 = vpack.c.bf16 %v999_v48, %v987_v14  ;;  %v5880_v35 = vpack.c.bf16 %v7776_v52, %v7772_v47  ;;  %v6648_v14 = vpack.c.bf16 %v7783_v56, %v7780_v54  ;;  %v6650_v53 = vpack.c.bf16 %v7797_v10, %v7793_v4  ;;  %v12520_v10 = vld [vmem:[#allocation207_spill] sm:$0xff]  ;;  %v12530_v46 = vld [vmem:[#allocation152_spill] sm:$0xff]  ;;  %v12536_v58 = vld [vmem:[#allocation161_spill] sm:$0xff] }
 0x131   : > { %v6642_v5 = vpack.c.bf16 %v3567_v60, %v3555_v30  ;;  %v6652_v48 = vpack.c.bf16 %v7810_v19, %v7808_v18  ;;  %v6654_v30 = vpack.c.bf16 %v7825_v55, %v7823_v50  ;;  %v5888_v60 = vpack.c.bf16 %v7833_v63, %v7829_v59  ;;  %v12507_v55 = vld [vmem:[#allocation119_spill] sm:$0xff]  ;;  %v12509_v63 = vld [vmem:[#allocation122_spill] sm:$0xff]  ;;  %v12511_v59 = vld [vmem:[#allocation125_spill] sm:$0xff] }
 0x132   : > { %5875 = vmatpush1.bf16.msra.mxu0 %v5874_v2  ;;  %v5890_v2 = vpack.c.bf16 %v7847_v42, %v7843_v27  ;;  %v12514_v42 = vld [vmem:[#allocation130_spill] sm:$0xff]  ;;  %v12515_v27 = vld [vmem:[#allocation131_spill] sm:$0xff]  ;;  %v12537_v54 = vld [vmem:[#allocation164_spill] sm:$0xff] }
 0x133   : > { %6643 = vmatpush1.bf16.msra.mxu1 %v6642_v5  ;;  %5877 = vmatprep.subr.bf16.mxu0 %v5876_v11  ;;  %v5884_v5 = vpack.c.bf16 %v7804_v16, %v7801_v12  ;;  %v6656_v11 = vpack.c.bf16 %v7840_v6, %v7837_v1  ;;  %v12512_v6 = vld [vmem:[#allocation127_spill] sm:$0xff]  ;;  %v12513_v1 = vld [vmem:[#allocation128_spill] sm:$0xff]  ;;  %v12526_v18 = vld [vmem:[#allocation146_spill] sm:$0xff] }
 0x134   : > { %6645 = vmatprep.subr.bf16.mxu1 %v6644_v17  ;;  %v5886_v17 = vpack.c.bf16 %v7819_v41, %v7817_v40  ;;  %v12506_v41 = vld [vmem:[#allocation118_spill] sm:$0xff]  ;;  %v12508_v40 = vld [vmem:[#allocation121_spill] sm:$0xff]  ;;  %v12518_v12 = vld [vmem:[#allocation135_spill] sm:$0xff] }
 0x135   : > { %1004 = vmatmul.mubr.f32.vlgmr.msra.gmra.mrb[0].mxu0 %v12503_v7  ;;  %v12521_v50 = vld [vmem:[#allocation139_spill] sm:$0xff]  ;;  %v12538_v56 = vld [vmem:[#allocation166_spill] sm:$0xff]  ;;  %v12544_v45 = vld [vmem:[#allocation176_spill] sm:$0xff] }
 0x136   : > { %5879 = vmatpush1.bf16.msra.mxu0 %v5878_v9  ;;  %3572 = vmatmul.mubr.f32.vlgmr.msra.gmra.mrb[0].mxu1 %v12503_v7  ;;  %v6658_v9 = vpack.c.bf16 %v7853_v0, %v7851_v37  ;;  %v5892_v7 = vpack.c.bf16 %v12505_v36, %v12504_v39  ;;  %v12516_v0 = vld [vmem:[#allocation133_spill] sm:$0xff]  ;;  %v12524_v19 = vld [vmem:[#allocation143_spill] sm:$0xff]  ;;  %v12541_v52 = vld [vmem:[#allocation170_spill] sm:$0xff] }
 0x137   : > { %6647 = vmatpush1.bf16.msra.mxu1 %v6646_v8  ;;  %5881 = vmatprep.subr.bf16.mxu0 %v5880_v35  ;;  %v12510_v35 = vld [vmem:[#allocation123_spill] sm:$0xff]  ;;  %v12519_v36 = vld [vmem:[#allocation137_spill] sm:$0xff]  ;;  %v12522_v8 = vld [vmem:[#allocation140_spill] sm:$0xff] }
 0x138   : > { %6649 = vmatprep.subr.bf16.mxu1 %v6648_v14  ;;  %v12517_v14 = vld [vmem:[#allocation134_spill] sm:$0xff]  ;;  %1204 = vmatprep.mubr.f32.mxu0 %v12520_v10  ;;  %v12539_v47 = vld [vmem:[#allocation167_spill] sm:$0xff]  ;;  %v12550_v16 = vld [vmem:[#allocation65_spill] sm:$0xff] }
 0x139   : > { %v12542_v39 = vld [vmem:[#allocation171_spill] sm:$0xff]  ;;  %3772 = vmatprep.mubr.f32.mxu1 %v12520_v10  ;;  %v12548_v10 = vld [vmem:[#allocation200_spill] sm:$0xff]  ;;  %v6660_v34 = vpack.c.bf16 %v12550_v16, %v12549_v21  ;;  %v12555_v32 = vld [vmem:[#allocation73_spill] sm:$0xff] }
 0x13a   : > { %5883 = vmatpush1.bf16.msra.mxu0 %v5882_v24  ;;  %v12543_v24 = vld [vmem:[#allocation175_spill] sm:$0xff]  ;;  %v12558_v4 = vld [vmem:[#allocation77_spill] sm:$0xff]  ;;  %v12560_v20 = vld [vmem:[#allocation80_spill] sm:$0xff] }
 0x13b   : > { %6651 = vmatpush1.bf16.msra.mxu1 %v6650_v53  ;;  %5885 = vmatprep.subr.bf16.mxu0 %v5884_v5  ;;  %v12540_v5 = vld [vmem:[#allocation169_spill] sm:$0xff]  ;;  %v12551_v37 = vld [vmem:[#allocation67_spill] sm:$0xff] }
 0x13c   : > { %6653 = vmatprep.subr.bf16.mxu1 %v6652_v48  ;;  %v12545_v53 = vld [vmem:[#allocation185_spill] sm:$0xff]  ;;  %v5894_v44 = vpack.c.bf16 %v12552_v43, %v12551_v37  ;;  %v12556_v48 = vld [vmem:[#allocation74_spill] sm:$0xff]  ;;  %v12562_v43 = vld [vmem:[#allocation83_spill] sm:$0xff] }
 0x13d   : > { %v5896_v13 = vpack.c.bf16 %v12556_v48, %v12555_v32  ;;  %v12564_v37 = vld [vmem:[#allocation86_spill] sm:$0xff]  ;;  %v12568_v32 = vld [vmem:[#allocation92_spill] sm:$0xff] }
 0x13e   : > { %5887 = vmatpush1.bf16.msra.mxu0 %v5886_v17  ;;  %v12557_v17 = vld [vmem:[#allocation75_spill] sm:$0xff] }
 0x13f   : > { %6655 = vmatpush1.bf16.msra.mxu1 %v6654_v30  ;;  %5889 = vmatprep.subr.bf16.mxu0 %v5888_v60  ;;  %v12553_v30 = vld [vmem:[#allocation70_spill] sm:$0xff]  ;;  %v12554_v60 = vld [vmem:[#allocation71_spill] sm:$0xff]  ;;  %v6664_v22 = vpack.c.bf16 %v12558_v4, %v12557_v17 }
 0x140   : > { %6657 = vmatprep.subr.bf16.mxu1 %v6656_v11  ;;  %v6662_v33 = vpack.c.bf16 %v12554_v60, %v12553_v30  ;;  %v12559_v11 = vld [vmem:[#allocation79_spill] sm:$0xff]  ;;  %v12566_v30 = vld [vmem:[#allocation89_spill] sm:$0xff] }
 0x141   : > { %v5898_v16 = vpack.c.bf16 %v12560_v20, %v12559_v11  ;;  %v12565_v60 = vld [vmem:[#allocation87_spill] sm:$0xff]  ;;  %v12572_v11 = vld [vmem:[#allocation98_spill] sm:$0xff] }
 0x142   : > { %5891 = vmatpush1.bf16.msra.mxu0 %v5890_v2  ;;  %v12561_v2 = vld [vmem:[#allocation82_spill] sm:$0xff]  ;;  %v6668_v48 = vpack.c.bf16 %v12566_v30, %v12565_v60  ;;  %v12570_v20 = vld [vmem:[#allocation95_spill] sm:$0xff] }
 0x143   : > { %6659 = vmatpush1.bf16.msra.mxu1 %v6658_v9  ;;  %5893 = vmatprep.subr.bf16.mxu0 %v5892_v7  ;;  %v6666_v9 = vpack.c.bf16 %v12562_v43, %v12561_v2  ;;  %v12563_v7 = vld [vmem:[#allocation85_spill] sm:$0xff]  ;;  %v12573_v43 = vld [vmem:[#allocation99_spill] sm:$0xff] }
 0x144   : > { %6661 = vmatprep.subr.bf16.mxu1 %v6660_v34  ;;  %v5900_v21 = vpack.c.bf16 %v12564_v37, %v12563_v7  ;;  %v12567_v34 = vld [vmem:[#allocation91_spill] sm:$0xff]  ;;  %v12574_v2 = vld [vmem:[#allocation101_spill] sm:$0xff]  ;;  %v12576_v7 = vld [vmem:[#allocation104_spill] sm:$0xff] }
 0x145   : > { %v5902_v4 = vpack.c.bf16 %v12568_v32, %v12567_v34  ;;  %v6672_v37 = vpack.c.bf16 %v12574_v2, %v12573_v43  ;;  %v12578_v32 = vld [vmem:[#allocation107_spill] sm:$0xff]  ;;  %v12580_v34 = vld [vmem:[#allocation110_spill] sm:$0xff] }
 0x146   : > { %5895 = vmatpush1.bf16.msra.mxu0 %v5894_v44  ;;  %v12569_v44 = vld [vmem:[#allocation94_spill] sm:$0xff] }
 0x147   : > { %6663 = vmatpush1.bf16.msra.mxu1 %v6662_v33  ;;  %5897 = vmatprep.subr.bf16.mxu0 %v5896_v13  ;;  %v6670_v33 = vpack.c.bf16 %v12570_v20, %v12569_v44  ;;  %v12571_v13 = vld [vmem:[#allocation97_spill] sm:$0xff]  ;;  %v12581_v20 = vld [vmem:[#allocation111_spill] sm:$0xff] }
 0x148   : > { %6665 = vmatprep.subr.bf16.mxu1 %v6664_v22  ;;  %v5904_v17 = vpack.c.bf16 %v12572_v11, %v12571_v13  ;;  %v12575_v22 = vld [vmem:[#allocation103_spill] sm:$0xff]  ;;  %v12582_v44 = vld [vmem:[#allocation113_spill] sm:$0xff]  ;;  %v12584_v13 = vld [vmem:[#allocation116_spill] sm:$0xff] }
 0x149   : > { %v5906_v30 = vpack.c.bf16 %v12576_v7, %v12575_v22  ;;  %v6676_v11 = vpack.c.bf16 %v12582_v44, %v12581_v20 }
 0x14a   : > { %5899 = vmatpush1.bf16.msra.mxu0 %v5898_v16  ;;  %v12577_v16 = vld [vmem:[#allocation106_spill] sm:$0xff] }
 0x14b   : > { %6667 = vmatpush1.bf16.msra.mxu1 %v6666_v9  ;;  %5901 = vmatprep.subr.bf16.mxu0 %v5900_v21  ;;  %v6674_v9 = vpack.c.bf16 %v12578_v32, %v12577_v16  ;;  %v12579_v21 = vld [vmem:[#allocation109_spill] sm:$0xff] }
 0x14c   : > { %6669 = vmatprep.subr.bf16.mxu1 %v6668_v48  ;;  %v5908_v60 = vpack.c.bf16 %v12580_v34, %v12579_v21  ;;  %v12583_v48 = vld [vmem:[#allocation115_spill] sm:$0xff] }
 0x14d   : > { %v5910_v2 = vpack.c.bf16 %v12584_v13, %v12583_v48 }
 0x14e   : > { %5903 = vmatpush1.bf16.msra.mxu0 %v5902_v4  ;;  %v12585_v4 = vpack.c.bf16 %v12507_v55, %v12506_v41 }
 0x14f   : > { %6671 = vmatpush1.bf16.msra.mxu1 %v6670_v33  ;;  %5905 = vmatprep.subr.bf16.mxu0 %v5904_v17  ;;  %v12586_v17 = vpack.c.bf16 %v12509_v63, %v12508_v40  ;;  %v12592_v33 = vpack.c.bf16 %v12522_v8, %v12521_v50 }
 0x150   : > { %6673 = vmatprep.subr.bf16.mxu1 %v6672_v37  ;;  %v12587_v37 = vpack.c.bf16 %v12511_v59, %v12510_v35 }
 0x152   : > { %5907 = vmatpush1.bf16.msra.mxu0 %v5906_v30  ;;  %v12588_v30 = vpack.c.bf16 %v12513_v1, %v12512_v6 }
 0x153   : > { %6675 = vmatpush1.bf16.msra.mxu1 %v6674_v9  ;;  %5909 = vmatprep.subr.bf16.mxu0 %v5908_v60  ;;  %v12589_v60 = vpack.c.bf16 %v12515_v27, %v12514_v42  ;;  %v12593_v9 = vpack.c.bf16 %v12524_v19, %v12523_v3 }
 0x154   : > { %6677 = vmatprep.subr.bf16.mxu1 %v6676_v11  ;;  %v12590_v11 = vpack.c.bf16 %v12517_v14, %v12516_v0 }
 0x156   : > { %5911 = vmatpush1.bf16.msra.mxu0 %v5910_v2  ;;  %v12591_v2 = vpack.c.bf16 %v12519_v36, %v12518_v12  ;;  %v12602_v12 = vld [vmem:[#allocation154_spill] sm:$0xff] }
 0x157   : > { %6679 = vmatpush1.bf16.msra.mxu1 %v12585_v4  ;;  %5913 = vmatprep.subr.bf16.mxu0 %v12586_v17  ;;  %v12594_v4 = vld [vmem:[#allocation145_spill] sm:$0xff] }
 0x158   : > { %6681 = vmatprep.subr.bf16.mxu1 %v12587_v37  ;;  %v12595_v17 = vpack.c.bf16 %v12526_v18, %v12594_v4  ;;  %v12596_v37 = vld [vmem:[#allocation149_spill] sm:$0xff] }
 0x15a   : > { %5915 = vmatpush1.bf16.msra.mxu0 %v12588_v30  ;;  %v12597_v30 = vld [vmem:[#allocation147_spill] sm:$0xff] }
 0x15b   : > { %6683 = vmatpush1.bf16.msra.mxu1 %v12589_v60  ;;  %5917 = vmatprep.subr.bf16.mxu0 %v12590_v11  ;;  %v12598_v60 = vpack.c.bf16 %v12596_v37, %v12597_v30  ;;  %v12599_v11 = vld [vmem:[#allocation151_spill] sm:$0xff] }
 0x15c   : > { %6685 = vmatprep.subr.bf16.mxu1 %v12591_v2  ;;  %v12600_v36 = vpack.c.bf16 %v12530_v46, %v12599_v11  ;;  %v12601_v2 = vld [vmem:[#allocation155_spill] sm:$0xff] }
 0x15d   : > { %v12603_v8 = vpack.c.bf16 %v12601_v2, %v12602_v12 }
 0x15e   : > { %5919 = vmatpush1.bf16.msra.mxu0 %v12592_v33  ;;  %v12604_v33 = vpack.c.bf16 %v12534_v31, %v12533_v29 }
 0x15f   : > { %6687 = vmatpush1.bf16.msra.mxu1 %v12593_v9  ;;  %5921 = vmatprep.subr.bf16.mxu0 %v12595_v17  ;;  %v12605_v9 = vpack.c.bf16 %v12536_v58, %v12535_v62  ;;  %v12606_v17 = vpack.c.bf16 %v12537_v54, %v12483_v51 }
 0x160   : > { %6689 = vmatprep.subr.bf16.mxu1 %v12598_v60  ;;  %v12607_v60 = vpack.c.bf16 %v12539_v47, %v12538_v56 }
 0x162   : > { %5923 = vmatpush1.bf16.msra.mxu0 %v12600_v36  ;;  %v12608_v36 = vpack.c.bf16 %v12541_v52, %v12540_v5 }
 0x163   : > { %6691 = vmatpush1.bf16.msra.mxu1 %v12603_v8  ;;  %5925 = vmatprep.subr.bf16.mxu0 %v12604_v33  ;;  %v12609_v8 = vpack.c.bf16 %v8120_v61, %v12542_v39  ;;  %v12610_v33 = vpack.c.bf16 %v12544_v45, %v12543_v24  ;;  %v12618_v39 = vld [vmem:[#allocation190_spill] sm:$0xff] }
 0x164   : > { %6693 = vmatprep.subr.bf16.mxu1 %v12605_v9  ;;  %v12611_v9 = vpack.c.bf16 %v12493_v23, %v12492_v15  ;;  %v12622_v23 = vld [vmem:[#allocation195_spill] sm:$0xff]  ;;  %v12712_v15 = vld [vmem:[#allocation26_spill] sm:$0xff] }
 0x166   : > { %5927 = vmatpush1.bf16.msra.mxu0 %v12606_v17  ;;  %v12612_v17 = vpack.c.bf16 %v12495_v38, %v12494_v28  ;;  %v12710_v28 = vld [vmem:[#allocation24_spill] sm:$0xff] }
 0x167   : > { %6695 = vmatpush1.bf16.msra.mxu1 %v12607_v60  ;;  %5929 = vmatprep.subr.bf16.mxu0 %v12608_v36  ;;  %v12613_v60 = vld [vmem:[#allocation183_spill] sm:$0xff] }
 0x168   : > { %6697 = vmatprep.subr.bf16.mxu1 %v12609_v8  ;;  %v12614_v52 = vpack.c.bf16 %v12545_v53, %v12613_v60  ;;  %v12615_v36 = vld [vmem:[#allocation187_spill] sm:$0xff] }
 0x169   : > { %v12616_v61 = vpack.c.bf16 %v8154_v26, %v12615_v36  ;;  %v12617_v8 = vld [vmem:[#allocation191_spill] sm:$0xff]  ;;  %v12703_v36 = vld [vmem:[#allocation20_spill] sm:$0xff] }
 0x16a   : > { %5931 = vmatpush1.bf16.msra.mxu0 %v12610_v33  ;;  %v12619_v45 = vpack.c.bf16 %v12617_v8, %v12618_v39  ;;  %v12620_v33 = vpack.c.bf16 %v12497_v49, %v8167_v25  ;;  %v12629_v8 = vld [vmem:[#allocation16_spill] sm:$0xff]  ;;  %v12631_v49 = vld [vmem:[#allocation18_spill] sm:$0xff] }
 0x16b   : > { %6699 = vmatpush1.bf16.msra.mxu1 %v12611_v9  ;;  %5933 = vmatprep.subr.bf16.mxu0 %v12612_v17  ;;  %v12621_v9 = vld [vmem:[#allocation197_spill] sm:$0xff]  ;;  %v12624_v17 = vld [vmem:[#allocation199_spill] sm:$0xff]  ;;  %v12700_v39 = vld [vmem:[#allocation198_spill] sm:$0xff] }
 0x16c   : > { %6701 = vmatprep.subr.bf16.mxu1 %v12614_v52  ;;  %v12623_v38 = vpack.c.bf16 %v12621_v9, %v12622_v23  ;;  %v12625_v53 = vpack.c.bf16 %v12548_v10, %v12624_v17  ;;  %v12626_v52 = vld [vmem:[#allocation202_spill] sm:$0xff]  ;;  %v12634_v10 = vld [vmem:[#allocation27_spill] sm:$0xff] }
 0x16d   : > { %v12627_v26 = vpack.c.bf16 %v8189_v57, %v12626_v52  ;;  %v12639_v57 = vld [vmem:[#allocation39_spill] sm:$0xff]  ;;  %v12645_v52 = vld [vmem:[#allocation57_spill] sm:$0xff]  ;;  %v12693_v17 = vld [vmem:[#allocation14_spill] sm:$0xff] }
 0x16e   : > { %5935 = vmatpush1.bf16.msra.mxu0 %v12616_v61  ;;  %v12628_v61 = vld [vmem:[#allocation12_spill] sm:$0xff] }
 0x16f   : > { %6703 = vmatpush1.bf16.msra.mxu1 %v12619_v45  ;;  %5937 = vmatprep.subr.bf16.mxu0 %v12620_v33  ;;  %v12630_v45 = vld [vmem:[#allocation206_spill] sm:$0xff]  ;;  %v12632_v33 = vld [vmem:[#allocation21_spill] sm:$0xff] }
 0x170   : > { %6705 = vmatprep.subr.bf16.mxu1 %v12623_v38  ;;  %v12633_v38 = vld [vmem:[#allocation25_spill] sm:$0xff] }
 0x172   : > { %5939 = vmatpush1.bf16.msra.mxu0 %v12625_v53  ;;  %v12635_v53 = vld [vmem:[#allocation209_spill] sm:$0xff] }
 0x173   : > { %6707 = vmatpush1.bf16.msra.mxu1 %v12627_v26  ;;  %5941 = vmatprep.subr.bf16.mxu0 %v12628_v61  ;;  %v12636_v26 = vld [vmem:[#allocation31_spill] sm:$0xff]  ;;  %v12637_v61 = vld [vmem:[#allocation34_spill] sm:$0xff] }
 0x174   : > { %6709 = vmatprep.subr.bf16.mxu1 %v12629_v8  ;;  %v12638_v8 = vld [vmem:[#allocation36_spill] sm:$0xff] }
 0x175   : > { %1207 = vmatmul.mubr.f32.vlgmr.msra.gmra.mrb[0].mxu0 %v12630_v45 }
 0x176   : > { %5943 = vmatpush1.bf16.msra.mxu0 %v12631_v49  ;;  %3775 = vmatmul.mubr.f32.vlgmr.msra.gmra.mrb[0].mxu1 %v12630_v45  ;;  %v12640_v49 = vld [vmem:[#allocation42_spill] sm:$0xff]  ;;  %v12641_v45 = vld [vmem:[#allocation45_spill] sm:$0xff] }
 0x177   : > { %6711 = vmatpush1.bf16.msra.mxu1 %v12632_v33  ;;  %5945 = vmatprep.subr.bf16.mxu0 %v12633_v38  ;;  %v12642_v33 = vld [vmem:[#allocation48_spill] sm:$0xff]  ;;  %v12643_v38 = vld [vmem:[#allocation51_spill] sm:$0xff] }
 0x178   : > { %6713 = vmatprep.subr.bf16.mxu1 %v12634_v10  ;;  %1344 = vmatprep.mubr.f32.mxu0 %v12635_v53  ;;  %v12644_v10 = vld [vmem:[#allocation55_spill] sm:$0xff] }
 0x179   : > { %3912 = vmatprep.mubr.f32.mxu1 %v12635_v53  ;;  %v12646_v53 = vld [vmem:[#allocation60_spill] sm:$0xff] }
 0x17a   : > { %5947 = vmatpush1.bf16.msra.mxu0 %v12636_v26  ;;  %v12647_v26 = vld [vmem:[#allocation64_spill] sm:$0xff] }
 0x17b   : > { %6715 = vmatpush1.bf16.msra.mxu1 %v12637_v61  ;;  %5949 = vmatprep.subr.bf16.mxu0 %v12638_v8  ;;  %v12648_v61 = vld [vmem:[#allocation66_spill] sm:$0xff]  ;;  %v12649_v8 = vld [vmem:[#allocation69_spill] sm:$0xff] }
 0x17c   : > { %6717 = vmatprep.subr.bf16.mxu1 %v12639_v57  ;;  %v12650_v57 = vld [vmem:[#allocation72_spill] sm:$0xff] }
 0x17e   : > { %5951 = vmatpush1.bf16.msra.mxu0 %v12640_v49  ;;  %v12651_v49 = vld [vmem:[#allocation76_spill] sm:$0xff] }
 0x17f   : > { %6719 = vmatpush1.bf16.msra.mxu1 %v12641_v45  ;;  %5953 = vmatprep.subr.bf16.mxu0 %v12642_v33  ;;  %v12652_v45 = vld [vmem:[#allocation78_spill] sm:$0xff]  ;;  %v12653_v33 = vld [vmem:[#allocation81_spill] sm:$0xff] }
 0x180   : > { %6721 = vmatprep.subr.bf16.mxu1 %v12643_v38  ;;  %v12654_v38 = vld [vmem:[#allocation84_spill] sm:$0xff] }
 0x182   : > { %5955 = vmatpush1.bf16.msra.mxu0 %v12644_v10  ;;  %v12655_v10 = vld [vmem:[#allocation88_spill] sm:$0xff] }
 0x183   : > { %6723 = vmatpush1.bf16.msra.mxu1 %v12645_v52  ;;  %5957 = vmatprep.subr.bf16.mxu0 %v12646_v53  ;;  %v12656_v52 = vld [vmem:[#allocation90_spill] sm:$0xff]  ;;  %v12657_v53 = vld [vmem:[#allocation93_spill] sm:$0xff] }
 0x184   : > { %6725 = vmatprep.subr.bf16.mxu1 %v12647_v26  ;;  %v12658_v26 = vld [vmem:[#allocation96_spill] sm:$0xff] }
 0x186   : > { %5959 = vmatpush1.bf16.msra.mxu0 %v12648_v61  ;;  %v12659_v61 = vld [vmem:[#allocation100_spill] sm:$0xff] }
 0x187   : > { %6727 = vmatpush1.bf16.msra.mxu1 %v12649_v8  ;;  %5961 = vmatprep.subr.bf16.mxu0 %v12650_v57  ;;  %v12660_v8 = vld [vmem:[#allocation102_spill] sm:$0xff]  ;;  %v12661_v57 = vld [vmem:[#allocation105_spill] sm:$0xff] }
 0x188   : > { %6729 = vmatprep.subr.bf16.mxu1 %v12651_v49  ;;  %v12662_v49 = vld [vmem:[#allocation108_spill] sm:$0xff] }
 0x18a   : > { %5963 = vmatpush1.bf16.msra.mxu0 %v12652_v45  ;;  %v12663_v45 = vld [vmem:[#allocation112_spill] sm:$0xff] }
 0x18b   : > { %6731 = vmatpush1.bf16.msra.mxu1 %v12653_v33  ;;  %5965 = vmatprep.subr.bf16.mxu0 %v12654_v38  ;;  %v12664_v33 = vld [vmem:[#allocation114_spill] sm:$0xff]  ;;  %v12665_v38 = vld [vmem:[#allocation117_spill] sm:$0xff] }
 0x18c   : > { %6733 = vmatprep.subr.bf16.mxu1 %v12655_v10  ;;  %v12666_v10 = vld [vmem:[#allocation120_spill] sm:$0xff] }
 0x18e   : > { %5967 = vmatpush1.bf16.msra.mxu0 %v12656_v52  ;;  %v12667_v52 = vld [vmem:[#allocation124_spill] sm:$0xff] }
 0x18f   : > { %6735 = vmatpush1.bf16.msra.mxu1 %v12657_v53  ;;  %5969 = vmatprep.subr.bf16.mxu0 %v12658_v26  ;;  %v12668_v53 = vld [vmem:[#allocation126_spill] sm:$0xff]  ;;  %v12669_v26 = vld [vmem:[#allocation129_spill] sm:$0xff] }
 0x190   : > { %6737 = vmatprep.subr.bf16.mxu1 %v12659_v61  ;;  %v12670_v61 = vld [vmem:[#allocation132_spill] sm:$0xff] }
 0x192   : > { %5971 = vmatpush1.bf16.msra.mxu0 %v12660_v8  ;;  %v12671_v8 = vld [vmem:[#allocation136_spill] sm:$0xff] }
 0x193   : > { %6739 = vmatpush1.bf16.msra.mxu1 %v12661_v57  ;;  %5973 = vmatprep.subr.bf16.mxu0 %v12662_v49  ;;  %v12672_v57 = vld [vmem:[#allocation138_spill] sm:$0xff]  ;;  %v12673_v49 = vld [vmem:[#allocation141_spill] sm:$0xff] }
 0x194   : > { %6741 = vmatprep.subr.bf16.mxu1 %v12663_v45  ;;  %v12674_v45 = vld [vmem:[#allocation144_spill] sm:$0xff] }
 0x196   : > { %5975 = vmatpush1.bf16.msra.mxu0 %v12664_v33  ;;  %v12675_v33 = vld [vmem:[#allocation148_spill] sm:$0xff] }
 0x197   : > { %6743 = vmatpush1.bf16.msra.mxu1 %v12665_v38  ;;  %5977 = vmatprep.subr.bf16.mxu0 %v12666_v10  ;;  %v12676_v38 = vld [vmem:[#allocation150_spill] sm:$0xff]  ;;  %v12677_v10 = vld [vmem:[#allocation153_spill] sm:$0xff] }
 0x198   : > { %6745 = vmatprep.subr.bf16.mxu1 %v12667_v52  ;;  %v12678_v52 = vld [vmem:[#allocation156_spill] sm:$0xff] }
 0x19a   : > { %5979 = vmatpush1.bf16.msra.mxu0 %v12668_v53  ;;  %v12679_v53 = vld [vmem:[#allocation160_spill] sm:$0xff] }
 0x19b   : > { %6747 = vmatpush1.bf16.msra.mxu1 %v12669_v26  ;;  %5981 = vmatprep.subr.bf16.mxu0 %v12670_v61  ;;  %v12680_v26 = vld [vmem:[#allocation162_spill] sm:$0xff]  ;;  %v12681_v61 = vld [vmem:[#allocation165_spill] sm:$0xff] }
 0x19c   : > { %6749 = vmatprep.subr.bf16.mxu1 %v12671_v8  ;;  %v12682_v8 = vld [vmem:[#allocation168_spill] sm:$0xff] }
 0x19e   : > { %5983 = vmatpush1.bf16.msra.mxu0 %v12672_v57  ;;  %v12683_v57 = vld [vmem:[#allocation172_spill] sm:$0xff] }
 0x19f   : > { %6751 = vmatpush1.bf16.msra.mxu1 %v12673_v49  ;;  %5985 = vmatprep.subr.bf16.mxu0 %v12674_v45  ;;  %v12684_v49 = vld [vmem:[#allocation174_spill] sm:$0xff]  ;;  %v12685_v45 = vld [vmem:[#allocation177_spill] sm:$0xff] }
 0x1a0   : > { %6753 = vmatprep.subr.bf16.mxu1 %v12675_v33  ;;  %v12686_v33 = vld [vmem:[#allocation180_spill] sm:$0xff] }
 0x1a2   : > { %5987 = vmatpush1.bf16.msra.mxu0 %v12676_v38  ;;  %v12687_v38 = vld [vmem:[#allocation184_spill] sm:$0xff] }
 0x1a3   : > { %6755 = vmatpush1.bf16.msra.mxu1 %v12677_v10  ;;  %5989 = vmatprep.subr.bf16.mxu0 %v12678_v52  ;;  %v12688_v10 = vld [vmem:[#allocation186_spill] sm:$0xff]  ;;  %v12689_v52 = vld [vmem:[#allocation189_spill] sm:$0xff] }
 0x1a4   : > { %6757 = vmatprep.subr.bf16.mxu1 %v12679_v53  ;;  %v12690_v53 = vld [vmem:[#allocation192_spill] sm:$0xff] }
 0x1a6   : > { %5991 = vmatpush1.bf16.msra.mxu0 %v12680_v26  ;;  %v12691_v26 = vld [vmem:[#allocation13_spill] sm:$0xff] }
 0x1a7   : > { %6759 = vmatpush1.bf16.msra.mxu1 %v12681_v61  ;;  %5993 = vmatprep.subr.bf16.mxu0 %v12682_v8  ;;  %v12692_v61 = vand.u32 4294901760, %v12691_v26  ;;  %v12694_v8 = vand.u32 4294901760, %v12693_v17  ;;  %v12706_v26 = vld [vmem:[#allocation22_spill] sm:$0xff] }
 0x1a8   : > { %6761 = vmatprep.subr.bf16.mxu1 %v12683_v57  ;;  %v12695_v57 = vld [vmem:[#allocation196_spill] sm:$0xff]  ;;  %v12707_v17 = vand.u32 4294901760, %v12706_v26 }
 0x1a9   : > { %v6004_v9 = vpack.c.bf16 %v12694_v8, %v12692_v61  ;;  %v12708_v8 = vld [vmem:[#allocation23_spill] sm:$0xff]  ;;  %v12721_v26 = vld [vmem:[#allocation32_spill] sm:$0xff] }
 0x1aa   : > { %5995 = vmatpush1.bf16.msra.mxu0 %v12684_v49  ;;  %v12696_v49 = vld [vmem:[#allocation15_spill] sm:$0xff]  ;;  %v12709_v61 = vand.u32 4294901760, %v12708_v8 }
 0x1ab   : > { %6763 = vmatpush1.bf16.msra.mxu1 %v12685_v45  ;;  %5997 = vmatprep.subr.bf16.mxu0 %v12686_v33  ;;  %v12697_v23 = vand.u32 4294901760, %v12696_v49  ;;  %v12698_v45 = vld [vmem:[#allocation17_spill] sm:$0xff]  ;;  %v12711_v49 = vand.u32 4294901760, %v12710_v28 }
 0x1ac   : > { %6765 = vmatprep.subr.bf16.mxu1 %v12687_v38  ;;  %v12699_v25 = vand.u32 4294901760, %v12698_v45  ;;  %v12701_v38 = vld [vmem:[#allocation19_spill] sm:$0xff]  ;;  %v12713_v45 = vand.u32 4294901760, %v12712_v15  ;;  %v12723_v15 = vld [vmem:[#allocation33_spill] sm:$0xff] }
 0x1ad   : > { %v12724_v28 = vand.u32 4294901760, %v12723_v15 }
 0x1ae   : > { %5999 = vmatpush1.bf16.msra.mxu0 %v12688_v10  ;;  %v6772_v33 = vpack.c.bf16 %v12699_v25, %v12697_v23  ;;  %v12702_v10 = vand.u32 4294901760, %v12701_v38  ;;  %v6008_v25 = vpack.c.bf16 %v12713_v45, %v12711_v49  ;;  %v12714_v23 = vld [vmem:[#allocation28_spill] sm:$0xff]  ;;  %v12716_v38 = vld [vmem:[#allocation29_spill] sm:$0xff] }
 0x1af   : > { %6767 = vmatpush1.bf16.msra.mxu1 %v12689_v52  ;;  %6001 = vmatprep.subr.bf16.mxu0 %v12690_v53  ;;  %v12704_v52 = vand.u32 4294901760, %v12703_v36  ;;  %v12705_v53 = vld [vmem:[#allocation201_spill] sm:$0xff]  ;;  %v12717_v24 = vand.u32 4294901760, %v12716_v38 }
 0x1b0   : > { %6769 = vmatprep.subr.bf16.mxu1 %v12695_v57  ;;  %v6774_v57 = vpack.c.bf16 %v12709_v61, %v12707_v17  ;;  %v12722_v17 = vand.u32 4294901760, %v12721_v26  ;;  %v12727_v45 = vld [vmem:[#allocation37_spill] sm:$0xff] }
 0x1b1   : > { %v6006_v60 = vpack.c.bf16 %v12704_v52, %v12702_v10  ;;  %v12718_v10 = vld [vmem:[#allocation208_spill] sm:$0xff]  ;;  %v12735_v26 = vld [vmem:[#allocation205_spill] sm:$0xff] }
 0x1b2   : > { %6003 = vmatpush1.bf16.msra.mxu0 %v12700_v39  ;;  %v12715_v39 = vand.u32 4294901760, %v12714_v23  ;;  %v12728_v23 = vand.u32 4294901760, %v12727_v45 }
 0x1b3   : > { %6771 = vmatpush1.bf16.msra.mxu1 %v12705_v53  ;;  %6005 = vmatprep.subr.bf16.mxu0 %v6004_v9  ;;  %v12719_v9 = vld [vmem:[#allocation30_spill] sm:$0xff]  ;;  %v12733_v53 = vld [vmem:[#allocation41_spill] sm:$0xff] }
 0x1b4   : > { %6773 = vmatprep.subr.bf16.mxu1 %v6772_v33  ;;  %v6776_v36 = vpack.c.bf16 %v12717_v24, %v12715_v39  ;;  %v12720_v52 = vand.u32 4294901760, %v12719_v9  ;;  %v12725_v33 = vld [vmem:[#allocation35_spill] sm:$0xff]  ;;  %v12729_v39 = vld [vmem:[#allocation38_spill] sm:$0xff]  ;;  %v12734_v9 = vand.u32 4294901760, %v12733_v53 }
 0x1b5   : > { %1348 = vmatmul.mubr.f32.vlgmr.msra.gmra.mrb[0].mxu0 %v12718_v10  ;;  %v12726_v61 = vand.u32 4294901760, %v12725_v33  ;;  %v12730_v24 = vand.u32 4294901760, %v12729_v39  ;;  %v12746_v39 = vld [vmem:[#allocation50_spill] sm:$0xff] }
 0x1b6   : > { %6007 = vmatpush1.bf16.msra.mxu0 %v6006_v60  ;;  %3916 = vmatmul.mubr.f32.vlgmr.msra.gmra.mrb[0].mxu1 %v12718_v10  ;;  %v6010_v8 = vpack.c.bf16 %v12722_v17, %v12720_v52  ;;  %v12731_v60 = vld [vmem:[#allocation40_spill] sm:$0xff] }
 0x1b7   : > { %6775 = vmatpush1.bf16.msra.mxu1 %v6774_v57  ;;  %6009 = vmatprep.subr.bf16.mxu0 %v6008_v25  ;;  %v6778_v49 = vpack.c.bf16 %v12726_v61, %v12724_v28  ;;  %v6012_v38 = vpack.c.bf16 %v12730_v24, %v12728_v23  ;;  %v12732_v10 = vand.u32 4294901760, %v12731_v60  ;;  %v12736_v57 = vld [vmem:[#allocation43_spill] sm:$0xff]  ;;  %v12738_v52 = vld [vmem:[#allocation44_spill] sm:$0xff]  ;;  %v12740_v28 = vld [vmem:[#allocation46_spill] sm:$0xff]  ;;  %v12747_v24 = vand.u32 4294901760, %v12746_v39 }
 0x1b8   : > { %6777 = vmatprep.subr.bf16.mxu1 %v6776_v36  ;;  %1611 = vmatprep.mubr.f32.mxu0 %v12735_v26  ;;  %v12737_v25 = vand.u32 4294901760, %v12736_v57  ;;  %v12739_v17 = vand.u32 4294901760, %v12738_v52  ;;  %v12741_v33 = vand.u32 4294901760, %v12740_v28  ;;  %v12742_v36 = vld [vmem:[#allocation47_spill] sm:$0xff]  ;;  %v12744_v23 = vld [vmem:[#allocation49_spill] sm:$0xff]  ;;  %v12756_v28 = vld [vmem:[#allocation58_spill] sm:$0xff] }
 0x1b9   : > { %v6780_v5 = vpack.c.bf16 %v12734_v9, %v12732_v10  ;;  %4179 = vmatprep.mubr.f32.mxu1 %v12735_v26  ;;  %v12743_v61 = vand.u32 4294901760, %v12742_v36  ;;  %v12745_v53 = vand.u32 4294901760, %v12744_v23  ;;  %v12748_v10 = vld [vmem:[#allocation52_spill] sm:$0xff]  ;;  %v12750_v9 = vld [vmem:[#allocation53_spill] sm:$0xff]  ;;  %v12758_v36 = vld [vmem:[#allocation59_spill] sm:$0xff] }
 0x1ba   : > { %6011 = vmatpush1.bf16.msra.mxu0 %v6010_v8  ;;  %v6014_v15 = vpack.c.bf16 %v12739_v17, %v12737_v25  ;;  %v12749_v8 = vand.u32 4294901760, %v12748_v10  ;;  %v12751_v57 = vand.u32 4294901760, %v12750_v9  ;;  %v12752_v25 = vld [vmem:[#allocation54_spill] sm:$0xff]  ;;  %v12766_v9 = vld [vmem:[#allocation65_spill] sm:$0xff] }
 0x1bb   : > { %6779 = vmatpush1.bf16.msra.mxu1 %v6778_v49  ;;  %6013 = vmatprep.subr.bf16.mxu0 %v6012_v38  ;;  %v6782_v45 = vpack.c.bf16 %v12743_v61, %v12741_v33  ;;  %v6016_v60 = vpack.c.bf16 %v12747_v24, %v12745_v53  ;;  %v12753_v49 = vand.u32 4294901760, %v12752_v25  ;;  %v12754_v38 = vld [vmem:[#allocation56_spill] sm:$0xff]  ;;  %v12757_v33 = vand.u32 4294901760, %v12756_v28  ;;  %v12760_v53 = vld [vmem:[#allocation61_spill] sm:$0xff]  ;;  %v12762_v39 = vld [vmem:[#allocation62_spill] sm:$0xff] }
 0x1bc   : > { %6781 = vmatprep.subr.bf16.mxu1 %v6780_v5  ;;  %v6784_v26 = vpack.c.bf16 %v12751_v57, %v12749_v8  ;;  %v12755_v52 = vand.u32 4294901760, %v12754_v38  ;;  %v12759_v61 = vand.u32 4294901760, %v12758_v36  ;;  %v12761_v5 = vand.u32 4294901760, %v12760_v53  ;;  %v12764_v8 = vld [vmem:[#allocation63_spill] sm:$0xff]  ;;  %v12772_v28 = vld [vmem:[#allocation70_spill] sm:$0xff] }
 0x1bd   : > { %v12763_v24 = vand.u32 4294901760, %v12762_v39  ;;  %v12767_v57 = vand.u32 4294901760, %v12766_v9  ;;  %v12774_v36 = vld [vmem:[#allocation71_spill] sm:$0xff]  ;;  %v12778_v39 = vld [vmem:[#allocation74_spill] sm:$0xff]  ;;  %v12782_v9 = vld [vmem:[#allocation77_spill] sm:$0xff] }
 0x1be   : > { %6015 = vmatpush1.bf16.msra.mxu0 %v6014_v15  ;;  %v6018_v17 = vpack.c.bf16 %v12755_v52, %v12753_v49  ;;  %v6786_v23 = vpack.c.bf16 %v12759_v61, %v12757_v33  ;;  %v12765_v15 = vand.u32 4294901760, %v12764_v8  ;;  %v12768_v49 = vld [vmem:[#allocation67_spill] sm:$0xff]  ;;  %v12773_v33 = vand.u32 4294901760, %v12772_v28  ;;  %v12788_v28 = vld [vmem:[#allocation82_spill] sm:$0xff] }
 0x1bf   : > { %6783 = vmatpush1.bf16.msra.mxu1 %v6782_v45  ;;  %6017 = vmatprep.subr.bf16.mxu0 %v6016_v60  ;;  %v6020_v10 = vpack.c.bf16 %v12763_v24, %v12761_v5  ;;  %v12769_v45 = vand.u32 4294901760, %v12768_v49  ;;  %v12770_v60 = vld [vmem:[#allocation68_spill] sm:$0xff]  ;;  %v12775_v61 = vand.u32 4294901760, %v12774_v36  ;;  %v12776_v5 = vld [vmem:[#allocation73_spill] sm:$0xff]  ;;  %v12779_v24 = vand.u32 4294901760, %v12778_v39  ;;  %v12790_v36 = vld [vmem:[#allocation83_spill] sm:$0xff] }
 0x1c0   : > { %6785 = vmatprep.subr.bf16.mxu1 %v6784_v26  ;;  %v6788_v25 = vpack.c.bf16 %v12767_v57, %v12765_v15  ;;  %v12771_v38 = vand.u32 4294901760, %v12770_v60  ;;  %v12777_v26 = vand.u32 4294901760, %v12776_v5  ;;  %v12780_v15 = vld [vmem:[#allocation75_spill] sm:$0xff]  ;;  %v12783_v57 = vand.u32 4294901760, %v12782_v9  ;;  %v12794_v39 = vld [vmem:[#allocation86_spill] sm:$0xff]  ;;  %v12798_v9 = vld [vmem:[#allocation89_spill] sm:$0xff] }
 0x1c1   : > { %v6790_v53 = vpack.c.bf16 %v12775_v61, %v12773_v33  ;;  %v12789_v33 = vand.u32 4294901760, %v12788_v28  ;;  %v12791_v61 = vand.u32 4294901760, %v12790_v36  ;;  %v12804_v28 = vld [vmem:[#allocation94_spill] sm:$0xff]  ;;  %v12806_v36 = vld [vmem:[#allocation95_spill] sm:$0xff] }
 0x1c2   : > { %6019 = vmatpush1.bf16.msra.mxu0 %v6018_v17  ;;  %v6022_v52 = vpack.c.bf16 %v12771_v38, %v12769_v45  ;;  %v6024_v8 = vpack.c.bf16 %v12779_v24, %v12777_v26  ;;  %v12781_v17 = vand.u32 4294901760, %v12780_v15  ;;  %v12784_v45 = vld [vmem:[#allocation79_spill] sm:$0xff]  ;;  %v12792_v26 = vld [vmem:[#allocation85_spill] sm:$0xff]  ;;  %v12795_v24 = vand.u32 4294901760, %v12794_v39  ;;  %v12810_v39 = vld [vmem:[#allocation98_spill] sm:$0xff] }
 0x1c3   : > { %6787 = vmatpush1.bf16.msra.mxu1 %v6786_v23  ;;  %6021 = vmatprep.subr.bf16.mxu0 %v6020_v10  ;;  %v12785_v23 = vand.u32 4294901760, %v12784_v45  ;;  %v12786_v10 = vld [vmem:[#allocation80_spill] sm:$0xff]  ;;  %v6794_v5 = vpack.c.bf16 %v12791_v61, %v12789_v33  ;;  %v12805_v33 = vand.u32 4294901760, %v12804_v28  ;;  %v12807_v61 = vand.u32 4294901760, %v12806_v36 }
 0x1c4   : > { %6789 = vmatprep.subr.bf16.mxu1 %v6788_v25  ;;  %v6792_v49 = vpack.c.bf16 %v12783_v57, %v12781_v17  ;;  %v12787_v60 = vand.u32 4294901760, %v12786_v10  ;;  %v12793_v25 = vand.u32 4294901760, %v12792_v26  ;;  %v12796_v17 = vld [vmem:[#allocation87_spill] sm:$0xff]  ;;  %v12799_v57 = vand.u32 4294901760, %v12798_v9 }
 0x1c5   : > { %v6798_v26 = vpack.c.bf16 %v12807_v61, %v12805_v33  ;;  %v12824_v36 = vand.u32 4294901760, %v12584_v13  ;;  %v12827_v61 = vand.u32 4294901760, %v12508_v40  ;;  %v12834_v40 = vand.u32 4294901760, %v12515_v27  ;;  %v12842_v27 = vld [vmem:[#allocation140_spill] sm:$0xff] }
 0x1c6   : > { %6023 = vmatpush1.bf16.msra.mxu0 %v6022_v52  ;;  %v6026_v38 = vpack.c.bf16 %v12787_v60, %v12785_v23  ;;  %v6028_v15 = vpack.c.bf16 %v12795_v24, %v12793_v25  ;;  %v12797_v52 = vand.u32 4294901760, %v12796_v17  ;;  %v12800_v23 = vld [vmem:[#allocation91_spill] sm:$0xff]  ;;  %v12808_v25 = vld [vmem:[#allocation97_spill] sm:$0xff]  ;;  %v12811_v24 = vand.u32 4294901760, %v12810_v39 }
 0x1c7   : > { %6791 = vmatpush1.bf16.msra.mxu1 %v6790_v53  ;;  %6025 = vmatprep.subr.bf16.mxu0 %v6024_v8  ;;  %v12801_v53 = vand.u32 4294901760, %v12800_v23  ;;  %v12802_v8 = vld [vmem:[#allocation92_spill] sm:$0xff]  ;;  %v12835_v39 = vand.u32 4294901760, %v12516_v0  ;;  %v12844_v0 = vand.u32 4294901760, %v12523_v3  ;;  %v12852_v3 = vand.u32 4294901760, %v12602_v12 }
 0x1c8   : > { %6793 = vmatprep.subr.bf16.mxu1 %v6792_v49  ;;  %v6796_v45 = vpack.c.bf16 %v12799_v57, %v12797_v52  ;;  %v12803_v10 = vand.u32 4294901760, %v12802_v8  ;;  %v12809_v49 = vand.u32 4294901760, %v12808_v25  ;;  %v12813_v52 = vld [vmem:[#allocation101_spill] sm:$0xff]  ;;  %v12818_v8 = vand.u32 4294901760, %v12578_v32 }
 0x1c9   : > { %v12814_v9 = vand.u32 4294901760, %v12813_v52  ;;  %v12825_v32 = vand.u32 4294901760, %v12506_v41  ;;  %v12831_v25 = vand.u32 4294901760, %v12512_v6  ;;  %v12859_v12 = vand.u32 4294901760, %v12537_v54  ;;  %v12868_v54 = vld [vmem:[#allocation173_spill] sm:$0xff] }
 0x1ca   : > { %6027 = vmatpush1.bf16.msra.mxu0 %v6026_v38  ;;  %v6030_v60 = vpack.c.bf16 %v12803_v10, %v12801_v53  ;;  %v6032_v17 = vpack.c.bf16 %v12811_v24, %v12809_v49  ;;  %v12812_v38 = vand.u32 4294901760, %v12573_v43  ;;  %v12817_v53 = vand.u32 4294901760, %v12577_v16 }
 0x1cb   : > { %6795 = vmatpush1.bf16.msra.mxu1 %v6794_v5  ;;  %6029 = vmatprep.subr.bf16.mxu0 %v6028_v15  ;;  %v12815_v5 = vand.u32 4294901760, %v12575_v22  ;;  %v12816_v15 = vand.u32 4294901760, %v12576_v7  ;;  %v12820_v43 = vand.u32 4294901760, %v12580_v34  ;;  %v12822_v22 = vand.u32 4294901760, %v12582_v44 }
 0x1cc   : > { %6797 = vmatprep.subr.bf16.mxu1 %v6796_v45  ;;  %v6800_v57 = vpack.c.bf16 %v12814_v9, %v12812_v38  ;;  %v6802_v10 = vpack.c.bf16 %v12818_v8, %v12817_v53  ;;  %v12819_v45 = vand.u32 4294901760, %v12579_v21  ;;  %v12823_v7 = vand.u32 4294901760, %v12583_v48  ;;  %v12839_v38 = vld [vmem:[#allocation137_spill] sm:$0xff] }
 0x1cd   : > { %v6034_v23 = vpack.c.bf16 %v12816_v15, %v12815_v5  ;;  %v12826_v34 = vand.u32 4294901760, %v12507_v55  ;;  %v12830_v48 = vand.u32 4294901760, %v12511_v59  ;;  %v12832_v49 = vand.u32 4294901760, %v12513_v1  ;;  %v12837_v59 = vld [vmem:[#allocation135_spill] sm:$0xff]  ;;  %v350_v9 = vld [vmem:[#allocation5 + $0x4e0] sm:$0xff] }
 0x1ce   : > { %6031 = vmatpush1.bf16.msra.mxu0 %v6030_v60  ;;  %v6036_v28 = vpack.c.bf16 %v12820_v43, %v12819_v45  ;;  %v12821_v60 = vand.u32 4294901760, %v12581_v20  ;;  %v6038_v16 = vpack.c.bf16 %v12824_v36, %v12823_v7  ;;  %v12828_v20 = vand.u32 4294901760, %v12509_v63  ;;  %v9188_v1 = vld [vmem:[%s7733_s16] sm:$0xff] }
 0x1cf   : > { %6799 = vmatpush1.bf16.msra.mxu1 %v6798_v26  ;;  %6033 = vmatprep.subr.bf16.mxu0 %v6032_v17  ;;  %v6806_v21 = vpack.c.bf16 %v12826_v34, %v12825_v32  ;;  %v12829_v26 = vand.u32 4294901760, %v12510_v35  ;;  %v6042_v41 = vpack.c.bf16 %v12832_v49, %v12831_v25  ;;  %v12833_v55 = vand.u32 4294901760, %v12514_v42  ;;  %v329_v32 = vld [vmem:[#allocation5 + $0x438] sm:$0xff] }
 0x1d0   : > { %6801 = vmatprep.subr.bf16.mxu1 %v6800_v57  ;;  %v6804_v33 = vpack.c.bf16 %v12822_v22, %v12821_v60  ;;  %v6040_v44 = vpack.c.bf16 %v12828_v20, %v12827_v61  ;;  %v12836_v35 = vand.u32 4294901760, %v12517_v14  ;;  %v12838_v17 = vand.u32 4294901760, %v12837_v59  ;;  %v12864_v61 = vld [vmem:[#allocation170_spill] sm:$0xff]  ;;  %v12872_v49 = vld [vmem:[#allocation176_spill] sm:$0xff]  ;;  %v12878_v59 = vld [vmem:[#allocation181_spill] sm:$0xff] }
 0x1d1   : > { %v6808_v13 = vpack.c.bf16 %v12830_v48, %v12829_v26  ;;  %v6810_v63 = vpack.c.bf16 %v12834_v40, %v12833_v55  ;;  %v12840_v6 = vand.u32 4294901760, %v12839_v38  ;;  %v12841_v42 = vand.u32 4294901760, %v12521_v50  ;;  %v326_v55 = vld [vmem:[#allocation5 + $0x420] sm:$0xff]  ;;  %v12874_v40 = vld [vmem:[#allocation178_spill] sm:$0xff] }
 0x1d2   : > { %6035 = vmatpush1.bf16.msra.mxu0 %v6034_v23  ;;  %v6044_v24 = vpack.c.bf16 %v12836_v35, %v12835_v39  ;;  %v12843_v57 = vand.u32 4294901760, %v12842_v27  ;;  %v12845_v14 = vand.u32 4294901760, %v12524_v19  ;;  %v12846_v23 = vand.u32 4294901760, %v12594_v4  ;;  %v327_v4 = vld [vmem:[#allocation5 + $0x428] sm:$0xff]  ;;  %v12876_v39 = vld [vmem:[#allocation179_spill] sm:$0xff] }
 0x1d3   : > { %6803 = vmatpush1.bf16.msra.mxu1 %v6802_v10  ;;  %6037 = vmatprep.subr.bf16.mxu0 %v6036_v28  ;;  %v6812_v52 = vpack.c.bf16 %v12840_v6, %v12838_v17  ;;  %v12847_v53 = vand.u32 4294901760, %v12526_v18  ;;  %v12848_v10 = vand.u32 4294901760, %v12597_v30  ;;  %v12849_v45 = vand.u32 4294901760, %v12596_v37  ;;  %v12880_v38 = vld [vmem:[#allocation182_spill] sm:$0xff] }
 0x1d4   : > { %6805 = vmatprep.subr.bf16.mxu1 %v6804_v33  ;;  %v6046_v5 = vpack.c.bf16 %v12843_v57, %v12841_v42  ;;  %v6814_v15 = vpack.c.bf16 %v12845_v14, %v12844_v0  ;;  %v12850_v50 = vand.u32 4294901760, %v12599_v11  ;;  %v12851_v28 = vand.u32 4294901760, %v12530_v46  ;;  %v323_v33 = vld [vmem:[#allocation5 + $0x408] sm:$0xff]  ;;  %v324_v57 = vld [vmem:[#allocation5 + $0x410] sm:$0xff] }
 0x1d5   : > { %v6048_v8 = vpack.c.bf16 %v12847_v53, %v12846_v23  ;;  %v6816_v43 = vpack.c.bf16 %v12849_v45, %v12848_v10  ;;  %v12853_v19 = vand.u32 4294901760, %v12601_v2  ;;  %v12854_v18 = vand.u32 4294901760, %v12533_v29  ;;  %v328_v0 = vld [vmem:[#allocation5 + $0x430] sm:$0xff]  ;;  %v12884_v53 = vld [vmem:[#allocation185_spill] sm:$0xff] }
 0x1d6   : > { %6039 = vmatpush1.bf16.msra.mxu0 %v6038_v16  ;;  %v6050_v60 = vpack.c.bf16 %v12851_v28, %v12850_v50  ;;  %v12855_v30 = vand.u32 4294901760, %v12534_v31  ;;  %v12856_v7 = vand.u32 4294901760, %v12535_v62  ;;  %v12857_v11 = vand.u32 4294901760, %v12536_v58  ;;  %v325_v16 = vld [vmem:[#allocation5 + $0x418] sm:$0xff]  ;;  %v12882_v14 = vld [vmem:[#allocation183_spill] sm:$0xff] }
 0x1d7   : > { %6807 = vmatpush1.bf16.msra.mxu1 %v6806_v21  ;;  %6041 = vmatprep.subr.bf16.mxu0 %v6040_v44  ;;  %v6818_v22 = vpack.c.bf16 %v12853_v19, %v12852_v3  ;;  %v12858_v36 = vand.u32 4294901760, %v12483_v51  ;;  %v12860_v34 = vand.u32 4294901760, %v12538_v56  ;;  %v12861_v29 = vand.u32 4294901760, %v12539_v47  ;;  %v12862_v21 = vld [vmem:[#allocation169_spill] sm:$0xff]  ;;  %v12866_v51 = vld [vmem:[#allocation171_spill] sm:$0xff]  ;;  %v12888_v3 = vld [vmem:[#allocation188_spill] sm:$0xff] }
 0x1d8   : > { %6809 = vmatprep.subr.bf16.mxu1 %v6808_v13  ;;  %v6052_v37 = vpack.c.bf16 %v12855_v30, %v12854_v18  ;;  %v6820_v46 = vpack.c.bf16 %v12857_v11, %v12856_v7  ;;  %v12863_v62 = vand.u32 4294901760, %v12862_v21  ;;  %v12865_v58 = vand.u32 4294901760, %v12864_v61  ;;  %v12870_v13 = vld [vmem:[#allocation175_spill] sm:$0xff]  ;;  %v322_v47 = vld [vmem:[#allocation5 + $0x400] sm:$0xff]  ;;  %v12890_v11 = vld [vmem:[#allocation190_spill] sm:$0xff] }
 0x1d9   : > { %v9228_v2 = vpack.c.bf16 %v12859_v12, %v12858_v36  ;;  %v9234_v31 = vpack.c.bf16 %v12861_v29, %v12860_v34  ;;  %v12867_v44 = vand.u32 4294901760, %v12866_v51  ;;  %v12869_v26 = vand.u32 4294901760, %v12868_v54  ;;  %v12886_v50 = vld [vmem:[#allocation187_spill] sm:$0xff]  ;;  %v12894_v29 = vld [vmem:[#allocation193_spill] sm:$0xff]  ;;  %v331_v54 = vld [vmem:[#allocation5 + $0x448] sm:$0xff] }
 0x1da   : > { %6043 = vmatpush1.bf16.msra.mxu0 %v6042_v41  ;;  %v9240_v20 = vpack.c.bf16 %v12865_v58, %v12863_v62  ;;  %v12871_v25 = vand.u32 4294901760, %v12870_v13  ;;  %v12873_v56 = vand.u32 4294901760, %v12872_v49  ;;  %v12877_v35 = vand.u32 4294901760, %v12876_v39  ;;  %v12892_v12 = vld [vmem:[#allocation191_spill] sm:$0xff]  ;;  %v12896_v62 = vld [vmem:[#allocation194_spill] sm:$0xff] }
 0x1db   : > { %6811 = vmatpush1.bf16.msra.mxu1 %v6810_v63  ;;  %6045 = vmatprep.subr.bf16.mxu0 %v6044_v24  ;;  %v9246_v48 = vpack.c.bf16 %v12869_v26, %v12867_v44  ;;  %v12875_v63 = vand.u32 4294901760, %v12874_v40  ;;  %v12879_v17 = vand.u32 4294901760, %v12878_v59  ;;  %v12881_v6 = vand.u32 4294901760, %v12880_v38  ;;  %v335_v26 = vld [vmem:[#allocation5 + $0x468] sm:$0xff]  ;;  %v12898_v13 = vld [vmem:[#allocation195_spill] sm:$0xff]  ;;  %v333_v38 = vld [vmem:[#allocation5 + $0x458] sm:$0xff] }
 0x1dc   : > { %6813 = vmatprep.subr.bf16.mxu1 %v6812_v52  ;;  %v9252_v41 = vpack.c.bf16 %v12873_v56, %v12871_v25  ;;  %v1756_v42 = vand.u32 4294901760, %v323_v33  ;;  %v1760_v27 = vand.u32 4294901760, %v327_v4  ;;  %v12883_v23 = vand.u32 4294901760, %v12882_v14  ;;  %v12902_v56 = vld [vmem:[#allocation199_spill] sm:$0xff]  ;;  %v12906_v14 = vld [vmem:[#allocation202_spill] sm:$0xff] }
 0x1dd   : > { %v9258_v24 = vpack.c.bf16 %v12877_v35, %v12875_v63  ;;  %v9264_v52 = vpack.c.bf16 %v12881_v6, %v12879_v17  ;;  %v12885_v10 = vand.u32 4294901760, %v12884_v53  ;;  %v12887_v28 = vand.u32 4294901760, %v12886_v50  ;;  %v12904_v63 = vld [vmem:[#allocation200_spill] sm:$0xff]  ;;  %v12908_v53 = vld [vmem:[#allocation203_spill] sm:$0xff] }
 0x1de   : > { %6047 = vmatpush1.bf16.msra.mxu0 %v6046_v5  ;;  %v12889_v19 = vand.u32 4294901760, %v12888_v3  ;;  %v4324_v30 = vand.u32 4294901760, %v325_v16  ;;  %v4328_v7 = vand.u32 4294901760, %v329_v32  ;;  %v12891_v36 = vand.u32 4294901760, %v12890_v11  ;;  %v337_v6 = vld [vmem:[#allocation5 + $0x478] sm:$0xff] }
 0x1df   : > { %v9270_v45 = vpack.c.bf16 %v12885_v10, %v12883_v23  ;;  %6815 = vmatpush1.bf16.msra.mxu1 %v6814_v15  ;;  %6049 = vmatprep.subr.bf16.mxu0 %v6048_v8  ;;  %v12893_v5 = vand.u32 4294901760, %v12892_v12  ;;  %v12895_v21 = vand.u32 4294901760, %v12894_v29  ;;  %v12897_v61 = vand.u32 4294901760, %v12896_v62  ;;  %v12900_v8 = vld [vmem:[#allocation197_spill] sm:$0xff]  ;;  %v336_v62 = vld [vmem:[#allocation5 + $0x470] sm:$0xff] }
 0x1e0   : > { %v9276_v18 = vpack.c.bf16 %v12889_v19, %v12887_v28  ;;  %v1758_v51 = vand.u32 4294901760, %v322_v47  ;;  %v1762_v44 = vand.u32 4294901760, %v326_v55  ;;  %6817 = vmatprep.subr.bf16.mxu1 %v6816_v43  ;;  %v12899_v15 = vand.u32 4294901760, %v12898_v13  ;;  %v330_v19 = vld [vmem:[#allocation5 + $0x440] sm:$0xff] }
 0x1e1   : > { %v9282_v34 = vpack.c.bf16 %v12893_v5, %v12891_v36  ;;  %v9288_v58 = vpack.c.bf16 %v12897_v61, %v12895_v21  ;;  %v12901_v25 = vand.u32 4294901760, %v12900_v8  ;;  %v12903_v40 = vand.u32 4294901760, %v12902_v56  ;;  %v334_v29 = vld [vmem:[#allocation5 + $0x460] sm:$0xff]  ;;  %v332_v21 = vld [vmem:[#allocation5 + $0x450] sm:$0xff] }
 0x1e2   : > { %v12905_v39 = vand.u32 4294901760, %v12904_v63  ;;  %v4326_v59 = vand.u32 4294901760, %v324_v57  ;;  %v4330_v17 = vand.u32 4294901760, %v328_v0  ;;  %v12907_v23 = vand.u32 4294901760, %v12906_v14  ;;  %6051 = vmatpush1.bf16.msra.mxu0 %v6050_v60 }
 0x1e3   : > { %v9294_v49 = vpack.c.bf16 %v12901_v25, %v12899_v15  ;;  %v12909_v43 = vand.u32 4294901760, %v12908_v53  ;;  %v9308_v50 = vpack.c.bf16 %v1760_v27, %v1756_v42  ;;  %v9310_v28 = vsub.f32 %v323_v33, %v1756_v42  ;;  %6819 = vmatpush1.bf16.msra.mxu1 %v6818_v22  ;;  %6053 = vmatprep.subr.bf16.mxu0 %v6052_v37  ;;  %v343_v15 = vld [vmem:[#allocation5 + $0x4a8] sm:$0xff]  ;;  %v345_v25 = vld [vmem:[#allocation5 + $0x4b8] sm:$0xff] }
 0x1e4   : > { %v9300_v35 = vpack.c.bf16 %v12905_v39, %v12903_v40  ;;  %v9312_v3 = vsub.f32 %v327_v4, %v1760_v27  ;;  %v9314_v11 = vpack.c.bf16 %v4328_v7, %v4324_v30  ;;  %v9316_v36 = vsub.f32 %v325_v16, %v4324_v30  ;;  %6821 = vmatprep.subr.bf16.mxu1 %v6820_v46  ;;  %v339_v30 = vld [vmem:[#allocation5 + $0x488] sm:$0xff]  ;;  %v344_v39 = vld [vmem:[#allocation5 + $0x4b0] sm:$0xff] }
 0x1e5   : > { %v9306_v10 = vpack.c.bf16 %v12909_v43, %v12907_v23  ;;  %12910 = vst [vmem:[#allocation163_spill] sm:$0xff] %v9308_v50  ;;  %12911 = vst [vmem:[#allocation118_spill] sm:$0xff] %v9310_v28  ;;  %v1764_v12 = vand.u32 4294901760, %v331_v54  ;;  %v1768_v5 = vand.u32 4294901760, %v335_v26  ;;  %v9318_v61 = vsub.f32 %v329_v32, %v4328_v7  ;;  %v341_v7 = vld [vmem:[#allocation5 + $0x498] sm:$0xff]  ;;  %v347_v23 = vld [vmem:[#allocation5 + $0x4c8] sm:$0xff] }
 0x1e6   : > { %12912 = vst [vmem:[#allocation119_spill] sm:$0xff] %v9312_v3  ;;  %12913 = vst [vmem:[#allocation121_spill] sm:$0xff] %v9314_v11  ;;  %v9320_v13 = vpack.c.bf16 %v1762_v44, %v1758_v51  ;;  %v4332_v33 = vand.u32 4294901760, %v333_v38  ;;  %v4336_v4 = vand.u32 4294901760, %v337_v6  ;;  %v9322_v42 = vsub.f32 %v322_v47, %v1758_v51  ;;  %6055 = vmatpush1.bf16.msra.mxu0 %v9228_v2  ;;  %v342_v2 = vld [vmem:[#allocation5 + $0x4a0] sm:$0xff]  ;;  %v351_v53 = vld [vmem:[#allocation5 + $0x4e8] sm:$0xff] }
 0x1e7   : > { %12914 = vst [vmem:[#allocation122_spill] sm:$0xff] %v9316_v36  ;;  %12915 = vst [vmem:[#allocation123_spill] sm:$0xff] %v9318_v61  ;;  %v9324_v60 = vsub.f32 %v326_v55, %v1762_v44  ;;  %v9326_v16 = vpack.c.bf16 %v4330_v17, %v4326_v59  ;;  %v9328_v27 = vsub.f32 %v324_v57, %v4326_v59  ;;  %v1766_v8 = vand.u32 4294901760, %v330_v19  ;;  %v338_v57 = vld [vmem:[#allocation5 + $0x480] sm:$0xff] }
 0x1e8   : > { %12916 = vst [vmem:[#allocation125_spill] sm:$0xff] %v9320_v13  ;;  %12917 = vst [vmem:[#allocation127_spill] sm:$0xff] %v9322_v42  ;;  %v1770_v22 = vand.u32 4294901760, %v334_v29  ;;  %v4334_v37 = vand.u32 4294901760, %v332_v21  ;;  %v4338_v32 = vand.u32 4294901760, %v336_v62  ;;  %v9331_v56 = vsub.f32 %v328_v0, %v4330_v17  ;;  %6823 = vmatpush1.bf16.msra.mxu1 %v9234_v31  ;;  %6057 = vmatprep.subr.bf16.mxu0 %v9240_v20  ;;  %v340_v0 = vld [vmem:[#allocation5 + $0x490] sm:$0xff] }
 0x1e9   : > { %12918 = vst [vmem:[#allocation128_spill] sm:$0xff] %v9324_v60  ;;  %12919 = vst [vmem:[#allocation130_spill] sm:$0xff] %v9326_v16  ;;  %v9333_v46 = vpack.c.bf16 %v1768_v5, %v1764_v12  ;;  %v9335_v47 = vsub.f32 %v331_v54, %v1764_v12  ;;  %v9337_v55 = vsub.f32 %v335_v26, %v1768_v5  ;;  %v1772_v40 = vand.u32 4294901760, %v339_v30  ;;  %v353_v5 = vld [vmem:[#allocation5 + $0x4f8] sm:$0xff] }
 0x1ea   : > { %12920 = vst [vmem:[#allocation131_spill] sm:$0xff] %v9328_v27  ;;  %12921 = vst [vmem:[#allocation133_spill] sm:$0xff] %v9331_v56  ;;  %v9341_v51 = vpack.c.bf16 %v4336_v4, %v4332_v33  ;;  %v9343_v44 = vsub.f32 %v333_v38, %v4332_v33  ;;  %v1776_v63 = vand.u32 4294901760, %v343_v15  ;;  %6825 = vmatprep.subr.bf16.mxu1 %v9246_v48  ;;  %v4340_v59 = vand.u32 4294901760, %v341_v7 }
 0x1eb   : > { %12922 = vst [vmem:[#allocation134_spill] sm:$0xff] %v9333_v46  ;;  %12923 = vst [vmem:[#allocation207_spill] sm:$0xff] %v9335_v47  ;;  %v9346_v54 = vsub.f32 %v337_v6, %v4336_v4  ;;  %v9348_v26 = vsub.f32 %v330_v19, %v1766_v8  ;;  %v4344_v17 = vand.u32 4294901760, %v345_v25  ;;  %v9350_v31 = vpack.c.bf16 %v1770_v22, %v1766_v8  ;;  %v349_v19 = vld [vmem:[#allocation5 + $0x4d8] sm:$0xff] }
 0x1ec   : > { %12924 = vst [vmem:[#allocation139_spill] sm:$0xff] %v9337_v55  ;;  %12925 = vst [vmem:[#allocation142_spill] sm:$0xff] %v9341_v51  ;;  %v9352_v20 = vsub.f32 %v334_v29, %v1770_v22  ;;  %v9354_v14 = vpack.c.bf16 %v4338_v32, %v4334_v37  ;;  %v9356_v38 = vsub.f32 %v332_v21, %v4334_v37  ;;  %6059 = vmatpush1.bf16.msra.mxu0 %v9252_v41  ;;  %v346_v37 = vld [vmem:[#allocation5 + $0x4c0] sm:$0xff] }
 0x1ed   : > { %12926 = vst [vmem:[#allocation143_spill] sm:$0xff] %v9343_v44  ;;  %12927 = vst [vmem:[#allocation146_spill] sm:$0xff] %v9346_v54  ;;  %v1774_v43 = vand.u32 4294901760, %v338_v57  ;;  %v1778_v48 = vand.u32 4294901760, %v342_v2  ;;  %v4342_v6 = vand.u32 4294901760, %v340_v0  ;;  %v4346_v12 = vand.u32 4294901760, %v344_v39  ;;  %6827 = vmatpush1.bf16.msra.mxu1 %v9258_v24  ;;  %6061 = vmatprep.subr.bf16.mxu0 %v9264_v52 }
 0x1ee   : > { %12928 = vst [vmem:[#allocation152_spill] sm:$0xff] %v9348_v26  ;;  %12929 = vst [vmem:[#allocation157_spill] sm:$0xff] %v9350_v31  ;;  %v9361_v29 = vsub.f32 %v336_v62, %v4338_v32  ;;  %v9363_v33 = vpack.c.bf16 %v1776_v63, %v1772_v40  ;;  %v9365_v21 = vsub.f32 %v339_v30, %v1772_v40  ;;  %6829 = vmatprep.subr.bf16.mxu1 %v9270_v45  ;;  %v348_v32 = vld [vmem:[#allocation5 + $0x4d0] sm:$0xff] }
 0x1ef   : > { %12930 = vst [vmem:[#allocation158_spill] sm:$0xff] %v9352_v20  ;;  %12931 = vst [vmem:[#allocation159_spill] sm:$0xff] %v9354_v14  ;;  %v9368_v4 = vsub.f32 %v343_v15, %v1776_v63  ;;  %v9370_v41 = vpack.c.bf16 %v4344_v17, %v4340_v59  ;;  %v1780_v8 = vand.u32 4294901760, %v347_v23  ;;  %v1784_v22 = vand.u32 4294901760, %v351_v53  ;;  %v355_v63 = vld [vmem:[#allocation5 + $0x508] sm:$0xff] }
 0x1f0   : > { %12932 = vst [vmem:[#allocation161_spill] sm:$0xff] %v9356_v38  ;;  %12933 = vst [vmem:[#allocation164_spill] sm:$0xff] %v9361_v29  ;;  %v9372_v14 = vsub.f32 %v341_v7, %v4340_v59  ;;  %v9374_v24 = vsub.f32 %v345_v25, %v4344_v17  ;;  %v4348_v52 = vand.u32 4294901760, %v349_v19  ;;  %v4352_v62 = vand.u32 4294901760, %v353_v5  ;;  %6063 = vmatpush1.bf16.msra.mxu0 %v9276_v18  ;;  %v357_v17 = vld [vmem:[#allocation5 + $0x518] sm:$0xff] }
 0x1f1   : > { %12934 = vst [vmem:[#allocation166_spill] sm:$0xff] %v9363_v33  ;;  %12935 = vst [vmem:[#allocation167_spill] sm:$0xff] %v9365_v21  ;;  %v352_v33 = vld [vmem:[#allocation5 + $0x4f0] sm:$0xff]  ;;  %v9377_v30 = vpack.c.bf16 %v1778_v48, %v1774_v43  ;;  %v9379_v45 = vsub.f32 %v338_v57, %v1774_v43  ;;  %v9381_v15 = vsub.f32 %v342_v2, %v1778_v48  ;;  %6831 = vmatpush1.bf16.msra.mxu1 %v9282_v34  ;;  %v358_v34 = vld [vmem:[#allocation5 + $0x520] sm:$0xff] }
 0x1f2   : > { %12936 = vst [vmem:[#allocation99_spill] sm:$0xff] %v9368_v4  ;;  %12937 = vst [vmem:[#allocation103_spill] sm:$0xff] %v9370_v41  ;;  %v9383_v40 = vpack.c.bf16 %v4346_v12, %v4342_v6  ;;  %v359_v41 = vld [vmem:[#allocation5 + $0x528] sm:$0xff]  ;;  %6065 = vmatprep.subr.bf16.mxu0 %v9288_v58  ;;  %v9387_v7 = vsub.f32 %v340_v0, %v4342_v6  ;;  %v9389_v25 = vsub.f32 %v344_v39, %v4346_v12 }
 0x1f3   : > { %12938 = vst [vmem:[#allocation104_spill] sm:$0xff] %v9372_v14  ;;  %12939 = vst [vmem:[#allocation106_spill] sm:$0xff] %v9374_v24  ;;  %v1782_v59 = vand.u32 4294901760, %v346_v37  ;;  %v1786_v18 = vand.u32 4294901760, %v350_v9  ;;  %v361_v24 = vld [vmem:[#allocation5 + $0x538] sm:$0xff]  ;;  %6833 = vmatprep.subr.bf16.mxu1 %v9294_v49  ;;  %v9392_v57 = vpack.c.bf16 %v1784_v22, %v1780_v8  ;;  %v9394_v2 = vsub.f32 %v347_v23, %v1780_v8  ;;  %v356_v23 = vld [vmem:[#allocation5 + $0x510] sm:$0xff] }
 0x1f4   : > { %12940 = vst [vmem:[#allocation107_spill] sm:$0xff] %v9377_v30  ;;  %12941 = vst [vmem:[#allocation109_spill] sm:$0xff] %v9379_v45  ;;  %v4350_v43 = vand.u32 4294901760, %v348_v32  ;;  %v4354_v48 = vand.u32 4294901760, %v352_v33  ;;  %v9396_v45 = vsub.f32 %v351_v53, %v1784_v22  ;;  %v9398_v58 = vpack.c.bf16 %v4352_v62, %v4348_v52  ;;  %6067 = vmatpush1.bf16.msra.mxu0 %v9300_v35  ;;  %v360_v8 = vld [vmem:[#allocation5 + $0x530] sm:$0xff] }
 0x1f5   : > { %12942 = vst [vmem:[#allocation110_spill] sm:$0xff] %v9381_v15  ;;  %12943 = vst [vmem:[#allocation111_spill] sm:$0xff] %v9383_v40  ;;  %v354_v15 = vld [vmem:[#allocation5 + $0x500] sm:$0xff]  ;;  %v1788_v0 = vand.u32 4294901760, %v355_v63  ;;  %v1792_v39 = vand.u32 4294901760, %v359_v41  ;;  %v9401_v6 = vsub.f32 %v349_v19, %v4348_v52  ;;  %v9403_v12 = vsub.f32 %v353_v5, %v4352_v62  ;;  %6835 = vmatpush1.bf16.msra.mxu1 %v9306_v10  ;;  %v363_v62 = vld [vmem:[#allocation5 + $0x548] sm:$0xff] }
 0x1f6   : > { %12944 = vst [vmem:[#allocation113_spill] sm:$0xff] %v9387_v7  ;;  %12945 = vst [vmem:[#allocation115_spill] sm:$0xff] %v9389_v25  ;;  %v4356_v49 = vand.u32 4294901760, %v357_v17  ;;  %v4360_v25 = vand.u32 4294901760, %v361_v24  ;;  %v9407_v53 = vpack.c.bf16 %v1786_v18, %v1782_v59  ;;  %v9409_v22 = vsub.f32 %v346_v37, %v1782_v59  ;;  %v367_v10 = vld [vmem:[#allocation5 + $0x568] sm:$0xff] }
 0x1f7   : > { %12946 = vst [vmem:[#allocation116_spill] sm:$0xff] %v9392_v57  ;;  %12947 = vst [vmem:[#allocation145_spill] sm:$0xff] %v9394_v2  ;;  %v12952_v2 = vld [vmem:[#allocation12_spill] sm:$0xff]  ;;  %v1794_v7 = vand.u32 4294901760, %v358_v34  ;;  %v9412_v35 = vsub.f32 %v350_v9, %v1786_v18  ;;  %v9414_v19 = vpack.c.bf16 %v4354_v48, %v4350_v43  ;;  %v9416_v5 = vsub.f32 %v348_v32, %v4350_v43  ;;  %v12963_v9 = vld [vmem:[#allocation18_spill] sm:$0xff] }
 0x1f8   : > { %12948 = vst [vmem:[#allocation149_spill] sm:$0xff] %v9396_v45  ;;  %12949 = vst [vmem:[#allocation147_spill] sm:$0xff] %v9398_v58  ;;  %6069 = vmatprep.subr.bf16.mxu0 %v12952_v2  ;;  %v1790_v45 = vand.u32 4294901760, %v354_v15  ;;  %v12955_v58 = vld [vmem:[#allocation16_spill] sm:$0xff]  ;;  %v9418_v52 = vsub.f32 %v352_v33, %v4354_v48  ;;  %v9421_v2 = vpack.c.bf16 %v1792_v39, %v1788_v0  ;;  %v4358_v59 = vand.u32 4294901760, %v356_v23  ;;  %v362_v43 = vld [vmem:[#allocation5 + $0x540] sm:$0xff] }
 0x1f9   : > { %12950 = vst [vmem:[#allocation151_spill] sm:$0xff] %v9401_v6  ;;  %12951 = vst [vmem:[#allocation155_spill] sm:$0xff] %v9403_v12  ;;  %6837 = vmatprep.subr.bf16.mxu1 %v12955_v58  ;;  %v12960_v12 = vld [vmem:[#allocation204_spill] sm:$0xff]  ;;  %v9423_v37 = vsub.f32 %v355_v63, %v1788_v0  ;;  %v9427_v32 = vsub.f32 %v359_v41, %v1792_v39  ;;  %v9429_v33 = vpack.c.bf16 %v4360_v25, %v4356_v49  ;;  %v366_v48 = vld [vmem:[#allocation5 + $0x560] sm:$0xff] }
 0x1fa   : > { %12953 = vst [vmem:[#allocation154_spill] sm:$0xff] %v9407_v53  ;;  %12954 = vst [vmem:[#allocation206_spill] sm:$0xff] %v9409_v22  ;;  %1613 = vmatmul.mubr.f32.vlgmr.msra.gmra.mrb[0].mxu0 %v12960_v12  ;;  %v4362_v22 = vand.u32 4294901760, %v360_v8  ;;  %v365_v6 = vld [vmem:[#allocation5 + $0x558] sm:$0xff]  ;;  %4181 = vmatmul.mubr.f32.vlgmr.msra.gmra.mrb[0].mxu1 %v12960_v12  ;;  %v9431_v18 = vsub.f32 %v357_v17, %v4356_v49  ;;  %v12968_v63 = vld [vmem:[#allocation25_spill] sm:$0xff]  ;;  %v9435_v0 = vsub.f32 %v361_v24, %v4360_v25 }
 0x1fb   : > { %12956 = vst [vmem:[#allocation209_spill] sm:$0xff] %v9412_v35  ;;  %12957 = vst [vmem:[#allocation13_spill] sm:$0xff] %v9414_v19  ;;  %v369_v58 = vld [vmem:[#allocation5 + $0x578] sm:$0xff]  ;;  %6071 = vmatpush1.bf16.msra.mxu0 %v12963_v9  ;;  %v1800_v9 = vand.u32 4294901760, %v367_v10  ;;  %v364_v35 = vld [vmem:[#allocation5 + $0x550] sm:$0xff]  ;;  %v9441_v17 = vsub.f32 %v354_v15, %v1790_v45  ;;  %v9443_v49 = vsub.f32 %v358_v34, %v1794_v7 }
 0x1fc   : > { %12958 = vst [vmem:[#allocation14_spill] sm:$0xff] %v9416_v5  ;;  %12959 = vst [vmem:[#allocation15_spill] sm:$0xff] %v9418_v52  ;;  %v12967_v52 = vld [vmem:[#allocation21_spill] sm:$0xff]  ;;  %6073 = vmatprep.subr.bf16.mxu0 %v12968_v63  ;;  %v1796_v5 = vand.u32 4294901760, %v363_v62  ;;  %v12971_v41 = vld [vmem:[#allocation27_spill] sm:$0xff]  ;;  %v9446_v24 = vpack.c.bf16 %v4362_v22, %v4358_v59  ;;  %v9448_v25 = vsub.f32 %v356_v23, %v4358_v59 }
 0x1fd   : > { %12961 = vst [vmem:[#allocation17_spill] sm:$0xff] %v9421_v2  ;;  %12962 = vst [vmem:[#allocation19_spill] sm:$0xff] %v9423_v37  ;;  %6839 = vmatpush1.bf16.msra.mxu1 %v12967_v52  ;;  %v9437_v37 = vpack.c.bf16 %v1794_v7, %v1790_v45  ;;  %v368_v2 = vld [vmem:[#allocation5 + $0x570] sm:$0xff]  ;;  %v12972_v39 = vld [vmem:[#allocation205_spill] sm:$0xff]  ;;  %v4368_v52 = vand.u32 4294901760, %v369_v58  ;;  %v9451_v45 = vsub.f32 %v360_v8, %v4362_v22  ;;  %v4366_v7 = vand.u32 4294901760, %v364_v35 }
 0x1fe   : > { %12964 = vst [vmem:[#allocation20_spill] sm:$0xff] %v9427_v32  ;;  %12965 = vst [vmem:[#allocation22_spill] sm:$0xff] %v9429_v33  ;;  %6841 = vmatprep.subr.bf16.mxu1 %v12971_v41  ;;  %1748 = vmatprep.mubr.f32.mxu0 %v12972_v39  ;;  %v371_v32 = vld [vmem:[#allocation5 + $0x588] sm:$0xff]  ;;  %v373_v33 = vld [vmem:[#allocation5 + $0x598] sm:$0xff]  ;;  %v9453_v15 = vsub.f32 %v363_v62, %v1796_v5  ;;  %v4370_v34 = vand.u32 4294901760, %v368_v2  ;;  %v9459_v23 = vsub.f32 %v367_v10, %v1800_v9 }
 0x1ff   : > { %12966 = vst [vmem:[#allocation23_spill] sm:$0xff] %v9431_v18  ;;  %12969 = vst [vmem:[#allocation24_spill] sm:$0xff] %v9435_v0  ;;  %v4364_v18 = vand.u32 4294901760, %v365_v6  ;;  %v375_v63 = vld [vmem:[#allocation5 + $0x5a8] sm:$0xff]  ;;  %4316 = vmatprep.mubr.f32.mxu1 %v12972_v39  ;;  %v1798_v0 = vand.u32 4294901760, %v362_v43  ;;  %v377_v41 = vld [vmem:[#allocation5 + $0x5b8] sm:$0xff]  ;;  %v9457_v39 = vpack.c.bf16 %v1800_v9, %v1796_v5 }
 0x200   : > { %12970 = vst [vmem:[#allocation26_spill] sm:$0xff] %v9437_v37  ;;  %12973 = vst [vmem:[#allocation28_spill] sm:$0xff] %v9441_v17  ;;  %v1802_v37 = vand.u32 4294901760, %v366_v48  ;;  %v12977_v19 = vld [vmem:[#allocation31_spill] sm:$0xff]  ;;  %v12981_v17 = vld [vmem:[#allocation36_spill] sm:$0xff]  ;;  %v1804_v59 = vand.u32 4294901760, %v371_v32 }
 0x201   : > { %12974 = vst [vmem:[#allocation29_spill] sm:$0xff] %v9443_v49  ;;  %12975 = vst [vmem:[#allocation208_spill] sm:$0xff] %v9446_v24  ;;  %6075 = vmatpush1.bf16.msra.mxu0 %v12977_v19  ;;  %v12980_v49 = vld [vmem:[#allocation34_spill] sm:$0xff]  ;;  %v370_v24 = vld [vmem:[#allocation5 + $0x580] sm:$0xff]  ;;  %v9462_v8 = vpack.c.bf16 %v4368_v52, %v4364_v18  ;;  %v9464_v22 = vsub.f32 %v365_v6, %v4364_v18  ;;  %v4372_v19 = vand.u32 4294901760, %v373_v33  ;;  %v4376_v62 = vand.u32 4294901760, %v377_v41 }
 0x202   : > { %12976 = vst [vmem:[#allocation30_spill] sm:$0xff] %v9448_v25  ;;  %12978 = vst [vmem:[#allocation32_spill] sm:$0xff] %v9451_v45  ;;  %6843 = vmatpush1.bf16.msra.mxu1 %v12980_v49  ;;  %6077 = vmatprep.subr.bf16.mxu0 %v12981_v17  ;;  %v1808_v25 = vand.u32 4294901760, %v375_v63  ;;  %v374_v53 = vld [vmem:[#allocation5 + $0x5a0] sm:$0xff]  ;;  %v12984_v57 = vld [vmem:[#allocation39_spill] sm:$0xff]  ;;  %v9468_v49 = vpack.c.bf16 %v1802_v37, %v1798_v0  ;;  %v9470_v5 = vsub.f32 %v362_v43, %v1798_v0 }
 0x203   : > { %12979 = vst [vmem:[#allocation33_spill] sm:$0xff] %v9453_v15  ;;  %12982 = vst [vmem:[#allocation35_spill] sm:$0xff] %v9457_v39  ;;  %6845 = vmatprep.subr.bf16.mxu1 %v12984_v57  ;;  %v9466_v15 = vsub.f32 %v369_v58, %v4368_v52  ;;  %v9472_v10 = vsub.f32 %v366_v48, %v1802_v37  ;;  %v372_v9 = vld [vmem:[#allocation5 + $0x590] sm:$0xff]  ;;  %v9475_v45 = vpack.c.bf16 %v4370_v34, %v4366_v7  ;;  %v12994_v58 = vld [vmem:[#allocation45_spill] sm:$0xff] }
 0x204   : > { %12983 = vst [vmem:[#allocation37_spill] sm:$0xff] %v9459_v23  ;;  %12985 = vst [vmem:[#allocation38_spill] sm:$0xff] %v9462_v8  ;;  %v376_v17 = vld [vmem:[#allocation5 + $0x5b0] sm:$0xff]  ;;  %v12991_v23 = vld [vmem:[#allocation42_spill] sm:$0xff]  ;;  %v9477_v57 = vsub.f32 %v364_v35, %v4366_v7  ;;  %v1806_v6 = vand.u32 4294901760, %v370_v24  ;;  %v1810_v18 = vand.u32 4294901760, %v374_v53  ;;  %v9481_v43 = vsub.f32 %v368_v2, %v4370_v34 }
 0x205   : > { %12986 = vst [vmem:[#allocation40_spill] sm:$0xff] %v9464_v22  ;;  %12987 = vst [vmem:[#allocation41_spill] sm:$0xff] %v9466_v15  ;;  %6079 = vmatpush1.bf16.msra.mxu0 %v12991_v23  ;;  %v379_v22 = vld [vmem:[#allocation5 + $0x5c8] sm:$0xff]  ;;  %v12995_v52 = vld [vmem:[#allocation48_spill] sm:$0xff]  ;;  %v9483_v37 = vpack.c.bf16 %v1808_v25, %v1804_v59  ;;  %v9485_v48 = vsub.f32 %v371_v32, %v1804_v59  ;;  %v9488_v35 = vsub.f32 %v375_v63, %v1808_v25 }
 0x206   : > { %12988 = vst [vmem:[#allocation43_spill] sm:$0xff] %v9468_v49  ;;  %12989 = vst [vmem:[#allocation44_spill] sm:$0xff] %v9470_v5  ;;  %v383_v8 = vld [vmem:[#allocation5 + $0x5e8] sm:$0xff]  ;;  %6847 = vmatpush1.bf16.msra.mxu1 %v12994_v58  ;;  %6081 = vmatprep.subr.bf16.mxu0 %v12995_v52  ;;  %v381_v0 = vld [vmem:[#allocation5 + $0x5d8] sm:$0xff]  ;;  %v9490_v7 = vpack.c.bf16 %v4376_v62, %v4372_v19  ;;  %v4378_v5 = vand.u32 4294901760, %v376_v17  ;;  %v9494_v2 = vsub.f32 %v377_v41, %v4376_v62 }
 0x207   : > { %12990 = vst [vmem:[#allocation46_spill] sm:$0xff] %v9472_v10  ;;  %12992 = vst [vmem:[#allocation47_spill] sm:$0xff] %v9475_v45  ;;  %v385_v23 = vld [vmem:[#allocation5 + $0x5f8] sm:$0xff]  ;;  %v12999_v10 = vld [vmem:[#allocation51_spill] sm:$0xff]  ;;  %v9492_v45 = vsub.f32 %v373_v33, %v4372_v19  ;;  %v1812_v34 = vand.u32 4294901760, %v379_v22  ;;  %v1816_v52 = vand.u32 4294901760, %v383_v8  ;;  %v9499_v63 = vsub.f32 %v370_v24, %v1806_v6 }
 0x208   : > { %12993 = vst [vmem:[#allocation49_spill] sm:$0xff] %v9477_v57  ;;  %12996 = vst [vmem:[#allocation50_spill] sm:$0xff] %v9481_v43  ;;  %6849 = vmatprep.subr.bf16.mxu1 %v12999_v10  ;;  %v4374_v57 = vand.u32 4294901760, %v372_v9  ;;  %v378_v15 = vld [vmem:[#allocation5 + $0x5c0] sm:$0xff]  ;;  %v380_v32 = vld [vmem:[#allocation5 + $0x5d0] sm:$0xff]  ;;  %v9497_v43 = vpack.c.bf16 %v1810_v18, %v1806_v6  ;;  %v4380_v25 = vand.u32 4294901760, %v381_v0  ;;  %v9503_v41 = vsub.f32 %v374_v53, %v1810_v18 }
 0x209   : > { %12997 = vst [vmem:[#allocation52_spill] sm:$0xff] %v9483_v37  ;;  %12998 = vst [vmem:[#allocation53_spill] sm:$0xff] %v9485_v48  ;;  %v382_v58 = vld [vmem:[#allocation5 + $0x5e0] sm:$0xff]  ;;  %v384_v59 = vld [vmem:[#allocation5 + $0x5f0] sm:$0xff]  ;;  %v4384_v10 = vand.u32 4294901760, %v385_v23  ;;  %v1814_v62 = vand.u32 4294901760, %v378_v15  ;;  %v9510_v24 = vsub.f32 %v376_v17, %v4378_v5  ;;  %v9512_v39 = vpack.c.bf16 %v1816_v52, %v1812_v34 }
 0x20a   : > { %13000 = vst [vmem:[#allocation54_spill] sm:$0xff] %v9488_v35  ;;  %13001 = vst [vmem:[#allocation56_spill] sm:$0xff] %v9490_v7  ;;  %v13004_v48 = vld [vmem:[#allocation55_spill] sm:$0xff]  ;;  %v387_v35 = vld [vmem:[#allocation5 + $0x608] sm:$0xff]  ;;  %v9505_v19 = vsub.f32 %v372_v9, %v4374_v57  ;;  %v4382_v6 = vand.u32 4294901760, %v380_v32 }
 0x20b   : > { %13002 = vst [vmem:[#allocation58_spill] sm:$0xff] %v9492_v45  ;;  %13003 = vst [vmem:[#allocation59_spill] sm:$0xff] %v9494_v2  ;;  %6083 = vmatpush1.bf16.msra.mxu0 %v13004_v48  ;;  %v391_v7 = vld [vmem:[#allocation5 + $0x628] sm:$0xff]  ;;  %v13007_v37 = vld [vmem:[#allocation57_spill] sm:$0xff]  ;;  %v1818_v2 = vand.u32 4294901760, %v382_v58  ;;  %v9508_v48 = vpack.c.bf16 %v4378_v5, %v4374_v57  ;;  %v1820_v53 = vand.u32 4294901760, %v387_v35  ;;  %v9523_v5 = vsub.f32 %v385_v23, %v4384_v10 }
 0x20c   : > { %13005 = vst [vmem:[#allocation61_spill] sm:$0xff] %v9497_v43  ;;  %13006 = vst [vmem:[#allocation62_spill] sm:$0xff] %v9499_v63  ;;  %6851 = vmatpush1.bf16.msra.mxu1 %v13007_v37  ;;  %v13008_v33 = vld [vmem:[#allocation60_spill] sm:$0xff]  ;;  %v4386_v63 = vand.u32 4294901760, %v384_v59  ;;  %v9514_v37 = vsub.f32 %v379_v22, %v1812_v34  ;;  %v1824_v18 = vand.u32 4294901760, %v391_v7  ;;  %v13016_v9 = vld [vmem:[#allocation66_spill] sm:$0xff]  ;;  %v9529_v34 = vsub.f32 %v378_v15, %v1814_v62 }
 0x20d   : > { %6085 = vmatprep.subr.bf16.mxu0 %v13008_v33  ;;  %13009 = vst [vmem:[#allocation63_spill] sm:$0xff] %v9503_v41  ;;  %13010 = vst [vmem:[#allocation65_spill] sm:$0xff] %v9505_v19  ;;  %v13011_v45 = vld [vmem:[#allocation64_spill] sm:$0xff]  ;;  %v9517_v33 = vsub.f32 %v383_v8, %v1816_v52  ;;  %v9519_v19 = vpack.c.bf16 %v4384_v10, %v4380_v25  ;;  %v386_v17 = vld [vmem:[#allocation5 + $0x600] sm:$0xff]  ;;  %v9527_v22 = vpack.c.bf16 %v1818_v2, %v1814_v62 }
 0x20e   : > { %6853 = vmatprep.subr.bf16.mxu1 %v13011_v45  ;;  %13012 = vst [vmem:[#allocation67_spill] sm:$0xff] %v9508_v48  ;;  %13013 = vst [vmem:[#allocation68_spill] sm:$0xff] %v9510_v24  ;;  %v389_v43 = vld [vmem:[#allocation5 + $0x618] sm:$0xff]  ;;  %v9521_v45 = vsub.f32 %v381_v0, %v4380_v25  ;;  %v390_v57 = vld [vmem:[#allocation5 + $0x620] sm:$0xff]  ;;  %v9532_v23 = vsub.f32 %v382_v58, %v1818_v2  ;;  %v9534_v25 = vpack.c.bf16 %v4386_v63, %v4382_v6 }
 0x20f   : > { %v393_v49 = vld [vmem:[#allocation5 + $0x638] sm:$0xff]  ;;  %13014 = vst [vmem:[#allocation70_spill] sm:$0xff] %v9512_v39  ;;  %13015 = vst [vmem:[#allocation71_spill] sm:$0xff] %v9514_v37  ;;  %6087 = vmatpush1.bf16.msra.mxu0 %v13016_v9  ;;  %v388_v24 = vld [vmem:[#allocation5 + $0x610] sm:$0xff]  ;;  %v4388_v9 = vand.u32 4294901760, %v389_v43  ;;  %v9536_v10 = vsub.f32 %v380_v32, %v4382_v6  ;;  %v1822_v15 = vand.u32 4294901760, %v386_v17 }
 0x210   : > { %13017 = vst [vmem:[#allocation73_spill] sm:$0xff] %v9517_v33  ;;  %13018 = vst [vmem:[#allocation74_spill] sm:$0xff] %v9519_v19  ;;  %v13021_v41 = vld [vmem:[#allocation69_spill] sm:$0xff]  ;;  %v13022_v39 = vld [vmem:[#allocation72_spill] sm:$0xff]  ;;  %v4392_v8 = vand.u32 4294901760, %v393_v49  ;;  %v1826_v62 = vand.u32 4294901760, %v390_v57 }
 0x211   : > { %13019 = vst [vmem:[#allocation75_spill] sm:$0xff] %v9521_v45  ;;  %13020 = vst [vmem:[#allocation77_spill] sm:$0xff] %v9523_v5  ;;  %6855 = vmatpush1.bf16.msra.mxu1 %v13021_v41  ;;  %6089 = vmatprep.subr.bf16.mxu0 %v13022_v39  ;;  %v392_v52 = vld [vmem:[#allocation5 + $0x630] sm:$0xff]  ;;  %v395_v33 = vld [vmem:[#allocation5 + $0x648] sm:$0xff]  ;;  %v9538_v41 = vsub.f32 %v384_v59, %v4386_v63  ;;  %v9540_v39 = vpack.c.bf16 %v1824_v18, %v1820_v53  ;;  %v4390_v19 = vand.u32 4294901760, %v388_v24 }
 0x212   : > { %13023 = vst [vmem:[#allocation79_spill] sm:$0xff] %v9527_v22  ;;  %13024 = vst [vmem:[#allocation80_spill] sm:$0xff] %v9529_v34  ;;  %v399_v37 = vld [vmem:[#allocation5 + $0x668] sm:$0xff]  ;;  %v13025_v0 = vld [vmem:[#allocation76_spill] sm:$0xff]  ;;  %v9542_v5 = vsub.f32 %v387_v35, %v1820_v53  ;;  %v1828_v58 = vand.u32 4294901760, %v395_v33  ;;  %v9547_v63 = vsub.f32 %v391_v7, %v1824_v18  ;;  %v9549_v35 = vpack.c.bf16 %v4392_v8, %v4388_v9 }
 0x213   : > { %6857 = vmatprep.subr.bf16.mxu1 %v13025_v0  ;;  %13026 = vst [vmem:[#allocation82_spill] sm:$0xff] %v9532_v23  ;;  %13027 = vst [vmem:[#allocation83_spill] sm:$0xff] %v9534_v25  ;;  %v397_v34 = vld [vmem:[#allocation5 + $0x658] sm:$0xff]  ;;  %v13032_v22 = vld [vmem:[#allocation78_spill] sm:$0xff]  ;;  %v4394_v0 = vand.u32 4294901760, %v392_v52  ;;  %v1832_v2 = vand.u32 4294901760, %v399_v37  ;;  %v9551_v6 = vsub.f32 %v389_v43, %v4388_v9  ;;  %v9558_v40 = vpack.c.bf16 %v1826_v62, %v1822_v15 }
 0x214   : > { %13028 = vst [vmem:[#allocation85_spill] sm:$0xff] %v9536_v10  ;;  %13029 = vst [vmem:[#allocation86_spill] sm:$0xff] %v9538_v41  ;;  %v401_v45 = vld [vmem:[#allocation5 + $0x678] sm:$0xff]  ;;  %6091 = vmatpush1.bf16.msra.mxu0 %v13032_v22  ;;  %v394_v23 = vld [vmem:[#allocation5 + $0x640] sm:$0xff]  ;;  %v9556_v22 = vsub.f32 %v386_v17, %v1822_v15  ;;  %v4396_v41 = vand.u32 4294901760, %v397_v34 }
 0x215   : > { %13030 = vst [vmem:[#allocation87_spill] sm:$0xff] %v9540_v39  ;;  %13031 = vst [vmem:[#allocation89_spill] sm:$0xff] %v9542_v5  ;;  %v398_v25 = vld [vmem:[#allocation5 + $0x660] sm:$0xff]  ;;  %v13034_v59 = vld [vmem:[#allocation84_spill] sm:$0xff]  ;;  %v9554_v5 = vsub.f32 %v393_v49, %v4392_v8  ;;  %v4400_v10 = vand.u32 4294901760, %v401_v45  ;;  %v1830_v7 = vand.u32 4294901760, %v394_v23  ;;  %v9563_v9 = vpack.c.bf16 %v4394_v0, %v4390_v19 }
 0x216   : > { %v13033_v32 = vld [vmem:[#allocation81_spill] sm:$0xff]  ;;  %6093 = vmatprep.subr.bf16.mxu0 %v13034_v59  ;;  %13035 = vst [vmem:[#allocation91_spill] sm:$0xff] %v9547_v63  ;;  %13036 = vst [vmem:[#allocation92_spill] sm:$0xff] %v9549_v35  ;;  %v13038_v53 = vld [vmem:[#allocation88_spill] sm:$0xff]  ;;  %v1834_v18 = vand.u32 4294901760, %v398_v25  ;;  %v9565_v49 = vsub.f32 %v388_v24, %v4390_v19  ;;  %v9567_v17 = vsub.f32 %v392_v52, %v4394_v0 }
 0x217   : > { %6859 = vmatpush1.bf16.msra.mxu1 %v13033_v32  ;;  %13037 = vst [vmem:[#allocation94_spill] sm:$0xff] %v9551_v6  ;;  %13039 = vst [vmem:[#allocation95_spill] sm:$0xff] %v9554_v5  ;;  %v396_v39 = vld [vmem:[#allocation5 + $0x650] sm:$0xff]  ;;  %v9560_v32 = vsub.f32 %v390_v57, %v1826_v62  ;;  %v403_v59 = vld [vmem:[#allocation5 + $0x688] sm:$0xff]  ;;  %v9569_v8 = vpack.c.bf16 %v1832_v2, %v1828_v58  ;;  %v9573_v62 = vsub.f32 %v395_v33, %v1828_v58 }
 0x218   : > { %6861 = vmatprep.subr.bf16.mxu1 %v13038_v53  ;;  %13040 = vst [vmem:[#allocation97_spill] sm:$0xff] %v9556_v22  ;;  %v400_v48 = vld [vmem:[#allocation5 + $0x670] sm:$0xff]  ;;  %13041 = vst [vmem:[#allocation98_spill] sm:$0xff] %v9558_v40  ;;  %v407_v63 = vld [vmem:[#allocation5 + $0x6a8] sm:$0xff]  ;;  %v4398_v5 = vand.u32 4294901760, %v396_v39  ;;  %v9578_v24 = vpack.c.bf16 %v4400_v10, %v4396_v41  ;;  %v9580_v52 = vsub.f32 %v397_v34, %v4396_v41  ;;  %v1836_v0 = vand.u32 4294901760, %v403_v59 }
 0x219   : > { %13042 = vst [vmem:[#allocation101_spill] sm:$0xff] %v9560_v32  ;;  %v13043_v43 = vld [vmem:[#allocation90_spill] sm:$0xff]  ;;  %13044 = vst [vmem:[#allocation135_spill] sm:$0xff] %v9563_v9  ;;  %v405_v53 = vld [vmem:[#allocation5 + $0x698] sm:$0xff]  ;;  %v9575_v32 = vsub.f32 %v399_v37, %v1832_v2  ;;  %v9584_v33 = vpack.c.bf16 %v1834_v18, %v1830_v7 }
 0x21a   : > { %6095 = vmatpush1.bf16.msra.mxu0 %v13043_v43  ;;  %13045 = vst [vmem:[#allocation137_spill] sm:$0xff] %v9565_v49  ;;  %13046 = vst [vmem:[#allocation140_spill] sm:$0xff] %v9567_v17  ;;  %v409_v22 = vld [vmem:[#allocation5 + $0x6b8] sm:$0xff]  ;;  %v13048_v15 = vld [vmem:[#allocation93_spill] sm:$0xff]  ;;  %v4402_v43 = vand.u32 4294901760, %v400_v48  ;;  %v1840_v17 = vand.u32 4294901760, %v407_v63 }
 0x21b   : > { %13047 = vst [vmem:[#allocation169_spill] sm:$0xff] %v9569_v8  ;;  %6863 = vmatpush1.bf16.msra.mxu1 %v13048_v15  ;;  %v13049_v57 = vld [vmem:[#allocation96_spill] sm:$0xff]  ;;  %13050 = vst [vmem:[#allocation170_spill] sm:$0xff] %v9573_v62  ;;  %v402_v6 = vld [vmem:[#allocation5 + $0x680] sm:$0xff]  ;;  %v9582_v8 = vsub.f32 %v401_v45, %v4400_v10  ;;  %v4404_v37 = vand.u32 4294901760, %v405_v53  ;;  %v4408_v58 = vand.u32 4294901760, %v409_v22  ;;  %v9595_v10 = vsub.f32 %v396_v39, %v4398_v5 }
 0x21c   : > { %6097 = vmatprep.subr.bf16.mxu0 %v13049_v57  ;;  %13051 = vst [vmem:[#allocation171_spill] sm:$0xff] %v9575_v32  ;;  %v406_v9 = vld [vmem:[#allocation5 + $0x6a0] sm:$0xff]  ;;  %v13052_v19 = vld [vmem:[#allocation100_spill] sm:$0xff]  ;;  %13053 = vst [vmem:[#allocation173_spill] sm:$0xff] %v9578_v24  ;;  %v9587_v57 = vsub.f32 %v394_v23, %v1830_v7  ;;  %v9589_v32 = vsub.f32 %v398_v25, %v1834_v18  ;;  %v9593_v45 = vpack.c.bf16 %v4402_v43, %v4398_v5 }
 0x21d   : > { %6865 = vmatprep.subr.bf16.mxu1 %v13052_v19  ;;  %13054 = vst [vmem:[#allocation175_spill] sm:$0xff] %v9580_v52  ;;  %v404_v49 = vld [vmem:[#allocation5 + $0x690] sm:$0xff]  ;;  %13055 = vst [vmem:[#allocation176_spill] sm:$0xff] %v9582_v8  ;;  %v13057_v2 = vld [vmem:[#allocation102_spill] sm:$0xff]  ;;  %v1838_v19 = vand.u32 4294901760, %v402_v6  ;;  %v1842_v62 = vand.u32 4294901760, %v406_v9  ;;  %v9598_v25 = vsub.f32 %v400_v48, %v4402_v43  ;;  %v9600_v7 = vpack.c.bf16 %v1840_v17, %v1836_v0 }
 0x21e   : > { %v408_v15 = vld [vmem:[#allocation5 + $0x6b0] sm:$0xff]  ;;  %13056 = vst [vmem:[#allocation178_spill] sm:$0xff] %v9584_v33  ;;  %6099 = vmatpush1.bf16.msra.mxu0 %v13057_v2  ;;  %13058 = vst [vmem:[#allocation179_spill] sm:$0xff] %v9587_v57  ;;  %v411_v34 = vld [vmem:[#allocation5 + $0x6c8] sm:$0xff]  ;;  %v4406_v8 = vand.u32 4294901760, %v404_v49  ;;  %v9602_v18 = vsub.f32 %v403_v59, %v1836_v0  ;;  %v9611_v35 = vsub.f32 %v409_v22, %v4408_v58 }
 0x21f   : > { %13059 = vst [vmem:[#allocation181_spill] sm:$0xff] %v9589_v32  ;;  %v415_v41 = vld [vmem:[#allocation5 + $0x6e8] sm:$0xff]  ;;  %v13060_v52 = vld [vmem:[#allocation105_spill] sm:$0xff]  ;;  %v13061_v24 = vld [vmem:[#allocation108_spill] sm:$0xff]  ;;  %v4410_v33 = vand.u32 4294901760, %v408_v15  ;;  %v9604_v32 = vsub.f32 %v407_v63, %v1840_v17  ;;  %v1844_v5 = vand.u32 4294901760, %v411_v34  ;;  %v9613_v48 = vpack.c.bf16 %v1842_v62, %v1838_v19 }
 0x220   : > { %6867 = vmatpush1.bf16.msra.mxu1 %v13060_v52  ;;  %6101 = vmatprep.subr.bf16.mxu0 %v13061_v24  ;;  %13062 = vst [vmem:[#allocation182_spill] sm:$0xff] %v9593_v45  ;;  %13063 = vst [vmem:[#allocation183_spill] sm:$0xff] %v9595_v10  ;;  %v413_v40 = vld [vmem:[#allocation5 + $0x6d8] sm:$0xff]  ;;  %v9606_v52 = vpack.c.bf16 %v4408_v58, %v4404_v37  ;;  %v9608_v24 = vsub.f32 %v405_v53, %v4404_v37  ;;  %v1848_v39 = vand.u32 4294901760, %v415_v41  ;;  %v410_v10 = vld [vmem:[#allocation5 + $0x6c0] sm:$0xff] }
 0x221   : > { %v417_v2 = vld [vmem:[#allocation5 + $0x6f8] sm:$0xff]  ;;  %13065 = vst [vmem:[#allocation185_spill] sm:$0xff] %v9598_v25  ;;  %13066 = vst [vmem:[#allocation187_spill] sm:$0xff] %v9600_v7  ;;  %v414_v57 = vld [vmem:[#allocation5 + $0x6e0] sm:$0xff]  ;;  %v4412_v43 = vand.u32 4294901760, %v413_v40  ;;  %v9617_v53 = vsub.f32 %v402_v6, %v1838_v19  ;;  %v9619_v37 = vsub.f32 %v406_v9, %v1842_v62  ;;  %v9624_v58 = vsub.f32 %v404_v49, %v4406_v8 }
 0x222   : > { %v13064_v23 = vld [vmem:[#allocation112_spill] sm:$0xff]  ;;  %13067 = vst [vmem:[#allocation188_spill] sm:$0xff] %v9602_v18  ;;  %13068 = vst [vmem:[#allocation190_spill] sm:$0xff] %v9604_v32  ;;  %v13071_v45 = vld [vmem:[#allocation114_spill] sm:$0xff]  ;;  %v1846_v18 = vand.u32 4294901760, %v410_v10  ;;  %v1850_v25 = vand.u32 4294901760, %v414_v57 }
 0x223   : > { %6869 = vmatprep.subr.bf16.mxu1 %v13064_v23  ;;  %13069 = vst [vmem:[#allocation191_spill] sm:$0xff] %v9606_v52  ;;  %13070 = vst [vmem:[#allocation193_spill] sm:$0xff] %v9608_v24  ;;  %6103 = vmatpush1.bf16.msra.mxu0 %v13071_v45  ;;  %v4416_v23 = vand.u32 4294901760, %v417_v2  ;;  %v412_v59 = vld [vmem:[#allocation5 + $0x6d0] sm:$0xff]  ;;  %v13074_v63 = vld [vmem:[#allocation117_spill] sm:$0xff]  ;;  %v9621_v24 = vpack.c.bf16 %v4410_v33, %v4406_v8 }
 0x224   : > { %13072 = vst [vmem:[#allocation194_spill] sm:$0xff] %v9611_v35  ;;  %13073 = vst [vmem:[#allocation195_spill] sm:$0xff] %v9613_v48  ;;  %v416_v0 = vld [vmem:[#allocation5 + $0x6f0] sm:$0xff]  ;;  %6871 = vmatpush1.bf16.msra.mxu1 %v13074_v63  ;;  %v13075_v17 = vld [vmem:[#allocation120_spill] sm:$0xff]  ;;  %v9626_v35 = vsub.f32 %v408_v15, %v4410_v33  ;;  %v9628_v63 = vpack.c.bf16 %v1848_v39, %v1844_v5  ;;  %v4414_v6 = vand.u32 4294901760, %v412_v59 }
 0x225   : > { %6105 = vmatprep.subr.bf16.mxu0 %v13075_v17  ;;  %13076 = vst [vmem:[#allocation197_spill] sm:$0xff] %v9617_v53  ;;  %13077 = vst [vmem:[#allocation199_spill] sm:$0xff] %v9619_v37  ;;  %v419_v32 = vld [vmem:[#allocation5 + $0x708] sm:$0xff]  ;;  %v13079_v22 = vld [vmem:[#allocation124_spill] sm:$0xff]  ;;  %v9630_v17 = vsub.f32 %v411_v34, %v1844_v5  ;;  %v4418_v9 = vand.u32 4294901760, %v416_v0  ;;  %v9633_v37 = vsub.f32 %v415_v41, %v1848_v39 }
 0x226   : > { %13078 = vst [vmem:[#allocation200_spill] sm:$0xff] %v9621_v24  ;;  %v423_v45 = vld [vmem:[#allocation5 + $0x728] sm:$0xff]  ;;  %6873 = vmatprep.subr.bf16.mxu1 %v13079_v22  ;;  %13080 = vst [vmem:[#allocation202_spill] sm:$0xff] %v9624_v58  ;;  %v421_v48 = vld [vmem:[#allocation5 + $0x718] sm:$0xff]  ;;  %v9635_v53 = vpack.c.bf16 %v4416_v23, %v4412_v43  ;;  %v1852_v49 = vand.u32 4294901760, %v419_v32  ;;  %v9639_v58 = vsub.f32 %v413_v40, %v4412_v43 }
 0x227   : > { %13081 = vst [vmem:[#allocation203_spill] sm:$0xff] %v9626_v35  ;;  %13082 = vst [vmem:[#allocation12_spill] sm:$0xff] %v9628_v63  ;;  %v425_v62 = vld [vmem:[#allocation5 + $0x738] sm:$0xff]  ;;  %v13084_v19 = vld [vmem:[#allocation126_spill] sm:$0xff]  ;;  %v1856_v8 = vand.u32 4294901760, %v423_v45  ;;  %v9641_v34 = vsub.f32 %v417_v2, %v4416_v23  ;;  %v9643_v5 = vsub.f32 %v410_v10, %v1846_v18  ;;  %v9656_v2 = vpack.c.bf16 %v4418_v9, %v4414_v6 }
 0x228   : > { %13083 = vst [vmem:[#allocation16_spill] sm:$0xff] %v9630_v17  ;;  %6107 = vmatpush1.bf16.msra.mxu0 %v13084_v19  ;;  %13085 = vst [vmem:[#allocation204_spill] sm:$0xff] %v9633_v37  ;;  %v418_v15 = vld [vmem:[#allocation5 + $0x700] sm:$0xff]  ;;  %v13088_v35 = vld [vmem:[#allocation132_spill] sm:$0xff]  ;;  %v4420_v17 = vand.u32 4294901760, %v421_v48  ;;  %v9646_v37 = vpack.c.bf16 %v1850_v25, %v1846_v18  ;;  %v4424_v63 = vand.u32 4294901760, %v425_v62  ;;  %v9658_v10 = vsub.f32 %v412_v59, %v4414_v6 }
 0x229   : > { %13086 = vst [vmem:[#allocation18_spill] sm:$0xff] %v9635_v53  ;;  %v422_v33 = vld [vmem:[#allocation5 + $0x720] sm:$0xff]  ;;  %6109 = vmatprep.subr.bf16.mxu0 %v13088_v35  ;;  %13089 = vst [vmem:[#allocation21_spill] sm:$0xff] %v9639_v58  ;;  %v420_v19 = vld [vmem:[#allocation5 + $0x710] sm:$0xff]  ;;  %v9648_v53 = vsub.f32 %v414_v57, %v1850_v25  ;;  %v13096_v35 = vcombine.high %v9188_v1, %v9188_v1  ;;  %v1854_v43 = vand.u32 4294901760, %v418_v15 }
 0x22a   : > { %v13087_v22 = vld [vmem:[#allocation129_spill] sm:$0xff]  ;;  %13090 = vst [vmem:[#allocation25_spill] sm:$0xff] %v9641_v34  ;;  %13091 = vst [vmem:[#allocation27_spill] sm:$0xff] %v9643_v5  ;;  %v424_v41 = vld [vmem:[#allocation5 + $0x730] sm:$0xff]  ;;  %v1858_v23 = vand.u32 4294901760, %v422_v33  ;;  %v9661_v18 = vsub.f32 %v416_v0, %v4418_v9  ;;  %v9663_v57 = vpack.c.bf16 %v1856_v8, %v1852_v49  ;;  %v4422_v25 = vand.u32 4294901760, %v420_v19 }
 0x22b   : > { %6875 = vmatpush1.bf16.msra.mxu1 %v13087_v22  ;;  %v13092_v39 = vld [vmem:[#allocation136_spill] sm:$0xff]  ;;  %13093 = vst [vmem:[#allocation205_spill] sm:$0xff] %v9646_v37  ;;  %13094 = vst [vmem:[#allocation31_spill] sm:$0xff] %v9648_v53  ;;  %v13095_v24 = vld [vmem:[#allocation11_spill] sm:$0xff]  ;;  %v4426_v53 = vand.u32 4294901760, %v424_v41  ;;  %v9667_v59 = vsub.f32 %v419_v32, %v1852_v49  ;;  %v9669_v6 = vsub.f32 %v423_v45, %v1856_v8 }
 0x22c   : > { %6877 = vmatprep.subr.bf16.mxu1 %v13092_v39  ;;  %v9654_v40 = vrot.slane %v13096_v35, %v13095_v24  ;;  %13097 = vst [vmem:[#allocation34_spill] sm:$0xff] %v9656_v2  ;;  %13098 = vst [vmem:[#allocation36_spill] sm:$0xff] %v9658_v10  ;;  %v427_v22 = vld [vmem:[#allocation5 + $0x748] sm:$0xff]  ;;  %v429_v34 = vld [vmem:[#allocation5 + $0x758] sm:$0xff]  ;;  %v9671_v10 = vsub.f32 %v421_v48, %v4420_v17  ;;  %v9674_v0 = vpack.c.bf16 %v4424_v63, %v4420_v17 }
 0x22d   : > { %v431_v5 = vld [vmem:[#allocation5 + $0x768] sm:$0xff]  ;;  %13100 = vst [vmem:[#allocation39_spill] sm:$0xff] %v9661_v18  ;;  %13101 = vst [vmem:[#allocation42_spill] sm:$0xff] %v9663_v57  ;;  %v433_v1 = vld [vmem:[#allocation5 + $0x778] sm:$0xff]  ;;  %v1860_v9 = vand.u32 4294901760, %v427_v22  ;;  %v4428_v32 = vand.u32 4294901760, %v429_v34  ;;  %v9685_v17 = vsub.f32 %v422_v33, %v1858_v23 }
 0x22e   : > { %v13099_v39 = vld [vmem:[#allocation138_spill] sm:$0xff]  ;;  %v13102_v24 = vld [vmem:[#allocation141_spill] sm:$0xff]  ;;  %v13103_v35 = vld [vmem:[#allocation144_spill] sm:$0xff]  ;;  %13104 = vst [vmem:[#allocation45_spill] sm:$0xff] %v9667_v59  ;;  %v467_v2 = vcombine.high %v9654_v40, %v9654_v40  ;;  %v4432_v45 = vand.u32 4294901760, %v433_v1 }
 0x22f   : > { %6111 = vmatpush1.bf16.msra.mxu0 %v13099_v39  ;;  %6879 = vmatpush1.bf16.msra.mxu1 %v13102_v24  ;;  %13105 = vst [vmem:[#allocation48_spill] sm:$0xff] %v9669_v6  ;;  %13106 = vst [vmem:[#allocation51_spill] sm:$0xff] %v9671_v10  ;;  %v13107_v58 = vld [vmem:[#allocation148_spill] sm:$0xff]  ;;  %v1864_v39 = vand.u32 4294901760, %v431_v5  ;;  %v426_v18 = vld [vmem:[#allocation5 + $0x740] sm:$0xff]  ;;  %v9678_v24 = vsub.f32 %v425_v62, %v4424_v63  ;;  %v9687_v10 = vpack.c.bf16 %v4426_v53, %v4422_v25 }
 0x230   : > { %6113 = vmatprep.subr.bf16.mxu0 %v13103_v35  ;;  %6881 = vmatprep.subr.bf16.mxu1 %v13107_v58  ;;  %13108 = vst [vmem:[#allocation55_spill] sm:$0xff] %v9674_v0  ;;  %v430_v57 = vld [vmem:[#allocation5 + $0x760] sm:$0xff]  ;;  %v9680_v35 = vpack.c.bf16 %v1858_v23, %v1854_v43  ;;  %v428_v49 = vld [vmem:[#allocation5 + $0x750] sm:$0xff]  ;;  %v13111_v8 = vld [vmem:[#allocation150_spill] sm:$0xff]  ;;  %v9683_v58 = vsub.f32 %v418_v15, %v1854_v43 }
 0x231   : > { %13109 = vst [vmem:[#allocation57_spill] sm:$0xff] %v9678_v24  ;;  %v432_v48 = vld [vmem:[#allocation5 + $0x770] sm:$0xff]  ;;  %13113 = vst [vmem:[#allocation66_spill] sm:$0xff] %v9685_v17  ;;  %v9689_v6 = vsub.f32 %v420_v19, %v4422_v25  ;;  %v435_v59 = vld [vmem:[#allocation5 + $0x788] sm:$0xff]  ;;  %v9693_v62 = vsub.f32 %v424_v41, %v4426_v53  ;;  %v9695_v24 = vsub.f32 %v427_v22, %v1860_v9  ;;  %v1866_v37 = vand.u32 4294901760, %v430_v57 }
 0x232   : > { %13110 = vst [vmem:[#allocation60_spill] sm:$0xff] %v9680_v35  ;;  %13112 = vst [vmem:[#allocation64_spill] sm:$0xff] %v9683_v58  ;;  %v13116_v0 = vld [vmem:[#allocation153_spill] sm:$0xff]  ;;  %v13117_v63 = vld [vmem:[#allocation156_spill] sm:$0xff]  ;;  %v1862_v35 = vand.u32 4294901760, %v426_v18  ;;  %v9698_v23 = vpack.c.bf16 %v1864_v39, %v1860_v9  ;;  %v4430_v19 = vand.u32 4294901760, %v428_v49  ;;  %v9704_v53 = vpack.c.bf16 %v4432_v45, %v4428_v32 }
 0x233   : > { %6115 = vmatpush1.bf16.msra.mxu0 %v13111_v8  ;;  %13114 = vst [vmem:[#allocation69_spill] sm:$0xff] %v9687_v10  ;;  %13115 = vst [vmem:[#allocation72_spill] sm:$0xff] %v9689_v6  ;;  %6883 = vmatpush1.bf16.msra.mxu1 %v13116_v0  ;;  %v439_v8 = vld [vmem:[#allocation5 + $0x7a8] sm:$0xff]  ;;  %v437_v15 = vld [vmem:[#allocation5 + $0x798] sm:$0xff]  ;;  %v4434_v25 = vand.u32 4294901760, %v432_v48  ;;  %v9700_v0 = vand.u32 4294901760, %v467_v2  ;;  %v9706_v41 = vsub.f32 %v429_v34, %v4428_v32 }
 0x234   : > { %6117 = vmatprep.subr.bf16.mxu0 %v13117_v63  ;;  %13118 = vst [vmem:[#allocation76_spill] sm:$0xff] %v9693_v62  ;;  %13119 = vst [vmem:[#allocation78_spill] sm:$0xff] %v9695_v24  ;;  %v441_v43 = vld [vmem:[#allocation5 + $0x7b8] sm:$0xff]  ;;  %v434_v6 = vld [vmem:[#allocation5 + $0x780] sm:$0xff]  ;;  %v9702_v63 = vsub.f32 %v431_v5, %v1864_v39  ;;  %v9708_v22 = vsub.f32 %v433_v1, %v4432_v45  ;;  %v1868_v62 = vand.u32 4294901760, %v435_v59  ;;  %v4436_v9 = vand.u32 4294901760, %v437_v15 }
 0x235   : > { %v13120_v33 = vld [vmem:[#allocation160_spill] sm:$0xff]  ;;  %13121 = vst [vmem:[#allocation81_spill] sm:$0xff] %v9698_v23  ;;  %v438_v17 = vld [vmem:[#allocation5 + $0x7a0] sm:$0xff]  ;;  %13122 = vst [vmem:[#allocation84_spill] sm:$0xff] %v9700_v0  ;;  %v4440_v58 = vand.u32 4294901760, %v441_v43  ;;  %v9713_v5 = vpack.c.bf16 %v1866_v37, %v1862_v35  ;;  %v9715_v39 = vsub.f32 %v426_v18, %v1862_v35  ;;  %v1870_v34 = vand.u32 4294901760, %v434_v6 }
 0x236   : > { %6885 = vmatprep.subr.bf16.mxu1 %v13120_v33  ;;  %13123 = vst [vmem:[#allocation88_spill] sm:$0xff] %v9702_v63  ;;  %13124 = vst [vmem:[#allocation90_spill] sm:$0xff] %v9704_v53  ;;  %v13127_v24 = vld [vmem:[#allocation162_spill] sm:$0xff]  ;;  %v1872_v33 = vand.u32 4294901760, %v439_v8  ;;  %v436_v23 = vld [vmem:[#allocation5 + $0x790] sm:$0xff]  ;;  %v1874_v32 = vand.u32 4294901760, %v438_v17  ;;  %v9718_v45 = vsub.f32 %v430_v57, %v1866_v37 }
 0x237   : > { %13125 = vst [vmem:[#allocation93_spill] sm:$0xff] %v9706_v41  ;;  %13126 = vst [vmem:[#allocation96_spill] sm:$0xff] %v9708_v22  ;;  %6119 = vmatpush1.bf16.msra.mxu0 %v13127_v24  ;;  %v440_v10 = vld [vmem:[#allocation5 + $0x7b0] sm:$0xff]  ;;  %v13128_v52 = vld [vmem:[#allocation165_spill] sm:$0xff]  ;;  %v9720_v24 = vpack.c.bf16 %v4434_v25, %v4430_v19  ;;  %v9722_v22 = vsub.f32 %v428_v49, %v4430_v19  ;;  %v4438_v18 = vand.u32 4294901760, %v436_v23 }
 0x238   : > { %6887 = vmatpush1.bf16.msra.mxu1 %v13128_v52  ;;  %v13129_v7 = vld [vmem:[#allocation168_spill] sm:$0xff]  ;;  %13130 = vst [vmem:[#allocation100_spill] sm:$0xff] %v9713_v5  ;;  %13131 = vst [vmem:[#allocation102_spill] sm:$0xff] %v9715_v39  ;;  %v443_v41 = vld [vmem:[#allocation5 + $0x7c8] sm:$0xff]  ;;  %v9725_v52 = vsub.f32 %v467_v2, %v9700_v0  ;;  %v9729_v5 = vsub.f32 %v435_v59, %v1868_v62  ;;  %v4442_v35 = vand.u32 4294901760, %v440_v10 }
 0x239   : > { %6121 = vmatprep.subr.bf16.mxu0 %v13129_v7  ;;  %v13132_v1 = vld [vmem:[#allocation172_spill] sm:$0xff]  ;;  %13133 = vst [vmem:[#allocation105_spill] sm:$0xff] %v9718_v45  ;;  %13134 = vst [vmem:[#allocation108_spill] sm:$0xff] %v9720_v24  ;;  %v447_v63 = vld [vmem:[#allocation5 + $0x7e8] sm:$0xff]  ;;  %v9727_v7 = vsub.f32 %v432_v48, %v4434_v25  ;;  %v9734_v37 = vsub.f32 %v439_v8, %v1872_v33  ;;  %v9736_v57 = vpack.c.bf16 %v4440_v58, %v4436_v9 }
 0x23a   : > { %6889 = vmatprep.subr.bf16.mxu1 %v13132_v1  ;;  %13135 = vst [vmem:[#allocation112_spill] sm:$0xff] %v9722_v22  ;;  %13136 = vst [vmem:[#allocation114_spill] sm:$0xff] %v9725_v52  ;;  %v13139_v39 = vld [vmem:[#allocation174_spill] sm:$0xff]  ;;  %v9732_v1 = vpack.c.bf16 %v1872_v33, %v1868_v62  ;;  %v9738_v49 = vsub.f32 %v437_v15, %v4436_v9  ;;  %v445_v19 = vld [vmem:[#allocation5 + $0x7d8] sm:$0xff]  ;;  %v9742_v59 = vsub.f32 %v441_v43, %v4440_v58 }
 0x23b   : > { %13137 = vst [vmem:[#allocation117_spill] sm:$0xff] %v9727_v7  ;;  %13138 = vst [vmem:[#allocation120_spill] sm:$0xff] %v9729_v5  ;;  %6123 = vmatpush1.bf16.msra.mxu0 %v13139_v39  ;;  %v449_v22 = vld [vmem:[#allocation5 + $0x7f8] sm:$0xff]  ;;  %v13144_v2 = vld [vmem:[#allocation177_spill] sm:$0xff]  ;;  %v9744_v25 = vpack.c.bf16 %v1874_v32, %v1870_v34  ;;  %v1876_v5 = vand.u32 4294901760, %v443_v41  ;;  %v1880_v39 = vand.u32 4294901760, %v447_v63  ;;  %v9747_v33 = vsub.f32 %v434_v6, %v1870_v34 }
 0x23c   : > { %13140 = vst [vmem:[#allocation124_spill] sm:$0xff] %v9732_v1  ;;  %13141 = vst [vmem:[#allocation126_spill] sm:$0xff] %v9734_v37  ;;  %6891 = vmatpush1.bf16.msra.mxu1 %v13144_v2  ;;  %v13145_v48 = vld [vmem:[#allocation180_spill] sm:$0xff]  ;;  %v442_v62 = vld [vmem:[#allocation5 + $0x7c0] sm:$0xff]  ;;  %v9749_v15 = vsub.f32 %v438_v17, %v1874_v32  ;;  %v9751_v9 = vsub.f32 %v436_v23, %v4438_v18  ;;  %v9756_v58 = vpack.c.bf16 %v4442_v35, %v4438_v18 }
 0x23d   : > { %13142 = vst [vmem:[#allocation129_spill] sm:$0xff] %v9736_v57  ;;  %13143 = vst [vmem:[#allocation132_spill] sm:$0xff] %v9738_v49  ;;  %6125 = vmatprep.subr.bf16.mxu0 %v13145_v48  ;;  %v446_v7 = vld [vmem:[#allocation5 + $0x7e0] sm:$0xff]  ;;  %v13148_v8 = vld [vmem:[#allocation184_spill] sm:$0xff]  ;;  %v9754_v48 = vand.u32 4294901760, %v9725_v52  ;;  %v9758_v43 = vsub.f32 %v440_v10, %v4442_v35  ;;  %v4448_v37 = vand.u32 4294901760, %v449_v22  ;;  %v9767_v18 = vsub.f32 %v443_v41, %v1876_v5 }
 0x23e   : > { %13146 = vst [vmem:[#allocation136_spill] sm:$0xff] %v9742_v59  ;;  %13147 = vst [vmem:[#allocation11_spill] sm:$0xff] %v9744_v25  ;;  %6893 = vmatprep.subr.bf16.mxu1 %v13148_v8  ;;  %v444_v49 = vld [vmem:[#allocation5 + $0x7d0] sm:$0xff]  ;;  %v4444_v59 = vand.u32 4294901760, %v445_v19  ;;  %v13155_v45 = vld [vmem:[#allocation186_spill] sm:$0xff]  ;;  %v1878_v8 = vand.u32 4294901760, %v442_v62 }
 0x23f   : > { %13149 = vst [vmem:[#allocation138_spill] sm:$0xff] %v9747_v33  ;;  %13150 = vst [vmem:[#allocation141_spill] sm:$0xff] %v9749_v15  ;;  %v448_v2 = vld [vmem:[#allocation5 + $0x7f0] sm:$0xff]  ;;  %6127 = vmatpush1.bf16.msra.mxu0 %v13155_v45  ;;  %v1882_v6 = vand.u32 4294901760, %v446_v7  ;;  %v13156_v34 = vld [vmem:[#allocation189_spill] sm:$0xff]  ;;  %v4446_v10 = vand.u32 4294901760, %v444_v49  ;;  %v9770_v15 = vsub.f32 %v447_v63, %v1880_v39  ;;  %v1887_v45 = vsub.f32 %v9725_v52, %v9754_v48 }
 0x240   : > { %13151 = vst [vmem:[#allocation144_spill] sm:$0xff] %v9751_v9  ;;  %13152 = vst [vmem:[#allocation148_spill] sm:$0xff] %v9754_v48  ;;  %6895 = vmatpush1.bf16.msra.mxu1 %v13156_v34  ;;  %v13157_v32 = vld [vmem:[#allocation192_spill] sm:$0xff]  ;;  %v9765_v9 = vpack.c.bf16 %v1880_v39, %v1876_v5  ;;  %v4450_v35 = vand.u32 4294901760, %v448_v2  ;;  %v9776_v34 = vpack.c.bf16 %v4448_v37, %v4444_v59  ;;  %v11978_v41 = vand.u32 4294901760, %v9322_v42  ;;  %v13165_v5 = vld [vmem:[#allocation198_spill] sm:$0xff] }
 0x241   : > { %13153 = vst [vmem:[#allocation150_spill] sm:$0xff] %v9756_v58  ;;  %13154 = vst [vmem:[#allocation153_spill] sm:$0xff] %v9758_v43  ;;  %6129 = vmatprep.subr.bf16.mxu0 %v13157_v32  ;;  %v13160_v43 = vld [vmem:[#allocation196_spill] sm:$0xff]  ;;  %v9778_v32 = vsub.f32 %v445_v19, %v4444_v59  ;;  %v9780_v33 = vsub.f32 %v449_v22, %v4448_v37  ;;  %v9786_v63 = vsub.f32 %v442_v62, %v1878_v8  ;;  %v13170_v22 = vld [vmem:[#allocation201_spill] sm:$0xff] }
 0x242   : > { %13158 = vst [vmem:[#allocation156_spill] sm:$0xff] %v9765_v9  ;;  %13159 = vst [vmem:[#allocation160_spill] sm:$0xff] %v9767_v18  ;;  %6897 = vmatprep.subr.bf16.mxu1 %v13160_v43  ;;  %v9784_v43 = vpack.c.bf16 %v1882_v6, %v1878_v8  ;;  %v13168_v39 = vand.u32 4294901760, %v9310_v28  ;;  %v13169_v23 = vand.u32 4294901760, %v9312_v3  ;;  %v9800_v37 = vsub.f32 %v446_v7, %v1882_v6 }
 0x243   : > { %13161 = vst [vmem:[#allocation162_spill] sm:$0xff] %v9770_v15  ;;  %13162 = vst [vmem:[#allocation165_spill] sm:$0xff] %v9776_v34  ;;  %6131 = vmatpush1.bf16.msra.mxu0 %v13165_v5  ;;  %v9802_v59 = vpack.c.bf16 %v4450_v35, %v4446_v10  ;;  %v9804_v62 = vsub.f32 %v444_v49, %v4446_v10  ;;  %v9807_v8 = vand.u32 4294901760, %v9654_v40  ;;  %v13177_v7 = vand.u32 4294901760, %v9318_v61 }
 0x244   : > { %13163 = vst [vmem:[#allocation168_spill] sm:$0xff] %v9778_v32  ;;  %13164 = vst [vmem:[#allocation172_spill] sm:$0xff] %v9780_v33  ;;  %v9791_v17 = vsub.f32 %v9310_v28, %v13168_v39  ;;  %v9796_v19 = vsub.f32 %v9312_v3, %v13169_v23  ;;  %6899 = vmatpush1.bf16.msra.mxu1 %v13170_v22  ;;  %6133 = vmatprep.subr.bf16.mxu0 %v9308_v50  ;;  %v1888_v39 = vand.u32 4294901760, %v1887_v45  ;;  %v13245_v3 = vld [vmem:[#allocation61_spill] sm:$0xff]  ;;  %v13248_v28 = vld [vmem:[#allocation67_spill] sm:$0xff] }
 0x245   : > { %13166 = vst [vmem:[#allocation174_spill] sm:$0xff] %v9784_v43  ;;  %13167 = vst [vmem:[#allocation177_spill] sm:$0xff] %v9786_v63  ;;  %6901 = vmatprep.subr.bf16.mxu1 %v9314_v11  ;;  %v9810_v5 = vsub.f32 %v448_v2, %v4450_v35  ;;  %v13176_v23 = vand.u32 4294901760, %v9316_v36  ;;  %v9820_v6 = vsub.f32 %v9318_v61, %v13177_v7  ;;  %v11981_v2 = vand.u32 4294901760, %v9324_v60  ;;  %v13188_v11 = vld [vmem:[#allocation103_spill] sm:$0xff]  ;;  %v13244_v61 = vld [vmem:[#allocation29_spill] sm:$0xff] }
 0x246   : > { %13171 = vst [vmem:[#allocation180_spill] sm:$0xff] %v9800_v37  ;;  %13172 = vst [vmem:[#allocation184_spill] sm:$0xff] %v9802_v59  ;;  %1750 = vmatmul.mubr.f32.vlgmr.msra.gmra.mrb[0].mxu0 %v12960_v12  ;;  %v9826_v49 = vsub.f32 %v9322_v42, %v11978_v41  ;;  %v1905_v45 = vand.u32 4294901760, %v9791_v17  ;;  %v9841_v41 = vsub.f32 %v9654_v40, %v9807_v8  ;;  %v13179_v17 = vand.u32 4294901760, %v9328_v27  ;;  %v13233_v42 = vld [vmem:[#allocation47_spill] sm:$0xff]  ;;  %v13289_v37 = vld [vmem:[#allocation182_spill] sm:$0xff] }
 0x247   : > { %13173 = vst [vmem:[#allocation186_spill] sm:$0xff] %v9804_v62  ;;  %13174 = vst [vmem:[#allocation189_spill] sm:$0xff] %v9807_v8  ;;  %v9815_v22 = vsub.f32 %v9316_v36, %v13176_v23  ;;  %6135 = vmatpush1.bf16.msra.mxu0 %v9320_v13  ;;  %4318 = vmatmul.mubr.f32.vlgmr.msra.gmra.mrb[0].mxu1 %v12960_v12  ;;  %v1917_v23 = vand.u32 4294901760, %v9796_v19  ;;  %v4485_v40 = vand.u32 4294901760, %v9820_v6  ;;  %v13181_v7 = vand.u32 4294901760, %v9335_v47  ;;  %v13250_v36 = vld [vmem:[#allocation30_spill] sm:$0xff] }
 0x248   : > { %13175 = vst [vmem:[#allocation192_spill] sm:$0xff] %v9810_v5  ;;  %6903 = vmatpush1.bf16.msra.mxu1 %v9326_v16  ;;  %6137 = vmatprep.subr.bf16.mxu0 %v9333_v46  ;;  %13178 = vst [vmem:[#allocation196_spill] sm:$0xff] %v9841_v41  ;;  %v1922_v12 = vsub.f32 %v9324_v60, %v11981_v2  ;;  %v4478_v35 = vsub.f32 %v9328_v27, %v13179_v17  ;;  %v13182_v6 = vand.u32 4294901760, %v9337_v55  ;;  %v13183_v46 = vld [vmem:[#allocation159_spill] sm:$0xff]  ;;  %v13184_v17 = vld [vmem:[#allocation166_spill] sm:$0xff] }
 0x249   : > { %6905 = vmatprep.subr.bf16.mxu1 %v9341_v51  ;;  %1889 = vmatprep.mubr.f32.mxu0 %v1888_v39  ;;  %v4473_v19 = vand.u32 4294901760, %v9815_v22  ;;  %v13180_v51 = vand.u32 4294901760, %v9331_v56  ;;  %v13189_v48 = vand.u32 4294901760, %v9352_v20  ;;  %v9894_v52 = vand.u32 4294901760, %v9841_v41  ;;  %v13232_v27 = vld [vmem:[#allocation24_spill] sm:$0xff]  ;;  %v13300_v63 = vld [vmem:[#allocation65_spill] sm:$0xff] }
 0x24a   : > { %4457 = vmatprep.mubr.f32.mxu1 %v1888_v39  ;;  %v1928_v39 = vsub.f32 %v9335_v47, %v13181_v7  ;;  %v1940_v10 = vsub.f32 %v9337_v55, %v13182_v6  ;;  %v13186_v7 = vand.u32 4294901760, %v9346_v54  ;;  %v13187_v6 = vand.u32 4294901760, %v9348_v26  ;;  %v13308_v32 = vld [vmem:[#allocation71_spill] sm:$0xff] }
 0x24b   : > { %v4490_v22 = vsub.f32 %v9331_v56, %v13180_v51  ;;  %6139 = vmatpush1.bf16.msra.mxu0 %v9350_v31  ;;  %v1911_v51 = vand.u32 4294901760, %v9826_v49  ;;  %v13185_v31 = vand.u32 4294901760, %v9343_v44  ;;  %v13190_v49 = vand.u32 4294901760, %v9356_v38  ;;  %13192 = vst [vmem:[#allocation198_spill] sm:$0xff] %v9894_v52 }
 0x24c   : > { %6907 = vmatpush1.bf16.msra.mxu1 %v13183_v46  ;;  %6141 = vmatprep.subr.bf16.mxu0 %v13184_v17  ;;  %v4508_v13 = vsub.f32 %v9346_v54, %v13186_v7  ;;  %v1934_v2 = vsub.f32 %v9348_v26, %v13187_v6  ;;  %v1946_v17 = vsub.f32 %v9352_v20, %v13189_v48  ;;  %v1923_v6 = vand.u32 4294901760, %v1922_v12  ;;  %v13196_v7 = vld [vmem:[#allocation111_spill] sm:$0xff]  ;;  %v13197_v54 = vld [vmem:[#allocation116_spill] sm:$0xff] }
 0x24d   : > { %v4496_v16 = vsub.f32 %v9343_v44, %v13185_v31  ;;  %6909 = vmatprep.subr.bf16.mxu1 %v13188_v11  ;;  %v4502_v46 = vsub.f32 %v9356_v38, %v13190_v49  ;;  %v13191_v31 = vand.u32 4294901760, %v9361_v29  ;;  %v4479_v26 = vand.u32 4294901760, %v4478_v35 }
 0x24e   : > { %v4491_v11 = vand.u32 4294901760, %v4490_v22  ;;  %v1929_v8 = vand.u32 4294901760, %v1928_v39  ;;  %v13193_v48 = vand.u32 4294901760, %v9365_v21  ;;  %v13194_v49 = vand.u32 4294901760, %v9368_v4 }
 0x24f   : > { %v4514_v50 = vsub.f32 %v9361_v29, %v13191_v31  ;;  %6143 = vmatpush1.bf16.msra.mxu0 %v9377_v30  ;;  %v13195_v31 = vld [vmem:[#allocation106_spill] sm:$0xff]  ;;  %v1941_v12 = vand.u32 4294901760, %v1940_v10  ;;  %v4497_v35 = vand.u32 4294901760, %v4496_v16  ;;  %v4509_v22 = vand.u32 4294901760, %v4508_v13  ;;  %v13198_v30 = vld [vmem:[#allocation147_spill] sm:$0xff] }
 0x250   : > { %v1952_v20 = vsub.f32 %v9365_v21, %v13193_v48  ;;  %v1964_v38 = vsub.f32 %v9368_v4, %v13194_v49  ;;  %6911 = vmatpush1.bf16.msra.mxu1 %v13196_v7  ;;  %6145 = vmatprep.subr.bf16.mxu0 %v13197_v54  ;;  %v1935_v44 = vand.u32 4294901760, %v1934_v2  ;;  %v1947_v39 = vand.u32 4294901760, %v1946_v17  ;;  %v13200_v7 = vld [vmem:[#allocation109_spill] sm:$0xff]  ;;  %v13201_v10 = vld [vmem:[#allocation110_spill] sm:$0xff]  ;;  %v13225_v4 = vld [vmem:[#allocation20_spill] sm:$0xff] }
 0x251   : > { %6913 = vmatprep.subr.bf16.mxu1 %v13198_v30  ;;  %v4503_v55 = vand.u32 4294901760, %v4502_v46  ;;  %v4515_v47 = vand.u32 4294901760, %v4514_v50  ;;  %v13199_v48 = vand.u32 4294901760, %v9372_v14  ;;  %v9912_v49 = vpack.c.bf16 %v1917_v23, %v1905_v45  ;;  %v13202_v13 = vld [vmem:[#allocation154_spill] sm:$0xff]  ;;  %v13204_v45 = vld [vmem:[#allocation13_spill] sm:$0xff]  ;;  %v13218_v30 = vld [vmem:[#allocation155_spill] sm:$0xff] }
 0x252   : > { %v9914_v29 = vpack.c.bf16 %v4485_v40, %v4473_v19  ;;  %v1953_v46 = vand.u32 4294901760, %v1952_v20  ;;  %v1965_v50 = vand.u32 4294901760, %v1964_v38  ;;  %v13203_v17 = vand.u32 4294901760, %v13195_v31  ;;  %v13205_v23 = vld [vmem:[#allocation17_spill] sm:$0xff]  ;;  %v13207_v2 = vld [vmem:[#allocation22_spill] sm:$0xff] }
 0x253   : > { %v9910_v21 = vsub.f32 %v9372_v14, %v13199_v48  ;;  %6147 = vmatpush1.bf16.msra.mxu0 %v13202_v13  ;;  %v9928_v19 = vpack.c.bf16 %v1923_v6, %v1911_v51  ;;  %v9930_v40 = vpack.c.bf16 %v4491_v11, %v4479_v26  ;;  %v9932_v16 = vpack.c.bf16 %v1941_v12, %v1929_v8  ;;  %v13206_v54 = vld [vmem:[#allocation113_spill] sm:$0xff]  ;;  %v13210_v8 = vld [vmem:[#allocation115_spill] sm:$0xff]  ;;  %v13215_v13 = vld [vmem:[#allocation208_spill] sm:$0xff] }
 0x254   : > { %v9924_v48 = vsub.f32 %v13195_v31, %v13203_v17  ;;  %6915 = vmatpush1.bf16.msra.mxu1 %v13204_v45  ;;  %6149 = vmatprep.subr.bf16.mxu0 %v13205_v23  ;;  %v9936_v20 = vpack.c.bf16 %v4509_v22, %v4497_v35  ;;  %v9938_v38 = vpack.c.bf16 %v1947_v39, %v1935_v44  ;;  %v13208_v23 = vand.u32 4294901760, %v13200_v7  ;;  %v13211_v12 = vld [vmem:[#allocation145_spill] sm:$0xff]  ;;  %v13212_v44 = vld [vmem:[#allocation26_spill] sm:$0xff]  ;;  %v13214_v39 = vld [vmem:[#allocation151_spill] sm:$0xff] }
 0x255   : > { %6917 = vmatprep.subr.bf16.mxu1 %v13207_v2  ;;  %v9940_v17 = vpack.c.bf16 %v4515_v47, %v4503_v55  ;;  %v4521_v45 = vand.u32 4294901760, %v9910_v21  ;;  %v13209_v11 = vand.u32 4294901760, %v13201_v10  ;;  %v9956_v47 = vpack.c.bf16 %v1965_v50, %v1953_v46  ;;  %v13213_v21 = vld [vmem:[#allocation149_spill] sm:$0xff]  ;;  %v13216_v2 = vld [vmem:[#allocation35_spill] sm:$0xff] }
 0x256   : > { %v9946_v51 = vsub.f32 %v13200_v7, %v13208_v23  ;;  %v4533_v55 = vand.u32 4294901760, %v9924_v48  ;;  %v13220_v46 = vld [vmem:[#allocation209_spill] sm:$0xff]  ;;  %v13221_v7 = vld [vmem:[#allocation38_spill] sm:$0xff]  ;;  %v13223_v31 = vld [vmem:[#allocation15_spill] sm:$0xff]  ;;  %v13226_v35 = vand.u32 4294901760, %v13210_v8  ;;  %v13227_v50 = vand.u32 4294901760, %v13211_v12 }
 0x257   : > { %v9951_v26 = vsub.f32 %v13201_v10, %v13209_v11  ;;  %6151 = vmatpush1.bf16.msra.mxu0 %v13212_v44  ;;  %v13217_v11 = vand.u32 4294901760, %v13206_v54  ;;  %v13219_v10 = vld [vmem:[#allocation206_spill] sm:$0xff]  ;;  %v13224_v14 = vld [vmem:[#allocation19_spill] sm:$0xff]  ;;  %v13229_v23 = vand.u32 4294901760, %v13213_v21  ;;  %v13307_v18 = vand.u32 4294901760, %v13300_v63 }
 0x258   : > { %6919 = vmatpush1.bf16.msra.mxu1 %v13215_v13  ;;  %6153 = vmatprep.subr.bf16.mxu0 %v13216_v2  ;;  %v13222_v48 = vld [vmem:[#allocation14_spill] sm:$0xff]  ;;  %v1959_v56 = vand.u32 4294901760, %v9946_v51  ;;  %v4538_v44 = vsub.f32 %v13210_v8, %v13226_v35  ;;  %v13230_v2 = vand.u32 4294901760, %v13214_v39  ;;  %v13231_v22 = vld [vmem:[#allocation23_spill] sm:$0xff]  ;;  %v13234_v35 = vld [vmem:[#allocation52_spill] sm:$0xff] }
 0x259   : > { %v4526_v6 = vsub.f32 %v13206_v54, %v13217_v11  ;;  %6921 = vmatprep.subr.bf16.mxu1 %v13221_v7  ;;  %v1971_v11 = vand.u32 4294901760, %v9951_v26  ;;  %v1976_v7 = vsub.f32 %v13211_v12, %v13227_v50  ;;  %v13228_v54 = vld [vmem:[#allocation43_spill] sm:$0xff]  ;;  %v1988_v13 = vsub.f32 %v13213_v21, %v13229_v23  ;;  %v13238_v26 = vld [vmem:[#allocation56_spill] sm:$0xff] }
 0x25a   : > { %v4544_v51 = vsub.f32 %v13214_v39, %v13230_v2  ;;  %v13235_v50 = vand.u32 4294901760, %v13218_v30  ;;  %v13236_v12 = vand.u32 4294901760, %v13219_v10  ;;  %v13237_v21 = vand.u32 4294901760, %v13220_v46 }
 0x25b   : > { %6155 = vmatpush1.bf16.msra.mxu0 %v13228_v54  ;;  %v4527_v8 = vand.u32 4294901760, %v4526_v6  ;;  %v13239_v60 = vand.u32 4294901760, %v13222_v48  ;;  %v13240_v6 = vand.u32 4294901760, %v13223_v31  ;;  %v4539_v39 = vand.u32 4294901760, %v4538_v44  ;;  %v13249_v44 = vld [vmem:[#allocation70_spill] sm:$0xff] }
 0x25c   : > { %6923 = vmatpush1.bf16.msra.mxu1 %v13233_v42  ;;  %6157 = vmatprep.subr.bf16.mxu0 %v13234_v35  ;;  %v4556_v54 = vsub.f32 %v13218_v30, %v13235_v50  ;;  %v1982_v23 = vsub.f32 %v13219_v10, %v13236_v12  ;;  %v1994_v2 = vsub.f32 %v13220_v46, %v13237_v21  ;;  %v13241_v50 = vand.u32 4294901760, %v13224_v14  ;;  %v13243_v46 = vld [vmem:[#allocation28_spill] sm:$0xff] }
 0x25d   : > { %6925 = vmatprep.subr.bf16.mxu1 %v13238_v26  ;;  %v4550_v42 = vsub.f32 %v13222_v48, %v13239_v60  ;;  %v4562_v35 = vsub.f32 %v13223_v31, %v13240_v6  ;;  %v13242_v12 = vand.u32 4294901760, %v13225_v4  ;;  %v1977_v21 = vand.u32 4294901760, %v1976_v7 }
 0x25e   : > { %v2000_v30 = vsub.f32 %v13224_v14, %v13241_v50  ;;  %v1989_v60 = vand.u32 4294901760, %v1988_v13  ;;  %v4545_v48 = vand.u32 4294901760, %v4544_v51  ;;  %v13246_v6 = vand.u32 4294901760, %v13231_v22 }
 0x25f   : > { %v2012_v10 = vsub.f32 %v13225_v4, %v13242_v12  ;;  %6159 = vmatpush1.bf16.msra.mxu0 %v13245_v3  ;;  %v13247_v50 = vand.u32 4294901760, %v13232_v27  ;;  %v4557_v7 = vand.u32 4294901760, %v4556_v54  ;;  %v1983_v12 = vand.u32 4294901760, %v1982_v23  ;;  %v13251_v3 = vld [vmem:[#allocation74_spill] sm:$0xff]  ;;  %v13254_v23 = vld [vmem:[#allocation32_spill] sm:$0xff] }
 0x260   : > { %v4568_v31 = vsub.f32 %v13231_v22, %v13246_v6  ;;  %6927 = vmatpush1.bf16.msra.mxu1 %v13248_v28  ;;  %6161 = vmatprep.subr.bf16.mxu0 %v13249_v44  ;;  %v1995_v26 = vand.u32 4294901760, %v1994_v2  ;;  %v4551_v13 = vand.u32 4294901760, %v4550_v42  ;;  %v4563_v51 = vand.u32 4294901760, %v4562_v35  ;;  %v13255_v44 = vld [vmem:[#allocation79_spill] sm:$0xff] }
 0x261   : > { %v4580_v14 = vsub.f32 %v13232_v27, %v13247_v50  ;;  %6929 = vmatprep.subr.bf16.mxu1 %v13251_v3  ;;  %v2001_v5 = vand.u32 4294901760, %v2000_v30  ;;  %v2013_v62 = vand.u32 4294901760, %v2012_v10  ;;  %v10028_v6 = vpack.c.bf16 %v4533_v55, %v4521_v45  ;;  %v13256_v45 = vld [vmem:[#allocation83_spill] sm:$0xff]  ;;  %v13273_v3 = vld [vmem:[#allocation49_spill] sm:$0xff]  ;;  %v13284_v27 = vld [vmem:[#allocation178_spill] sm:$0xff] }
 0x262   : > { %v13252_v22 = vand.u32 4294901760, %v13243_v46  ;;  %v13253_v28 = vand.u32 4294901760, %v13244_v61  ;;  %v10038_v4 = vpack.c.bf16 %v1971_v11, %v1959_v56  ;;  %v10040_v42 = vpack.c.bf16 %v4539_v39, %v4527_v8  ;;  %v13257_v55 = vld [vmem:[#allocation87_spill] sm:$0xff] }
 0x263   : > { %6163 = vmatpush1.bf16.msra.mxu0 %v13255_v44  ;;  %v4569_v30 = vand.u32 4294901760, %v4568_v31  ;;  %v4581_v10 = vand.u32 4294901760, %v4580_v14  ;;  %v10051_v2 = vpack.c.bf16 %v4557_v7, %v4545_v48  ;;  %v13259_v56 = vand.u32 4294901760, %v13250_v36  ;;  %v13260_v31 = vld [vmem:[#allocation92_spill] sm:$0xff]  ;;  %v13264_v7 = vld [vmem:[#allocation37_spill] sm:$0xff] }
 0x264   : > { %v2006_v50 = vsub.f32 %v13243_v46, %v13252_v22  ;;  %v2018_v54 = vsub.f32 %v13244_v61, %v13253_v28  ;;  %6931 = vmatpush1.bf16.msra.mxu1 %v13256_v45  ;;  %6165 = vmatprep.subr.bf16.mxu0 %v13257_v55  ;;  %v13258_v22 = vsub.f32 %v9841_v41, %v9894_v52  ;;  %v13262_v52 = vld [vmem:[#allocation33_spill] sm:$0xff]  ;;  %v13263_v48 = vand.u32 4294901760, %v13254_v23  ;;  %v13265_v45 = vld [vmem:[#allocation98_spill] sm:$0xff]  ;;  %v13279_v61 = vld [vmem:[#allocation59_spill] sm:$0xff] }
 0x265   : > { %v10049_v28 = vpack.c.bf16 %v1989_v60, %v1977_v21  ;;  %v10056_v8 = vsub.f32 %v13250_v36, %v13259_v56  ;;  %6933 = vmatprep.subr.bf16.mxu1 %v13260_v31  ;;  %v10059_v14 = vpack.c.bf16 %v1995_v26, %v1983_v12  ;;  %v10061_v39 = vpack.c.bf16 %v4563_v51, %v4551_v13  ;;  %v13267_v26 = vld [vmem:[#allocation40_spill] sm:$0xff]  ;;  %v13268_v13 = vld [vmem:[#allocation41_spill] sm:$0xff]  ;;  %v13274_v41 = vld [vmem:[#allocation50_spill] sm:$0xff] }
 0x266   : > { %v10047_v35 = vand.u32 4294901760, %v13258_v22  ;;  %v10063_v11 = vpack.c.bf16 %v2013_v62, %v2001_v5  ;;  %v2007_v55 = vand.u32 4294901760, %v2006_v50  ;;  %v2019_v21 = vand.u32 4294901760, %v2018_v54  ;;  %v13269_v5 = vld [vmem:[#allocation44_spill] sm:$0xff]  ;;  %v13270_v22 = vld [vmem:[#allocation135_spill] sm:$0xff]  ;;  %v13271_v50 = vld [vmem:[#allocation169_spill] sm:$0xff] }
 0x267   : > { %v10069_v60 = vsub.f32 %v13254_v23, %v13263_v48  ;;  %6167 = vmatpush1.bf16.msra.mxu0 %v13265_v45  ;;  %v10073_v31 = vpack.c.bf16 %v4581_v10, %v4569_v30  ;;  %v4575_v54 = vand.u32 4294901760, %v10056_v8  ;;  %v13272_v48 = vld [vmem:[#allocation46_spill] sm:$0xff]  ;;  %v13275_v30 = vld [vmem:[#allocation173_spill] sm:$0xff]  ;;  %v13281_v8 = vand.u32 4294901760, %v13262_v52  ;;  %v13288_v12 = vld [vmem:[#allocation63_spill] sm:$0xff] }
 0x268   : > { %13261 = vst [vmem:[#allocation201_spill] sm:$0xff] %v10063_v11  ;;  %6935 = vmatpush1.bf16.msra.mxu1 %v13270_v22  ;;  %6169 = vmatprep.subr.bf16.mxu0 %v13271_v50  ;;  %v13276_v10 = vld [vmem:[#allocation53_spill] sm:$0xff]  ;;  %v13277_v23 = vld [vmem:[#allocation54_spill] sm:$0xff]  ;;  %v10089_v46 = vpack.c.bf16 %v2019_v21, %v2007_v55  ;;  %v13282_v56 = vand.u32 4294901760, %v13264_v7  ;;  %v13285_v62 = vand.u32 4294901760, %v13267_v26  ;;  %v13286_v22 = vand.u32 4294901760, %v13268_v13 }
 0x269   : > { %13266 = vst [vmem:[#allocation210_spill] sm:$0xff] %v10073_v31  ;;  %6937 = vmatprep.subr.bf16.mxu1 %v13275_v30  ;;  %v13278_v36 = vld [vmem:[#allocation58_spill] sm:$0xff]  ;;  %v2024_v44 = vsub.f32 %v13262_v52, %v13281_v8  ;;  %v13287_v21 = vand.u32 4294901760, %v13269_v5  ;;  %v4587_v30 = vand.u32 4294901760, %v10069_v60  ;;  %v13295_v52 = vand.u32 4294901760, %v13276_v10  ;;  %v13316_v31 = vld [vmem:[#allocation80_spill] sm:$0xff] }
 0x26a   : > { %13280 = vst [vmem:[#allocation211_spill] sm:$0xff] %v10089_v46  ;;  %v2036_v45 = vsub.f32 %v13264_v7, %v13282_v56  ;;  %v13283_v50 = vld [vmem:[#allocation62_spill] sm:$0xff]  ;;  %v4592_v51 = vsub.f32 %v13267_v26, %v13285_v62  ;;  %v4604_v55 = vsub.f32 %v13268_v13, %v13286_v22  ;;  %v13290_v56 = vld [vmem:[#allocation187_spill] sm:$0xff]  ;;  %v13292_v26 = vand.u32 4294901760, %v13273_v3  ;;  %v13304_v46 = vld [vmem:[#allocation200_spill] sm:$0xff] }
 0x26b   : > { %6171 = vmatpush1.bf16.msra.mxu0 %v13284_v27  ;;  %v2030_v8 = vsub.f32 %v13269_v5, %v13287_v21  ;;  %v13291_v27 = vand.u32 4294901760, %v13272_v48  ;;  %v13293_v13 = vand.u32 4294901760, %v13274_v41  ;;  %v13294_v5 = vld [vmem:[#allocation191_spill] sm:$0xff]  ;;  %v13296_v60 = vand.u32 4294901760, %v13277_v23 }
 0x26c   : > { %6939 = vmatpush1.bf16.msra.mxu1 %v13289_v37  ;;  %6173 = vmatprep.subr.bf16.mxu0 %v13290_v56  ;;  %v4598_v22 = vsub.f32 %v13273_v3, %v13292_v26  ;;  %v2048_v56 = vsub.f32 %v13276_v10, %v13295_v52  ;;  %v13298_v26 = vand.u32 4294901760, %v13279_v61  ;;  %v2025_v7 = vand.u32 4294901760, %v2024_v44  ;;  %v13301_v10 = vld [vmem:[#allocation195_spill] sm:$0xff]  ;;  %v13305_v44 = vld [vmem:[#allocation12_spill] sm:$0xff] }
 0x26d   : > { %v2042_v62 = vsub.f32 %v13272_v48, %v13291_v27  ;;  %v4610_v21 = vsub.f32 %v13274_v41, %v13293_v13  ;;  %6941 = vmatprep.subr.bf16.mxu1 %v13294_v5  ;;  %v2060_v37 = vsub.f32 %v13277_v23, %v13296_v60  ;;  %v13297_v27 = vand.u32 4294901760, %v13278_v36 }
 0x26e   : > { %v4628_v3 = vsub.f32 %v13279_v61, %v13298_v26  ;;  %v2037_v13 = vand.u32 4294901760, %v2036_v45  ;;  %v13299_v5 = vand.u32 4294901760, %v13283_v50  ;;  %v4593_v33 = vand.u32 4294901760, %v4592_v51 }
 0x26f   : > { %v4616_v48 = vsub.f32 %v13278_v36, %v13297_v27  ;;  %6175 = vmatpush1.bf16.msra.mxu0 %v13301_v10  ;;  %v4605_v60 = vand.u32 4294901760, %v4604_v55  ;;  %v13302_v23 = vand.u32 4294901760, %v13288_v12  ;;  %v13303_v36 = vld [vmem:[#allocation68_spill] sm:$0xff]  ;;  %v2031_v45 = vand.u32 4294901760, %v2030_v8 }
 0x270   : > { %v2054_v41 = vsub.f32 %v13283_v50, %v13299_v5  ;;  %6943 = vmatpush1.bf16.msra.mxu1 %v13304_v46  ;;  %6177 = vmatprep.subr.bf16.mxu0 %v13305_v44  ;;  %v2043_v26 = vand.u32 4294901760, %v2042_v62  ;;  %v4599_v61 = vand.u32 4294901760, %v4598_v22  ;;  %v4611_v5 = vand.u32 4294901760, %v4610_v21  ;;  %v13306_v50 = vld [vmem:[#allocation18_spill] sm:$0xff]  ;;  %v13309_v46 = vld [vmem:[#allocation73_spill] sm:$0xff] }
 0x271   : > { %v2066_v27 = vsub.f32 %v13288_v12, %v13302_v23  ;;  %6945 = vmatprep.subr.bf16.mxu1 %v13306_v50  ;;  %v2049_v52 = vand.u32 4294901760, %v2048_v56  ;;  %v2061_v10 = vand.u32 4294901760, %v2060_v37  ;;  %v4617_v51 = vand.u32 4294901760, %v4616_v48  ;;  %v13310_v44 = vld [vmem:[#allocation205_spill] sm:$0xff]  ;;  %v13312_v56 = vld [vmem:[#allocation75_spill] sm:$0xff]  ;;  %v13315_v21 = vld [vmem:[#allocation42_spill] sm:$0xff] }
 0x272   : > { %v4629_v55 = vand.u32 4294901760, %v4628_v3  ;;  %v2055_v15 = vand.u32 4294901760, %v2054_v41  ;;  %v4622_v23 = vsub.f32 %v13300_v63, %v13307_v18  ;;  %v13311_v62 = vand.u32 4294901760, %v13303_v36  ;;  %v13313_v48 = vld [vmem:[#allocation77_spill] sm:$0xff]  ;;  %v13314_v41 = vld [vmem:[#allocation34_spill] sm:$0xff]  ;;  %v13318_v63 = vld [vmem:[#allocation55_spill] sm:$0xff] }
 0x273   : > { %6179 = vmatpush1.bf16.msra.mxu0 %v13310_v44  ;;  %v2067_v8 = vand.u32 4294901760, %v2066_v27  ;;  %v10159_v18 = vpack.c.bf16 %v4587_v30, %v4575_v54  ;;  %v10161_v12 = vpack.c.bf16 %v2037_v13, %v2025_v7  ;;  %v13317_v44 = vld [vmem:[#allocation82_spill] sm:$0xff]  ;;  %v10166_v11 = vpack.c.bf16 %v4605_v60, %v4593_v33  ;;  %v13321_v50 = vld [vmem:[#allocation60_spill] sm:$0xff] }
 0x274   : > { %v4634_v22 = vsub.f32 %v13303_v36, %v13311_v62  ;;  %6947 = vmatpush1.bf16.msra.mxu1 %v13314_v41  ;;  %6181 = vmatprep.subr.bf16.mxu0 %v13315_v21  ;;  %v10168_v62 = vpack.c.bf16 %v2043_v26, %v2031_v45  ;;  %v10170_v37 = vpack.c.bf16 %v4611_v5, %v4599_v61  ;;  %v4623_v54 = vand.u32 4294901760, %v4622_v23  ;;  %v13325_v26 = vld [vmem:[#allocation69_spill] sm:$0xff]  ;;  %v13334_v21 = vld [vmem:[#allocation95_spill] sm:$0xff] }
 0x275   : > { %6949 = vmatprep.subr.bf16.mxu1 %v13318_v63  ;;  %v10172_v3 = vpack.c.bf16 %v2061_v10, %v2049_v52  ;;  %v10174_v41 = vpack.c.bf16 %v4629_v55, %v4617_v51  ;;  %v13319_v7 = vand.u32 4294901760, %v13308_v32  ;;  %v13320_v13 = vand.u32 4294901760, %v13309_v46  ;;  %v13326_v5 = vld [vmem:[#allocation81_spill] sm:$0xff]  ;;  %v13333_v63 = vld [vmem:[#allocation94_spill] sm:$0xff] }
 0x276   : > { %v10183_v33 = vpack.c.bf16 %v2067_v8, %v2055_v15  ;;  %v4635_v60 = vand.u32 4294901760, %v4634_v22  ;;  %v13323_v61 = vand.u32 4294901760, %v13312_v56  ;;  %v13324_v52 = vand.u32 4294901760, %v13313_v48  ;;  %v13329_v8 = vld [vmem:[#allocation85_spill] sm:$0xff]  ;;  %v13338_v22 = vld [vmem:[#allocation100_spill] sm:$0xff] }
 0x277   : > { %v2072_v30 = vsub.f32 %v13308_v32, %v13319_v7  ;;  %v2084_v27 = vsub.f32 %v13309_v46, %v13320_v13  ;;  %6183 = vmatpush1.bf16.msra.mxu0 %v13321_v50  ;;  %v13327_v51 = vand.u32 4294901760, %v13316_v31  ;;  %v13328_v15 = vand.u32 4294901760, %v13317_v44  ;;  %v13330_v7 = vld [vmem:[#allocation86_spill] sm:$0xff]  ;;  %v13332_v50 = vld [vmem:[#allocation91_spill] sm:$0xff]  ;;  %v13336_v46 = vld [vmem:[#allocation101_spill] sm:$0xff] }
 0x278   : > { %13322 = vst [vmem:[#allocation212_spill] sm:$0xff] %v10183_v33  ;;  %v4640_v10 = vsub.f32 %v13312_v56, %v13323_v61  ;;  %v4652_v45 = vsub.f32 %v13313_v48, %v13324_v52  ;;  %6951 = vmatpush1.bf16.msra.mxu1 %v13325_v26  ;;  %6185 = vmatprep.subr.bf16.mxu0 %v13326_v5  ;;  %v13331_v61 = vld [vmem:[#allocation89_spill] sm:$0xff]  ;;  %v12101_v26 = vand.u32 4294901760, %v13332_v50  ;;  %v13339_v33 = vld [vmem:[#allocation140_spill] sm:$0xff]  ;;  %v13341_v32 = vand.u32 4294901760, %v13330_v7 }
 0x279   : > { %v2078_v55 = vsub.f32 %v13316_v31, %v13327_v51  ;;  %v2090_v23 = vsub.f32 %v13317_v44, %v13328_v15  ;;  %6953 = vmatprep.subr.bf16.mxu1 %v9704_v53  ;;  %v2073_v56 = vand.u32 4294901760, %v2072_v30  ;;  %v13335_v51 = vld [vmem:[#allocation97_spill] sm:$0xff]  ;;  %v2085_v13 = vand.u32 4294901760, %v2084_v27 }
 0x27a   : > { %v13337_v15 = vld [vmem:[#allocation137_spill] sm:$0xff]  ;;  %v4641_v36 = vand.u32 4294901760, %v4640_v10  ;;  %v4653_v53 = vand.u32 4294901760, %v4652_v45  ;;  %v13340_v30 = vand.u32 4294901760, %v13329_v8  ;;  %v4658_v44 = vsub.f32 %v13330_v7, %v13341_v32 }
 0x27b   : > { %6187 = vmatpush1.bf16.msra.mxu0 %v13338_v22  ;;  %v2079_v5 = vand.u32 4294901760, %v2078_v55  ;;  %v2091_v48 = vand.u32 4294901760, %v2090_v23  ;;  %v13342_v27 = vand.u32 4294901760, %v13331_v61  ;;  %v2108_v45 = vsub.f32 %v13332_v50, %v12101_v26  ;;  %v13351_v50 = vld [vmem:[#allocation171_spill] sm:$0xff] }
 0x27c   : > { %6955 = vmatpush1.bf16.msra.mxu1 %v9720_v24  ;;  %6189 = vmatprep.subr.bf16.mxu0 %v9732_v1  ;;  %v4646_v31 = vsub.f32 %v13329_v8, %v13340_v30  ;;  %v13343_v55 = vand.u32 4294901760, %v13333_v63  ;;  %v13344_v30 = vand.u32 4294901760, %v13334_v21  ;;  %v10232_v1 = vpack.c.bf16 %v4635_v60, %v4623_v54 }
 0x27d   : > { %6957 = vmatprep.subr.bf16.mxu1 %v9736_v57  ;;  %v2096_v10 = vsub.f32 %v13331_v61, %v13342_v27  ;;  %v13345_v32 = vand.u32 4294901760, %v13335_v51  ;;  %v13346_v27 = vand.u32 4294901760, %v13336_v46  ;;  %v13347_v26 = vand.u32 4294901760, %v13337_v15 }
 0x27e   : > { %v4664_v23 = vsub.f32 %v13333_v63, %v13343_v55  ;;  %v4676_v52 = vsub.f32 %v13334_v21, %v13344_v30  ;;  %v10244_v55 = vpack.c.bf16 %v2085_v13, %v2073_v56  ;;  %v10246_v63 = vpack.c.bf16 %v4653_v53, %v4641_v36  ;;  %v13349_v30 = vld [vmem:[#allocation170_spill] sm:$0xff] }
 0x27f   : > { %v2102_v57 = vsub.f32 %v13335_v51, %v13345_v32  ;;  %v2114_v24 = vsub.f32 %v13336_v46, %v13346_v27  ;;  %v4670_v22 = vsub.f32 %v13337_v15, %v13347_v26  ;;  %6191 = vmatpush1.bf16.msra.mxu0 %v9744_v25  ;;  %v13348_v54 = vand.u32 4294901760, %v13339_v33  ;;  %v13352_v32 = vld [vmem:[#allocation175_spill] sm:$0xff]  ;;  %v13413_v51 = vld [vmem:[#allocation138_spill] sm:$0xff]  ;;  %v13414_v46 = vld [vmem:[#allocation141_spill] sm:$0xff] }
 0x280   : > { %6959 = vmatpush1.bf16.msra.mxu1 %v9756_v58  ;;  %6193 = vmatprep.subr.bf16.mxu0 %v9765_v9  ;;  %v10254_v27 = vpack.c.bf16 %v2091_v48, %v2079_v5  ;;  %v4647_v21 = vand.u32 4294901760, %v4646_v31  ;;  %v4659_v26 = vand.u32 4294901760, %v4658_v44  ;;  %v2097_v36 = vand.u32 4294901760, %v2096_v10  ;;  %v13354_v44 = vld [vmem:[#allocation176_spill] sm:$0xff]  ;;  %v13355_v25 = vld [vmem:[#allocation179_spill] sm:$0xff] }
 0x281   : > { %v4682_v60 = vsub.f32 %v13339_v33, %v13348_v54  ;;  %6961 = vmatprep.subr.bf16.mxu1 %v9776_v34  ;;  %v2109_v53 = vand.u32 4294901760, %v2108_v45  ;;  %v4665_v56 = vand.u32 4294901760, %v4664_v23  ;;  %v4677_v13 = vand.u32 4294901760, %v4676_v52  ;;  %v13358_v45 = vld [vmem:[#allocation183_spill] sm:$0xff]  ;;  %v13361_v10 = vld [vmem:[#allocation188_spill] sm:$0xff] }
 0x282   : > { %13350 = vst [vmem:[#allocation213_spill] sm:$0xff] %v10254_v27  ;;  %v2103_v61 = vand.u32 4294901760, %v2102_v57  ;;  %v2115_v54 = vand.u32 4294901760, %v2114_v24  ;;  %v4671_v7 = vand.u32 4294901760, %v4670_v22  ;;  %v13353_v48 = vand.u32 4294901760, %v13349_v30  ;;  %v13357_v22 = vld [vmem:[#allocation181_spill] sm:$0xff] }
 0x283   : > { %6195 = vmatpush1.bf16.msra.mxu0 %v9784_v43  ;;  %v4683_v9 = vand.u32 4294901760, %v4682_v60  ;;  %v13356_v24 = vand.u32 4294901760, %v13351_v50  ;;  %v12120_v23 = vand.u32 4294901760, %v13358_v45  ;;  %v13359_v60 = vld [vmem:[#allocation185_spill] sm:$0xff]  ;;  %v10278_v5 = vpack.c.bf16 %v4659_v26, %v4647_v21  ;;  %v13377_v26 = vld [vmem:[#allocation203_spill] sm:$0xff]  ;;  %v13415_v27 = vld [vmem:[#allocation144_spill] sm:$0xff] }
 0x284   : > { %v10263_v31 = vsub.f32 %v13349_v30, %v13353_v48  ;;  %6963 = vmatpush1.bf16.msra.mxu1 %v9802_v59  ;;  %6197 = vmatprep.subr.bf16.mxu0 %v9912_v49  ;;  %v12121_v8 = vand.u32 4294901760, %v13361_v10  ;;  %v13362_v59 = vld [vmem:[#allocation190_spill] sm:$0xff]  ;;  %v13363_v49 = vld [vmem:[#allocation193_spill] sm:$0xff]  ;;  %v10286_v58 = vpack.c.bf16 %v4677_v13, %v4665_v56  ;;  %v10288_v52 = vpack.c.bf16 %v2115_v54, %v2103_v61  ;;  %v13425_v33 = vld [vmem:[#allocation192_spill] sm:$0xff] }
 0x285   : > { %v10272_v57 = vsub.f32 %v13351_v50, %v13356_v24  ;;  %6965 = vmatprep.subr.bf16.mxu1 %v9914_v29  ;;  %13360 = vst [vmem:[#allocation214_spill] sm:$0xff] %v10278_v5  ;;  %v12122_v43 = vand.u32 4294901760, %v13362_v59  ;;  %v12123_v34 = vand.u32 4294901760, %v13363_v49  ;;  %v10284_v24 = vpack.c.bf16 %v2109_v53, %v2097_v36  ;;  %v13419_v5 = vld [vmem:[#allocation211_spill] sm:$0xff]  ;;  %v13423_v50 = vld [vmem:[#allocation180_spill] sm:$0xff] }
 0x286   : > { %1895 = vmatmul.mubr.f32.vlgmr.msra.gmra.mrb[0].mxu0 %v10047_v35  ;;  %13365 = vst [vmem:[#allocation216_spill] sm:$0xff] %v10286_v58  ;;  %13366 = vst [vmem:[#allocation217_spill] sm:$0xff] %v10288_v52  ;;  %v13367_v48 = vand.u32 4294901760, %v13352_v32  ;;  %v10297_v21 = vpack.c.bf16 %v4683_v9, %v4671_v7  ;;  %v13369_v36 = vand.u32 4294901760, %v13354_v44  ;;  %v13370_v61 = vand.u32 4294901760, %v13355_v25  ;;  %v13378_v52 = vld [vmem:[#allocation16_spill] sm:$0xff] }
 0x287   : > { %13364 = vst [vmem:[#allocation215_spill] sm:$0xff] %v10284_v24  ;;  %6199 = vmatpush1.bf16.msra.mxu0 %v9928_v19  ;;  %4463 = vmatmul.mubr.f32.vlgmr.msra.gmra.mrb[0].mxu1 %v10047_v35  ;;  %v13371_v9 = vand.u32 4294901760, %v13357_v22  ;;  %v10321_v7 = vsub.f32 %v13358_v45, %v12120_v23  ;;  %v13372_v13 = vand.u32 4294901760, %v13359_v60  ;;  %v13379_v58 = vld [vmem:[#allocation204_spill] sm:$0xff]  ;;  %v13383_v24 = vand.u32 4294901760, %v13377_v26  ;;  %v13385_v19 = vld [vmem:[#allocation21_spill] sm:$0xff] }
 0x288   : > { %v10293_v29 = vsub.f32 %v13352_v32, %v13367_v48  ;;  %13368 = vst [vmem:[#allocation218_spill] sm:$0xff] %v10297_v21  ;;  %v10303_v53 = vsub.f32 %v13354_v44, %v13369_v36  ;;  %v10308_v56 = vsub.f32 %v13355_v25, %v13370_v61  ;;  %6967 = vmatpush1.bf16.msra.mxu1 %v9930_v40  ;;  %v13373_v36 = vld [vmem:[#allocation194_spill] sm:$0xff]  ;;  %v12127_v61 = vand.u32 4294901760, %v13378_v52  ;;  %v13421_v44 = vld [vmem:[#allocation172_spill] sm:$0xff] }
 0x289   : > { %6201 = vmatprep.subr.bf16.mxu0 %v9932_v16  ;;  %v10316_v35 = vsub.f32 %v13357_v22, %v13371_v9  ;;  %v10326_v54 = vsub.f32 %v13359_v60, %v13372_v13  ;;  %6969 = vmatprep.subr.bf16.mxu1 %v9936_v20  ;;  %v10332_v16 = vsub.f32 %v13361_v10, %v12121_v8  ;;  %v13374_v20 = vld [vmem:[#allocation197_spill] sm:$0xff]  ;;  %v13375_v13 = vld [vmem:[#allocation199_spill] sm:$0xff]  ;;  %v13376_v8 = vld [vmem:[#allocation202_spill] sm:$0xff]  ;;  %v13426_v25 = vand.u32 4294901760, %v13385_v19 }
 0x28a   : > { %v10337_v40 = vsub.f32 %v13362_v59, %v12122_v43  ;;  %v10342_v48 = vsub.f32 %v13363_v49, %v12123_v34  ;;  %2286 = vmatprep.mubr.f32.mxu0 %v9700_v0  ;;  %v12124_v9 = vand.u32 4294901760, %v13374_v20  ;;  %4854 = vmatprep.mubr.f32.mxu1 %v9700_v0  ;;  %v13382_v34 = vand.u32 4294901760, %v13376_v8  ;;  %v13390_v10 = vld [vmem:[#allocation39_spill] sm:$0xff]  ;;  %v13391_v49 = vld [vmem:[#allocation45_spill] sm:$0xff]  ;;  %v13402_v60 = vld [vmem:[#allocation210_spill] sm:$0xff] }
 0x28b   : > { %6203 = vmatpush1.bf16.msra.mxu0 %v9938_v38  ;;  %v13381_v38 = vand.u32 4294901760, %v13375_v13  ;;  %v13405_v22 = vld [vmem:[#allocation102_spill] sm:$0xff]  ;;  %v13417_v59 = vld [vmem:[#allocation160_spill] sm:$0xff]  ;;  %v13428_v30 = vand.u32 4294901760, %v10263_v31  ;;  %v13431_v32 = vand.u32 4294901760, %v10303_v53  ;;  %v13435_v31 = vand.u32 4294901760, %v10326_v54 }
 0x28c   : > { %6971 = vmatpush1.bf16.msra.mxu1 %v9940_v17  ;;  %6205 = vmatprep.subr.bf16.mxu0 %v9956_v47  ;;  %v13380_v17 = vand.u32 4294901760, %v13373_v36  ;;  %v10374_v21 = vsub.f32 %v13374_v20, %v12124_v9  ;;  %v10384_v43 = vsub.f32 %v13376_v8, %v13382_v34  ;;  %v10395_v9 = vsub.f32 %v13378_v52, %v12127_v61  ;;  %v13389_v34 = vld [vmem:[#allocation36_spill] sm:$0xff]  ;;  %v13393_v20 = vld [vmem:[#allocation51_spill] sm:$0xff] }
 0x28d   : > { %6973 = vmatprep.subr.bf16.mxu1 %v10028_v6  ;;  %v10379_v6 = vsub.f32 %v13375_v13, %v13381_v38  ;;  %v13384_v38 = vand.u32 4294901760, %v13379_v58  ;;  %v13394_v13 = vld [vmem:[#allocation57_spill] sm:$0xff]  ;;  %v13396_v52 = vld [vmem:[#allocation64_spill] sm:$0xff] }
 0x28e   : > { %v10369_v47 = vsub.f32 %v13373_v36, %v13380_v17  ;;  %v10389_v17 = vsub.f32 %v13377_v26, %v13383_v24  ;;  %v13388_v24 = vld [vmem:[#allocation31_spill] sm:$0xff]  ;;  %v13392_v36 = vld [vmem:[#allocation48_spill] sm:$0xff]  ;;  %v13424_v26 = vld [vmem:[#allocation186_spill] sm:$0xff]  ;;  %v2151_v15 = vand.u32 4294901760, %v10374_v21  ;;  %v13433_v21 = vand.u32 4294901760, %v10316_v35 }
 0x28f   : > { %6207 = vmatpush1.bf16.msra.mxu0 %v10038_v4  ;;  %v10400_v23 = vsub.f32 %v13379_v58, %v13384_v38  ;;  %v13386_v4 = vld [vmem:[#allocation25_spill] sm:$0xff]  ;;  %v13398_v8 = vld [vmem:[#allocation72_spill] sm:$0xff]  ;;  %v13418_v38 = vld [vmem:[#allocation162_spill] sm:$0xff]  ;;  %v13437_v53 = vand.u32 4294901760, %v13388_v24 }
 0x290   : > { %6975 = vmatpush1.bf16.msra.mxu1 %v10040_v42  ;;  %6209 = vmatprep.subr.bf16.mxu0 %v10049_v28  ;;  %v13387_v42 = vld [vmem:[#allocation27_spill] sm:$0xff]  ;;  %v13399_v28 = vld [vmem:[#allocation76_spill] sm:$0xff]  ;;  %v13422_v58 = vld [vmem:[#allocation177_spill] sm:$0xff]  ;;  %v4725_v61 = vand.u32 4294901760, %v10369_v47  ;;  %v13427_v45 = vand.u32 4294901760, %v13386_v4  ;;  %v4731_v47 = vand.u32 4294901760, %v10389_v17 }
 0x291   : > { %6977 = vmatprep.subr.bf16.mxu1 %v10051_v2  ;;  %v13395_v2 = vld [vmem:[#allocation201_spill] sm:$0xff]  ;;  %v13420_v0 = vld [vmem:[#allocation168_spill] sm:$0xff] }
 0x293   : > { %6211 = vmatpush1.bf16.msra.mxu0 %v10059_v14  ;;  %v13397_v14 = vld [vmem:[#allocation66_spill] sm:$0xff] }
 0x294   : > { %6979 = vmatpush1.bf16.msra.mxu1 %v10061_v39  ;;  %6213 = vmatprep.subr.bf16.mxu0 %v13395_v2  ;;  %v13406_v39 = vld [vmem:[#allocation105_spill] sm:$0xff]  ;;  %v4748_v2 = vsub.f32 %v13386_v4, %v13427_v45  ;;  %v13430_v45 = vand.u32 4294901760, %v10293_v29 }
 0x295   : > { %6981 = vmatprep.subr.bf16.mxu1 %v13402_v60  ;;  %v13416_v60 = vld [vmem:[#allocation153_spill] sm:$0xff] }
 0x296   : > { %v10499_v4 = vpack.c.bf16 %v13431_v32, %v13430_v45  ;;  %v13436_v32 = vand.u32 4294901760, %v13387_v42 }
 0x297   : > { %6215 = vmatpush1.bf16.msra.mxu0 %v13419_v5  ;;  %v4736_v5 = vsub.f32 %v13385_v19, %v13426_v25  ;;  %v13429_v25 = vand.u32 4294901760, %v10272_v57  ;;  %v2181_v57 = vand.u32 4294901760, %v10400_v23  ;;  %v12158_v23 = vand.u32 4294901760, %v13390_v10 }
 0x298   : > { %6983 = vmatpush1.bf16.msra.mxu1 %v10159_v18  ;;  %6217 = vmatprep.subr.bf16.mxu0 %v10161_v12  ;;  %v2163_v18 = vand.u32 4294901760, %v10379_v6  ;;  %v4719_v12 = vand.u32 4294901760, %v10384_v43  ;;  %v13434_v43 = vand.u32 4294901760, %v10321_v7  ;;  %v2174_v29 = vsub.f32 %v13387_v42, %v13436_v32  ;;  %v13443_v32 = vld [vmem:[#allocation78_spill] sm:$0xff] }
 0x299   : > { %6985 = vmatprep.subr.bf16.mxu1 %v10166_v11  ;;  %v10493_v19 = vpack.c.bf16 %v13429_v25, %v13428_v30  ;;  %v13432_v11 = vand.u32 4294901760, %v10308_v56  ;;  %v2169_v30 = vand.u32 4294901760, %v10395_v9  ;;  %v2186_v56 = vsub.f32 %v13388_v24, %v13437_v53 }
 0x29a   : > { %v10511_v17 = vpack.c.bf16 %v13435_v31, %v13434_v43  ;;  %v4737_v35 = vand.u32 4294901760, %v4736_v5  ;;  %v4749_v7 = vand.u32 4294901760, %v4748_v2  ;;  %v13439_v9 = vand.u32 4294901760, %v10332_v16  ;;  %v13442_v43 = vld [vmem:[#allocation212_spill] sm:$0xff] }
 0x29b   : > { %v10505_v6 = vpack.c.bf16 %v13433_v21, %v13432_v11  ;;  %6219 = vmatpush1.bf16.msra.mxu0 %v10168_v62  ;;  %v13438_v62 = vand.u32 4294901760, %v13389_v34  ;;  %v13440_v25 = vand.u32 4294901760, %v10337_v40  ;;  %v10541_v2 = vpack.c.bf16 %v2163_v18, %v2151_v15 }
 0x29c   : > { %6987 = vmatpush1.bf16.msra.mxu1 %v10170_v37  ;;  %6221 = vmatprep.subr.bf16.mxu0 %v10172_v3  ;;  %v13441_v37 = vand.u32 4294901760, %v10342_v48  ;;  %v10543_v5 = vpack.c.bf16 %v4731_v47, %v4719_v12  ;;  %v12153_v11 = vand.u32 4294901760, %v13391_v49  ;;  %v12152_v21 = vand.u32 4294901760, %v13392_v36 }
 0x29d   : > { %v10527_v54 = vsub.f32 %v13389_v34, %v13438_v62  ;;  %6989 = vmatprep.subr.bf16.mxu1 %v10174_v41  ;;  %v10535_v45 = vpack.c.bf16 %v13440_v25, %v13439_v9  ;;  %v12154_v41 = vand.u32 4294901760, %v13393_v20  ;;  %v12155_v16 = vand.u32 4294901760, %v13394_v13  ;;  %v13446_v9 = vld [vmem:[#allocation93_spill] sm:$0xff] }
 0x29e   : > { %v10539_v3 = vpack.c.bf16 %v4725_v61, %v13441_v37  ;;  %v10550_v40 = vpack.c.bf16 %v2181_v57, %v2169_v30  ;;  %v2175_v31 = vand.u32 4294901760, %v2174_v29  ;;  %v2187_v48 = vand.u32 4294901760, %v2186_v56  ;;  %v13444_v29 = vld [vmem:[#allocation88_spill] sm:$0xff] }
 0x29f   : > { %6223 = vmatpush1.bf16.msra.mxu0 %v13442_v43  ;;  %v12156_v61 = vand.u32 4294901760, %v13396_v52  ;;  %v10555_v15 = vpack.c.bf16 %v4749_v7, %v4737_v35  ;;  %v4743_v18 = vand.u32 4294901760, %v10527_v54  ;;  %v4754_v12 = vsub.f32 %v13390_v10, %v12158_v23  ;;  %v13445_v7 = vld [vmem:[#allocation213_spill] sm:$0xff]  ;;  %v13447_v37 = vld [vmem:[#allocation96_spill] sm:$0xff] }
 0x2a0   : > { %6991 = vmatpush1.bf16.msra.mxu1 %v10232_v1  ;;  %6225 = vmatprep.subr.bf16.mxu0 %v10244_v55  ;;  %v12157_v47 = vand.u32 4294901760, %v13397_v14  ;;  %v12159_v30 = vand.u32 4294901760, %v13398_v8  ;;  %v12160_v57 = vand.u32 4294901760, %v13399_v28  ;;  %v12162_v1 = vand.u32 4294901760, %v13443_v32 }
 0x2a1   : > { %6993 = vmatprep.subr.bf16.mxu1 %v10246_v63  ;;  %v12166_v55 = vand.u32 4294901760, %v13444_v29  ;;  %v2192_v53 = vsub.f32 %v13391_v49, %v12153_v11  ;;  %v2204_v56 = vsub.f32 %v13392_v36, %v12152_v21  ;;  %v4760_v63 = vsub.f32 %v13393_v20, %v12154_v41  ;;  %v13448_v21 = vld [vmem:[#allocation214_spill] sm:$0xff]  ;;  %v13449_v11 = vld [vmem:[#allocation215_spill] sm:$0xff] }
 0x2a2   : > { %v4772_v35 = vsub.f32 %v13394_v13, %v12155_v16  ;;  %v10580_v62 = vpack.c.bf16 %v2187_v48, %v2175_v31  ;;  %v2198_v54 = vsub.f32 %v13396_v52, %v12156_v61  ;;  %v12165_v25 = vand.u32 4294901760, %v13446_v9  ;;  %v13451_v31 = vld [vmem:[#allocation217_spill] sm:$0xff] }
 0x2a3   : > { %6227 = vmatpush1.bf16.msra.mxu0 %v13445_v7  ;;  %v4755_v41 = vand.u32 4294901760, %v4754_v12  ;;  %v2210_v16 = vsub.f32 %v13397_v14, %v12157_v47  ;;  %v13450_v7 = vld [vmem:[#allocation216_spill] sm:$0xff]  ;;  %v4766_v61 = vsub.f32 %v13398_v8, %v12159_v30  ;;  %v2228_v12 = vsub.f32 %v13444_v29, %v12166_v55  ;;  %v13459_v29 = vld [vmem:[#allocation126_spill] sm:$0xff] }
 0x2a4   : > { %6995 = vmatpush1.bf16.msra.mxu1 %v13448_v21  ;;  %6229 = vmatprep.subr.bf16.mxu0 %v13449_v11  ;;  %v4778_v21 = vsub.f32 %v13399_v28, %v12160_v57  ;;  %v2216_v11 = vsub.f32 %v13443_v32, %v12162_v1  ;;  %v2193_v47 = vand.u32 4294901760, %v2192_v53  ;;  %v2205_v23 = vand.u32 4294901760, %v2204_v56  ;;  %v13453_v1 = vld [vmem:[#allocation112_spill] sm:$0xff]  ;;  %v13454_v28 = vld [vmem:[#allocation218_spill] sm:$0xff] }
 0x2a5   : > { %6997 = vmatprep.subr.bf16.mxu1 %v13450_v7  ;;  %v4761_v48 = vand.u32 4294901760, %v4760_v63  ;;  %v4773_v7 = vand.u32 4294901760, %v4772_v35  ;;  %v2199_v43 = vand.u32 4294901760, %v2198_v54  ;;  %v4784_v30 = vsub.f32 %v13446_v9, %v12165_v25 }
 0x2a6   : > { %v13452_v57 = vand.u32 4294901760, %v13447_v37  ;;  %v2211_v53 = vand.u32 4294901760, %v2210_v16  ;;  %v13455_v56 = vand.u32 4294901760, %v13405_v22  ;;  %v13456_v35 = vand.u32 4294901760, %v13406_v39 }
 0x2a7   : > { %6231 = vmatpush1.bf16.msra.mxu0 %v13451_v31  ;;  %v13457_v31 = vld [vmem:[#allocation117_spill] sm:$0xff]  ;;  %v4779_v55 = vand.u32 4294901760, %v4778_v21  ;;  %v2217_v32 = vand.u32 4294901760, %v2216_v11  ;;  %v2229_v9 = vand.u32 4294901760, %v2228_v12  ;;  %v12187_v52 = vand.u32 4294901760, %v13459_v29 }
 0x2a8   : > { %v4796_v8 = vsub.f32 %v13447_v37, %v13452_v57  ;;  %6999 = vmatpush1.bf16.msra.mxu1 %v13454_v28  ;;  %6233 = vmatprep.subr.bf16.mxu0 %v10493_v19  ;;  %v2222_v63 = vsub.f32 %v13405_v22, %v13455_v56  ;;  %v2234_v54 = vsub.f32 %v13406_v39, %v13456_v35  ;;  %v4767_v57 = vand.u32 4294901760, %v4766_v61  ;;  %v13458_v19 = vld [vmem:[#allocation120_spill] sm:$0xff] }
 0x2a9   : > { %7001 = vmatprep.subr.bf16.mxu1 %v10499_v4  ;;  %v7010_v28 = vpack.c.bf16 %v4755_v41, %v4743_v18  ;;  %v6244_v37 = vpack.c.bf16 %v2205_v23, %v2193_v47  ;;  %v12188_v16 = vand.u32 4294901760, %v13458_v19  ;;  %v7012_v56 = vpack.c.bf16 %v4773_v7, %v4761_v48  ;;  %v13463_v48 = vld [vmem:[#allocation136_spill] sm:$0xff] }
 0x2aa   : > { %v4785_v22 = vand.u32 4294901760, %v4784_v30  ;;  %v4797_v14 = vand.u32 4294901760, %v4796_v8  ;;  %v13460_v35 = vand.u32 4294901760, %v13453_v1  ;;  %v6246_v4 = vpack.c.bf16 %v2211_v53, %v2199_v43  ;;  %v13462_v8 = vld [vmem:[#allocation132_spill] sm:$0xff] }
 0x2ab   : > { %6235 = vmatpush1.bf16.msra.mxu0 %v10505_v6  ;;  %v2223_v41 = vand.u32 4294901760, %v2222_v63  ;;  %v2235_v23 = vand.u32 4294901760, %v2234_v54  ;;  %v13461_v61 = vand.u32 4294901760, %v13457_v31  ;;  %v7014_v6 = vpack.c.bf16 %v4779_v55, %v4767_v57 }
 0x2ac   : > { %v4790_v25 = vsub.f32 %v13453_v1, %v13460_v35  ;;  %7003 = vmatpush1.bf16.msra.mxu1 %v10511_v17  ;;  %6237 = vmatprep.subr.bf16.mxu0 %v10535_v45  ;;  %v6248_v47 = vpack.c.bf16 %v2229_v9, %v2217_v32  ;;  %v12186_v30 = vand.u32 4294901760, %v13462_v8  ;;  %v12179_v21 = vand.u32 4294901760, %v13463_v48 }
 0x2ad   : > { %v4802_v18 = vsub.f32 %v13457_v31, %v13461_v61  ;;  %7005 = vmatprep.subr.bf16.mxu1 %v10539_v3  ;;  %v2240_v17 = vsub.f32 %v13458_v19, %v12188_v16  ;;  %v2252_v45 = vsub.f32 %v13459_v29, %v12187_v52  ;;  %v12177_v43 = vand.u32 4294901760, %v13413_v51  ;;  %v13493_v16 = vld [vmem:[#allocation155_spill] sm:$0xff] }
 0x2ae   : > { %v12176_v11 = vand.u32 4294901760, %v13414_v46  ;;  %v7016_v3 = vpack.c.bf16 %v4797_v14, %v4785_v22  ;;  %v4791_v32 = vand.u32 4294901760, %v4790_v25  ;;  %v12175_v55 = vand.u32 4294901760, %v13415_v27 }
 0x2af   : > { %6239 = vmatpush1.bf16.msra.mxu0 %v10541_v2  ;;  %v12173_v9 = vand.u32 4294901760, %v13416_v60  ;;  %v6250_v12 = vpack.c.bf16 %v2235_v23, %v2223_v41  ;;  %v4803_v7 = vand.u32 4294901760, %v4802_v18  ;;  %v12174_v53 = vand.u32 4294901760, %v13417_v59 }
 0x2b0   : > { %7007 = vmatpush1.bf16.msra.mxu1 %v10543_v5  ;;  %6241 = vmatprep.subr.bf16.mxu0 %v10550_v40  ;;  %v12178_v63 = vand.u32 4294901760, %v13418_v38  ;;  %v4808_v22 = vsub.f32 %v13462_v8, %v12186_v30  ;;  %v4820_v14 = vsub.f32 %v13463_v48, %v12179_v21  ;;  %v12180_v2 = vand.u32 4294901760, %v13420_v0  ;;  %v13491_v30 = vld [vmem:[#allocation149_spill] sm:$0xff] }
 0x2b1   : > { %7009 = vmatprep.subr.bf16.mxu1 %v10555_v15  ;;  %v12185_v5 = vand.u32 4294901760, %v13421_v44  ;;  %v2241_v40 = vand.u32 4294901760, %v2240_v17  ;;  %v2253_v25 = vand.u32 4294901760, %v2252_v45  ;;  %v2246_v54 = vsub.f32 %v13413_v51, %v12177_v43 }
 0x2b2   : > { %v2258_v15 = vsub.f32 %v13414_v46, %v12176_v11  ;;  %v4814_v57 = vsub.f32 %v13415_v27, %v12175_v55  ;;  %v4826_v35 = vsub.f32 %v13416_v60, %v12173_v9  ;;  %v12184_v41 = vand.u32 4294901760, %v13422_v58 }
 0x2b3   : > { %6243 = vmatpush1.bf16.msra.mxu0 %v10580_v62  ;;  %v12183_v23 = vand.u32 4294901760, %v13423_v50  ;;  %v2264_v61 = vsub.f32 %v13417_v59, %v12174_v53  ;;  %v2276_v62 = vsub.f32 %v13418_v38, %v12178_v63  ;;  %v12181_v18 = vand.u32 4294901760, %v13424_v26 }
 0x2b4   : > { %7011 = vmatpush1.bf16.msra.mxu1 %v7010_v28  ;;  %6245 = vmatprep.subr.bf16.mxu0 %v6244_v37  ;;  %v12182_v17 = vand.u32 4294901760, %v13425_v33  ;;  %v4809_v45 = vand.u32 4294901760, %v4808_v22  ;;  %v4821_v9 = vand.u32 4294901760, %v4820_v14  ;;  %v4832_v28 = vsub.f32 %v13420_v0, %v12180_v2 }
 0x2b5   : > { %7013 = vmatprep.subr.bf16.mxu1 %v7012_v56  ;;  %v4844_v37 = vsub.f32 %v13421_v44, %v12185_v5  ;;  %v7018_v53 = vpack.c.bf16 %v4803_v7, %v4791_v32  ;;  %v6252_v55 = vpack.c.bf16 %v2253_v25, %v2241_v40  ;;  %v2247_v11 = vand.u32 4294901760, %v2246_v54  ;;  %v13490_v5 = vld [vmem:[#allocation145_spill] sm:$0xff] }
 0x2b6   : > { %v2259_v43 = vand.u32 4294901760, %v2258_v15  ;;  %v4815_v63 = vand.u32 4294901760, %v4814_v57  ;;  %v4827_v21 = vand.u32 4294901760, %v4826_v35  ;;  %v2270_v56 = vsub.f32 %v13422_v58, %v12184_v41 }
 0x2b7   : > { %6247 = vmatpush1.bf16.msra.mxu0 %v6246_v4  ;;  %v2282_v22 = vsub.f32 %v13423_v50, %v12183_v23  ;;  %v2265_v14 = vand.u32 4294901760, %v2264_v61  ;;  %v2277_v2 = vand.u32 4294901760, %v2276_v62  ;;  %v4838_v32 = vsub.f32 %v13424_v26, %v12181_v18 }
 0x2b8   : > { %7015 = vmatpush1.bf16.msra.mxu1 %v7014_v6  ;;  %6249 = vmatprep.subr.bf16.mxu0 %v6248_v47  ;;  %v4850_v4 = vsub.f32 %v13425_v33, %v12182_v17  ;;  %v7020_v7 = vpack.c.bf16 %v4821_v9, %v4809_v45  ;;  %v4833_v40 = vand.u32 4294901760, %v4832_v28  ;;  %v4845_v25 = vand.u32 4294901760, %v4844_v37  ;;  %v13464_v9 = vld [vmem:[#allocation118_spill] sm:$0xff]  ;;  %v13465_v45 = vld [vmem:[#allocation119_spill] sm:$0xff] }
 0x2b9   : > { %7017 = vmatprep.subr.bf16.mxu1 %v7016_v3  ;;  %v6254_v54 = vpack.c.bf16 %v2259_v43, %v2247_v11  ;;  %v2271_v15 = vand.u32 4294901760, %v2270_v56  ;;  %v2283_v57 = vand.u32 4294901760, %v2282_v22  ;;  %v7022_v6 = vpack.c.bf16 %v4827_v21, %v4815_v63  ;;  %v13466_v43 = vld [vmem:[#allocation122_spill] sm:$0xff]  ;;  %v13467_v11 = vld [vmem:[#allocation123_spill] sm:$0xff]  ;;  %v13469_v21 = vld [vmem:[#allocation128_spill] sm:$0xff] }
 0x2ba   : > { %v6256_v47 = vpack.c.bf16 %v2277_v2, %v2265_v14  ;;  %v4839_v35 = vand.u32 4294901760, %v4838_v32  ;;  %v4851_v61 = vand.u32 4294901760, %v4850_v4  ;;  %v7024_v62 = vpack.c.bf16 %v4845_v25, %v4833_v40  ;;  %v13470_v63 = vld [vmem:[#allocation131_spill] sm:$0xff]  ;;  %v13471_v2 = vld [vmem:[#allocation133_spill] sm:$0xff]  ;;  %v13475_v4 = vld [vmem:[#allocation146_spill] sm:$0xff] }
 0x2bb   : > { %6251 = vmatpush1.bf16.msra.mxu0 %v6250_v12  ;;  %v6258_v18 = vpack.c.bf16 %v2283_v57, %v2271_v15  ;;  %v6260_v28 = vpack.c.bf16 %v13465_v45, %v13464_v9  ;;  %v7028_v12 = vpack.c.bf16 %v13467_v11, %v13466_v43  ;;  %v7030_v37 = vpack.c.bf16 %v13471_v2, %v13470_v63  ;;  %v13472_v56 = vld [vmem:[#allocation207_spill] sm:$0xff]  ;;  %v13476_v40 = vld [vmem:[#allocation189_spill] sm:$0xff]  ;;  %v13478_v25 = vld [vmem:[#allocation158_spill] sm:$0xff] }
 0x2bc   : > { %7019 = vmatpush1.bf16.msra.mxu1 %v7018_v53  ;;  %6253 = vmatprep.subr.bf16.mxu0 %v6252_v55  ;;  %v7026_v3 = vpack.c.bf16 %v4851_v61, %v4839_v35  ;;  %v13468_v55 = vld [vmem:[#allocation127_spill] sm:$0xff]  ;;  %v13479_v15 = vld [vmem:[#allocation161_spill] sm:$0xff]  ;;  %v13480_v57 = vld [vmem:[#allocation164_spill] sm:$0xff]  ;;  %v6272_v52 = vpack.c.bf16 %v13491_v30, %v13490_v5 }
 0x2bd   : > { %7021 = vmatprep.subr.bf16.mxu1 %v7020_v7  ;;  %v6262_v53 = vpack.c.bf16 %v13469_v21, %v13468_v55  ;;  %v13473_v22 = vld [vmem:[#allocation139_spill] sm:$0xff]  ;;  %v13487_v17 = vld [vmem:[#allocation110_spill] sm:$0xff]  ;;  %v13503_v5 = vld [vmem:[#allocation29_spill] sm:$0xff] }
 0x2be   : > { %v6264_v14 = vpack.c.bf16 %v13473_v22, %v13472_v56  ;;  %v13474_v32 = vld [vmem:[#allocation143_spill] sm:$0xff] }
 0x2bf   : > { %6255 = vmatpush1.bf16.msra.mxu0 %v6254_v54  ;;  %v7032_v7 = vpack.c.bf16 %v13475_v4, %v13474_v32  ;;  %v13482_v35 = vld [vmem:[#allocation99_spill] sm:$0xff] }
 0x2c0   : > { %7023 = vmatpush1.bf16.msra.mxu1 %v7022_v6  ;;  %6257 = vmatprep.subr.bf16.mxu0 %v6256_v47  ;;  %v7034_v6 = vpack.c.bf16 %v13480_v57, %v13479_v15  ;;  %v13481_v47 = vld [vmem:[#allocation167_spill] sm:$0xff] }
 0x2c1   : > { %7025 = vmatprep.subr.bf16.mxu1 %v7024_v62  ;;  %v6268_v61 = vpack.c.bf16 %v13482_v35, %v13481_v47  ;;  %v13483_v62 = vld [vmem:[#allocation104_spill] sm:$0xff] }
 0x2c3   : > { %6259 = vmatpush1.bf16.msra.mxu0 %v6258_v18  ;;  %v13477_v18 = vld [vmem:[#allocation152_spill] sm:$0xff] }
 0x2c4   : > { %7027 = vmatpush1.bf16.msra.mxu1 %v7026_v3  ;;  %6261 = vmatprep.subr.bf16.mxu0 %v6260_v28  ;;  %v6266_v54 = vpack.c.bf16 %v13478_v25, %v13477_v18  ;;  %v13484_v3 = vld [vmem:[#allocation106_spill] sm:$0xff] }
 0x2c5   : > { %7029 = vmatprep.subr.bf16.mxu1 %v7028_v12  ;;  %v7036_v28 = vpack.c.bf16 %v13484_v3, %v13483_v62  ;;  %v13485_v12 = vld [vmem:[#allocation114_spill] sm:$0xff]  ;;  %v13495_v62 = vld [vmem:[#allocation209_spill] sm:$0xff] }
 0x2c6   : > { %2288 = vmatmul.mubr.f32.vlgmr.msra.gmra.mrb[0].mxu0 %v13476_v40  ;;  %v13494_v3 = vld [vmem:[#allocation206_spill] sm:$0xff] }
 0x2c7   : > { %6263 = vmatpush1.bf16.msra.mxu0 %v6262_v53  ;;  %4856 = vmatmul.mubr.f32.vlgmr.msra.gmra.mrb[0].mxu1 %v13476_v40  ;;  %v13486_v53 = vld [vmem:[#allocation109_spill] sm:$0xff] }
 0x2c8   : > { %7031 = vmatpush1.bf16.msra.mxu1 %v7030_v37  ;;  %6265 = vmatprep.subr.bf16.mxu0 %v6264_v14  ;;  %v6270_v23 = vpack.c.bf16 %v13487_v17, %v13486_v53  ;;  %v13488_v37 = vld [vmem:[#allocation113_spill] sm:$0xff]  ;;  %v13489_v14 = vld [vmem:[#allocation115_spill] sm:$0xff]  ;;  %v13499_v53 = vld [vmem:[#allocation20_spill] sm:$0xff] }
 0x2c9   : > { %7033 = vmatprep.subr.bf16.mxu1 %v7032_v7  ;;  %2488 = vmatprep.mubr.f32.mxu0 %v13485_v12  ;;  %v7038_v41 = vpack.c.bf16 %v13489_v14, %v13488_v37  ;;  %v13492_v7 = vld [vmem:[#allocation151_spill] sm:$0xff]  ;;  %v13501_v37 = vld [vmem:[#allocation24_spill] sm:$0xff] }
 0x2ca   : > { %5056 = vmatprep.mubr.f32.mxu1 %v13485_v12  ;;  %v7040_v40 = vpack.c.bf16 %v13493_v16, %v13492_v7  ;;  %v6274_v12 = vpack.c.bf16 %v13495_v62, %v13494_v3  ;;  %v13497_v17 = vld [vmem:[#allocation15_spill] sm:$0xff]  ;;  %v13505_v62 = vld [vmem:[#allocation32_spill] sm:$0xff]  ;;  %v13507_v3 = vld [vmem:[#allocation37_spill] sm:$0xff] }
 0x2cb   : > { %6267 = vmatpush1.bf16.msra.mxu0 %v6266_v54  ;;  %v13496_v54 = vld [vmem:[#allocation14_spill] sm:$0xff]  ;;  %v13500_v14 = vld [vmem:[#allocation23_spill] sm:$0xff] }
 0x2cc   : > { %7035 = vmatpush1.bf16.msra.mxu1 %v7034_v6  ;;  %6269 = vmatprep.subr.bf16.mxu0 %v6268_v61  ;;  %v7042_v6 = vpack.c.bf16 %v13497_v17, %v13496_v54  ;;  %v13498_v61 = vld [vmem:[#allocation19_spill] sm:$0xff]  ;;  %v7044_v30 = vpack.c.bf16 %v13501_v37, %v13500_v14  ;;  %v13508_v17 = vld [vmem:[#allocation40_spill] sm:$0xff]  ;;  %v13509_v54 = vld [vmem:[#allocation41_spill] sm:$0xff] }
 0x2cd   : > { %7037 = vmatprep.subr.bf16.mxu1 %v7036_v28  ;;  %v6276_v35 = vpack.c.bf16 %v13499_v53, %v13498_v61  ;;  %v13502_v28 = vld [vmem:[#allocation28_spill] sm:$0xff]  ;;  %v7048_v53 = vpack.c.bf16 %v13509_v54, %v13508_v17  ;;  %v13511_v61 = vld [vmem:[#allocation46_spill] sm:$0xff] }
 0x2ce   : > { %v6278_v16 = vpack.c.bf16 %v13503_v5, %v13502_v28  ;;  %v13513_v5 = vld [vmem:[#allocation50_spill] sm:$0xff] }
 0x2cf   : > { %6271 = vmatpush1.bf16.msra.mxu0 %v6270_v23  ;;  %v13504_v23 = vld [vmem:[#allocation30_spill] sm:$0xff] }
 0x2d0   : > { %7039 = vmatpush1.bf16.msra.mxu1 %v7038_v41  ;;  %6273 = vmatprep.subr.bf16.mxu0 %v6272_v52  ;;  %v7046_v41 = vpack.c.bf16 %v13505_v62, %v13504_v23  ;;  %v13506_v52 = vld [vmem:[#allocation33_spill] sm:$0xff]  ;;  %v13515_v28 = vld [vmem:[#allocation54_spill] sm:$0xff]  ;;  %v13517_v23 = vld [vmem:[#allocation59_spill] sm:$0xff] }
 0x2d1   : > { %7041 = vmatprep.subr.bf16.mxu1 %v7040_v40  ;;  %v6280_v7 = vpack.c.bf16 %v13507_v3, %v13506_v52  ;;  %v13510_v40 = vld [vmem:[#allocation44_spill] sm:$0xff]  ;;  %v13516_v62 = vld [vmem:[#allocation58_spill] sm:$0xff]  ;;  %v13519_v52 = vld [vmem:[#allocation63_spill] sm:$0xff] }
 0x2d2   : > { %v6282_v37 = vpack.c.bf16 %v13511_v61, %v13510_v40  ;;  %v7052_v3 = vpack.c.bf16 %v13517_v23, %v13516_v62  ;;  %v13521_v61 = vld [vmem:[#allocation68_spill] sm:$0xff]  ;;  %v13523_v40 = vld [vmem:[#allocation73_spill] sm:$0xff] }
 0x2d3   : > { %6275 = vmatpush1.bf16.msra.mxu0 %v6274_v12  ;;  %v13512_v12 = vld [vmem:[#allocation49_spill] sm:$0xff] }
 0x2d4   : > { %7043 = vmatpush1.bf16.msra.mxu1 %v7042_v6  ;;  %6277 = vmatprep.subr.bf16.mxu0 %v6276_v35  ;;  %v7050_v6 = vpack.c.bf16 %v13513_v5, %v13512_v12  ;;  %v13514_v35 = vld [vmem:[#allocation53_spill] sm:$0xff]  ;;  %v13524_v5 = vld [vmem:[#allocation75_spill] sm:$0xff] }
 0x2d5   : > { %7045 = vmatprep.subr.bf16.mxu1 %v7044_v30  ;;  %v6284_v14 = vpack.c.bf16 %v13515_v28, %v13514_v35  ;;  %v13518_v30 = vld [vmem:[#allocation62_spill] sm:$0xff]  ;;  %v13525_v12 = vld [vmem:[#allocation77_spill] sm:$0xff] }
 0x2d6   : > { %v6286_v54 = vpack.c.bf16 %v13519_v52, %v13518_v30  ;;  %v7056_v28 = vpack.c.bf16 %v13525_v12, %v13524_v5  ;;  %v13527_v35 = vld [vmem:[#allocation82_spill] sm:$0xff]  ;;  %v13531_v30 = vld [vmem:[#allocation91_spill] sm:$0xff] }
 0x2d7   : > { %6279 = vmatpush1.bf16.msra.mxu0 %v6278_v16  ;;  %v13520_v16 = vld [vmem:[#allocation65_spill] sm:$0xff]  ;;  %v13529_v52 = vld [vmem:[#allocation86_spill] sm:$0xff] }
 0x2d8   : > { %7047 = vmatpush1.bf16.msra.mxu1 %v7046_v41  ;;  %6281 = vmatprep.subr.bf16.mxu0 %v6280_v7  ;;  %v7054_v41 = vpack.c.bf16 %v13521_v61, %v13520_v16  ;;  %v13522_v7 = vld [vmem:[#allocation71_spill] sm:$0xff]  ;;  %v13532_v61 = vld [vmem:[#allocation94_spill] sm:$0xff] }
 0x2d9   : > { %7049 = vmatprep.subr.bf16.mxu1 %v7048_v53  ;;  %v6288_v17 = vpack.c.bf16 %v13523_v40, %v13522_v7  ;;  %v13526_v53 = vld [vmem:[#allocation80_spill] sm:$0xff]  ;;  %v13533_v16 = vld [vmem:[#allocation95_spill] sm:$0xff] }
 0x2da   : > { %v6290_v23 = vpack.c.bf16 %v13527_v35, %v13526_v53  ;;  %v7060_v40 = vpack.c.bf16 %v13533_v16, %v13532_v61  ;;  %v13550_v16 = vld [vmem:[#allocation183_spill] sm:$0xff] }
 0x2db   : > { %6283 = vmatpush1.bf16.msra.mxu0 %v6282_v37  ;;  %v13528_v37 = vld [vmem:[#allocation85_spill] sm:$0xff] }
 0x2dc   : > { %7051 = vmatpush1.bf16.msra.mxu1 %v7050_v6  ;;  %6285 = vmatprep.subr.bf16.mxu0 %v6284_v14  ;;  %v7058_v6 = vpack.c.bf16 %v13529_v52, %v13528_v37  ;;  %v13530_v14 = vld [vmem:[#allocation89_spill] sm:$0xff]  ;;  %v13540_v52 = vld [vmem:[#allocation171_spill] sm:$0xff]  ;;  %v13541_v37 = vld [vmem:[#allocation170_spill] sm:$0xff] }
 0x2dd   : > { %7053 = vmatprep.subr.bf16.mxu1 %v7052_v3  ;;  %v6292_v62 = vpack.c.bf16 %v13531_v30, %v13530_v14  ;;  %v13534_v3 = vld [vmem:[#allocation101_spill] sm:$0xff]  ;;  %v13542_v53 = vpack.c.bf16 %v13540_v52, %v13541_v37  ;;  %v13544_v30 = vld [vmem:[#allocation175_spill] sm:$0xff] }
 0x2de   : > { %v13559_v37 = vld [vmem:[#allocation197_spill] sm:$0xff] }
 0x2df   : > { %6287 = vmatpush1.bf16.msra.mxu0 %v6286_v54  ;;  %v13535_v54 = vld [vmem:[#allocation97_spill] sm:$0xff] }
 0x2e0   : > { %7055 = vmatpush1.bf16.msra.mxu1 %v7054_v41  ;;  %6289 = vmatprep.subr.bf16.mxu0 %v6288_v17  ;;  %v13536_v12 = vpack.c.bf16 %v13534_v3, %v13535_v54  ;;  %v13537_v41 = vld [vmem:[#allocation140_spill] sm:$0xff]  ;;  %v13538_v17 = vld [vmem:[#allocation137_spill] sm:$0xff] }
 0x2e1   : > { %7057 = vmatprep.subr.bf16.mxu1 %v7056_v28  ;;  %v13539_v35 = vpack.c.bf16 %v13537_v41, %v13538_v17  ;;  %v13543_v28 = vld [vmem:[#allocation176_spill] sm:$0xff]  ;;  %v13556_v17 = vld [vmem:[#allocation193_spill] sm:$0xff] }
 0x2e2   : > { %v13545_v14 = vpack.c.bf16 %v13543_v28, %v13544_v30  ;;  %v13553_v54 = vld [vmem:[#allocation188_spill] sm:$0xff]  ;;  %v13562_v30 = vld [vmem:[#allocation202_spill] sm:$0xff] }
 0x2e3   : > { %6291 = vmatpush1.bf16.msra.mxu0 %v6290_v23  ;;  %v13546_v23 = vld [vmem:[#allocation181_spill] sm:$0xff] }
 0x2e4   : > { %7059 = vmatpush1.bf16.msra.mxu1 %v7058_v6  ;;  %6293 = vmatprep.subr.bf16.mxu0 %v6292_v62  ;;  %v13547_v6 = vld [vmem:[#allocation179_spill] sm:$0xff] }
 0x2e5   : > { %7061 = vmatprep.subr.bf16.mxu1 %v7060_v40  ;;  %v13548_v62 = vpack.c.bf16 %v13546_v23, %v13547_v6  ;;  %v13549_v40 = vld [vmem:[#allocation185_spill] sm:$0xff]  ;;  %v13565_v6 = vld [vmem:[#allocation16_spill] sm:$0xff] }
 0x2e6   : > { %v13551_v3 = vpack.c.bf16 %v13549_v40, %v13550_v16  ;;  %v13568_v16 = vld [vmem:[#allocation21_spill] sm:$0xff] }
 0x2e7   : > { %6295 = vmatpush1.bf16.msra.mxu0 %v13536_v12  ;;  %v13552_v12 = vld [vmem:[#allocation190_spill] sm:$0xff] }
 0x2e8   : > { %7063 = vmatpush1.bf16.msra.mxu1 %v13539_v35  ;;  %6297 = vmatprep.subr.bf16.mxu0 %v13542_v53  ;;  %v13554_v41 = vpack.c.bf16 %v13552_v12, %v13553_v54  ;;  %v13555_v35 = vld [vmem:[#allocation194_spill] sm:$0xff]  ;;  %v13558_v53 = vld [vmem:[#allocation199_spill] sm:$0xff] }
 0x2e9   : > { %7065 = vmatprep.subr.bf16.mxu1 %v13545_v14  ;;  %v13557_v52 = vpack.c.bf16 %v13555_v35, %v13556_v17  ;;  %v13560_v28 = vpack.c.bf16 %v13558_v53, %v13559_v37  ;;  %v13561_v14 = vld [vmem:[#allocation203_spill] sm:$0xff] }
 0x2ea   : > { %v13563_v23 = vpack.c.bf16 %v13561_v14, %v13562_v30 }
 0x2eb   : > { %6299 = vmatpush1.bf16.msra.mxu0 %v13548_v62  ;;  %v13564_v62 = vld [vmem:[#allocation204_spill] sm:$0xff] }
 0x2ec   : > { %7067 = vmatpush1.bf16.msra.mxu1 %v13551_v3  ;;  %6301 = vmatprep.subr.bf16.mxu0 %v13554_v41  ;;  %v13566_v40 = vpack.c.bf16 %v13564_v62, %v13565_v6  ;;  %v13567_v3 = vld [vmem:[#allocation25_spill] sm:$0xff]  ;;  %v13570_v41 = vpack.c.bf16 %v13388_v24, %v13387_v42  ;;  %v13575_v62 = vld [vmem:[#allocation64_spill] sm:$0xff]  ;;  %v13581_v42 = vld [vmem:[#allocation78_spill] sm:$0xff] }
 0x2ed   : > { %7069 = vmatprep.subr.bf16.mxu1 %v13557_v52  ;;  %v13569_v12 = vpack.c.bf16 %v13567_v3, %v13568_v16  ;;  %v13571_v52 = vpack.c.bf16 %v13390_v10, %v13389_v34  ;;  %v13578_v16 = vld [vmem:[#allocation72_spill] sm:$0xff]  ;;  %v13584_v34 = vld [vmem:[#allocation93_spill] sm:$0xff] }
 0x2ef   : > { %6303 = vmatpush1.bf16.msra.mxu0 %v13560_v28  ;;  %v13572_v28 = vpack.c.bf16 %v13392_v36, %v13391_v49 }
 0x2f0   : > { %7071 = vmatpush1.bf16.msra.mxu1 %v13563_v23  ;;  %6305 = vmatprep.subr.bf16.mxu0 %v13566_v40  ;;  %v13573_v23 = vpack.c.bf16 %v13394_v13, %v13393_v20  ;;  %v13574_v40 = vld [vmem:[#allocation66_spill] sm:$0xff] }
 0x2f1   : > { %7073 = vmatprep.subr.bf16.mxu1 %v13569_v12  ;;  %v13576_v3 = vpack.c.bf16 %v13574_v40, %v13575_v62  ;;  %v13577_v12 = vld [vmem:[#allocation76_spill] sm:$0xff] }
 0x2f2   : > { %v13579_v24 = vpack.c.bf16 %v13577_v12, %v13578_v16 }
 0x2f3   : > { %6307 = vmatpush1.bf16.msra.mxu0 %v13570_v41  ;;  %v13580_v41 = vld [vmem:[#allocation88_spill] sm:$0xff] }
 0x2f4   : > { %7075 = vmatpush1.bf16.msra.mxu1 %v13571_v52  ;;  %6309 = vmatprep.subr.bf16.mxu0 %v13572_v28  ;;  %v13582_v10 = vpack.c.bf16 %v13580_v41, %v13581_v42  ;;  %v13583_v52 = vld [vmem:[#allocation96_spill] sm:$0xff]  ;;  %v13586_v28 = vld [vmem:[#allocation102_spill] sm:$0xff] }
 0x2f5   : > { %7077 = vmatprep.subr.bf16.mxu1 %v13573_v23  ;;  %v13585_v36 = vpack.c.bf16 %v13583_v52, %v13584_v34  ;;  %v13587_v13 = vpack.c.bf16 %v13406_v39, %v13586_v28  ;;  %v13588_v23 = vpack.c.bf16 %v13457_v31, %v13453_v1 }
 0x2f7   : > { %6311 = vmatpush1.bf16.msra.mxu0 %v13576_v3  ;;  %v13589_v3 = vpack.c.bf16 %v13459_v29, %v13458_v19 }
 0x2f8   : > { %7079 = vmatpush1.bf16.msra.mxu1 %v13579_v24  ;;  %6313 = vmatprep.subr.bf16.mxu0 %v13582_v10  ;;  %v13590_v24 = vpack.c.bf16 %v13463_v48, %v13462_v8  ;;  %v13591_v10 = vpack.c.bf16 %v13414_v46, %v13413_v51 }
 0x2f9   : > { %7081 = vmatprep.subr.bf16.mxu1 %v13585_v36  ;;  %v13592_v36 = vpack.c.bf16 %v13416_v60, %v13415_v27  ;;  %v13598_v60 = vld [vmem:[#allocation121_spill] sm:$0xff] }
 0x2fb   : > { %6315 = vmatpush1.bf16.msra.mxu0 %v13587_v13  ;;  %v13593_v13 = vpack.c.bf16 %v13418_v38, %v13417_v59  ;;  %v13600_v38 = vld [vmem:[#allocation125_spill] sm:$0xff] }
 0x2fc   : > { %7083 = vmatpush1.bf16.msra.mxu1 %v13588_v23  ;;  %6317 = vmatprep.subr.bf16.mxu0 %v13589_v3  ;;  %v13594_v23 = vpack.c.bf16 %v13421_v44, %v13420_v0  ;;  %v13595_v3 = vpack.c.bf16 %v13423_v50, %v13422_v58  ;;  %v13603_v50 = vld [vmem:[#allocation142_spill] sm:$0xff] }
 0x2fd   : > { %7085 = vmatprep.subr.bf16.mxu1 %v13590_v24  ;;  %v13596_v24 = vpack.c.bf16 %v13425_v33, %v13424_v26  ;;  %v13608_v33 = vld [vmem:[#allocation103_spill] sm:$0xff]  ;;  %v13614_v26 = vld [vmem:[#allocation13_spill] sm:$0xff]  ;;  %v13665_v58 = vld [vmem:[#allocation174_spill] sm:$0xff] }
 0x2ff   : > { %6319 = vmatpush1.bf16.msra.mxu0 %v13591_v10  ;;  %v13597_v10 = vld [vmem:[#allocation163_spill] sm:$0xff] }
 0x300   : > { %7087 = vmatpush1.bf16.msra.mxu1 %v13592_v36  ;;  %6321 = vmatprep.subr.bf16.mxu0 %v13593_v13  ;;  %v13599_v36 = vld [vmem:[#allocation196_spill] sm:$0xff]  ;;  %v13601_v13 = vld [vmem:[#allocation130_spill] sm:$0xff] }
 0x301   : > { %7089 = vmatprep.subr.bf16.mxu1 %v13594_v23  ;;  %v13602_v23 = vld [vmem:[#allocation134_spill] sm:$0xff] }
 0x303   : > { %6323 = vmatpush1.bf16.msra.mxu0 %v13595_v3  ;;  %v13604_v3 = vld [vmem:[#allocation148_spill] sm:$0xff] }
 0x304   : > { %7091 = vmatpush1.bf16.msra.mxu1 %v13596_v24  ;;  %6325 = vmatprep.subr.bf16.mxu0 %v13597_v10  ;;  %v13605_v24 = vld [vmem:[#allocation157_spill] sm:$0xff]  ;;  %v13606_v10 = vld [vmem:[#allocation159_spill] sm:$0xff] }
 0x305   : > { %7093 = vmatprep.subr.bf16.mxu1 %v13598_v60  ;;  %v13607_v60 = vld [vmem:[#allocation166_spill] sm:$0xff] }
 0x306   : > { %2491 = vmatmul.mubr.f32.vlgmr.msra.gmra.mrb[0].mxu0 %v13599_v36 }
 0x307   : > { %6327 = vmatpush1.bf16.msra.mxu0 %v13600_v38  ;;  %5059 = vmatmul.mubr.f32.vlgmr.msra.gmra.mrb[0].mxu1 %v13599_v36  ;;  %v13609_v38 = vld [vmem:[#allocation107_spill] sm:$0xff] }
 0x308   : > { %7095 = vmatpush1.bf16.msra.mxu1 %v13601_v13  ;;  %6329 = vmatprep.subr.bf16.mxu0 %v13602_v23  ;;  %v13610_v36 = vld [vmem:[#allocation111_spill] sm:$0xff]  ;;  %v13611_v13 = vld [vmem:[#allocation116_spill] sm:$0xff] }
 0x309   : > { %7097 = vmatprep.subr.bf16.mxu1 %v13603_v50  ;;  %2628 = vmatprep.mubr.f32.mxu0 %v13604_v3  ;;  %v13612_v23 = vld [vmem:[#allocation147_spill] sm:$0xff]  ;;  %v13613_v50 = vld [vmem:[#allocation154_spill] sm:$0xff] }
 0x30a   : > { %5196 = vmatprep.mubr.f32.mxu1 %v13604_v3  ;;  %v13615_v3 = vld [vmem:[#allocation17_spill] sm:$0xff] }
 0x30b   : > { %6331 = vmatpush1.bf16.msra.mxu0 %v13605_v24  ;;  %v13616_v24 = vld [vmem:[#allocation22_spill] sm:$0xff] }
 0x30c   : > { %7099 = vmatpush1.bf16.msra.mxu1 %v13606_v10  ;;  %6333 = vmatprep.subr.bf16.mxu0 %v13607_v60  ;;  %v13617_v10 = vld [vmem:[#allocation26_spill] sm:$0xff]  ;;  %v13618_v60 = vld [vmem:[#allocation208_spill] sm:$0xff] }
 0x30d   : > { %7101 = vmatprep.subr.bf16.mxu1 %v13608_v33  ;;  %v13619_v33 = vld [vmem:[#allocation35_spill] sm:$0xff] }
 0x30f   : > { %6335 = vmatpush1.bf16.msra.mxu0 %v13609_v38  ;;  %v13620_v38 = vld [vmem:[#allocation38_spill] sm:$0xff] }
 0x310   : > { %7103 = vmatpush1.bf16.msra.mxu1 %v13610_v36  ;;  %6337 = vmatprep.subr.bf16.mxu0 %v13611_v13  ;;  %v13621_v36 = vld [vmem:[#allocation43_spill] sm:$0xff] }
 0x311   : > { %7105 = vmatprep.subr.bf16.mxu1 %v13612_v23  ;;  %v13622_v13 = vld [vmem:[#allocation47_spill] sm:$0xff]  ;;  %v13623_v23 = vld [vmem:[#allocation52_spill] sm:$0xff] }
 0x313   : > { %6339 = vmatpush1.bf16.msra.mxu0 %v13613_v50  ;;  %v13624_v50 = vld [vmem:[#allocation56_spill] sm:$0xff] }
 0x314   : > { %7107 = vmatpush1.bf16.msra.mxu1 %v13614_v26  ;;  %6341 = vmatprep.subr.bf16.mxu0 %v13615_v3  ;;  %v13625_v26 = vld [vmem:[#allocation61_spill] sm:$0xff]  ;;  %v13626_v3 = vld [vmem:[#allocation67_spill] sm:$0xff] }
 0x315   : > { %7109 = vmatprep.subr.bf16.mxu1 %v13616_v24  ;;  %v13627_v24 = vld [vmem:[#allocation70_spill] sm:$0xff] }
 0x317   : > { %6343 = vmatpush1.bf16.msra.mxu0 %v13617_v10  ;;  %v13628_v10 = vld [vmem:[#allocation74_spill] sm:$0xff] }
 0x318   : > { %7111 = vmatpush1.bf16.msra.mxu1 %v13618_v60  ;;  %6345 = vmatprep.subr.bf16.mxu0 %v13619_v33  ;;  %v13629_v60 = vld [vmem:[#allocation79_spill] sm:$0xff] }
 0x319   : > { %7113 = vmatprep.subr.bf16.mxu1 %v13620_v38  ;;  %v13630_v33 = vld [vmem:[#allocation83_spill] sm:$0xff] }
 0x31a   : > { %v13631_v38 = vld [vmem:[#allocation87_spill] sm:$0xff] }
 0x31b   : > { %6347 = vmatpush1.bf16.msra.mxu0 %v13621_v36  ;;  %v13632_v36 = vld [vmem:[#allocation92_spill] sm:$0xff] }
 0x31c   : > { %7115 = vmatpush1.bf16.msra.mxu1 %v13622_v13  ;;  %6349 = vmatprep.subr.bf16.mxu0 %v13623_v23  ;;  %v13633_v13 = vld [vmem:[#allocation98_spill] sm:$0xff]  ;;  %v13634_v23 = vld [vmem:[#allocation135_spill] sm:$0xff] }
 0x31d   : > { %7117 = vmatprep.subr.bf16.mxu1 %v13624_v50  ;;  %v13635_v50 = vld [vmem:[#allocation169_spill] sm:$0xff] }
 0x31f   : > { %6351 = vmatpush1.bf16.msra.mxu0 %v13625_v26  ;;  %v13636_v26 = vld [vmem:[#allocation173_spill] sm:$0xff] }
 0x320   : > { %7119 = vmatpush1.bf16.msra.mxu1 %v13626_v3  ;;  %6353 = vmatprep.subr.bf16.mxu0 %v13627_v24  ;;  %v13637_v3 = vld [vmem:[#allocation178_spill] sm:$0xff] }
 0x321   : > { %7121 = vmatprep.subr.bf16.mxu1 %v13628_v10  ;;  %v13638_v24 = vld [vmem:[#allocation182_spill] sm:$0xff]  ;;  %v13639_v10 = vld [vmem:[#allocation187_spill] sm:$0xff] }
 0x323   : > { %6355 = vmatpush1.bf16.msra.mxu0 %v13629_v60  ;;  %v13640_v60 = vld [vmem:[#allocation191_spill] sm:$0xff] }
 0x324   : > { %7123 = vmatpush1.bf16.msra.mxu1 %v13630_v33  ;;  %6357 = vmatprep.subr.bf16.mxu0 %v13631_v38  ;;  %v13641_v33 = vld [vmem:[#allocation195_spill] sm:$0xff]  ;;  %v13642_v38 = vld [vmem:[#allocation200_spill] sm:$0xff] }
 0x325   : > { %7125 = vmatprep.subr.bf16.mxu1 %v13632_v36  ;;  %v13643_v36 = vld [vmem:[#allocation12_spill] sm:$0xff] }
 0x327   : > { %6359 = vmatpush1.bf16.msra.mxu0 %v13633_v13  ;;  %v13644_v13 = vld [vmem:[#allocation18_spill] sm:$0xff] }
 0x328   : > { %7127 = vmatpush1.bf16.msra.mxu1 %v13634_v23  ;;  %6361 = vmatprep.subr.bf16.mxu0 %v13635_v50  ;;  %v13645_v23 = vld [vmem:[#allocation205_spill] sm:$0xff]  ;;  %v13646_v50 = vld [vmem:[#allocation34_spill] sm:$0xff] }
 0x329   : > { %7129 = vmatprep.subr.bf16.mxu1 %v13636_v26  ;;  %v13647_v26 = vld [vmem:[#allocation42_spill] sm:$0xff] }
 0x32b   : > { %6363 = vmatpush1.bf16.msra.mxu0 %v13637_v3  ;;  %v13648_v3 = vld [vmem:[#allocation55_spill] sm:$0xff] }
 0x32c   : > { %7131 = vmatpush1.bf16.msra.mxu1 %v13638_v24  ;;  %6365 = vmatprep.subr.bf16.mxu0 %v13639_v10  ;;  %v13649_v24 = vld [vmem:[#allocation60_spill] sm:$0xff]  ;;  %v13650_v10 = vld [vmem:[#allocation69_spill] sm:$0xff] }
 0x32d   : > { %7133 = vmatprep.subr.bf16.mxu1 %v13640_v60  ;;  %v13651_v60 = vld [vmem:[#allocation81_spill] sm:$0xff] }
 0x32f   : > { %6367 = vmatpush1.bf16.msra.mxu0 %v13641_v33  ;;  %v13652_v33 = vld [vmem:[#allocation90_spill] sm:$0xff] }
 0x330   : > { %7135 = vmatpush1.bf16.msra.mxu1 %v13642_v38  ;;  %6369 = vmatprep.subr.bf16.mxu0 %v13643_v36  ;;  %v13653_v38 = vld [vmem:[#allocation100_spill] sm:$0xff] }
 0x331   : > { %7137 = vmatprep.subr.bf16.mxu1 %v13644_v13  ;;  %v13654_v36 = vld [vmem:[#allocation108_spill] sm:$0xff] }
 0x332   : > { %v13655_v13 = vld [vmem:[#allocation124_spill] sm:$0xff] }
 0x333   : > { %6371 = vmatpush1.bf16.msra.mxu0 %v13645_v23  ;;  %v13656_v23 = vld [vmem:[#allocation129_spill] sm:$0xff] }
 0x334   : > { %7139 = vmatpush1.bf16.msra.mxu1 %v13646_v50  ;;  %6373 = vmatprep.subr.bf16.mxu0 %v13647_v26  ;;  %v13657_v50 = vld [vmem:[#allocation11_spill] sm:$0xff]  ;;  %v13658_v26 = vld [vmem:[#allocation150_spill] sm:$0xff] }
 0x335   : > { %7141 = vmatprep.subr.bf16.mxu1 %v13648_v3  ;;  %v13659_v3 = vld [vmem:[#allocation156_spill] sm:$0xff] }
 0x337   : > { %6375 = vmatpush1.bf16.msra.mxu0 %v13649_v24 }
 0x338   : > { %7143 = vmatpush1.bf16.msra.mxu1 %v13650_v10  ;;  %6377 = vmatprep.subr.bf16.mxu0 %v13651_v60  ;;  %v13660_v10 = vand.u32 4294901760, %v13464_v9  ;;  %v13661_v60 = vand.u32 4294901760, %v13465_v45  ;;  %v13669_v9 = vand.u32 4294901760, %v13470_v63  ;;  %v13677_v63 = vand.u32 4294901760, %v13478_v25  ;;  %v13687_v25 = vld [vmem:[#allocation84_spill] sm:$0xff] }
 0x339   : > { %7145 = vmatprep.subr.bf16.mxu1 %v13652_v33  ;;  %v13662_v33 = vld [vmem:[#allocation165_spill] sm:$0xff] }
 0x33a   : > { %v6388_v24 = vpack.c.bf16 %v13661_v60, %v13660_v10  ;;  %v13670_v60 = vand.u32 4294901760, %v13471_v2  ;;  %v13673_v10 = vand.u32 4294901760, %v13474_v32 }
 0x33b   : > { %6379 = vmatpush1.bf16.msra.mxu0 %v13653_v38  ;;  %v13663_v38 = vand.u32 4294901760, %v13466_v43  ;;  %v13671_v43 = vand.u32 4294901760, %v13472_v56  ;;  %v13678_v56 = vand.u32 4294901760, %v13479_v15  ;;  %v13688_v15 = vld [vmem:[#allocation109_spill] sm:$0xff] }
 0x33c   : > { %7147 = vmatpush1.bf16.msra.mxu1 %v13654_v36  ;;  %6381 = vmatprep.subr.bf16.mxu0 %v13655_v13  ;;  %v13664_v36 = vand.u32 4294901760, %v13467_v11  ;;  %v7158_v45 = vpack.c.bf16 %v13670_v60, %v13669_v9  ;;  %v13672_v11 = vand.u32 4294901760, %v13473_v22  ;;  %v13679_v22 = vand.u32 4294901760, %v13480_v57  ;;  %v13685_v60 = vld [vmem:[#allocation106_spill] sm:$0xff] }
 0x33d   : > { %7149 = vmatprep.subr.bf16.mxu1 %v13656_v23  ;;  %v13690_v57 = vld [vmem:[#allocation110_spill] sm:$0xff] }
 0x33e   : > { %v7156_v13 = vpack.c.bf16 %v13664_v36, %v13663_v38  ;;  %v6392_v38 = vpack.c.bf16 %v13672_v11, %v13671_v43  ;;  %v7162_v32 = vpack.c.bf16 %v13679_v22, %v13678_v56  ;;  %v13691_v11 = vand.u32 4294901760, %v13690_v57  ;;  %v13698_v56 = vld [vmem:[#allocation149_spill] sm:$0xff] }
 0x33f   : > { %6383 = vmatpush1.bf16.msra.mxu0 %v13657_v50  ;;  %v13666_v50 = vand.u32 4294901760, %v13468_v55  ;;  %v13674_v55 = vand.u32 4294901760, %v13475_v4  ;;  %v13680_v4 = vand.u32 4294901760, %v13481_v47  ;;  %v13692_v47 = vld [vmem:[#allocation113_spill] sm:$0xff]  ;;  %v13699_v22 = vand.u32 4294901760, %v13698_v56  ;;  %v13716_v56 = vld [vmem:[#allocation23_spill] sm:$0xff] }
 0x340   : > { %7151 = vmatpush1.bf16.msra.mxu1 %v13658_v26  ;;  %6385 = vmatprep.subr.bf16.mxu0 %v13659_v3  ;;  %v13667_v26 = vand.u32 4294901760, %v13469_v21  ;;  %v13668_v3 = vld [vmem:[#allocation184_spill] sm:$0xff] }
 0x341   : > { %7153 = vmatprep.subr.bf16.mxu1 %v13662_v33  ;;  %v7160_v21 = vpack.c.bf16 %v13674_v55, %v13673_v10  ;;  %v13693_v10 = vand.u32 4294901760, %v13692_v47  ;;  %v13694_v55 = vld [vmem:[#allocation115_spill] sm:$0xff] }
 0x342   : > { %v6390_v23 = vpack.c.bf16 %v13667_v26, %v13666_v50  ;;  %v13675_v50 = vld [vmem:[#allocation198_spill] sm:$0xff]  ;;  %v13676_v26 = vand.u32 4294901760, %v13477_v18  ;;  %v13686_v18 = vand.u32 4294901760, %v13685_v60 }
 0x343   : > { %6387 = vmatpush1.bf16.msra.mxu0 %v13665_v58  ;;  %v13704_v60 = vld [vmem:[#allocation206_spill] sm:$0xff] }
 0x344   : > { %7155 = vmatpush1.bf16.msra.mxu1 %v13668_v3  ;;  %6389 = vmatprep.subr.bf16.mxu0 %v6388_v24  ;;  %v6394_v2 = vpack.c.bf16 %v13677_v63, %v13676_v26  ;;  %v13696_v26 = vld [vmem:[#allocation145_spill] sm:$0xff] }
 0x345   : > { %7157 = vmatprep.subr.bf16.mxu1 %v7156_v13  ;;  %v13681_v13 = vld [vmem:[#allocation99_spill] sm:$0xff]  ;;  %v13697_v63 = vand.u32 4294901760, %v13696_v26 }
 0x346   : > { %2632 = vmatmul.mubr.f32.vlgmr.msra.gmra.mrb[0].mxu0 %v13675_v50  ;;  %v13682_v24 = vand.u32 4294901760, %v13681_v13  ;;  %v13700_v13 = vld [vmem:[#allocation151_spill] sm:$0xff] }
 0x347   : > { %6391 = vmatpush1.bf16.msra.mxu0 %v6390_v23  ;;  %5200 = vmatmul.mubr.f32.vlgmr.msra.gmra.mrb[0].mxu1 %v13675_v50  ;;  %v13683_v23 = vld [vmem:[#allocation104_spill] sm:$0xff] }
 0x348   : > { %7159 = vmatpush1.bf16.msra.mxu1 %v7158_v45  ;;  %6393 = vmatprep.subr.bf16.mxu0 %v6392_v38  ;;  %v6396_v36 = vpack.c.bf16 %v13682_v24, %v13680_v4  ;;  %v13684_v9 = vand.u32 4294901760, %v13683_v23  ;;  %v13689_v45 = vand.u32 4294901760, %v13688_v15  ;;  %v6400_v4 = vpack.c.bf16 %v13699_v22, %v13697_v63  ;;  %v13702_v24 = vld [vmem:[#allocation155_spill] sm:$0xff]  ;;  %v13718_v22 = vld [vmem:[#allocation24_spill] sm:$0xff] }
 0x349   : > { %7161 = vmatprep.subr.bf16.mxu1 %v7160_v21  ;;  %2895 = vmatprep.mubr.f32.mxu0 %v13687_v25  ;;  %v13695_v21 = vand.u32 4294901760, %v13694_v55  ;;  %v13703_v23 = vand.u32 4294901760, %v13702_v24  ;;  %v13712_v55 = vld [vmem:[#allocation19_spill] sm:$0xff]  ;;  %v13720_v24 = vld [vmem:[#allocation28_spill] sm:$0xff] }
 0x34a   : > { %v7164_v43 = vpack.c.bf16 %v13686_v18, %v13684_v9  ;;  %5463 = vmatprep.mubr.f32.mxu1 %v13687_v25  ;;  %v6398_v38 = vpack.c.bf16 %v13691_v11, %v13689_v45  ;;  %v13708_v45 = vld [vmem:[#allocation14_spill] sm:$0xff]  ;;  %v13710_v11 = vld [vmem:[#allocation15_spill] sm:$0xff] }
 0x34b   : > { %6395 = vmatpush1.bf16.msra.mxu0 %v6394_v2  ;;  %v7166_v50 = vpack.c.bf16 %v13695_v21, %v13693_v10  ;;  %v13701_v2 = vand.u32 4294901760, %v13700_v13  ;;  %v13709_v57 = vand.u32 4294901760, %v13708_v45  ;;  %v13711_v47 = vand.u32 4294901760, %v13710_v11  ;;  %v13714_v21 = vld [vmem:[#allocation20_spill] sm:$0xff]  ;;  %v13728_v11 = vld [vmem:[#allocation33_spill] sm:$0xff] }
 0x34c   : > { %7163 = vmatpush1.bf16.msra.mxu1 %v7162_v32  ;;  %6397 = vmatprep.subr.bf16.mxu0 %v6396_v36  ;;  %v13705_v32 = vand.u32 4294901760, %v13704_v60  ;;  %v13706_v36 = vld [vmem:[#allocation209_spill] sm:$0xff]  ;;  %v13715_v26 = vand.u32 4294901760, %v13714_v21  ;;  %v13719_v13 = vand.u32 4294901760, %v13718_v22  ;;  %v13732_v21 = vld [vmem:[#allocation40_spill] sm:$0xff] }
 0x34d   : > { %7165 = vmatprep.subr.bf16.mxu1 %v7164_v43  ;;  %v7168_v9 = vpack.c.bf16 %v13703_v23, %v13701_v2  ;;  %v13707_v18 = vand.u32 4294901760, %v13706_v36  ;;  %v7170_v10 = vpack.c.bf16 %v13711_v47, %v13709_v57  ;;  %v13713_v43 = vand.u32 4294901760, %v13712_v55  ;;  %v13730_v47 = vld [vmem:[#allocation37_spill] sm:$0xff]  ;;  %v13736_v22 = vld [vmem:[#allocation44_spill] sm:$0xff] }
 0x34e   : > { %v13731_v55 = vand.u32 4294901760, %v13730_v47  ;;  %v13748_v47 = vld [vmem:[#allocation58_spill] sm:$0xff] }
 0x34f   : > { %6399 = vmatpush1.bf16.msra.mxu0 %v6398_v38  ;;  %v6402_v15 = vpack.c.bf16 %v13707_v18, %v13705_v32  ;;  %v6404_v63 = vpack.c.bf16 %v13715_v26, %v13713_v43  ;;  %v13717_v38 = vand.u32 4294901760, %v13716_v56  ;;  %v13724_v32 = vld [vmem:[#allocation30_spill] sm:$0xff]  ;;  %v13726_v18 = vld [vmem:[#allocation32_spill] sm:$0xff]  ;;  %v13734_v26 = vld [vmem:[#allocation41_spill] sm:$0xff] }
 0x350   : > { %7167 = vmatpush1.bf16.msra.mxu1 %v7166_v50  ;;  %6401 = vmatprep.subr.bf16.mxu0 %v6400_v4  ;;  %v13721_v50 = vand.u32 4294901760, %v13720_v24  ;;  %v13722_v4 = vld [vmem:[#allocation29_spill] sm:$0xff]  ;;  %v13725_v36 = vand.u32 4294901760, %v13724_v32  ;;  %v13727_v45 = vand.u32 4294901760, %v13726_v18  ;;  %v13735_v56 = vand.u32 4294901760, %v13734_v26  ;;  %v13752_v26 = vld [vmem:[#allocation62_spill] sm:$0xff] }
 0x351   : > { %7169 = vmatprep.subr.bf16.mxu1 %v7168_v9  ;;  %v7172_v2 = vpack.c.bf16 %v13719_v13, %v13717_v38  ;;  %v13723_v23 = vand.u32 4294901760, %v13722_v4  ;;  %v13729_v9 = vand.u32 4294901760, %v13728_v11  ;;  %v13744_v18 = vld [vmem:[#allocation53_spill] sm:$0xff] }
 0x352   : > { %v7174_v57 = vpack.c.bf16 %v13727_v45, %v13725_v36  ;;  %v13746_v45 = vld [vmem:[#allocation54_spill] sm:$0xff] }
 0x353   : > { %6403 = vmatpush1.bf16.msra.mxu0 %v6402_v15  ;;  %v6406_v60 = vpack.c.bf16 %v13723_v23, %v13721_v50  ;;  %v6408_v43 = vpack.c.bf16 %v13731_v55, %v13729_v9  ;;  %v13733_v15 = vand.u32 4294901760, %v13732_v21  ;;  %v13740_v50 = vld [vmem:[#allocation49_spill] sm:$0xff]  ;;  %v13742_v23 = vld [vmem:[#allocation50_spill] sm:$0xff]  ;;  %v13747_v11 = vand.u32 4294901760, %v13746_v45  ;;  %v13750_v55 = vld [vmem:[#allocation59_spill] sm:$0xff] }
 0x354   : > { %7171 = vmatpush1.bf16.msra.mxu1 %v7170_v10  ;;  %6405 = vmatprep.subr.bf16.mxu0 %v6404_v63  ;;  %v13737_v10 = vand.u32 4294901760, %v13736_v22  ;;  %v13738_v63 = vld [vmem:[#allocation46_spill] sm:$0xff]  ;;  %v13741_v4 = vand.u32 4294901760, %v13740_v50  ;;  %v13743_v32 = vand.u32 4294901760, %v13742_v23  ;;  %v13751_v21 = vand.u32 4294901760, %v13750_v55  ;;  %v13761_v23 = vld [vmem:[#allocation73_spill] sm:$0xff] }
 0x355   : > { %7173 = vmatprep.subr.bf16.mxu1 %v7172_v2  ;;  %v7176_v38 = vpack.c.bf16 %v13735_v56, %v13733_v15  ;;  %v13739_v13 = vand.u32 4294901760, %v13738_v63  ;;  %v13745_v2 = vand.u32 4294901760, %v13744_v18 }
 0x356   : > { %v7178_v36 = vpack.c.bf16 %v13743_v32, %v13741_v4  ;;  %v13762_v32 = vand.u32 4294901760, %v13761_v23  ;;  %v13781_v23 = vld [vmem:[#allocation97_spill] sm:$0xff] }
 0x357   : > { %6407 = vmatpush1.bf16.msra.mxu0 %v6406_v60  ;;  %v6410_v24 = vpack.c.bf16 %v13739_v13, %v13737_v10  ;;  %v6412_v9 = vpack.c.bf16 %v13747_v11, %v13745_v2  ;;  %v13749_v60 = vand.u32 4294901760, %v13748_v47  ;;  %v13756_v10 = vld [vmem:[#allocation65_spill] sm:$0xff]  ;;  %v13758_v13 = vld [vmem:[#allocation68_spill] sm:$0xff] }
 0x358   : > { %7175 = vmatpush1.bf16.msra.mxu1 %v7174_v57  ;;  %6409 = vmatprep.subr.bf16.mxu0 %v6408_v43  ;;  %v13753_v57 = vand.u32 4294901760, %v13752_v26  ;;  %v13754_v43 = vld [vmem:[#allocation63_spill] sm:$0xff]  ;;  %v13757_v63 = vand.u32 4294901760, %v13756_v10  ;;  %v13759_v50 = vand.u32 4294901760, %v13758_v13  ;;  %v13764_v2 = vld [vmem:[#allocation77_spill] sm:$0xff]  ;;  %v13766_v47 = vld [vmem:[#allocation80_spill] sm:$0xff] }
 0x359   : > { %7177 = vmatprep.subr.bf16.mxu1 %v7176_v38  ;;  %v7180_v15 = vpack.c.bf16 %v13751_v21, %v13749_v60  ;;  %v13755_v56 = vand.u32 4294901760, %v13754_v43  ;;  %v13760_v38 = vand.u32 4294901760, %v13522_v7  ;;  %v13765_v45 = vand.u32 4294901760, %v13764_v2  ;;  %v13770_v21 = vld [vmem:[#allocation85_spill] sm:$0xff]  ;;  %v13772_v7 = vld [vmem:[#allocation86_spill] sm:$0xff]  ;;  %v13776_v10 = vld [vmem:[#allocation91_spill] sm:$0xff] }
 0x35a   : > { %v7182_v4 = vpack.c.bf16 %v13759_v50, %v13757_v63  ;;  %v13771_v26 = vand.u32 4294901760, %v13770_v21  ;;  %v13779_v13 = vld [vmem:[#allocation95_spill] sm:$0xff]  ;;  %v13785_v2 = vld [vmem:[#allocation137_spill] sm:$0xff] }
 0x35b   : > { %6411 = vmatpush1.bf16.msra.mxu0 %v6410_v24  ;;  %v6414_v22 = vpack.c.bf16 %v13755_v56, %v13753_v57  ;;  %v6416_v18 = vpack.c.bf16 %v13762_v32, %v13760_v38  ;;  %v13763_v24 = vand.u32 4294901760, %v13524_v5  ;;  %v13773_v57 = vand.u32 4294901760, %v13772_v7  ;;  %v13774_v56 = vld [vmem:[#allocation89_spill] sm:$0xff]  ;;  %v13791_v21 = vld [vmem:[#allocation171_spill] sm:$0xff] }
 0x35c   : > { %7179 = vmatpush1.bf16.msra.mxu1 %v7178_v36  ;;  %6413 = vmatprep.subr.bf16.mxu0 %v6412_v9  ;;  %v13767_v36 = vand.u32 4294901760, %v13766_v47  ;;  %v13768_v9 = vld [vmem:[#allocation82_spill] sm:$0xff]  ;;  %v13777_v5 = vand.u32 4294901760, %v13776_v10  ;;  %v13780_v50 = vand.u32 4294901760, %v13779_v13  ;;  %v13783_v32 = vld [vmem:[#allocation101_spill] sm:$0xff]  ;;  %v13787_v47 = vld [vmem:[#allocation140_spill] sm:$0xff] }
 0x35d   : > { %7181 = vmatprep.subr.bf16.mxu1 %v7180_v15  ;;  %v7184_v11 = vpack.c.bf16 %v13765_v45, %v13763_v24  ;;  %v13769_v60 = vand.u32 4294901760, %v13768_v9  ;;  %v7186_v43 = vpack.c.bf16 %v13773_v57, %v13771_v26  ;;  %v13775_v15 = vand.u32 4294901760, %v13774_v56  ;;  %v13793_v7 = vld [vmem:[#allocation175_spill] sm:$0xff]  ;;  %v13795_v57 = vld [vmem:[#allocation176_spill] sm:$0xff] }
 0x35e   : > { %v13786_v45 = vand.u32 4294901760, %v13785_v2  ;;  %v13796_v56 = vand.u32 4294901760, %v13795_v57  ;;  %v13797_v10 = vld [vmem:[#allocation179_spill] sm:$0xff] }
 0x35f   : > { %6415 = vmatpush1.bf16.msra.mxu0 %v6414_v22  ;;  %v6418_v55 = vpack.c.bf16 %v13769_v60, %v13767_v36  ;;  %v6420_v63 = vpack.c.bf16 %v13777_v5, %v13775_v15  ;;  %v13778_v22 = vand.u32 4294901760, %v13532_v61  ;;  %v13788_v36 = vand.u32 4294901760, %v13787_v47  ;;  %v13789_v60 = vld [vmem:[#allocation170_spill] sm:$0xff]  ;;  %v13799_v5 = vld [vmem:[#allocation181_spill] sm:$0xff]  ;;  %v13801_v13 = vld [vmem:[#allocation183_spill] sm:$0xff] }
 0x360   : > { %7183 = vmatpush1.bf16.msra.mxu1 %v7182_v4  ;;  %6417 = vmatprep.subr.bf16.mxu0 %v6416_v18  ;;  %v13782_v4 = vand.u32 4294901760, %v13781_v23  ;;  %v13784_v18 = vand.u32 4294901760, %v13783_v32  ;;  %v13792_v61 = vand.u32 4294901760, %v13791_v21  ;;  %v13803_v23 = vld [vmem:[#allocation185_spill] sm:$0xff]  ;;  %v13809_v47 = vand.u32 4294901760, %v13555_v35 }
 0x361   : > { %7185 = vmatprep.subr.bf16.mxu1 %v7184_v11  ;;  %v7188_v38 = vpack.c.bf16 %v13780_v50, %v13778_v22  ;;  %v7190_v9 = vpack.c.bf16 %v13788_v36, %v13786_v45  ;;  %v13790_v11 = vand.u32 4294901760, %v13789_v60  ;;  %v13802_v50 = vand.u32 4294901760, %v13801_v13  ;;  %v13817_v35 = vld [vmem:[#allocation21_spill] sm:$0xff] }
 0x362   : > { %v6422_v24 = vpack.c.bf16 %v13784_v18, %v13782_v4  ;;  %v13804_v4 = vand.u32 4294901760, %v13803_v23  ;;  %v13806_v18 = vld [vmem:[#allocation190_spill] sm:$0xff]  ;;  %v13811_v60 = vand.u32 4294901760, %v13558_v53  ;;  %v13812_v21 = vand.u32 4294901760, %v13562_v30  ;;  %v13821_v53 = vld [vmem:[#allocation27_spill] sm:$0xff]  ;;  %v13830_v23 = vld [vmem:[#allocation48_spill] sm:$0xff] }
 0x363   : > { %6419 = vmatpush1.bf16.msra.mxu0 %v6418_v55  ;;  %v6424_v26 = vpack.c.bf16 %v13792_v61, %v13790_v11  ;;  %v13794_v55 = vand.u32 4294901760, %v13793_v7  ;;  %v13807_v2 = vand.u32 4294901760, %v13806_v18  ;;  %v13815_v7 = vld [vmem:[#allocation204_spill] sm:$0xff]  ;;  %v13818_v57 = vand.u32 4294901760, %v13817_v35  ;;  %v13833_v18 = vld [vmem:[#allocation57_spill] sm:$0xff] }
 0x364   : > { %7187 = vmatpush1.bf16.msra.mxu1 %v7186_v43  ;;  %6421 = vmatprep.subr.bf16.mxu0 %v6420_v63  ;;  %v13798_v43 = vand.u32 4294901760, %v13797_v10  ;;  %v13800_v63 = vand.u32 4294901760, %v13799_v5  ;;  %v7194_v32 = vpack.c.bf16 %v13804_v4, %v13802_v50  ;;  %v13822_v10 = vand.u32 4294901760, %v13821_v53 }
 0x365   : > { %7189 = vmatprep.subr.bf16.mxu1 %v7188_v38  ;;  %v7192_v15 = vpack.c.bf16 %v13796_v56, %v13794_v55  ;;  %v13805_v38 = vand.u32 4294901760, %v13553_v54  ;;  %v13813_v54 = vand.u32 4294901760, %v13561_v14  ;;  %v13819_v56 = vld [vmem:[#allocation25_spill] sm:$0xff]  ;;  %v13825_v14 = vld [vmem:[#allocation36_spill] sm:$0xff]  ;;  %v13829_v50 = vand.u32 4294901760, %v13391_v49 }
 0x366   : > { %v6426_v22 = vpack.c.bf16 %v13800_v63, %v13798_v43  ;;  %v13823_v43 = vld [vmem:[#allocation31_spill] sm:$0xff]  ;;  %v13826_v63 = vand.u32 4294901760, %v13825_v14  ;;  %v13831_v4 = vand.u32 4294901760, %v13830_v23  ;;  %v13838_v49 = vand.u32 4294901760, %v13577_v12  ;;  %v13874_v23 = vld [vmem:[#allocation134_spill] sm:$0xff] }
 0x367   : > { %6423 = vmatpush1.bf16.msra.mxu0 %v6422_v24  ;;  %v6428_v45 = vpack.c.bf16 %v13807_v2, %v13805_v38  ;;  %v13808_v24 = vand.u32 4294901760, %v13556_v17  ;;  %v7198_v61 = vpack.c.bf16 %v13813_v54, %v13812_v21  ;;  %v13816_v17 = vand.u32 4294901760, %v13815_v7 }
 0x368   : > { %7191 = vmatpush1.bf16.msra.mxu1 %v7190_v9  ;;  %6425 = vmatprep.subr.bf16.mxu0 %v6424_v26  ;;  %v13810_v9 = vand.u32 4294901760, %v13559_v37  ;;  %v13814_v26 = vand.u32 4294901760, %v13565_v6  ;;  %v13820_v37 = vand.u32 4294901760, %v13819_v56  ;;  %v13824_v5 = vand.u32 4294901760, %v13823_v43  ;;  %v13827_v6 = vld [vmem:[#allocation39_spill] sm:$0xff]  ;;  %v13863_v43 = vld [vmem:[#allocation180_spill] sm:$0xff] }
 0x369   : > { %7193 = vmatprep.subr.bf16.mxu1 %v7192_v15  ;;  %v7196_v36 = vpack.c.bf16 %v13809_v47, %v13808_v24  ;;  %v13832_v38 = vand.u32 4294901760, %v13393_v20  ;;  %v13834_v2 = vand.u32 4294901760, %v13833_v18  ;;  %v13835_v24 = vand.u32 4294901760, %v13575_v62  ;;  %v13878_v18 = vld [vmem:[#allocation166_spill] sm:$0xff] }
 0x36a   : > { %v6430_v11 = vpack.c.bf16 %v13811_v60, %v13810_v9  ;;  %v6432_v55 = vpack.c.bf16 %v13816_v17, %v13814_v26  ;;  %v7200_v15 = vpack.c.bf16 %v13820_v37, %v13818_v57  ;;  %v6434_v30 = vpack.c.bf16 %v13824_v5, %v13822_v10  ;;  %v13857_v37 = vld [vmem:[#allocation162_spill] sm:$0xff] }
 0x36b   : > { %6427 = vmatpush1.bf16.msra.mxu0 %v6426_v22  ;;  %v13828_v22 = vand.u32 4294901760, %v13827_v6  ;;  %v13836_v47 = vand.u32 4294901760, %v13574_v40  ;;  %v13837_v9 = vand.u32 4294901760, %v13578_v16  ;;  %v13840_v20 = vand.u32 4294901760, %v13580_v41 }
 0x36c   : > { %7195 = vmatpush1.bf16.msra.mxu1 %v7194_v32  ;;  %6429 = vmatprep.subr.bf16.mxu0 %v6428_v45  ;;  %v6436_v32 = vpack.c.bf16 %v13831_v4, %v13829_v50  ;;  %v7204_v45 = vpack.c.bf16 %v13834_v2, %v13832_v38  ;;  %v13841_v54 = vand.u32 4294901760, %v13584_v34  ;;  %v13842_v62 = vand.u32 4294901760, %v13583_v52  ;;  %v13873_v50 = vld [vmem:[#allocation130_spill] sm:$0xff]  ;;  %v13877_v38 = vld [vmem:[#allocation159_spill] sm:$0xff] }
 0x36d   : > { %7197 = vmatprep.subr.bf16.mxu1 %v7196_v36  ;;  %v7202_v13 = vpack.c.bf16 %v13828_v22, %v13826_v63  ;;  %v6438_v36 = vpack.c.bf16 %v13836_v47, %v13835_v24  ;;  %v7206_v60 = vpack.c.bf16 %v13838_v49, %v13837_v9  ;;  %v13843_v40 = vand.u32 4294901760, %v13586_v28  ;;  %v13871_v22 = vld [vmem:[#allocation189_spill] sm:$0xff]  ;;  %v13875_v4 = vld [vmem:[#allocation142_spill] sm:$0xff]  ;;  %v13879_v2 = vld [vmem:[#allocation103_spill] sm:$0xff] }
 0x36e   : > { %v13844_v26 = vand.u32 4294901760, %v13406_v39  ;;  %v13845_v12 = vand.u32 4294901760, %v13453_v1  ;;  %v13847_v7 = vand.u32 4294901760, %v13458_v19  ;;  %v13848_v34 = vand.u32 4294901760, %v13459_v29  ;;  %v13854_v19 = vld [vmem:[#allocation153_spill] sm:$0xff]  ;;  %v13881_v24 = vld [vmem:[#allocation111_spill] sm:$0xff] }
 0x36f   : > { %6431 = vmatpush1.bf16.msra.mxu0 %v6430_v11  ;;  %v13839_v11 = vand.u32 4294901760, %v13581_v42  ;;  %v13846_v42 = vand.u32 4294901760, %v13457_v31  ;;  %v13849_v52 = vand.u32 4294901760, %v13462_v8  ;;  %v13850_v28 = vand.u32 4294901760, %v13463_v48  ;;  %v13882_v47 = vld [vmem:[#allocation116_spill] sm:$0xff]  ;;  %v13884_v9 = vld [vmem:[#allocation154_spill] sm:$0xff] }
 0x370   : > { %7199 = vmatpush1.bf16.msra.mxu1 %v7198_v61  ;;  %6433 = vmatprep.subr.bf16.mxu0 %v6432_v55  ;;  %v7208_v61 = vpack.c.bf16 %v13842_v62, %v13841_v54  ;;  %v6442_v16 = vpack.c.bf16 %v13844_v26, %v13843_v40  ;;  %v6444_v17 = vpack.c.bf16 %v13848_v34, %v13847_v7  ;;  %v13851_v39 = vand.u32 4294901760, %v13413_v51  ;;  %v13885_v49 = vld [vmem:[#allocation13_spill] sm:$0xff]  ;;  %v13891_v54 = vld [vmem:[#allocation38_spill] sm:$0xff]  ;;  %v13892_v62 = vld [vmem:[#allocation43_spill] sm:$0xff] }
 0x371   : > { %7201 = vmatprep.subr.bf16.mxu1 %v7200_v15  ;;  %v6440_v21 = vpack.c.bf16 %v13840_v20, %v13839_v11  ;;  %v7210_v41 = vpack.c.bf16 %v13846_v42, %v13845_v12  ;;  %v7212_v55 = vpack.c.bf16 %v13850_v28, %v13849_v52  ;;  %v13852_v35 = vand.u32 4294901760, %v13414_v46  ;;  %v13861_v46 = vld [vmem:[#allocation177_spill] sm:$0xff]  ;;  %v13888_v11 = vld [vmem:[#allocation26_spill] sm:$0xff]  ;;  %v13889_v20 = vld [vmem:[#allocation208_spill] sm:$0xff] }
 0x372   : > { %v13853_v31 = vand.u32 4294901760, %v13415_v27  ;;  %v13855_v57 = vand.u32 4294901760, %v13854_v19  ;;  %v13856_v56 = vand.u32 4294901760, %v13417_v59  ;;  %v13858_v8 = vand.u32 4294901760, %v13857_v37  ;;  %v13867_v59 = vld [vmem:[#allocation192_spill] sm:$0xff]  ;;  %v13897_v12 = vld [vmem:[#allocation67_spill] sm:$0xff] }
 0x373   : > { %6435 = vmatpush1.bf16.msra.mxu0 %v6434_v30  ;;  %v6446_v1 = vpack.c.bf16 %v13852_v35, %v13851_v39  ;;  %v13859_v48 = vand.u32 4294901760, %v13420_v0  ;;  %v13860_v51 = vand.u32 4294901760, %v13421_v44  ;;  %v13862_v10 = vand.u32 4294901760, %v13861_v46  ;;  %v13865_v30 = vld [vmem:[#allocation186_spill] sm:$0xff]  ;;  %v13869_v0 = vld [vmem:[#allocation163_spill] sm:$0xff]  ;;  %v13870_v44 = vld [vmem:[#allocation121_spill] sm:$0xff] }
 0x374   : > { %7203 = vmatpush1.bf16.msra.mxu1 %v7202_v13  ;;  %6437 = vmatprep.subr.bf16.mxu0 %v6436_v32  ;;  %v7214_v29 = vpack.c.bf16 %v13855_v57, %v13853_v31  ;;  %v6448_v15 = vpack.c.bf16 %v13858_v8, %v13856_v56  ;;  %v13864_v5 = vand.u32 4294901760, %v13863_v43  ;;  %v13866_v14 = vand.u32 4294901760, %v13865_v30  ;;  %v13872_v13 = vld [vmem:[#allocation125_spill] sm:$0xff]  ;;  %v13894_v40 = vld [vmem:[#allocation52_spill] sm:$0xff]  ;;  %v13898_v42 = vld [vmem:[#allocation70_spill] sm:$0xff] }
 0x375   : > { %7205 = vmatprep.subr.bf16.mxu1 %v7204_v45  ;;  %v7216_v53 = vpack.c.bf16 %v13860_v51, %v13859_v48  ;;  %v13868_v63 = vand.u32 4294901760, %v13867_v59  ;;  %v13876_v32 = vld [vmem:[#allocation157_spill] sm:$0xff]  ;;  %v13880_v45 = vld [vmem:[#allocation107_spill] sm:$0xff]  ;;  %v13895_v26 = vld [vmem:[#allocation56_spill] sm:$0xff] }
 0x376   : > { %v6450_v27 = vpack.c.bf16 %v13864_v5, %v13862_v10  ;;  %v13900_v7 = vld [vmem:[#allocation79_spill] sm:$0xff]  ;;  %v13903_v52 = vld [vmem:[#allocation92_spill] sm:$0xff]  ;;  %v13904_v28 = vld [vmem:[#allocation98_spill] sm:$0xff] }
 0x377   : > { %6439 = vmatpush1.bf16.msra.mxu0 %v6438_v36  ;;  %v7218_v6 = vpack.c.bf16 %v13868_v63, %v13866_v14  ;;  %v13883_v36 = vld [vmem:[#allocation147_spill] sm:$0xff]  ;;  %v13906_v39 = vld [vmem:[#allocation169_spill] sm:$0xff]  ;;  %v13909_v31 = vld [vmem:[#allocation182_spill] sm:$0xff] }
 0x378   : > { %7207 = vmatpush1.bf16.msra.mxu1 %v7206_v60  ;;  %6441 = vmatprep.subr.bf16.mxu0 %v6440_v21  ;;  %v13887_v60 = vld [vmem:[#allocation22_spill] sm:$0xff]  ;;  %v13890_v21 = vld [vmem:[#allocation35_spill] sm:$0xff]  ;;  %v13907_v35 = vld [vmem:[#allocation173_spill] sm:$0xff] }
 0x379   : > { %7209 = vmatprep.subr.bf16.mxu1 %v7208_v61  ;;  %v13893_v61 = vld [vmem:[#allocation47_spill] sm:$0xff]  ;;  %v13913_v56 = vld [vmem:[#allocation200_spill] sm:$0xff]  ;;  %v13915_v8 = vld [vmem:[#allocation18_spill] sm:$0xff] }
 0x37a   : > { %v13901_v34 = vld [vmem:[#allocation83_spill] sm:$0xff]  ;;  %v13914_v37 = vld [vmem:[#allocation12_spill] sm:$0xff]  ;;  %v13917_v48 = vld [vmem:[#allocation34_spill] sm:$0xff] }
 0x37b   : > { %6443 = vmatpush1.bf16.msra.mxu0 %v6442_v16  ;;  %v13896_v16 = vld [vmem:[#allocation61_spill] sm:$0xff]  ;;  %v13910_v19 = vld [vmem:[#allocation187_spill] sm:$0xff]  ;;  %v13918_v51 = vld [vmem:[#allocation42_spill] sm:$0xff] }
 0x37c   : > { %7211 = vmatpush1.bf16.msra.mxu1 %v7210_v41  ;;  %6445 = vmatprep.subr.bf16.mxu0 %v6444_v17  ;;  %v13899_v41 = vld [vmem:[#allocation74_spill] sm:$0xff]  ;;  %v13902_v17 = vld [vmem:[#allocation87_spill] sm:$0xff]  ;;  %v13920_v46 = vld [vmem:[#allocation60_spill] sm:$0xff] }
 0x37d   : > { %7213 = vmatprep.subr.bf16.mxu1 %v7212_v55  ;;  %v13905_v55 = vld [vmem:[#allocation135_spill] sm:$0xff]  ;;  %v13921_v10 = vld [vmem:[#allocation69_spill] sm:$0xff]  ;;  %v13923_v5 = vld [vmem:[#allocation90_spill] sm:$0xff] }
 0x37e   : > { %v13911_v57 = vld [vmem:[#allocation191_spill] sm:$0xff]  ;;  %v13922_v43 = vld [vmem:[#allocation81_spill] sm:$0xff]  ;;  %v13925_v30 = vld [vmem:[#allocation108_spill] sm:$0xff] }
 0x37f   : > { %6447 = vmatpush1.bf16.msra.mxu0 %v6446_v1  ;;  %v13908_v1 = vld [vmem:[#allocation178_spill] sm:$0xff]  ;;  %v13926_v14 = vld [vmem:[#allocation124_spill] sm:$0xff]  ;;  %v13927_v59 = vld [vmem:[#allocation129_spill] sm:$0xff] }
 0x380   : > { %7215 = vmatpush1.bf16.msra.mxu1 %v7214_v29  ;;  %6449 = vmatprep.subr.bf16.mxu0 %v6448_v15  ;;  %v13912_v29 = vld [vmem:[#allocation195_spill] sm:$0xff]  ;;  %v13916_v15 = vld [vmem:[#allocation205_spill] sm:$0xff] }
 0x381   : > { %7217 = vmatprep.subr.bf16.mxu1 %v7216_v53  ;;  %v13919_v53 = vld [vmem:[#allocation55_spill] sm:$0xff] }
 0x382   : > { %v13928_v63 = vld [vmem:[#allocation11_spill] sm:$0xff] }
 0x383   : > { %6451 = vmatpush1.bf16.msra.mxu0 %v6450_v27  ;;  %v13924_v27 = vld [vmem:[#allocation100_spill] sm:$0xff] }
 0x384   : > { %7219 = vmatpush1.bf16.msra.mxu1 %v7218_v6  ;;  %6453 = vmatprep.subr.bf16.mxu0 %v13869_v0  ;;  %v13929_v6 = vld [vmem:[#allocation150_spill] sm:$0xff]  ;;  %v13930_v0 = vld [vmem:[#allocation156_spill] sm:$0xff] }
 0x385   : > { %7221 = vmatprep.subr.bf16.mxu1 %v13870_v44 }
 0x386   : > { %2897 = vmatmul.mubr.f32.vlgmr.msra.gmra.mrb[0].mxu0 %v13871_v22 }
 0x387   : > { %6455 = vmatpush1.bf16.msra.mxu0 %v13872_v13  ;;  %5465 = vmatmul.mubr.f32.vlgmr.msra.gmra.mrb[0].mxu1 %v13871_v22 }
 0x388   : > { %7223 = vmatpush1.bf16.msra.mxu1 %v13873_v50  ;;  %6457 = vmatprep.subr.bf16.mxu0 %v13874_v23 }
 0x389   : > { %7225 = vmatprep.subr.bf16.mxu1 %v13875_v4  ;;  %3032 = vmatprep.mubr.f32.mxu0 %v13687_v25 }
 0x38a   : > { %5600 = vmatprep.mubr.f32.mxu1 %v13687_v25  ;;  %v13886_v25 = vld [vmem:[#allocation17_spill] sm:$0xff] }
 0x38b   : > { %6459 = vmatpush1.bf16.msra.mxu0 %v13876_v32 }
 0x38c   : > { %7227 = vmatpush1.bf16.msra.mxu1 %v13877_v38  ;;  %6461 = vmatprep.subr.bf16.mxu0 %v13878_v18 }
 0x38d   : > { %7229 = vmatprep.subr.bf16.mxu1 %v13879_v2 }
 0x38f   : > { %6463 = vmatpush1.bf16.msra.mxu0 %v13880_v45 }
 0x390   : > { %7231 = vmatpush1.bf16.msra.mxu1 %v13881_v24  ;;  %6465 = vmatprep.subr.bf16.mxu0 %v13882_v47 }
 0x391   : > { %7233 = vmatprep.subr.bf16.mxu1 %v13883_v36 }
 0x393   : > { %6467 = vmatpush1.bf16.msra.mxu0 %v13884_v9 }
 0x394   : > { %7235 = vmatpush1.bf16.msra.mxu1 %v13885_v49  ;;  %6469 = vmatprep.subr.bf16.mxu0 %v13886_v25 }
 0x395   : > { %7237 = vmatprep.subr.bf16.mxu1 %v13887_v60 }
 0x397   : > { %6471 = vmatpush1.bf16.msra.mxu0 %v13888_v11 }
 0x398   : > { %7239 = vmatpush1.bf16.msra.mxu1 %v13889_v20  ;;  %6473 = vmatprep.subr.bf16.mxu0 %v13890_v21 }
 0x399   : > { %7241 = vmatprep.subr.bf16.mxu1 %v13891_v54 }
 0x39b   : > { %6475 = vmatpush1.bf16.msra.mxu0 %v13892_v62 }
 0x39c   : > { %7243 = vmatpush1.bf16.msra.mxu1 %v13893_v61  ;;  %6477 = vmatprep.subr.bf16.mxu0 %v13894_v40 }
 0x39d   : > { %7245 = vmatprep.subr.bf16.mxu1 %v13895_v26 }
 0x39f   : > { %6479 = vmatpush1.bf16.msra.mxu0 %v13896_v16 }
 0x3a0   : > { %7247 = vmatpush1.bf16.msra.mxu1 %v13897_v12  ;;  %6481 = vmatprep.subr.bf16.mxu0 %v13898_v42 }
 0x3a1   : > { %7249 = vmatprep.subr.bf16.mxu1 %v13899_v41 }
 0x3a3   : > { %6483 = vmatpush1.bf16.msra.mxu0 %v13900_v7 }
 0x3a4   : > { %7251 = vmatpush1.bf16.msra.mxu1 %v13901_v34  ;;  %6485 = vmatprep.subr.bf16.mxu0 %v13902_v17 }
 0x3a5   : > { %7253 = vmatprep.subr.bf16.mxu1 %v13903_v52 }
 0x3a7   : > { %6487 = vmatpush1.bf16.msra.mxu0 %v13904_v28 }
 0x3a8   : > { %7255 = vmatpush1.bf16.msra.mxu1 %v13905_v55  ;;  %6489 = vmatprep.subr.bf16.mxu0 %v13906_v39 }
 0x3a9   : > { %7257 = vmatprep.subr.bf16.mxu1 %v13907_v35 }
 0x3ab   : > { %6491 = vmatpush1.bf16.msra.mxu0 %v13908_v1 }
 0x3ac   : > { %7259 = vmatpush1.bf16.msra.mxu1 %v13909_v31  ;;  %6493 = vmatprep.subr.bf16.mxu0 %v13910_v19 }
 0x3ad   : > { %7261 = vmatprep.subr.bf16.mxu1 %v13911_v57 }
 0x3af   : > { %6495 = vmatpush1.bf16.msra.mxu0 %v13912_v29 }
 0x3b0   : > { %7263 = vmatpush1.bf16.msra.mxu1 %v13913_v56  ;;  %6497 = vmatprep.subr.bf16.mxu0 %v13914_v37 }
 0x3b1   : > { %7265 = vmatprep.subr.bf16.mxu1 %v13915_v8 }
 0x3b3   : > { %6499 = vmatpush1.bf16.msra.mxu0 %v13916_v15 }
 0x3b4   : > { %7267 = vmatpush1.bf16.msra.mxu1 %v13917_v48  ;;  %6501 = vmatprep.subr.bf16.mxu0 %v13918_v51 }
 0x3b5   : > { %7269 = vmatprep.subr.bf16.mxu1 %v13919_v53 }
 0x3b7   : > { %6503 = vmatpush1.bf16.msra.mxu0 %v13920_v46 }
 0x3b8   : > { %7271 = vmatpush1.bf16.msra.mxu1 %v13921_v10  ;;  %6505 = vmatprep.subr.bf16.mxu0 %v13922_v43 }
 0x3b9   : > { %7273 = vmatprep.subr.bf16.mxu1 %v13923_v5 }
 0x3bb   : > { %6507 = vmatpush1.bf16.msra.mxu0 %v13924_v27 }
 0x3bc   : > { %7275 = vmatpush1.bf16.msra.mxu1 %v13925_v30  ;;  %6509 = vmatprep.subr.bf16.mxu0 %v13926_v14 }
 0x3bd   : > { %7277 = vmatprep.subr.bf16.mxu1 %v13927_v59 }
 0x3bf   : > { %6511 = vmatpush1.bf16.msra.mxu0 %v13928_v63 }
 0x3c0   : > { %7279 = vmatpush1.bf16.msra.mxu1 %v13929_v6  ;;  %6513 = vmatprep.subr.bf16.mxu0 %v13930_v0 }
 0x3c1   : > { %7281 = vmatprep.subr.bf16.mxu1 %v13662_v33 }
 0x3c3   : > { %6515 = vmatpush1.bf16.msra.mxu0 %v13665_v58 }
 0x3c4   : > { %7283 = vmatpush1.bf16.msra.mxu1 %v13668_v3 }
 0x3c6   : > { %3034 = vmatmul.mubr.f32.vlgmr.msra.gmra.mrb[0].mxu0 %v13871_v22 }
 0x3c7   : > { %5602 = vmatmul.mubr.f32.vlgmr.msra.gmra.mrb[0].mxu1 %v13871_v22 }
 0x499   : > { %v3035_v44 = vpop.f32.mrb[0].mxu0 }
 0x49a   : > { %5608 = vst [vmem:[%s192_s17] sm:$0x3] %v3035_v44  ;;  %v5603_v58 = vpop.f32.mrb[0].mxu1  ;;  %v3037_v33 = vpop.f32.mrb[1].mxu0 }
 0x49b   : > { %5739 = vst [vmem:[%s192_s17 + $0x4] sm:$0x3] %v5603_v58  ;;  %5738 = vst [vmem:[%s192_s17 + $0x2] sm:$0x3] %v3037_v33  ;;  %v5605_v3 = vpop.f32.mrb[1].mxu1 }
 0x49c   : > { %5740 = vst [vmem:[%s192_s17 + $0x6] sm:$0x3] %v5605_v3 }
 0x49d   : > { %7480 = shalt.err (!%p7477_p5)
}
 0x49e   : > { %s7481_s23 = scalar_lea.hbm %s11272_s6, 128  ;;  %s7485_s3 = scalar_lea.hbm %s11323_s2, 256 }
 0x49f   : > { %p7482_p9 = scmp.ne.s32.totalorder %s11272_s6, %s7481_s23  ;;  %p7486_p7 = scmp.lt.u32.totalorder %s11272_s6, %s11323_s2 }
 0x4a0   : > { %p7487_p3 = scmp.lt.u32.totalorder %s7485_s3, %s7481_s23  ;;  %p7489_p4 = scmp.lt.u32.totalorder %s7481_s23, %s11272_s6 }
 0x4a1   : > { %p7483_p1 = pnand %p7482_p9, %p7674_p10 }
 0x4a2   : > { %p7488_p13 = por %p7487_p3, %p7486_p7 }
 0x4a3   : > { %p7484_p2 = pneg %p7483_p1 }
 0x4a4   : > { %p7490_p6 = por %p7489_p4, %p7488_p13 }
 0x4a6   : > { %p7491_p8 = pnand %p7490_p6, %p7484_p2 }
 0x4a8   : > { %7494 = shalt.err (!%p7491_p8)
}
 0x4a9   : > { %s7561_s16 = smov 32   ;;  %s7562_s17 = smov 2  }
 0x4aa   : > { %7334 = dma.vmem_to_hbm [thread:$0]  (%p7674_p10), %s11267_s19, 128, %s11272_s6, %s5616_s7, %s7561_s16, %s7561_s16, %s7562_s17  }
 0x4ab PF: > { %s5645_s21 = sand.u32 1, %s7533_s9   ;;  %p13931_p12 = scmp.ne.s32.totalorder %s12205_s20, 0 }
 0x4ac   : > { %p13932_p11 = scmp.ge.s32.totalorder %s7553_s14, 2  ;;  %s5646_s4 = scalar_lea.sflag [#allocation4], %s5645_s21 }
 0x4ae   : > { %p7345_p0 = pnand %p13932_p11, %p13931_p12 }
 0x4b0   : > { %7528 = dma.done.wait (!%p7345_p0), %s5646_s4, 128  }
 0x4b1   : > { %7530 = vsyncadd (!%p7345_p0), %s5646_s4, 4294967168  ;;  %s19_s14 = sadd.s32 1, %s7553_s14   ;;  %s13933_s9 = smov %s7537_s10 }
 0x4b2   : > { %p16_p5 = scmp.ge.s32.totalorder %s19_s14, 4   ;;  %s13934_s10 = smov %s7541_s11 }
 0x4b3   : > { %s13935_s11 = smov %s7683_s28  ;;  %s13936_s12 = smov %s7549_s13 }
 0x4b4   : > { %s13937_s13 = smov %s13939_s25  ;;  %18 = sbr.rel (!%p16_p5) target bundleno = 7 (0x7), region = 80 }
 0x4bb   :  { %5651 = vsyncpa [#allocation3], 1 }
 0x4bc   :  { %5653 = vsyncpa [#allocation3 + $0x1], 1 }
 0x4bd   :  { %5654 = vsyncpa [#allocation6], 1 }
 0x4be   :  { %5655 = vsyncpa [#allocation4], 1 }
 0x4bf   :  { %5657 = vsyncpa [#allocation4 + $0x1], 1 }

</bundles_post_ra>
